<compile_context>
chip_gen: v5e
topology: v5e:2x2
jax: 0.10.0
libtpu: 0.0.40
codegen_flags: <defaults>
</compile_context>

<pallas_src>
import functools

import jax
import jax.numpy as jnp
from jax.experimental import pallas as pl
from jax.experimental.pallas import tpu as pltpu


def _psa_kernel(x_ref, wqkv_ref, bqkv_ref, wp_ref, bp_ref, o_ref, *,
                num_heads, reduced_dim):
    # x_ref:    (TW, WS2, C)   tile of windows
    # wqkv_ref: (C, C + 2R)    concatenated [Wv | Wq*scale | Wk]
    # bqkv_ref: (1, C + 2R)    concatenated [bv | bq*scale | bk]
    # wp_ref:   (C, C), bp_ref: (1, C)
    TW, WS2, C = x_ref.shape
    R = reduced_dim
    Rh = R // num_heads
    Ch = C // num_heads
    cd = x_ref.dtype                      # native MXU operand dtype (bf16/f32)

    x2d = x_ref[...].reshape(TW * WS2, C)

    # Single lane-dense fused projection, f32 accumulation on the MXU.
    qkv = jnp.dot(x2d, wqkv_ref[...], preferred_element_type=jnp.float32)
    qkv = qkv + bqkv_ref[...].astype(jnp.float32)

    # V occupies lanes [0, C)  -> vreg-aligned free view.
    # Q occupies lanes [C, C+R) -> starts on a 128-lane boundary.
    v = qkv[:, :C].astype(cd).reshape(TW, WS2, C)
    q = qkv[:, C:C + R].astype(cd).reshape(TW, WS2, R)   # scale already folded in
    k = qkv[:, C + R:].astype(cd).reshape(TW, WS2, R)

    head_outs = []
    for h in range(num_heads):            # num_heads is small -> static unroll
        qh = q[:, :, h * Rh:(h + 1) * Rh]
        kh = k[:, :, h * Rh:(h + 1) * Rh]
        vh = v[:, :, h * Ch:(h + 1) * Ch]
        # scores (TW, WS2, WS2) in f32; scale was folded into Wq in the wrapper.
        s = jnp.einsum('wqd,wkd->wqk', qh, kh,
                       preferred_element_type=jnp.float32)
        s = s - jnp.max(s, axis=-1, keepdims=True)
        p = jnp.exp(s)                                    # un-normalized probs
        l = jnp.sum(p, axis=-1, keepdims=True)            # (TW, WS2, 1)
        oh = jnp.einsum('wqk,wkd->wqd', p.astype(cd), vh,
                        preferred_element_type=jnp.float32)
        # Deferred normalization on the smaller (WS2, Ch) tensor; reciprocal
        # runs on the EUP slot.
        oh = oh * pl.reciprocal(l, approx=True)
        head_outs.append(oh)

    attn_out = jnp.concatenate(head_outs, axis=-1)        # (TW, WS2, C) f32
    attn_out = attn_out.reshape(TW * WS2, C).astype(cd)

    out = jnp.dot(attn_out, wp_ref[...], preferred_element_type=jnp.float32)
    out = out + bp_ref[...].astype(jnp.float32)
    o_ref[...] = out.reshape(TW, WS2, C).astype(o_ref.dtype)


def _const_spec(shape):
    """BlockSpec for grid-invariant weights: constant index_map, single buffer."""
    idx = lambda i: (0,) * len(shape)
    try:
        return pl.BlockSpec(shape, idx, pipeline_mode=pl.Buffered(1))
    except (TypeError, AttributeError):   # older jax without pipeline_mode
        return pl.BlockSpec(shape, idx)


@functools.partial(jax.jit,
                   static_argnames=("H", "W", "num_heads", "window_size",
                                    "win_tile", "compute_dtype"))
def lightweight_psa_pallas(x, wq, bq, wk, bk, wv, bv, wp, bp, *,
                           H, W, num_heads=4, window_size=8, win_tile=16,
                           compute_dtype=None):
    """LightweightPSA forward. x: (B, N, C), N == H * W. Weights are stored
    transposed relative to torch.nn.Linear.weight, i.e. shape (in, out).
    compute_dtype (e.g. jnp.bfloat16) sets the MXU operand dtype; accumulation
    and softmax stay f32."""
    B, N, C = x.shape
    ws = window_size
    WS2 = ws * ws
    assert N == H * W, "N must equal H * W"
    assert H % ws == 0 and W % ws == 0, "H, W must be multiples of window_size"
    assert C % num_heads == 0
    R = wq.shape[1]                               # reduced_dim
    assert R % num_heads == 0
    scale = float((C // num_heads) ** (-0.5))     # torch: (dim // num_heads) ** -0.5
    out_dtype = x.dtype
    cd = jnp.dtype(compute_dtype) if compute_dtype is not None else x.dtype

    # ---- fold softmax scale into the Q projection (one-time transform) -----
    wq_s = wq * scale
    bq_s = bq * scale

    # ---- window partition (wrapper-side layout plumbing) -------------------
    xw = x.reshape(B, H // ws, ws, W // ws, ws, C)
    xw = xw.transpose(0, 1, 3, 2, 4, 5).reshape(-1, WS2, C)   # (NW, WS2, C)
    NW = xw.shape[0]

    # Pad window count so any win_tile works (no divisibility constraint).
    win_tile = max(1, min(win_tile, NW))
    num_tiles = pl.cdiv(NW, win_tile)
    NW_pad = num_tiles * win_tile
    if NW_pad != NW:
        xw = jnp.pad(xw, ((0, NW_pad - NW), (0, 0), (0, 0)))

    # Fused projection ordered [Wv | Wq | Wk]: V slice lane-0 aligned,
    # Q slice starts at lane C (128-lane vreg boundary).
    wqkv = jnp.concatenate([wv, wq_s, wk], axis=1).astype(cd)         # (C, C + 2R)
    bqkv = jnp.concatenate([bv, bq_s, bk], axis=0).reshape(1, C + 2 * R).astype(cd)
    wp_c = wp.astype(cd)
    bp2 = bp.reshape(1, C).astype(cd)
    xw = xw.astype(cd)

    kernel = functools.partial(_psa_kernel, num_heads=num_heads, reduced_dim=R)

    M = NW_pad * WS2
    isz = jnp.dtype(cd).itemsize
    osz = jnp.dtype(out_dtype).itemsize
    w_bytes = (C * (C + 2 * R) + (C + 2 * R) + C * C + C) * isz
    cost = pl.CostEstimate(
        flops=(2 * M * C * (2 * R + C)            # fused qkv projection
               + 2 * M * WS2 * (R + C)            # q @ k^T and p @ v (all heads)
               + 2 * M * C * C),                  # output projection
        transcendentals=NW_pad * num_heads * WS2 * (WS2 + 1),  # exp + reciprocal
        bytes_accessed=M * C * isz + M * C * osz + w_bytes,
    )

    # VMEM budget from actual block sizes (double-buffered tiles + weights +
    # f32 intermediates) with 2x headroom, capped at 32 MiB for v7x safety.
    tile_tokens = win_tile * WS2
    tile_in = tile_tokens * C * isz
    tile_out = tile_tokens * C * osz
    interm_f32 = (tile_tokens * (C + 2 * R)             # qkv accumulator
                  + 2 * tile_tokens * C                 # head outputs + attn_out
                  + num_heads * win_tile * WS2 * WS2) * 4
    vmem_bytes = 2 * (2 * tile_in + 2 * tile_out + 2 * w_bytes + interm_f32)
    vmem_bytes = int(min(max(vmem_bytes, 4 * 1024 * 1024), 32 * 1024 * 1024))

    out = pl.pallas_call(
        kernel,
        out_shape=jax.ShapeDtypeStruct((NW_pad, WS2, C), out_dtype),
        grid_spec=pltpu.PrefetchScalarGridSpec(
            num_scalar_prefetch=0,
            grid=(num_tiles,),
            in_specs=[
                pl.BlockSpec((win_tile, WS2, C), lambda i: (i, 0, 0)),  # x windows
                _const_spec((C, C + 2 * R)),                            # [Wv|Wq|Wk]
                _const_spec((1, C + 2 * R)),                            # [bv|bq|bk]
                _const_spec((C, C)),                                    # Wproj
                _const_spec((1, C)),                                    # bproj
            ],
            out_specs=pl.BlockSpec((win_tile, WS2, C), lambda i: (i, 0, 0)),
        ),
        compiler_params=pltpu.CompilerParams(
            dimension_semantics=("parallel",),
            vmem_limit_bytes=vmem_bytes,
        ),
        cost_estimate=cost,
    )(xw, wqkv, bqkv, wp_c, bp2)

    out = out[:NW]

    # ---- window reverse + final (B, N, C) view ------------------------------
    out = out.reshape(B, H // ws, W // ws, ws, ws, C)
    out = out.transpose(0, 1, 3, 2, 4, 5).reshape(B, N, C)
    return out


def lightweight_psa_reference(x, wq, bq, wk, bk, wv, bv, wp, bp, *,
                              H, W, num_heads, window_size):
    """Pure-JAX mirror of the PyTorch forward (high-precision matmuls)."""
    B, N, C = x.shape
    ws = window_size
    R = wq.shape[1]
    Rh = R // num_heads
    Ch = C // num_heads
    scale = (C // num_heads) ** (-0.5)
    hi = "highest"

    xw = x.reshape(B, H // ws, ws, W // ws, ws, C)
    xw = xw.transpose(0, 1, 3, 2, 4, 5).reshape(-1, ws * ws, C)
    q = (jnp.dot(xw, wq, precision=hi) + bq).reshape(-1, ws * ws, num_heads, Rh).transpose(0, 2, 1, 3)
    k = (jnp.dot(xw, wk, precision=hi) + bk).reshape(-1, ws * ws, num_heads, Rh).transpose(0, 2, 1, 3)
    v = (jnp.dot(xw, wv, precision=hi) + bv).reshape(-1, ws * ws, num_heads, Ch).transpose(0, 2, 1, 3)
    attn = jnp.einsum('whqd,whkd->whqk', q, k, precision=hi) * scale
    attn = jax.nn.softmax(attn, axis=-1)
    o = jnp.einsum('whqk,whkd->whqd', attn, v, precision=hi)
    o = o.transpose(0, 2, 1, 3).reshape(-1, ws * ws, C)
    o = o.reshape(B, H // ws, W // ws, ws, ws, C).transpose(0, 1, 3, 2, 4, 5).reshape(B, N, C)
    return jnp.dot(o, wp, precision=hi) + bp


if __name__ == "__main__":
    # Small shapes consistent with the module's forward: x (B, N, C), N = H*W.
    B, H, W = 2, 16, 16
    C = 128                      # dim (lane-dense output)
    num_heads = 4
    window_size = 8
    reduction_ratio = 4
    N = H * W

    reduced_dim = max(C // reduction_ratio, num_heads * 8)
    reduced_dim -= reduced_dim % num_heads          # -> 32

    key = jax.random.PRNGKey(0)
    ks = jax.random.split(key, 9)
    x = jax.random.normal(ks[0], (B, N, C), jnp.float32)
    # Linear weights stored transposed (in_features, out_features): y = x @ W + b
    wq = jax.random.normal(ks[1], (C, reduced_dim), jnp.float32) * 0.05
    bq = jax.random.normal(ks[2], (reduced_dim,), jnp.float32) * 0.05
    wk = jax.random.normal(ks[3], (C, reduced_dim), jnp.float32) * 0.05
    bk = jax.random.normal(ks[4], (reduced_dim,), jnp.float32) * 0.05
    wv = jax.random.normal(ks[5], (C, C), jnp.float32) * 0.05
    bv = jax.random.normal(ks[6], (C,), jnp.float32) * 0.05
    wp = jax.random.normal(ks[7], (C, C), jnp.float32) * 0.05
    bp = jax.random.normal(ks[8], (C,), jnp.float32) * 0.05

    ref = lightweight_psa_reference(x, wq, bq, wk, bk, wv, bv, wp, bp,
                                    H=H, W=W, num_heads=num_heads,
                                    window_size=window_size)

    # f32 path (win_tile=4 -> grid=2, work for both v7x TensorCores).
    out = lightweight_psa_pallas(x, wq, bq, wk, bk, wv, bv, wp, bp,
                                 H=H, W=W, num_heads=num_heads,
                                 window_size=window_size, win_tile=4)
    out = jax.block_until_ready(out)
    assert out.shape == (B, N, C), out.shape
    max_err = float(jnp.max(jnp.abs(out - ref)))
    assert jnp.allclose(out, ref, atol=5e-3, rtol=5e-3), f"f32 max abs err {max_err}"

    # bf16 MXU-operand path (biggest throughput lever per perf review);
    # f32 accumulation + softmax retained, so looser tolerance only reflects
    # operand quantization.
    out_bf16 = lightweight_psa_pallas(x, wq, bq, wk, bk, wv, bv, wp, bp,
                                      H=H, W=W, num_heads=num_heads,
                                      window_size=window_size, win_tile=4,
                                      compute_dtype=jnp.bfloat16)
    out_bf16 = jax.block_until_ready(out_bf16)
    max_err_bf16 = float(jnp.max(jnp.abs(out_bf16 - ref)))
    assert jnp.allclose(out_bf16, ref, atol=5e-2, rtol=5e-2), \
        f"bf16 max abs err {max_err_bf16}"

    print("KERNEL_OK")
</pallas_src>

<mosaic_0001>
module attributes {stable_mosaic.version = 11 : i64} {
  func.func @_psa_kernel(%arg0: i32, %arg1: memref<4x64x128xf32, #tpu.memory_space<vmem>>, %arg2: memref<128x192xf32, #tpu.memory_space<vmem>>, %arg3: memref<1x192xf32, #tpu.memory_space<vmem>>, %arg4: memref<128x128xf32, #tpu.memory_space<vmem>>, %arg5: memref<1x128xf32, #tpu.memory_space<vmem>>, %arg6: memref<4x64x128xf32, #tpu.memory_space<vmem>>) attributes {dimension_semantics = [#tpu.dimension_semantics<parallel>], iteration_bounds = array<i64: 2>, scalar_prefetch = 0 : i64, scratch_operands = 0 : i64, tpu.core_type = #tpu.core_type<tc>, window_params = [{transform_indices = @transform_0, window_bounds = array<i64: 4, 64, 128>}, {pipeline_mode = #tpu.pipeline_mode<synchronous>, transform_indices = @transform_1, window_bounds = array<i64: 128, 192>}, {pipeline_mode = #tpu.pipeline_mode<synchronous>, transform_indices = @transform_2, window_bounds = array<i64: 1, 192>}, {pipeline_mode = #tpu.pipeline_mode<synchronous>, transform_indices = @transform_3, window_bounds = array<i64: 128, 128>}, {pipeline_mode = #tpu.pipeline_mode<synchronous>, transform_indices = @transform_4, window_bounds = array<i64: 1, 128>}, {transform_indices = @transform_5, window_bounds = array<i64: 4, 64, 128>}]} {
    %c0 = arith.constant 0 : index
    %c0_0 = arith.constant 0 : index
    %c0_1 = arith.constant 0 : index
    %0 = vector.load %arg1[%c0, %c0_0, %c0_1] : memref<4x64x128xf32, #tpu.memory_space<vmem>>, vector<4x64x128xf32>
    %1 = vector.shape_cast %0 : vector<4x64x128xf32> to vector<256x128xf32>
    %c0_2 = arith.constant 0 : index
    %c0_3 = arith.constant 0 : index
    %2 = vector.load %arg2[%c0_2, %c0_3] : memref<128x192xf32, #tpu.memory_space<vmem>>, vector<128x192xf32>
    %cst = arith.constant dense<0.000000e+00> : vector<256x192xf32>
    %3 = tpu.matmul %1, %2, %cst {dimension_numbers = #tpu.dot_dimension_numbers<[1], [0], [0], [1], [0, 0, 1, 1], [], []>} : vector<256x128xf32>, vector<128x192xf32>, vector<256x192xf32> -> vector<256x192xf32>
    %c0_4 = arith.constant 0 : index
    %c0_5 = arith.constant 0 : index
    %4 = vector.load %arg3[%c0_4, %c0_5] : memref<1x192xf32, #tpu.memory_space<vmem>>, vector<1x192xf32>
    %5 = vector.broadcast %4 : vector<1x192xf32> to vector<256x192xf32>
    %6 = arith.addf %3, %5 : vector<256x192xf32>
    %7 = vector.extract_strided_slice %6 {offsets = [0, 0], sizes = [256, 128], strides = [1, 1]} : vector<256x192xf32> to vector<256x128xf32>
    %8 = vector.shape_cast %7 : vector<256x128xf32> to vector<4x64x128xf32>
    %9 = vector.extract_strided_slice %6 {offsets = [0, 128], sizes = [256, 32], strides = [1, 1]} : vector<256x192xf32> to vector<256x32xf32>
    %10 = vector.shape_cast %9 : vector<256x32xf32> to vector<4x64x32xf32>
    %11 = vector.extract_strided_slice %6 {offsets = [0, 160], sizes = [256, 32], strides = [1, 1]} : vector<256x192xf32> to vector<256x32xf32>
    %12 = vector.shape_cast %11 : vector<256x32xf32> to vector<4x64x32xf32>
    %13 = vector.extract_strided_slice %10 {offsets = [0, 0, 0], sizes = [4, 64, 8], strides = [1, 1, 1]} : vector<4x64x32xf32> to vector<4x64x8xf32>
    %14 = vector.extract_strided_slice %12 {offsets = [0, 0, 0], sizes = [4, 64, 8], strides = [1, 1, 1]} : vector<4x64x32xf32> to vector<4x64x8xf32>
    %15 = vector.extract_strided_slice %8 {offsets = [0, 0, 0], sizes = [4, 64, 32], strides = [1, 1, 1]} : vector<4x64x128xf32> to vector<4x64x32xf32>
    "tpu.trace_start"() <{level = 10 : i32, message = "wqd,wkd->wqk"}> : () -> ()
    %cst_6 = arith.constant dense<0.000000e+00> : vector<4x64x64xf32>
    %16 = tpu.matmul %13, %14, %cst_6 {dimension_numbers = #tpu.dot_dimension_numbers<[2], [2], [1], [1], [0, 0, 0, 1, 1, 1], [0], [0]>} : vector<4x64x8xf32>, vector<4x64x8xf32>, vector<4x64x64xf32> -> vector<4x64x64xf32>
    "tpu.trace_stop"() : () -> ()
    %cst_7 = arith.constant dense<0xFF800000> : vector<4x64xf32>
    %17 = vector.multi_reduction <maximumf>, %16, %cst_7 [2] : vector<4x64x64xf32> to vector<4x64xf32>
    %18 = vector.shape_cast %17 : vector<4x64xf32> to vector<4x64x1xf32>
    %19 = vector.broadcast %18 : vector<4x64x1xf32> to vector<4x64x64xf32>
    %20 = arith.subf %16, %19 : vector<4x64x64xf32>
    %21 = math.exp %20 : vector<4x64x64xf32>
    %cst_8 = arith.constant dense<0.000000e+00> : vector<4x64xf32>
    %22 = vector.multi_reduction <add>, %21, %cst_8 [2] : vector<4x64x64xf32> to vector<4x64xf32>
    %23 = vector.shape_cast %22 : vector<4x64xf32> to vector<4x64x1xf32>
    "tpu.trace_start"() <{level = 10 : i32, message = "wqk,wkd->wqd"}> : () -> ()
    %cst_9 = arith.constant dense<0.000000e+00> : vector<4x64x32xf32>
    %24 = tpu.matmul %21, %15, %cst_9 {dimension_numbers = #tpu.dot_dimension_numbers<[2], [1], [1], [2], [0, 0, 0, 1, 1, 2], [0], [0]>} : vector<4x64x64xf32>, vector<4x64x32xf32>, vector<4x64x32xf32> -> vector<4x64x32xf32>
    "tpu.trace_stop"() : () -> ()
    %25 = tpu.reciprocal %23 {approx = true} : vector<4x64x1xf32> -> vector<4x64x1xf32>
    %26 = vector.broadcast %25 : vector<4x64x1xf32> to vector<4x64x32xf32>
    %27 = arith.mulf %24, %26 : vector<4x64x32xf32>
    %28 = vector.extract_strided_slice %10 {offsets = [0, 0, 8], sizes = [4, 64, 8], strides = [1, 1, 1]} : vector<4x64x32xf32> to vector<4x64x8xf32>
    %29 = vector.extract_strided_slice %12 {offsets = [0, 0, 8], sizes = [4, 64, 8], strides = [1, 1, 1]} : vector<4x64x32xf32> to vector<4x64x8xf32>
    %30 = vector.extract_strided_slice %8 {offsets = [0, 0, 32], sizes = [4, 64, 32], strides = [1, 1, 1]} : vector<4x64x128xf32> to vector<4x64x32xf32>
    "tpu.trace_start"() <{level = 10 : i32, message = "wqd,wkd->wqk"}> : () -> ()
    %cst_10 = arith.constant dense<0.000000e+00> : vector<4x64x64xf32>
    %31 = tpu.matmul %28, %29, %cst_10 {dimension_numbers = #tpu.dot_dimension_numbers<[2], [2], [1], [1], [0, 0, 0, 1, 1, 1], [0], [0]>} : vector<4x64x8xf32>, vector<4x64x8xf32>, vector<4x64x64xf32> -> vector<4x64x64xf32>
    "tpu.trace_stop"() : () -> ()
    %cst_11 = arith.constant dense<0xFF800000> : vector<4x64xf32>
    %32 = vector.multi_reduction <maximumf>, %31, %cst_11 [2] : vector<4x64x64xf32> to vector<4x64xf32>
    %33 = vector.shape_cast %32 : vector<4x64xf32> to vector<4x64x1xf32>
    %34 = vector.broadcast %33 : vector<4x64x1xf32> to vector<4x64x64xf32>
    %35 = arith.subf %31, %34 : vector<4x64x64xf32>
    %36 = math.exp %35 : vector<4x64x64xf32>
    %cst_12 = arith.constant dense<0.000000e+00> : vector<4x64xf32>
    %37 = vector.multi_reduction <add>, %36, %cst_12 [2] : vector<4x64x64xf32> to vector<4x64xf32>
    %38 = vector.shape_cast %37 : vector<4x64xf32> to vector<4x64x1xf32>
    "tpu.trace_start"() <{level = 10 : i32, message = "wqk,wkd->wqd"}> : () -> ()
    %cst_13 = arith.constant dense<0.000000e+00> : vector<4x64x32xf32>
    %39 = tpu.matmul %36, %30, %cst_13 {dimension_numbers = #tpu.dot_dimension_numbers<[2], [1], [1], [2], [0, 0, 0, 1, 1, 2], [0], [0]>} : vector<4x64x64xf32>, vector<4x64x32xf32>, vector<4x64x32xf32> -> vector<4x64x32xf32>
    "tpu.trace_stop"() : () -> ()
    %40 = tpu.reciprocal %38 {approx = true} : vector<4x64x1xf32> -> vector<4x64x1xf32>
    %41 = vector.broadcast %40 : vector<4x64x1xf32> to vector<4x64x32xf32>
    %42 = arith.mulf %39, %41 : vector<4x64x32xf32>
    %43 = vector.extract_strided_slice %10 {offsets = [0, 0, 16], sizes = [4, 64, 8], strides = [1, 1, 1]} : vector<4x64x32xf32> to vector<4x64x8xf32>
    %44 = vector.extract_strided_slice %12 {offsets = [0, 0, 16], sizes = [4, 64, 8], strides = [1, 1, 1]} : vector<4x64x32xf32> to vector<4x64x8xf32>
    %45 = vector.extract_strided_slice %8 {offsets = [0, 0, 64], sizes = [4, 64, 32], strides = [1, 1, 1]} : vector<4x64x128xf32> to vector<4x64x32xf32>
    "tpu.trace_start"() <{level = 10 : i32, message = "wqd,wkd->wqk"}> : () -> ()
    %cst_14 = arith.constant dense<0.000000e+00> : vector<4x64x64xf32>
    %46 = tpu.matmul %43, %44, %cst_14 {dimension_numbers = #tpu.dot_dimension_numbers<[2], [2], [1], [1], [0, 0, 0, 1, 1, 1], [0], [0]>} : vector<4x64x8xf32>, vector<4x64x8xf32>, vector<4x64x64xf32> -> vector<4x64x64xf32>
    "tpu.trace_stop"() : () -> ()
    %cst_15 = arith.constant dense<0xFF800000> : vector<4x64xf32>
    %47 = vector.multi_reduction <maximumf>, %46, %cst_15 [2] : vector<4x64x64xf32> to vector<4x64xf32>
    %48 = vector.shape_cast %47 : vector<4x64xf32> to vector<4x64x1xf32>
    %49 = vector.broadcast %48 : vector<4x64x1xf32> to vector<4x64x64xf32>
    %50 = arith.subf %46, %49 : vector<4x64x64xf32>
    %51 = math.exp %50 : vector<4x64x64xf32>
    %cst_16 = arith.constant dense<0.000000e+00> : vector<4x64xf32>
    %52 = vector.multi_reduction <add>, %51, %cst_16 [2] : vector<4x64x64xf32> to vector<4x64xf32>
    %53 = vector.shape_cast %52 : vector<4x64xf32> to vector<4x64x1xf32>
    "tpu.trace_start"() <{level = 10 : i32, message = "wqk,wkd->wqd"}> : () -> ()
    %cst_17 = arith.constant dense<0.000000e+00> : vector<4x64x32xf32>
    %54 = tpu.matmul %51, %45, %cst_17 {dimension_numbers = #tpu.dot_dimension_numbers<[2], [1], [1], [2], [0, 0, 0, 1, 1, 2], [0], [0]>} : vector<4x64x64xf32>, vector<4x64x32xf32>, vector<4x64x32xf32> -> vector<4x64x32xf32>
    "tpu.trace_stop"() : () -> ()
    %55 = tpu.reciprocal %53 {approx = true} : vector<4x64x1xf32> -> vector<4x64x1xf32>
    %56 = vector.broadcast %55 : vector<4x64x1xf32> to vector<4x64x32xf32>
    %57 = arith.mulf %54, %56 : vector<4x64x32xf32>
    %58 = vector.extract_strided_slice %10 {offsets = [0, 0, 24], sizes = [4, 64, 8], strides = [1, 1, 1]} : vector<4x64x32xf32> to vector<4x64x8xf32>
    %59 = vector.extract_strided_slice %12 {offsets = [0, 0, 24], sizes = [4, 64, 8], strides = [1, 1, 1]} : vector<4x64x32xf32> to vector<4x64x8xf32>
    %60 = vector.extract_strided_slice %8 {offsets = [0, 0, 96], sizes = [4, 64, 32], strides = [1, 1, 1]} : vector<4x64x128xf32> to vector<4x64x32xf32>
    "tpu.trace_start"() <{level = 10 : i32, message = "wqd,wkd->wqk"}> : () -> ()
    %cst_18 = arith.constant dense<0.000000e+00> : vector<4x64x64xf32>
    %61 = tpu.matmul %58, %59, %cst_18 {dimension_numbers = #tpu.dot_dimension_numbers<[2], [2], [1], [1], [0, 0, 0, 1, 1, 1], [0], [0]>} : vector<4x64x8xf32>, vector<4x64x8xf32>, vector<4x64x64xf32> -> vector<4x64x64xf32>
    "tpu.trace_stop"() : () -> ()
    %cst_19 = arith.constant dense<0xFF800000> : vector<4x64xf32>
    %62 = vector.multi_reduction <maximumf>, %61, %cst_19 [2] : vector<4x64x64xf32> to vector<4x64xf32>
    %63 = vector.shape_cast %62 : vector<4x64xf32> to vector<4x64x1xf32>
    %64 = vector.broadcast %63 : vector<4x64x1xf32> to vector<4x64x64xf32>
    %65 = arith.subf %61, %64 : vector<4x64x64xf32>
    %66 = math.exp %65 : vector<4x64x64xf32>
    %cst_20 = arith.constant dense<0.000000e+00> : vector<4x64xf32>
    %67 = vector.multi_reduction <add>, %66, %cst_20 [2] : vector<4x64x64xf32> to vector<4x64xf32>
    %68 = vector.shape_cast %67 : vector<4x64xf32> to vector<4x64x1xf32>
    "tpu.trace_start"() <{level = 10 : i32, message = "wqk,wkd->wqd"}> : () -> ()
    %cst_21 = arith.constant dense<0.000000e+00> : vector<4x64x32xf32>
    %69 = tpu.matmul %66, %60, %cst_21 {dimension_numbers = #tpu.dot_dimension_numbers<[2], [1], [1], [2], [0, 0, 0, 1, 1, 2], [0], [0]>} : vector<4x64x64xf32>, vector<4x64x32xf32>, vector<4x64x32xf32> -> vector<4x64x32xf32>
    "tpu.trace_stop"() : () -> ()
    %70 = tpu.reciprocal %68 {approx = true} : vector<4x64x1xf32> -> vector<4x64x1xf32>
    %71 = vector.broadcast %70 : vector<4x64x1xf32> to vector<4x64x32xf32>
    %72 = arith.mulf %69, %71 : vector<4x64x32xf32>
    %73 = tpu.concatenate %27, %42, %57, %72 in 2 : vector<4x64x32xf32>, vector<4x64x32xf32>, vector<4x64x32xf32>, vector<4x64x32xf32> -> vector<4x64x128xf32>
    %74 = vector.shape_cast %73 : vector<4x64x128xf32> to vector<256x128xf32>
    %c0_22 = arith.constant 0 : index
    %c0_23 = arith.constant 0 : index
    %75 = vector.load %arg4[%c0_22, %c0_23] : memref<128x128xf32, #tpu.memory_space<vmem>>, vector<128x128xf32>
    %cst_24 = arith.constant dense<0.000000e+00> : vector<256x128xf32>
    %76 = tpu.matmul %74, %75, %cst_24 {dimension_numbers = #tpu.dot_dimension_numbers<[1], [0], [0], [1], [0, 0, 1, 1], [], []>} : vector<256x128xf32>, vector<128x128xf32>, vector<256x128xf32> -> vector<256x128xf32>
    %c0_25 = arith.constant 0 : index
    %c0_26 = arith.constant 0 : index
    %77 = vector.load %arg5[%c0_25, %c0_26] : memref<1x128xf32, #tpu.memory_space<vmem>>, vector<1x128xf32>
    %78 = vector.broadcast %77 : vector<1x128xf32> to vector<256x128xf32>
    %79 = arith.addf %76, %78 : vector<256x128xf32>
    %80 = vector.shape_cast %79 : vector<256x128xf32> to vector<4x64x128xf32>
    %c0_27 = arith.constant 0 : index
    %c0_28 = arith.constant 0 : index
    %c0_29 = arith.constant 0 : index
    %81 = vector.load %arg6[%c0_27, %c0_28, %c0_29] : memref<4x64x128xf32, #tpu.memory_space<vmem>>, vector<4x64x128xf32>
    tpu.vector_store %arg6[%c0_27, %c0_28, %c0_29], %80 {strides = array<i32>} : memref<4x64x128xf32, #tpu.memory_space<vmem>>, vector<4x64x128xf32>,
    return
  }
  func.func @transform_0(%arg0: i32) -> (i32, i32, i32) {
    %c0_i32 = arith.constant 0 : i32
    %c0_i32_0 = arith.constant 0 : i32
    %c0_i32_1 = arith.constant 0 : i32
    return %arg0, %c0_i32, %c0_i32_0 : i32, i32, i32
  }
  func.func @transform_1(%arg0: i32) -> (i32, i32) {
    %c0_i32 = arith.constant 0 : i32
    %c0_i32_0 = arith.constant 0 : i32
    %c0_i32_1 = arith.constant 0 : i32
    return %c0_i32, %c0_i32_0 : i32, i32
  }
  func.func @transform_2(%arg0: i32) -> (i32, i32) {
    %c0_i32 = arith.constant 0 : i32
    %c0_i32_0 = arith.constant 0 : i32
    %c0_i32_1 = arith.constant 0 : i32
    return %c0_i32, %c0_i32_0 : i32, i32
  }
  func.func @transform_3(%arg0: i32) -> (i32, i32) {
    %c0_i32 = arith.constant 0 : i32
    %c0_i32_0 = arith.constant 0 : i32
    %c0_i32_1 = arith.constant 0 : i32
    return %c0_i32, %c0_i32_0 : i32, i32
  }
  func.func @transform_4(%arg0: i32) -> (i32, i32) {
    %c0_i32 = arith.constant 0 : i32
    %c0_i32_0 = arith.constant 0 : i32
    %c0_i32_1 = arith.constant 0 : i32
    return %c0_i32, %c0_i32_0 : i32, i32
  }
  func.func @transform_5(%arg0: i32) -> (i32, i32, i32) {
    %c0_i32 = arith.constant 0 : i32
    %c0_i32_0 = arith.constant 0 : i32
    %c0_i32_1 = arith.constant 0 : i32
    return %arg0, %c0_i32, %c0_i32_0 : i32, i32, i32
  }
}

</mosaic_0001>

<bundles_post_ra>
// kernel: lightweight_psa_pallas.1
= control target key start
LH: loop header
LB: loop body
LE: loop exit
PB: predicated region body
PF: predicated region fallthrough
CT: control target
= control target key end

     0   :  { %s7127_s18 = smov 0   ;;  %s11374_s0 = inlined_call_operand.vmem [shape: f32[8,64,128], index: 0, kind: input, shape index: {}]   ;;  %s11375_s1 = inlined_call_operand.vmem [shape: f32[128,192], index: 1, kind: input, shape index: {}]   ;;  %s11376_s2 = inlined_call_operand.vmem [shape: f32[1,192], index: 2, kind: input, shape index: {}]   ;;  %s11377_s3 = inlined_call_operand.vmem [shape: f32[128,128], index: 3, kind: input, shape index: {}]   ;;  %s11378_s4 = inlined_call_operand.vmem [shape: f32[1,128], index: 4, kind: input, shape index: {}]   ;;  %s11379_s5 = inlined_call_operand.vmem [shape: f32[8,64,128], index: 5, kind: output, shape index: {}]  }
   0x1 LB: > { %s5652_s19 = sadd.s32 4294967295, %s7086_s18   ;;  %p5656_p0 = scmp.ge.s32.totalorder %s7086_s18, 1  ;;  %s7086_s18 = sphi %s7127_s18, %s15_s18  }
   0x2   : > { %p189_p1 = scmp.lt.s32.totalorder %s7086_s18, 3 }
   0x4   : > { %p190_p2 = pnand %p5656_p0, %p189_p1 }
   0x6   : > { %193 = sbr.rel (%p190_p2) target bundleno = 3916 (0xf4c), region = 40 }
   0xb   : > { %v295_v0 = vld [vmem:[%s11375_s1 + $0xf0] sm:$0xff]  ;;  %v293_v1 = vld [vmem:[%s11375_s1 + $0xe0] sm:$0xff]  ;;  %s5657_s11 = sshll.u32 %s5652_s19, 2  ;;  %v296_v20 = vld [vmem:[%s11375_s1 + $0xf8] sm:$0xff]  ;;  %s7088_s22 = smov 96   ;;  %vm553_vm0 = vcmask 64512  }
   0xc   : > { %303 = vmatpush.msra.mxu0 %v295_v0  ;;  %6051 = vmatpush.msra.mxu1 %v295_v0  ;;  %v291_v2 = vld [vmem:[%s11375_s1 + $0xd0] sm:$0xff]  ;;  %v289_v3 = vld [vmem:[%s11375_s1 + $0xc0] sm:$0xff]  ;;  %p220_p3 = scmp.lt.s32.totalorder %s5657_s11, 7  ;;  %v294_v21 = vld [vmem:[%s11375_s1 + $0xe8] sm:$0xff]  ;;  %s7089_s23 = smov 88   ;;  %vm918_vm1 = vcmask 523264  }
   0xd   : > { %6052 = vmatpush.msra.mxu2 %v295_v0  ;;  %6053 = vmatpush.msra.mxu3 %v295_v0  ;;  %v287_v4 = vld [vmem:[%s11375_s1 + $0xb0] sm:$0xff]  ;;  %v285_v5 = vld [vmem:[%s11375_s1 + $0xa0] sm:$0xff]  ;;  %v292_v22 = vld [vmem:[%s11375_s1 + $0xd8] sm:$0xff]  ;;  %s7090_s24 = smov 120   ;;  %s7091_s26 = smov 112   ;;  %vm5331_vm2 = vcmask 261120  }
   0xe   : > { %304 = vmatpush.msra.mxu0 %v293_v1  ;;  %6054 = vmatpush.msra.mxu1 %v293_v1  ;;  %v283_v6 = vld [vmem:[%s11375_s1 + $0x90] sm:$0xff]  ;;  %v281_v7 = vld [vmem:[%s11375_s1 + $0x80] sm:$0xff]  ;;  %s12177_s11 = smov (!%p220_p3, %s5657_s11), 7  ;;  %v290_v27 = vld [vmem:[%s11375_s1 + $0xc8] sm:$0xff]  ;;  %s7092_s27 = smov 80   ;;  %vm5396_vm3 = vcmask 785408  }
   0xf   : > { %6055 = vmatpush.msra.mxu2 %v293_v1  ;;  %6056 = vmatpush.msra.mxu3 %v293_v1  ;;  %v279_v8 = vld [vmem:[%s11375_s1 + $0x70] sm:$0xff]  ;;  %v277_v9 = vld [vmem:[%s11375_s1 + $0x60] sm:$0xff]  ;;  %s6049_s25 = sshll.u32 %s12177_s11, 6  ;;  %v288_v28 = vld [vmem:[%s11375_s1 + $0xb8] sm:$0xff]  ;;  %s7093_s28 = smov 64  }
  0x10   : > { %305 = vmatpush.msra.mxu0 %v291_v2  ;;  %6057 = vmatpush.msra.mxu1 %v291_v2  ;;  %v275_v10 = vld [vmem:[%s11375_s1 + $0x50] sm:$0xff]  ;;  %v273_v11 = vld [vmem:[%s11375_s1 + $0x40] sm:$0xff]  ;;  %s7190_s30 = scalar_lea.vmem %s11374_s0, %s6049_s25  ;;  %v286_v29 = vld [vmem:[%s11375_s1 + $0xa8] sm:$0xff]  ;;  %s7094_s29 = smov 72  }
  0x11   : > { %6058 = vmatpush.msra.mxu2 %v291_v2  ;;  %6059 = vmatpush.msra.mxu3 %v291_v2  ;;  %v271_v12 = vld [vmem:[%s11375_s1 + $0x30] sm:$0xff]  ;;  %v269_v13 = vld [vmem:[%s11375_s1 + $0x20] sm:$0xff]  ;;  %v7221_v23 = vld [vmem:[%s7190_s30 + $0x8] sm:$0xff]  ;;  %s7095_s6 = smov 104   ;;  %s7096_s7 = smov 32  }
  0x12   : > { %306 = vmatpush.msra.mxu0 %v289_v3  ;;  %6060 = vmatpush.msra.mxu1 %v289_v3  ;;  %v267_v14 = vld [vmem:[%s11375_s1 + $0x10] sm:$0xff]  ;;  %v265_v15 = vld [vmem:[%s11375_s1] sm:$0xff]  ;;  %v7224_v24 = vld [vmem:[%s7190_s30 + $0x48] sm:$0xff] }
  0x13   : > { %6061 = vmatpush.msra.mxu2 %v289_v3  ;;  %6062 = vmatpush.msra.mxu3 %v289_v3  ;;  %v7196_v16 = vld [vmem:[%s7190_s30] sm:$0xff]  ;;  %v7227_v25 = vld [vmem:[%s7190_s30 + $0x88] sm:$0xff]  ;;  %v7246_v30 = vld [vmem:[%s7190_s30 + $0x10] sm:$0xff] }
  0x14   : > { %307 = vmatpush.msra.mxu0 %v287_v4  ;;  %6063 = vmatpush.msra.mxu1 %v287_v4  ;;  %v7199_v17 = vld [vmem:[%s7190_s30 + $0x40] sm:$0xff]  ;;  %v7230_v26 = vld [vmem:[%s7190_s30 + $0xc8] sm:$0xff]  ;;  %v7249_v31 = vld [vmem:[%s7190_s30 + $0x50] sm:$0xff] }
  0x15   : > { %6064 = vmatpush.msra.mxu2 %v287_v4  ;;  %6065 = vmatpush.msra.mxu3 %v287_v4  ;;  %v7202_v18 = vld [vmem:[%s7190_s30 + $0x80] sm:$0xff]  ;;  %v7252_v32 = vld [vmem:[%s7190_s30 + $0x90] sm:$0xff]  ;;  %v284_v34 = vld [vmem:[%s11375_s1 + $0x98] sm:$0xff] }
  0x16   : > { %308 = vmatpush.msra.mxu0 %v285_v5  ;;  %6066 = vmatpush.msra.mxu1 %v285_v5  ;;  %v7205_v19 = vld [vmem:[%s7190_s30 + $0xc0] sm:$0xff]  ;;  %v7255_v33 = vld [vmem:[%s7190_s30 + $0xd0] sm:$0xff]  ;;  %v282_v35 = vld [vmem:[%s11375_s1 + $0x88] sm:$0xff] }
  0x17   : > { %6067 = vmatpush.msra.mxu2 %v285_v5  ;;  %6068 = vmatpush.msra.mxu3 %v285_v5  ;;  %v280_v36 = vld [vmem:[%s11375_s1 + $0x78] sm:$0xff]  ;;  %v278_v41 = vld [vmem:[%s11375_s1 + $0x68] sm:$0xff]  ;;  %v237_v44 = vld [vmem:[%s7190_s30 + $0x20] sm:$0xff] }
  0x18   : > { %309 = vmatpush.msra.mxu0 %v283_v6  ;;  %6069 = vmatpush.msra.mxu1 %v283_v6  ;;  %v236_v37 = vld [vmem:[%s7190_s30 + $0x18] sm:$0xff]  ;;  %v274_v43 = vld [vmem:[%s11375_s1 + $0x48] sm:$0xff]  ;;  %v7294_v45 = vld [vmem:[%s7190_s30 + $0x60] sm:$0xff] }
  0x19   : > { %6070 = vmatpush.msra.mxu2 %v283_v6  ;;  %6071 = vmatpush.msra.mxu3 %v283_v6  ;;  %v7272_v38 = vld [vmem:[%s7190_s30 + $0x58] sm:$0xff]  ;;  %v7297_v46 = vld [vmem:[%s7190_s30 + $0xa0] sm:$0xff]  ;;  %v270_v49 = vld [vmem:[%s11375_s1 + $0x28] sm:$0xff] }
  0x1a   : > { %310 = vmatpush.msra.mxu0 %v281_v7  ;;  %6072 = vmatpush.msra.mxu1 %v281_v7  ;;  %v7275_v39 = vld [vmem:[%s7190_s30 + $0x98] sm:$0xff]  ;;  %v7300_v47 = vld [vmem:[%s7190_s30 + $0xe0] sm:$0xff]  ;;  %v238_v51 = vld [vmem:[%s7190_s30 + $0x28] sm:$0xff] }
  0x1b   : > { %6073 = vmatpush.msra.mxu2 %v281_v7  ;;  %6074 = vmatpush.msra.mxu3 %v281_v7  ;;  %v7278_v40 = vld [vmem:[%s7190_s30 + $0xd8] sm:$0xff]  ;;  %v7316_v52 = vld [vmem:[%s7190_s30 + $0x68] sm:$0xff]  ;;  %v239_v56 = vld [vmem:[%s7190_s30 + $0x30] sm:$0xff] }
  0x1c   : > { %311 = vmatpush.msra.mxu0 %v279_v8  ;;  %6075 = vmatpush.msra.mxu1 %v279_v8  ;;  %v276_v42 = vld [vmem:[%s11375_s1 + $0x58] sm:$0xff]  ;;  %v7319_v53 = vld [vmem:[%s7190_s30 + $0xa8] sm:$0xff]  ;;  %v7332_v57 = vld [vmem:[%s7190_s30 + $0x70] sm:$0xff] }
  0x1d   : > { %6076 = vmatpush.msra.mxu2 %v279_v8  ;;  %6077 = vmatpush.msra.mxu3 %v279_v8  ;;  %v272_v48 = vld [vmem:[%s11375_s1 + $0x38] sm:$0xff]  ;;  %v7322_v54 = vld [vmem:[%s7190_s30 + $0xe8] sm:$0xff]  ;;  %v7335_v58 = vld [vmem:[%s7190_s30 + $0xb0] sm:$0xff] }
  0x1e   : > { %312 = vmatpush.msra.mxu0 %v277_v9  ;;  %6078 = vmatpush.msra.mxu1 %v277_v9  ;;  %v268_v50 = vld [vmem:[%s11375_s1 + $0x18] sm:$0xff]  ;;  %v266_v55 = vld [vmem:[%s11375_s1 + $0x8] sm:$0xff]  ;;  %v7338_v59 = vld [vmem:[%s7190_s30 + $0xf0] sm:$0xff] }
  0x1f   : > { %6079 = vmatpush.msra.mxu2 %v277_v9  ;;  %6080 = vmatpush.msra.mxu3 %v277_v9  ;;  %v240_v60 = vld [vmem:[%s7190_s30 + $0x38] sm:$0xff]  ;;  %v7362_v2 = vld [vmem:[%s11376_s2] sm:$0x3] }
  0x20   : > { %313 = vmatpush.msra.mxu0 %v275_v10  ;;  %6081 = vmatpush.msra.mxu1 %v275_v10  ;;  %v7345_v61 = vld [vmem:[%s7190_s30 + $0x78] sm:$0xff]  ;;  %v7366_v3 = vperm.slane %v7362_v2, 0 }
  0x21   : > { %6082 = vmatpush.msra.mxu2 %v275_v10  ;;  %6083 = vmatpush.msra.mxu3 %v275_v10  ;;  %v7348_v62 = vld [vmem:[%s7190_s30 + $0xb8] sm:$0xff] }
  0x22   : > { %314 = vmatpush.msra.mxu0 %v273_v11  ;;  %6084 = vmatpush.msra.mxu1 %v273_v11  ;;  %v7351_v63 = vld [vmem:[%s7190_s30 + $0xf8] sm:$0xff] }
  0x23   : > { %6085 = vmatpush.msra.mxu2 %v273_v11  ;;  %6086 = vmatpush.msra.mxu3 %v273_v11 }
  0x24   : > { %315 = vmatpush.msra.mxu0 %v271_v12  ;;  %6087 = vmatpush.msra.mxu1 %v271_v12 }
  0x25   : > { %6088 = vmatpush.msra.mxu2 %v271_v12  ;;  %6089 = vmatpush.msra.mxu3 %v271_v12 }
  0x26   : > { %316 = vmatpush.msra.mxu0 %v269_v13  ;;  %6090 = vmatpush.msra.mxu1 %v269_v13 }
  0x27   : > { %6091 = vmatpush.msra.mxu2 %v269_v13  ;;  %6092 = vmatpush.msra.mxu3 %v269_v13 }
  0x28   : > { %317 = vmatpush.msra.mxu0 %v267_v14  ;;  %6093 = vmatpush.msra.mxu1 %v267_v14 }
  0x29   : > { %6094 = vmatpush.msra.mxu2 %v267_v14  ;;  %6095 = vmatpush.msra.mxu3 %v267_v14 }
  0x2a   : > { %318 = vmatpush.msra.mxu0 %v265_v15  ;;  %6096 = vmatpush.msra.mxu1 %v265_v15 }
  0x2b   : > { %6097 = vmatpush.msra.mxu2 %v265_v15  ;;  %6098 = vmatpush.msra.mxu3 %v265_v15 }
  0x2c   : > { %319 = vmatmul.f32.vlgmr.msra.gmra.mxu0 %v7196_v16  ;;  %343 = vmatmul.f32.vlgmr.msra.gmra.mxu1 %v7199_v17 }
  0x2d   : > { %367 = vmatmul.f32.vlgmr.msra.gmra.mxu2 %v7202_v18  ;;  %391 = vmatmul.f32.vlgmr.msra.gmra.mxu3 %v7205_v19 }
  0x2e   : > { %416 = vmatpush.msrb.mxu1 %v296_v20 }
  0x30   : > { %417 = vmatpush.msrb.mxu1 %v294_v21 }
  0x32   : > { %418 = vmatpush.msrb.mxu1 %v292_v22 }
  0x34   : > { %322 = vmatmul.f32.gmra.mxu0 %v7221_v23  ;;  %346 = vmatmul.f32.gmra.mxu1 %v7224_v24 }
  0x35   : > { %370 = vmatmul.f32.gmra.mxu2 %v7227_v25  ;;  %394 = vmatmul.f32.gmra.mxu3 %v7230_v26 }
  0x36   : > { %419 = vmatpush.msrb.mxu1 %v290_v27 }
  0x38   : > { %420 = vmatpush.msrb.mxu1 %v288_v28 }
  0x3a   : > { %421 = vmatpush.msrb.mxu1 %v286_v29 }
  0x3c   : > { %325 = vmatmul.f32.gmra.mxu0 %v7246_v30  ;;  %349 = vmatmul.f32.gmra.mxu1 %v7249_v31 }
  0x3d   : > { %373 = vmatmul.f32.gmra.mxu2 %v7252_v32  ;;  %397 = vmatmul.f32.gmra.mxu3 %v7255_v33 }
  0x3e   : > { %422 = vmatpush.msrb.mxu1 %v284_v34 }
  0x40   : > { %423 = vmatpush.msrb.mxu1 %v282_v35 }
  0x42   : > { %424 = vmatpush.msrb.mxu1 %v280_v36 }
  0x44   : > { %328 = vmatmul.f32.gmra.mxu0 %v236_v37  ;;  %352 = vmatmul.f32.gmra.mxu1 %v7272_v38 }
  0x45   : > { %376 = vmatmul.f32.gmra.mxu2 %v7275_v39  ;;  %400 = vmatmul.f32.gmra.mxu3 %v7278_v40 }
  0x46   : > { %425 = vmatpush.msrb.mxu1 %v278_v41 }
  0x48   : > { %426 = vmatpush.msrb.mxu1 %v276_v42 }
  0x4a   : > { %427 = vmatpush.msrb.mxu1 %v274_v43 }
  0x4c   : > { %331 = vmatmul.f32.gmra.mxu0 %v237_v44  ;;  %355 = vmatmul.f32.gmra.mxu1 %v7294_v45 }
  0x4d   : > { %379 = vmatmul.f32.gmra.mxu2 %v7297_v46  ;;  %403 = vmatmul.f32.gmra.mxu3 %v7300_v47 }
  0x4e   : > { %428 = vmatpush.msrb.mxu1 %v272_v48 }
  0x50   : > { %429 = vmatpush.msrb.mxu1 %v270_v49 }
  0x52   : > { %430 = vmatpush.msrb.mxu1 %v268_v50 }
  0x54   : > { %334 = vmatmul.f32.gmra.mxu0 %v238_v51  ;;  %358 = vmatmul.f32.gmra.mxu1 %v7316_v52 }
  0x55   : > { %382 = vmatmul.f32.gmra.mxu2 %v7319_v53  ;;  %406 = vmatmul.f32.gmra.mxu3 %v7322_v54 }
  0x56   : > { %431 = vmatpush.msrb.mxu1 %v266_v55 }
  0x5c   : > { %337 = vmatmul.f32.gmra.mxu0 %v239_v56  ;;  %361 = vmatmul.f32.gmra.mxu1 %v7332_v57 }
  0x5d   : > { %385 = vmatmul.f32.gmra.mxu2 %v7335_v58  ;;  %409 = vmatmul.f32.gmra.mxu3 %v7338_v59 }
  0x64   : > { %340 = vmatmul.f32.gmra.mxu0 %v240_v60  ;;  %364 = vmatmul.f32.gmra.mxu1 %v7345_v61 }
  0x65   : > { %388 = vmatmul.f32.gmra.mxu2 %v7348_v62  ;;  %412 = vmatmul.f32.gmra.mxu3 %v7351_v63 }
  0x6c   : > { %432 = vmatmul.f32.vlgmr.msrb.gmra.mxu1 %v7196_v16 }
  0x74   : > { %435 = vmatmul.f32.gmra.mxu1 %v7221_v23 }
  0x7c   : > { %438 = vmatmul.f32.gmra.mxu1 %v7246_v30 }
  0x84   : > { %441 = vmatmul.f32.gmra.mxu1 %v236_v37 }
  0x8c   : > { %444 = vmatmul.f32.gmra.mxu1 %v237_v44 }
  0x94   : > { %447 = vmatmul.f32.gmra.mxu1 %v238_v51 }
  0x9c   : > { %450 = vmatmul.f32.gmra.mxu1 %v239_v56 }
  0xa4   : > { %453 = vmatmul.f32.gmra.mxu1 %v240_v60 }
  0xa9   : > { %v320_v0 = vpop.f32.mrf.mxu0  ;;  %v344_v1 = vpop.f32.mrf.mxu1 }
  0xaa   : > { %v7369_v4 = vadd.f32 %v320_v0, %v7366_v3  ;;  %v7397_v22 = vadd.f32 %v344_v1, %v7366_v3 }
  0xac   : > { %456 = vmatmul.f32.gmra.mxu1 %v7199_v17  ;;  %11531 = vst [vmem:[#allocation2_spill] sm:$0xff] %v7369_v4 }
  0xad   : > { %11539 = vst [vmem:[#allocation10_spill] sm:$0xff] %v7397_v22 }
  0xb0   : > { %v368_v5 = vpop.f32.mrf.mxu2  ;;  %v392_v6 = vpop.f32.mrf.mxu3 }
  0xb1   : > { %v323_v7 = vpop.f32.mrf.mxu0  ;;  %v347_v8 = vpop.f32.mrf.mxu1  ;;  %v7382_v11 = vadd.f32 %v392_v6, %v7366_v3  ;;  %v7388_v15 = vadd.f32 %v368_v5, %v7366_v3 }
  0xb2   : > { %v7372_v9 = vadd.f32 %v323_v7, %v7366_v3  ;;  %v7385_v12 = vadd.f32 %v347_v8, %v7366_v3 }
  0xb3   : > { %11534 = vst [vmem:[#allocation5_spill] sm:$0xff] %v7382_v11 }
  0xb4   : > { %11532 = vst [vmem:[#allocation3_spill] sm:$0xff] %v7372_v9  ;;  %v7376_v10 = vpack.i.bf16 %v7372_v9, %v7369_v4  ;;  %459 = vmatmul.f32.gmra.mxu1 %v7224_v24  ;;  %v7409_v27 = vpack.i.bf16 %v7385_v12, %v7397_v22 }
  0xb5   : > { %11535 = vst [vmem:[#allocation6_spill] sm:$0xff] %v7385_v12 }
  0xb6   : > { %11533 = vst [vmem:[#allocation4_spill] sm:$0xff] %v7376_v10  ;;  %6117 = vrot.lane.b32.xlu1 %v7376_v10, %s7088_s22 }
  0xb7   : > { %11536 = vst [vmem:[#allocation7_spill] sm:$0xff] %v7388_v15 }
  0xb8   : > { %v371_v13 = vpop.f32.mrf.mxu2  ;;  %v395_v14 = vpop.f32.mrf.mxu3  ;;  %11542 = vst [vmem:[#allocation13_spill] sm:$0xff] %v7409_v27 }
  0xb9   : > { %v7391_v16 = vadd.f32 %v371_v13, %v7366_v3  ;;  %v7394_v17 = vadd.f32 %v395_v14, %v7366_v3  ;;  %v326_v20 = vpop.f32.mrf.mxu0  ;;  %v350_v21 = vpop.f32.mrf.mxu1 }
  0xba   : > { %v7419_v28 = vadd.f32 %v326_v20, %v7366_v3  ;;  %v7422_v36 = vadd.f32 %v350_v21, %v7366_v3 }
  0xbb   : > { %11537 = vst [vmem:[#allocation8_spill] sm:$0xff] %v7391_v16  ;;  %v7401_v23 = vpack.i.bf16 %v7394_v17, %v7382_v11  ;;  %v7405_v24 = vpack.i.bf16 %v7391_v16, %v7388_v15 }
  0xbc   : > { %11538 = vst [vmem:[#allocation9_spill] sm:$0xff] %v7394_v17  ;;  %462 = vmatmul.f32.gmra.mxu1 %v7249_v31 }
  0xbd   : > { %11540 = vst [vmem:[#allocation11_spill] sm:$0xff] %v7401_v23  ;;  %6132 = vrot.lane.b32.xlu0 %v7401_v23, %s7088_s22  ;;  %6127 = vrot.lane.b32.xlu2 %v7405_v24, %s7088_s22 }
  0xbe   : > { %11541 = vst [vmem:[#allocation12_spill] sm:$0xff] %v7405_v24  ;;  %6122 = vrot.lane.b32.xlu1 %v7409_v27, %s7088_s22 }
  0xbf   : > { %11543 = vst [vmem:[#allocation14_spill] sm:$0xff] %v7419_v28 }
  0xc0   : > { %v374_v29 = vpop.f32.mrf.mxu2  ;;  %v398_v30 = vpop.f32.mrf.mxu3  ;;  %11544 = vst [vmem:[#allocation15_spill] sm:$0xff] %v7422_v36 }
  0xc1   : > { %v329_v34 = vpop.f32.mrf.mxu0  ;;  %v353_v35 = vpop.f32.mrf.mxu1  ;;  %v7444_v43 = vadd.f32 %v398_v30, %v7366_v3 }
  0xc2   : > { %v7425_v31 = vadd.f32 %v329_v34, %v7366_v3  ;;  %v7428_v37 = vadd.f32 %v353_v35, %v7366_v3 }
  0xc3   : > { %11549 = vst [vmem:[#allocation20_spill] sm:$0xff] %v7444_v43 }
  0xc4   : > { %11545 = vst [vmem:[#allocation16_spill] sm:$0xff] %v7425_v31  ;;  %v7432_v41 = vpack.i.bf16 %v7428_v37, %v7422_v36  ;;  %v7436_v42 = vpack.i.bf16 %v7425_v31, %v7419_v28  ;;  %465 = vmatmul.f32.gmra.mxu1 %v7272_v38  ;;  %v7453_v38 = vadd.f32 %v374_v29, %v7366_v3 }
  0xc5   : > { %11546 = vst [vmem:[#allocation17_spill] sm:$0xff] %v7428_v37 }
  0xc6   : > { %11547 = vst [vmem:[#allocation18_spill] sm:$0xff] %v7432_v41  ;;  %6142 = vrot.lane.b32.xlu2 %v7432_v41, %s7088_s22  ;;  %6137 = vrot.lane.b32.xlu0 %v7436_v42, %s7088_s22 }
  0xc7   : > { %11548 = vst [vmem:[#allocation19_spill] sm:$0xff] %v7436_v42 }
  0xc8   : > { %v377_v44 = vpop.f32.mrf.mxu2  ;;  %v401_v48 = vpop.f32.mrf.mxu3  ;;  %11552 = vst [vmem:[#allocation23_spill] sm:$0xff] %v7453_v38 }
  0xc9   : > { %v7447_v49 = vadd.f32 %v377_v44, %v7366_v3  ;;  %v7450_v50 = vadd.f32 %v401_v48, %v7366_v3  ;;  %v332_v51 = vpop.f32.mrf.mxu0  ;;  %v356_v55 = vpop.f32.mrf.mxu1 }
  0xca   : > { %v7469_v0 = vadd.f32 %v332_v51, %v7366_v3  ;;  %v7472_v8 = vadd.f32 %v356_v55, %v7366_v3 }
  0xcb   : > { %11550 = vst [vmem:[#allocation21_spill] sm:$0xff] %v7447_v49  ;;  %v7457_v56 = vpack.i.bf16 %v7450_v50, %v7444_v43  ;;  %v7461_v60 = vpack.i.bf16 %v7447_v49, %v7453_v38 }
  0xcc   : > { %11551 = vst [vmem:[#allocation22_spill] sm:$0xff] %v7450_v50  ;;  %468 = vmatmul.f32.gmra.mxu1 %v7294_v45 }
  0xcd   : > { %11553 = vst [vmem:[#allocation24_spill] sm:$0xff] %v7457_v56  ;;  %6152 = vrot.lane.b32.xlu1 %v7457_v56, %s7088_s22 }
  0xce   : > { %11554 = vst [vmem:[#allocation25_spill] sm:$0xff] %v7461_v60  ;;  %6147 = vrot.lane.b32.xlu0 %v7461_v60, %s7088_s22 }
  0xcf   : > { %11555 = vst [vmem:[#allocation26_spill] sm:$0xff] %v7469_v0 }
  0xd0   : > { %v380_v1 = vpop.f32.mrf.mxu2  ;;  %v404_v5 = vpop.f32.mrf.mxu3  ;;  %11556 = vst [vmem:[#allocation27_spill] sm:$0xff] %v7472_v8 }
  0xd1   : > { %v335_v6 = vpop.f32.mrf.mxu0  ;;  %v359_v7 = vpop.f32.mrf.mxu1  ;;  %v7494_v21 = vadd.f32 %v404_v5, %v7366_v3  ;;  %v7497_v34 = vadd.f32 %v380_v1, %v7366_v3 }
  0xd2   : > { %v7475_v13 = vadd.f32 %v335_v6, %v7366_v3  ;;  %v7478_v45 = vadd.f32 %v359_v7, %v7366_v3 }
  0xd3   : > { %11561 = vst [vmem:[#allocation32_spill] sm:$0xff] %v7494_v21 }
  0xd4   : > { %11557 = vst [vmem:[#allocation28_spill] sm:$0xff] %v7475_v13  ;;  %v7482_v14 = vpack.i.bf16 %v7475_v13, %v7469_v0  ;;  %v7486_v20 = vpack.i.bf16 %v7478_v45, %v7472_v8  ;;  %471 = vmatmul.f32.gmra.mxu1 %v7316_v52 }
  0xd5   : > { %11558 = vst [vmem:[#allocation29_spill] sm:$0xff] %v7478_v45 }
  0xd6   : > { %11559 = vst [vmem:[#allocation30_spill] sm:$0xff] %v7482_v14  ;;  %6157 = vrot.lane.b32.xlu2 %v7482_v14, %s7088_s22  ;;  %6162 = vrot.lane.b32.xlu0 %v7486_v20, %s7088_s22 }
  0xd7   : > { %11560 = vst [vmem:[#allocation31_spill] sm:$0xff] %v7486_v20 }
  0xd8   : > { %v383_v29 = vpop.f32.mrf.mxu2  ;;  %v407_v30 = vpop.f32.mrf.mxu3  ;;  %11562 = vst [vmem:[#allocation33_spill] sm:$0xff] %v7497_v34 }
  0xd9   : > { %v7500_v35 = vadd.f32 %v383_v29, %v7366_v3  ;;  %v7503_v44 = vadd.f32 %v407_v30, %v7366_v3  ;;  %v338_v52 = vpop.f32.mrf.mxu0  ;;  %v362_v48 = vpop.f32.mrf.mxu1 }
  0xda   : > { %v7519_v1 = vadd.f32 %v338_v52, %v7366_v3  ;;  %v7522_v30 = vadd.f32 %v362_v48, %v7366_v3  ;;  %v7544_v48 = vperm.slane %v7362_v2, 1 }
  0xdb   : > { %11563 = vst [vmem:[#allocation34_spill] sm:$0xff] %v7500_v35  ;;  %v7507_v51 = vpack.i.bf16 %v7500_v35, %v7497_v34  ;;  %v7511_v55 = vpack.i.bf16 %v7503_v44, %v7494_v21 }
  0xdc   : > { %11564 = vst [vmem:[#allocation35_spill] sm:$0xff] %v7503_v44  ;;  %474 = vmatmul.f32.gmra.mxu1 %v7332_v57 }
  0xdd   : > { %11565 = vst [vmem:[#allocation36_spill] sm:$0xff] %v7507_v51  ;;  %6167 = vrot.lane.b32.xlu1 %v7507_v51, %s7088_s22 }
  0xde   : > { %11566 = vst [vmem:[#allocation37_spill] sm:$0xff] %v7511_v55  ;;  %6172 = vrot.lane.b32.xlu2 %v7511_v55, %s7088_s22 }
  0xdf   : > { %11567 = vst [vmem:[#allocation38_spill] sm:$0xff] %v7519_v1 }
  0xe0   : > { %v386_v5 = vpop.f32.mrf.mxu2  ;;  %v410_v6 = vpop.f32.mrf.mxu3  ;;  %11568 = vst [vmem:[#allocation39_spill] sm:$0xff] %v7522_v30 }
  0xe1   : > { %v341_v7 = vpop.f32.mrf.mxu0  ;;  %v365_v29 = vpop.f32.mrf.mxu1 }
  0xe2   : > { %v7525_v56 = vadd.f32 %v341_v7, %v7366_v3  ;;  %v7528_v57 = vadd.f32 %v365_v29, %v7366_v3  ;;  %v7547_v7 = vadd.f32 %v386_v5, %v7366_v3  ;;  %v7550_v29 = vadd.f32 %v410_v6, %v7366_v3 }
  0xe4   : > { %11569 = vst [vmem:[#allocation40_spill] sm:$0xff] %v7525_v56  ;;  %v7532_v23 = vpack.i.bf16 %v7525_v56, %v7519_v1  ;;  %v7536_v52 = vpack.i.bf16 %v7528_v57, %v7522_v30  ;;  %477 = vmatmul.f32.gmra.mxu1 %v7345_v61 }
  0xe5   : > { %11570 = vst [vmem:[#allocation41_spill] sm:$0xff] %v7528_v57 }
  0xe6   : > { %11571 = vst [vmem:[#allocation42_spill] sm:$0xff] %v7532_v23  ;;  %6177 = vrot.lane.b32.xlu0 %v7532_v23, %s7088_s22  ;;  %6182 = vrot.lane.b32.xlu1 %v7536_v52, %s7088_s22 }
  0xe7   : > { %11572 = vst [vmem:[#allocation43_spill] sm:$0xff] %v7536_v52 }
  0xe8   : > { %11573 = vst [vmem:[#allocation44_spill] sm:$0xff] %v7547_v7  ;;  %v389_v55 = vpop.f32.mrf.mxu2  ;;  %v413_v24 = vpop.f32.mrf.mxu3 }
  0xe9   : > { %11574 = vst [vmem:[#allocation45_spill] sm:$0xff] %v7550_v29  ;;  %v7553_v51 = vadd.f32 %v389_v55, %v7366_v3  ;;  %v7556_v61 = vadd.f32 %v413_v24, %v7366_v3  ;;  %v433_v60 = vpop.f32.mrf.mxu1 }
  0xea   : > { %v7559_v41 = vadd.f32 %v433_v60, %v7544_v48 }
  0xeb   : > { %11575 = vst [vmem:[#allocation46_spill] sm:$0xff] %v7553_v51  ;;  %v7563_v2 = vpack.i.bf16 %v7553_v51, %v7547_v7  ;;  %v7567_v5 = vpack.i.bf16 %v7556_v61, %v7550_v29 }
  0xec   : > { %11576 = vst [vmem:[#allocation47_spill] sm:$0xff] %v7556_v61  ;;  %480 = vmatmul.f32.gmra.mxu1 %v7202_v18 }
  0xed   : > { %11577 = vst [vmem:[#allocation48_spill] sm:$0xff] %v7559_v41  ;;  %6187 = vrot.lane.b32.xlu2 %v7563_v2, %s7088_s22 }
  0xee   : > { %11578 = vst [vmem:[#allocation49_spill] sm:$0xff] %v7563_v2  ;;  %6192 = vrot.lane.b32.xlu0 %v7567_v5, %s7088_s22  ;;  %1547 = vrot.lane.b32.xlu1 %v7559_v41, %s7089_s23 }
  0xef   : > { %11579 = vst [vmem:[#allocation50_spill] sm:$0xff] %v7567_v5 }
  0xf1   : > { %v436_v3 = vpop.f32.mrf.mxu1 }
  0xf2   : > { %v7584_v18 = vadd.f32 %v436_v3, %v7544_v48 }
  0xf4   : > { %483 = vmatmul.f32.gmra.mxu1 %v7227_v25  ;;  %11580 = vst [vmem:[#allocation51_spill] sm:$0xff] %v7584_v18 }
  0xf5   : > { %1531 = vrot.lane.b32.xlu2 %v7559_v41, %s7090_s24 }
  0xf6   : > { %537 = vrot.lane.b32.xlu0 %v7559_v41, %s7088_s22  ;;  %2691 = vrot.lane.b32.xlu1 %v7559_v41, %s7091_s26 }
  0xf9   : > { %v439_v24 = vpop.f32.mrf.mxu1 }
  0xfa   : > { %v7594_v25 = vadd.f32 %v439_v24, %v7544_v48 }
  0xfc   : > { %486 = vmatmul.f32.gmra.mxu1 %v7252_v32  ;;  %11581 = vst [vmem:[#allocation52_spill] sm:$0xff] %v7594_v25 }
  0xfd   : > { %2693 = vrot.lane.b32.xlu2 %v7584_v18, %s7091_s26 }
  0xfe   : > { %2707 = vrot.lane.b32.xlu0 %v7559_v41, %s7092_s27  ;;  %2709 = vrot.lane.b32.xlu1 %v7584_v18, %s7092_s27 }
 0x101   : > { %v442_v60 = vpop.f32.mrf.mxu1 }
 0x102   : > { %v7614_v55 = vadd.f32 %v442_v60, %v7544_v48 }
 0x104   : > { %489 = vmatmul.f32.gmra.mxu1 %v7275_v39  ;;  %11583 = vst [vmem:[#allocation54_spill] sm:$0xff] %v7614_v55 }
 0x105   : > { %1551 = vrot.lane.b32.xlu2 %v7594_v25, %s7089_s23 }
 0x106   : > { %539 = vrot.lane.b32.xlu0 %v7584_v18, %s7088_s22  ;;  %541 = vrot.lane.b32.xlu1 %v7594_v25, %s7088_s22 }
 0x109   : > { %v445_v32 = vpop.f32.mrf.mxu1 }
 0x10a   : > { %v7611_v39 = vadd.f32 %v445_v32, %v7544_v48 }
 0x10c   : > { %492 = vmatmul.f32.gmra.mxu1 %v7297_v46  ;;  %11582 = vst [vmem:[#allocation53_spill] sm:$0xff] %v7611_v39 }
 0x10d   : > { %2711 = vrot.lane.b32.xlu2 %v7594_v25, %s7092_s27 }
 0x10e   : > { %1533 = vrot.lane.b32.xlu0 %v7584_v18, %s7090_s24  ;;  %1535 = vrot.lane.b32.xlu1 %v7594_v25, %s7090_s24 }
 0x114   : > { %495 = vmatmul.f32.gmra.mxu1 %v7319_v53  ;;  %v448_v53 = vpop.f32.mrf.mxu1 }
 0x115   : > { %545 = vrot.lane.b32.xlu2 %v7611_v39, %s7088_s22 }
 0x116   : > { %1549 = vrot.lane.b32.xlu0 %v7584_v18, %s7089_s23  ;;  %543 = vrot.lane.b32.xlu1 %v7614_v55, %s7088_s22 }
 0x117   : > { %v7630_v46 = vpop.permute.xlu2 %6127 }
 0x118   : > { %11584 = vst [vmem:[#allocation55_spill] sm:$0xff] %v7630_v46 }
 0x11c   : > { %498 = vmatmul.f32.gmra.mxu1 %v7335_v58  ;;  %v7640_v58 = vadd.f32 %v448_v53, %v7544_v48  ;;  %v451_v24 = vpop.f32.mrf.mxu1 }
 0x11d   : > { %1539 = vrot.lane.b32.xlu2 %v7611_v39, %s7090_s24  ;;  %v7665_v60 = vadd.f32 %v451_v24, %v7544_v48 }
 0x11e   : > { %2695 = vrot.lane.b32.xlu0 %v7594_v25, %s7091_s26  ;;  %1553 = vrot.lane.b32.xlu1 %v7614_v55, %s7089_s23  ;;  %11585 = vst [vmem:[#allocation56_spill] sm:$0xff] %v7640_v58 }
 0x11f   : > { %11587 = vst [vmem:[#allocation58_spill] sm:$0xff] %v7665_v60 }
 0x120   : > { %v7642_v6 = vpop.permute.xlu2 %6142 }
 0x124   : > { %501 = vmatmul.f32.gmra.mxu1 %v7348_v62 }
 0x125   : > { %2699 = vrot.lane.b32.xlu2 %v7611_v39, %s7091_s26 }
 0x126   : > { %1537 = vrot.lane.b32.xlu0 %v7614_v55, %s7090_s24  ;;  %2697 = vrot.lane.b32.xlu1 %v7614_v55, %s7091_s26 }
 0x12c   : > { %504 = vmatmul.f32.gmra.mxu1 %v7205_v19  ;;  %v7658_v19 = vpop.permute.xlu1 %6117 }
 0x12d   : > { %547 = vrot.lane.b32.xlu2 %v7640_v58, %s7088_s22 }
 0x12e   : > { %2713 = vrot.lane.b32.xlu0 %v7614_v55, %s7092_s27  ;;  %2715 = vrot.lane.b32.xlu1 %v7611_v39, %s7092_s27 }
 0x12f   : > { %v7651_v62 = vpop.permute.xlu0 %6132 }
 0x130   : > { %11586 = vst [vmem:[#allocation57_spill] sm:$0xff] %v7651_v62  ;;  %v7653_v3 = vpop.permute.xlu2 %6157 }
 0x134   : > { %507 = vmatmul.f32.gmra.mxu1 %v7230_v26  ;;  %v454_v26 = vpop.f32.mrf.mxu1  ;;  %v7678_v5 = vpop.permute.xlu1 %6122 }
 0x135   : > { %1557 = vrot.lane.b32.xlu2 %v7640_v58, %s7089_s23  ;;  %v7681_v24 = vadd.f32 %v454_v26, %v7544_v48 }
 0x136   : > { %1555 = vrot.lane.b32.xlu0 %v7611_v39, %s7089_s23  ;;  %1541 = vrot.lane.b32.xlu1 %v7640_v58, %s7090_s24 }
 0x137   : > { %11589 = vst [vmem:[#allocation60_spill] sm:$0xff] %v7681_v24 }
 0x138   : > { %v7667_v32 = vpop.permute.xlu0 %6137  ;;  %v7670_v53 = vpop.permute.xlu2 %6172 }
 0x139   : > { %11588 = vst [vmem:[#allocation59_spill] sm:$0xff] %v7670_v53 }
 0x13c   : > { %510 = vmatmul.f32.gmra.mxu1 %v7255_v33 }
 0x13d   : > { %2717 = vrot.lane.b32.xlu2 %v7640_v58, %s7092_s27 }
 0x13e   : > { %2701 = vrot.lane.b32.xlu0 %v7640_v58, %s7091_s26  ;;  %1559 = vrot.lane.b32.xlu1 %v7665_v60, %s7089_s23 }
 0x13f   : > { %v7694_v52 = vpop.permute.xlu1 %6152 }
 0x140   : > { %v7686_v33 = vpop.permute.xlu0 %6147  ;;  %11592 = vst [vmem:[#allocation63_spill] sm:$0xff] %v7694_v52 }
 0x141   : > { %11590 = vst [vmem:[#allocation61_spill] sm:$0xff] %v7686_v33 }
 0x144   : > { %513 = vmatmul.f32.gmra.mxu1 %v7278_v40  ;;  %v457_v40 = vpop.f32.mrf.mxu1 }
 0x145   : > { %1545 = vrot.lane.b32.xlu2 %v7681_v24, %s7090_s24  ;;  %v7710_v52 = vadd.f32 %v457_v40, %v7544_v48 }
 0x146   : > { %549 = vrot.lane.b32.xlu0 %v7665_v60, %s7088_s22  ;;  %2703 = vrot.lane.b32.xlu1 %v7665_v60, %s7091_s26 }
 0x147   : > { %v7692_v2 = vpop.permute.xlu2 %6187  ;;  %11594 = vst [vmem:[#allocation65_spill] sm:$0xff] %v7710_v52 }
 0x148   : > { %11591 = vst [vmem:[#allocation62_spill] sm:$0xff] %v7692_v2  ;;  %v7705_v62 = vpop.permute.xlu0 %6162 }
 0x14c   : > { %516 = vmatmul.f32.gmra.mxu1 %v7300_v47 }
 0x14d   : > { %2705 = vrot.lane.b32.xlu2 %v7681_v24, %s7091_s26 }
 0x14e   : > { %1543 = vrot.lane.b32.xlu0 %v7665_v60, %s7090_s24  ;;  %551 = vrot.lane.b32.xlu1 %v7681_v24, %s7088_s22 }
 0x14f   : > { %v7703_v26 = vpop.permute.xlu2 %1531  ;;  %v7707_v53 = vpop.permute.xlu1 %6167 }
 0x150   : > { %11593 = vst [vmem:[#allocation64_spill] sm:$0xff] %v7707_v53 }
 0x154   : > { %519 = vmatmul.f32.gmra.mxu1 %v7322_v54  ;;  %v460_v54 = vpop.f32.mrf.mxu1 }
 0x155   : > { %635 = vrot.lane.b32.xlu2 %v7710_v52, %s7088_s22  ;;  %v7739_v33 = vadd.f32 %v460_v54, %v7544_v48 }
 0x156   : > { %2719 = vrot.lane.b32.xlu0 %v7665_v60, %s7092_s27  ;;  %2721 = vrot.lane.b32.xlu1 %v7681_v24, %s7092_s27 }
 0x157   : > { %v7719_v47 = vpop.permute.xlu2 %2693  ;;  %11597 = vst [vmem:[#allocation68_spill] sm:$0xff] %v7739_v33 }
 0x158   : > { %11595 = vst [vmem:[#allocation66_spill] sm:$0xff] %v7719_v47  ;;  %v7721_v20 = vpop.permute.xlu0 %6177  ;;  %v7723_v23 = vpop.permute.xlu1 %6182 }
 0x15c   : > { %522 = vmatmul.f32.gmra.mxu1 %v7338_v59  ;;  %v463_v53 = vpop.f32.mrf.mxu1 }
 0x15d   : > { %1636 = vrot.lane.b32.xlu2 %v7710_v52, %s7090_s24  ;;  %v7755_v54 = vadd.f32 %v463_v53, %v7544_v48 }
 0x15e   : > { %1561 = vrot.lane.b32.xlu0 %v7681_v24, %s7089_s23  ;;  %2812 = vrot.lane.b32.xlu1 %v7710_v52, %s7092_s27 }
 0x15f   : > { %v7732_v40 = vpop.permute.xlu2 %1551  ;;  %11599 = vst [vmem:[#allocation70_spill] sm:$0xff] %v7755_v54 }
 0x160   : > { %v7734_v27 = vpop.permute.xlu0 %6192  ;;  %v7736_v46 = vpop.permute.xlu1 %1547 }
 0x161   : > { %11596 = vst [vmem:[#allocation67_spill] sm:$0xff] %v7734_v27 }
 0x164   : > { %525 = vmatmul.f32.gmra.mxu1 %v7351_v63  ;;  %v466_v53 = vpop.f32.mrf.mxu1 }
 0x165   : > { %2796 = vrot.lane.b32.xlu2 %v7710_v52, %s7091_s26  ;;  %v7782_v11 = vadd.f32 %v466_v53, %v7544_v48 }
 0x166   : > { %1652 = vrot.lane.b32.xlu0 %v7710_v52, %s7089_s23  ;;  %1638 = vrot.lane.b32.xlu1 %v7739_v33, %s7090_s24 }
 0x167   : > { %v7748_v59 = vpop.permute.xlu2 %2711  ;;  %11600 = vst [vmem:[#allocation71_spill] sm:$0xff] %v7782_v11 }
 0x168   : > { %v7750_v27 = vpop.permute.xlu0 %537  ;;  %v7752_v2 = vpop.permute.xlu1 %2691 }
 0x169   : > { %11598 = vst [vmem:[#allocation69_spill] sm:$0xff] %v7752_v2 }
 0x16c   : > { %v469_v53 = vpop.f32.mrf.mxu1 }
 0x16d   : > { %1654 = vrot.lane.b32.xlu2 %v7739_v33, %s7089_s23 }
 0x16e   : > { %637 = vrot.lane.b32.xlu0 %v7739_v33, %s7088_s22  ;;  %639 = vrot.lane.b32.xlu1 %v7755_v54, %s7088_s22 }
 0x16f   : > { %v7763_v63 = vpop.permute.xlu2 %545 }
 0x170   : > { %v7765_v47 = vpop.permute.xlu0 %2707  ;;  %v7767_v42 = vpop.permute.xlu1 %2709 }
 0x174   : > { %v472_v22 = vpop.f32.mrf.mxu1 }
 0x175   : > { %2814 = vrot.lane.b32.xlu2 %v7739_v33, %s7092_s27  ;;  %v7824_v37 = vadd.f32 %v472_v22, %v7544_v48 }
 0x176   : > { %2798 = vrot.lane.b32.xlu0 %v7739_v33, %s7091_s26  ;;  %1656 = vrot.lane.b32.xlu1 %v7755_v54, %s7089_s23 }
 0x177   : > { %v7775_v2 = vpop.permute.xlu2 %1539  ;;  %11604 = vst [vmem:[#allocation75_spill] sm:$0xff] %v7824_v37 }
 0x178   : > { %v7777_v14 = vpop.permute.xlu0 %539  ;;  %v7779_v10 = vpop.permute.xlu1 %541 }
 0x17c   : > { %v475_v22 = vpop.f32.mrf.mxu1 }
 0x17d   : > { %641 = vrot.lane.b32.xlu2 %v7782_v11, %s7088_s22  ;;  %v7851_v15 = vadd.f32 %v475_v22, %v7544_v48 }
 0x17e   : > { %1640 = vrot.lane.b32.xlu0 %v7755_v54, %s7090_s24  ;;  %2800 = vrot.lane.b32.xlu1 %v7755_v54, %s7091_s26 }
 0x17f   : > { %v7790_v17 = vpop.permute.xlu2 %2699  ;;  %11606 = vst [vmem:[#allocation77_spill] sm:$0xff] %v7851_v15 }
 0x180   : > { %11601 = vst [vmem:[#allocation72_spill] sm:$0xff] %v7790_v17  ;;  %v7792_v43 = vpop.permute.xlu0 %1533  ;;  %v7794_v50 = vpop.permute.xlu1 %1535  ;;  %v7809_v17 = vadd.f32 %v469_v53, %v7544_v48 }
 0x182   : > { %11602 = vst [vmem:[#allocation73_spill] sm:$0xff] %v7809_v17 }
 0x184   : > { %v478_v49 = vpop.f32.mrf.mxu1 }
 0x185   : > { %1642 = vrot.lane.b32.xlu2 %v7782_v11, %s7090_s24 }
 0x186   : > { %2816 = vrot.lane.b32.xlu0 %v7755_v54, %s7092_s27  ;;  %2818 = vrot.lane.b32.xlu1 %v7782_v11, %s7092_s27 }
 0x187   : > { %v7802_v21 = vpop.permute.xlu2 %547 }
 0x188   : > { %v7804_v44 = vpop.permute.xlu0 %1549  ;;  %v7806_v29 = vpop.permute.xlu1 %543 }
 0x18c   : > { %v481_v51 = vpop.f32.mrf.mxu1 }
 0x18d   : > { %2802 = vrot.lane.b32.xlu2 %v7782_v11, %s7091_s26 }
 0x18e   : > { %1658 = vrot.lane.b32.xlu0 %v7782_v11, %s7089_s23  ;;  %1644 = vrot.lane.b32.xlu1 %v7809_v17, %s7090_s24 }
 0x18f   : > { %v7817_v61 = vpop.permute.xlu2 %1557 }
 0x190   : > { %v7819_v12 = vpop.permute.xlu0 %2695  ;;  %v7821_v36 = vpop.permute.xlu1 %1553 }
 0x191   : > { %11603 = vst [vmem:[#allocation74_spill] sm:$0xff] %v7819_v12 }
 0x195   : > { %1660 = vrot.lane.b32.xlu2 %v7809_v17, %s7089_s23 }
 0x196   : > { %643 = vrot.lane.b32.xlu0 %v7809_v17, %s7088_s22  ;;  %645 = vrot.lane.b32.xlu1 %v7824_v37, %s7088_s22 }
 0x197   : > { %v7832_v53 = vpop.permute.xlu2 %2717 }
 0x198   : > { %v7834_v8 = vpop.permute.xlu0 %1537  ;;  %v7836_v45 = vpop.permute.xlu1 %2697 }
 0x199   : > { %11605 = vst [vmem:[#allocation76_spill] sm:$0xff] %v7836_v45 }
 0x19d   : > { %2820 = vrot.lane.b32.xlu2 %v7809_v17, %s7092_s27 }
 0x19e   : > { %2804 = vrot.lane.b32.xlu0 %v7809_v17, %s7091_s26  ;;  %1662 = vrot.lane.b32.xlu1 %v7824_v37, %s7089_s23 }
 0x19f   : > { %v7844_v12 = vpop.permute.xlu2 %1545 }
 0x1a0   : > { %v7846_v30 = vpop.permute.xlu0 %2713  ;;  %v7848_v57 = vpop.permute.xlu1 %2715 }
 0x1a5   : > { %647 = vrot.lane.b32.xlu2 %v7851_v15, %s7088_s22 }
 0x1a6   : > { %1646 = vrot.lane.b32.xlu0 %v7824_v37, %s7090_s24  ;;  %2806 = vrot.lane.b32.xlu1 %v7824_v37, %s7091_s26 }
 0x1a7   : > { %v7859_v45 = vpop.permute.xlu2 %2705 }
 0x1a8   : > { %11607 = vst [vmem:[#allocation78_spill] sm:$0xff] %v7859_v45  ;;  %v1556_v16 = vpop.permute.xlu0 %1555  ;;  %v7861_v38 = vpop.permute.xlu1 %1541  ;;  %v7874_v45 = vadd.f32 %v478_v49, %v7544_v48 }
 0x1aa   : > { %11609 = vst [vmem:[#allocation80_spill] sm:$0xff] %v7874_v45 }
 0x1ad   : > { %1648 = vrot.lane.b32.xlu2 %v7851_v15, %s7090_s24 }
 0x1ae   : > { %2822 = vrot.lane.b32.xlu0 %v7824_v37, %s7092_s27  ;;  %2824 = vrot.lane.b32.xlu1 %v7851_v15, %s7092_s27 }
 0x1af   : > { %v7869_v22 = vpop.permute.xlu2 %635 }
 0x1b0   : > { %v7871_v34 = vpop.permute.xlu0 %2701  ;;  %v1560_v35 = vpop.permute.xlu1 %1559 }
 0x1b1   : > { %11608 = vst [vmem:[#allocation79_spill] sm:$0xff] %v7871_v34  ;;  %v7887_v34 = vadd.f32 %v481_v51, %v7544_v48 }
 0x1b3   : > { %11611 = vst [vmem:[#allocation82_spill] sm:$0xff] %v7887_v34 }
 0x1b5   : > { %2808 = vrot.lane.b32.xlu2 %v7851_v15, %s7091_s26 }
 0x1b6   : > { %1664 = vrot.lane.b32.xlu0 %v7851_v15, %s7089_s23  ;;  %1650 = vrot.lane.b32.xlu1 %v7874_v45, %s7090_s24 }
 0x1b7   : > { %v7882_v7 = vpop.permute.xlu2 %1636 }
 0x1b8   : > { %v550_v4 = vpop.permute.xlu0 %549  ;;  %v7884_v9 = vpop.permute.xlu1 %2703 }
 0x1b9   : > { %11610 = vst [vmem:[#allocation81_spill] sm:$0xff] %v7884_v9  ;;  %v484_v9 = vpop.f32.mrf.mxu1 }
 0x1bd   : > { %1666 = vrot.lane.b32.xlu2 %v7874_v45, %s7089_s23 }
 0x1be   : > { %649 = vrot.lane.b32.xlu0 %v7874_v45, %s7088_s22  ;;  %732 = vrot.lane.b32.xlu1 %v7887_v34, %s7088_s22 }
 0x1bf   : > { %v7895_v49 = vpop.permute.xlu2 %2796 }
 0x1c0   : > { %11612 = vst [vmem:[#allocation83_spill] sm:$0xff] %v7895_v49  ;;  %v7897_v28 = vpop.permute.xlu0 %1543  ;;  %v552_v31 = vpop.permute.xlu1 %551 }
 0x1c1   : > { %5663 = vmatpush.xpose.msk.msrb.mxu2 %vm553_vm0, %v552_v31  ;;  %v7916_v31 = vadd.f32 %v484_v9, %v7544_v48  ;;  %v487_v9 = vpop.f32.mrf.mxu1 }
 0x1c3   : > { %11613 = vst [vmem:[#allocation84_spill] sm:$0xff] %v7916_v31 }
 0x1c5   : > { %2826 = vrot.lane.b32.xlu2 %v7874_v45, %s7092_s27  ;;  %5664 = vmatpush.xpose.msk.msrb.mxu2 %vm553_vm0, %v550_v4 }
 0x1c6   : > { %2810 = vrot.lane.b32.xlu0 %v7874_v45, %s7091_s26  ;;  %1741 = vrot.lane.b32.xlu1 %v7887_v34, %s7090_s24 }
 0x1c7   : > { %v7907_v51 = vpop.permute.xlu2 %1654 }
 0x1c8   : > { %v7909_v49 = vpop.permute.xlu0 %2719  ;;  %v7911_v0 = vpop.permute.xlu1 %2721 }
 0x1c9   : > { %5665 = vmatpush.xpose.msk.msrb.mxu2 %vm553_vm0, %v7802_v21 }
 0x1cd   : > { %1757 = vrot.lane.b32.xlu2 %v7887_v34, %s7089_s23  ;;  %5666 = vmatpush.xpose.msk.msrb.mxu2 %vm553_vm0, %v7763_v63 }
 0x1ce   : > { %2901 = vrot.lane.b32.xlu0 %v7887_v34, %s7091_s26  ;;  %1759 = vrot.lane.b32.xlu1 %v7916_v31, %s7089_s23 }
 0x1cf   : > { %v7926_v4 = vpop.permute.xlu2 %2814 }
 0x1d0   : > { %v1562_v13 = vpop.permute.xlu0 %1561  ;;  %v7928_v1 = vpop.permute.xlu1 %2812 }
 0x1d1   : > { %5667 = vmatpush.xpose.msk.msrb.mxu2 %vm553_vm0, %v7806_v29  ;;  %5759 = vmatpush.xpose.msk.msrb.mxu0 %vm553_vm0, %v1562_v13 }
 0x1d5   : > { %2917 = vrot.lane.b32.xlu2 %v7887_v34, %s7092_s27  ;;  %5668 = vmatpush.xpose.msk.msrb.mxu2 %vm553_vm0, %v7779_v10  ;;  %v7953_v10 = vadd.f32 %v487_v9, %v7544_v48 }
 0x1d6   : > { %5760 = vmatpush.xpose.msk.msrb.mxu0 %vm553_vm0, %v1560_v35  ;;  %1743 = vrot.lane.b32.xlu0 %v7916_v31, %s7090_s24 }
 0x1d7   : > { %v7940_v21 = vpop.permute.xlu2 %641  ;;  %2903 = vrot.lane.b32.xlu1 %v7916_v31, %s7091_s26  ;;  %11614 = vst [vmem:[#allocation85_spill] sm:$0xff] %v7953_v10 }
 0x1d8   : > { %v7944_v29 = vpop.permute.xlu0 %1652  ;;  %v7946_v13 = vpop.permute.xlu1 %1638 }
 0x1d9   : > { %5669 = vmatpush.xpose.msk.msrb.mxu2 %vm553_vm0, %v7777_v14  ;;  %v490_v14 = vpop.f32.mrf.mxu1 }
 0x1da   : > { %5761 = vmatpush.xpose.msk.msrb.mxu0 %vm553_vm0, %v7817_v61 }
 0x1dd   : > { %734 = vrot.lane.b32.xlu2 %v7916_v31, %s7088_s22  ;;  %5670 = vmatpush.xpose.msk.msrb.mxu2 %vm553_vm0, %v7750_v27 }
 0x1de   : > { %5762 = vmatpush.xpose.msk.msrb.mxu0 %vm553_vm0, %v1556_v16  ;;  %2919 = vrot.lane.b32.xlu0 %v7916_v31, %s7092_s27  ;;  %v7975_v16 = vadd.f32 %v490_v14, %v7544_v48 }
 0x1df   : > { %v7962_v35 = vpop.permute.xlu2 %1642  ;;  %2921 = vrot.lane.b32.xlu1 %v7953_v10, %s7092_s27 }
 0x1e0   : > { %v7966_v61 = vpop.permute.xlu0 %637  ;;  %5671 = vmatmul.msk.f32.vlgmr.msrb.gmra.mxu2 %vm553_vm0, %v7559_v41  ;;  %v7970_v63 = vpop.permute.xlu1 %639  ;;  %11615 = vst [vmem:[#allocation86_spill] sm:$0xff] %v7975_v16 }
 0x1e2   : > { %5763 = vmatpush.xpose.msk.msrb.mxu0 %vm553_vm0, %v7821_v36 }
 0x1e5   : > { %1745 = vrot.lane.b32.xlu2 %v7953_v10, %s7090_s24 }
 0x1e6   : > { %5764 = vmatpush.xpose.msk.msrb.mxu0 %vm553_vm0, %v7732_v40  ;;  %736 = vrot.lane.b32.xlu0 %v7953_v10, %s7088_s22  ;;  %v6180_v40 = vunpack.i.h.bf16 %v7721_v20 }
 0x1e7   : > { %v7983_v27 = vpop.permute.xlu2 %2802  ;;  %738 = vrot.lane.b32.xlu1 %v7975_v16, %s7088_s22 }
 0x1e8   : > { %11616 = vst [vmem:[#allocation87_spill] sm:$0xff] %v7983_v27  ;;  %v7987_v9 = vpop.permute.xlu0 %2798  ;;  %5672 = vmatmul.msk.f32.gmra.mxu2 %vm553_vm0, %v7584_v18  ;;  %v7991_v36 = vpop.permute.xlu1 %1656 }
 0x1e9   : > { %11617 = vst [vmem:[#allocation88_spill] sm:$0xff] %v7987_v9  ;;  %v493_v18 = vpop.f32.mrf.mxu1 }
 0x1ea   : > { %5765 = vmatpush.xpose.msk.msrb.mxu0 %vm553_vm0, %v7804_v44  ;;  %v6179_v44 = vunpack.i.l.bf16 %v7721_v20  ;;  %v8017_v9 = vadd.f32 %v493_v18, %v7544_v48  ;;  %v6140_v20 = vunpack.i.h.bf16 %v7667_v32  ;;  %v6139_v18 = vunpack.i.l.bf16 %v7667_v32 }
 0x1ec   : > { %11618 = vst [vmem:[#allocation89_spill] sm:$0xff] %v8017_v9 }
 0x1ed   : > { %2905 = vrot.lane.b32.xlu2 %v7953_v10, %s7091_s26 }
 0x1ee   : > { %5766 = vmatpush.xpose.msk.msrb.mxu0 %vm553_vm0, %v7736_v46  ;;  %1761 = vrot.lane.b32.xlu0 %v7953_v10, %s7089_s23  ;;  %v6160_v46 = vunpack.i.h.bf16 %v7653_v3 }
 0x1ef   : > { %v8002_v14 = vpop.permute.xlu2 %1660  ;;  %1747 = vrot.lane.b32.xlu1 %v7975_v16, %s7090_s24 }
 0x1f0   : > { %v8007_v41 = vpop.permute.xlu0 %1640  ;;  %5673 = vmatmul.msk.f32.gmra.mxu2 %vm553_vm0, %v7594_v25  ;;  %v8011_v27 = vpop.permute.xlu1 %2800 }
 0x1f1   : > { %5767 = vmatmul.msk.f32.vlgmr.msrb.gmra.mxu0 %vm553_vm0, %v7703_v26  ;;  %v496_v32 = vpop.f32.mrf.mxu1 }
 0x1f2   : > { %2303 = vmatpush.msra.mxu0 %v6180_v40  ;;  %v6159_v40 = vunpack.i.l.bf16 %v7653_v3 }
 0x1f4   : > { %2304 = vmatpush.msra.mxu0 %v6179_v44  ;;  %v6120_v44 = vunpack.i.h.bf16 %v7658_v19 }
 0x1f5   : > { %1763 = vrot.lane.b32.xlu2 %v7975_v16, %s7089_s23 }
 0x1f6   : > { %2305 = vmatpush.msra.mxu0 %v6160_v46  ;;  %2907 = vrot.lane.b32.xlu0 %v7975_v16, %s7091_s26  ;;  %v6119_v46 = vunpack.i.l.bf16 %v7658_v19 }
 0x1f7   : > { %v8025_v25 = vpop.permute.xlu2 %2820  ;;  %1765 = vrot.lane.b32.xlu1 %v8017_v9, %s7089_s23 }
 0x1f8   : > { %2306 = vmatpush.msra.mxu0 %v6159_v40  ;;  %v8030_v26 = vpop.permute.xlu0 %2816  ;;  %5674 = vmatmul.msk.f32.gmra.mxu2 %vm553_vm0, %v7614_v55  ;;  %v8034_v3 = vpop.permute.xlu1 %2818 }
 0x1f9   : > { %5768 = vmatmul.msk.f32.gmra.mxu0 %vm553_vm0, %v7792_v43 }
 0x1fa   : > { %2307 = vmatpush.msra.mxu0 %v6140_v20 }
 0x1fc   : > { %2308 = vmatpush.msra.mxu0 %v6139_v18 }
 0x1fd   : > { %2923 = vrot.lane.b32.xlu2 %v7975_v16, %s7092_s27 }
 0x1fe   : > { %2309 = vmatpush.msra.mxu0 %v6120_v44  ;;  %1749 = vrot.lane.b32.xlu0 %v8017_v9, %s7090_s24 }
 0x1ff   : > { %v8046_v40 = vpop.permute.xlu2 %647  ;;  %2909 = vrot.lane.b32.xlu1 %v8017_v9, %s7091_s26 }
 0x200   : > { %2310 = vmatpush.msra.mxu0 %v6119_v46  ;;  %v8050_v43 = vpop.permute.xlu0 %1658  ;;  %5675 = vmatmul.msk.f32.gmra.mxu2 %vm553_vm0, %v7611_v39  ;;  %v8054_v19 = vpop.permute.xlu1 %1644 }
 0x201   : > { %5769 = vmatmul.msk.f32.gmra.mxu0 %vm553_vm0, %v7794_v50  ;;  %v499_v50 = vpop.f32.mrf.mxu1 }
 0x202   : > { %5855 = vmatpush.xpose.msk.msrb.mxu0 %vm553_vm0, %v7911_v0  ;;  %v8061_v0 = vadd.f32 %v496_v32, %v7544_v48 }
 0x204   : > { %11619 = vst [vmem:[#allocation90_spill] sm:$0xff] %v8061_v0 }
 0x205   : > { %740 = vrot.lane.b32.xlu2 %v8017_v9, %s7088_s22 }
 0x206   : > { %5856 = vmatpush.xpose.msk.msrb.mxu0 %vm553_vm0, %v7909_v49  ;;  %2925 = vrot.lane.b32.xlu0 %v8017_v9, %s7092_s27 }
 0x207   : > { %v8069_v20 = vpop.permute.xlu2 %1648  ;;  %2927 = vrot.lane.b32.xlu1 %v8061_v0, %s7092_s27 }
 0x208   : > { %v8073_v18 = vpop.permute.xlu0 %643  ;;  %5676 = vmatmul.msk.f32.gmra.mxu2 %vm553_vm0, %v7640_v58  ;;  %v8077_v49 = vpop.permute.xlu1 %645 }
 0x209   : > { %5770 = vmatmul.msk.f32.gmra.mxu0 %vm553_vm0, %v7834_v8  ;;  %v502_v46 = vpop.f32.mrf.mxu1 }
 0x20a   : > { %5857 = vmatpush.xpose.msk.msrb.mxu0 %vm553_vm0, %v7832_v53  ;;  %v8084_v53 = vadd.f32 %v499_v50, %v7544_v48 }
 0x20c   : > { %11620 = vst [vmem:[#allocation91_spill] sm:$0xff] %v8084_v53 }
 0x20d   : > { %1751 = vrot.lane.b32.xlu2 %v8061_v0, %s7090_s24 }
 0x20e   : > { %5858 = vmatpush.xpose.msk.msrb.mxu0 %vm553_vm0, %v7848_v57  ;;  %742 = vrot.lane.b32.xlu0 %v8061_v0, %s7088_s22 }
 0x20f   : > { %v8092_v44 = vpop.permute.xlu2 %2808  ;;  %744 = vrot.lane.b32.xlu1 %v8084_v53, %s7088_s22 }
 0x210   : > { %v8096_v8 = vpop.permute.xlu0 %2804  ;;  %5677 = vmatmul.msk.f32.gmra.mxu2 %vm553_vm0, %v7665_v60  ;;  %v1663_v57 = vpop.permute.xlu1 %1662 }
 0x211   : > { %5771 = vmatmul.msk.f32.gmra.mxu0 %vm553_vm0, %v7775_v2 }
 0x212   : > { %5859 = vmatpush.xpose.msk.msrb.mxu0 %vm553_vm0, %v7846_v30 }
 0x215   : > { %2911 = vrot.lane.b32.xlu2 %v8061_v0, %s7091_s26 }
 0x216   : > { %5860 = vmatpush.xpose.msk.msrb.mxu0 %vm553_vm0, %v7748_v59  ;;  %1767 = vrot.lane.b32.xlu0 %v8061_v0, %s7089_s23 }
 0x217   : > { %v1667_v30 = vpop.permute.xlu2 %1666  ;;  %1753 = vrot.lane.b32.xlu1 %v8084_v53, %s7090_s24 }
 0x218   : > { %5775 = vmatpush.xpose.msk.msra.mxu1 %vm553_vm0, %v1667_v30  ;;  %v8113_v2 = vpop.permute.xlu0 %1646  ;;  %5678 = vmatmul.msk.f32.gmra.mxu2 %vm553_vm0, %v7681_v24  ;;  %v8117_v59 = vpop.permute.xlu1 %2806 }
 0x219   : > { %5772 = vmatmul.msk.f32.gmra.mxu0 %vm553_vm0, %v7861_v38 }
 0x21a   : > { %5861 = vmatpush.xpose.msk.msrb.mxu0 %vm553_vm0, %v7767_v42  ;;  %v8124_v42 = vadd.f32 %v502_v46, %v7544_v48 }
 0x21c   : > { %11621 = vst [vmem:[#allocation92_spill] sm:$0xff] %v8124_v42 }
 0x21d   : > { %1769 = vrot.lane.b32.xlu2 %v8084_v53, %s7089_s23 }
 0x21e   : > { %5862 = vmatpush.xpose.msk.msrb.mxu0 %vm553_vm0, %v7765_v47  ;;  %2913 = vrot.lane.b32.xlu0 %v8084_v53, %s7091_s26  ;;  %v505_v47 = vpop.f32.mrf.mxu1 }
 0x21f   : > { %v8130_v32 = vpop.permute.xlu2 %2826  ;;  %1771 = vrot.lane.b32.xlu1 %v8124_v42, %s7089_s23 }
 0x220   : > { %v8134_v50 = vpop.permute.xlu0 %2822  ;;  %v8136_v38 = vpop.permute.xlu1 %2824 }
 0x221   : > { %5773 = vmatmul.msk.f32.gmra.mxu0 %vm553_vm0, %v7897_v28  ;;  %v8154_v28 = vadd.f32 %v505_v47, %v7544_v48 }
 0x223   : > { %11622 = vst [vmem:[#allocation93_spill] sm:$0xff] %v8154_v28 }
 0x225   : > { %2929 = vrot.lane.b32.xlu2 %v8084_v53, %s7092_s27 }
 0x226   : > { %1755 = vrot.lane.b32.xlu0 %v8124_v42, %s7090_s24  ;;  %v508_v55 = vpop.f32.mrf.mxu1 }
 0x227   : > { %v8144_v30 = vpop.permute.xlu2 %1757  ;;  %2915 = vrot.lane.b32.xlu1 %v8124_v42, %s7091_s26  ;;  %v8168_v47 = vadd.f32 %v508_v55, %v7544_v48 }
 0x228   : > { %v1665_v46 = vpop.permute.xlu0 %1664  ;;  %v8148_v60 = vpop.permute.xlu1 %1650 }
 0x229   : > { %5774 = vmatmul.msk.f32.gmra.mxu0 %vm553_vm0, %v7844_v12  ;;  %5776 = vmatpush.xpose.msk.msra.mxu1 %vm553_vm0, %v1665_v46  ;;  %11624 = vst [vmem:[#allocation95_spill] sm:$0xff] %v8168_v47  ;;  %v6185_v46 = vunpack.i.h.bf16 %v7723_v23 }
 0x22d   : > { %746 = vrot.lane.b32.xlu2 %v8124_v42, %s7088_s22  ;;  %5777 = vmatpush.xpose.msk.msra.mxu1 %vm553_vm0, %v1663_v57 }
 0x22e   : > { %2931 = vrot.lane.b32.xlu0 %v8124_v42, %s7092_s27 }
 0x22f   : > { %v8161_v58 = vpop.permute.xlu2 %2917  ;;  %1862 = vrot.lane.b32.xlu1 %v8154_v28, %s7089_s23 }
 0x230   : > { %11623 = vst [vmem:[#allocation94_spill] sm:$0xff] %v8161_v58  ;;  %v650_v12 = vpop.permute.xlu0 %649  ;;  %v8165_v39 = vpop.permute.xlu1 %732 }
 0x231   : > { %5679 = vmatpush.xpose.msk.msrb.mxu3 %vm553_vm0, %v650_v12  ;;  %5778 = vmatpush.xpose.msk.msra.mxu1 %vm553_vm0, %v8002_v14 }
 0x235   : > { %1848 = vrot.lane.b32.xlu2 %v8168_v47, %s7090_s24  ;;  %5680 = vmatpush.xpose.msk.msrb.mxu3 %vm553_vm0, %v8046_v40  ;;  %v511_v40 = vpop.f32.mrf.mxu1 }
 0x236   : > { %5779 = vmatpush.xpose.msk.msra.mxu1 %vm553_vm0, %v8050_v43  ;;  %829 = vrot.lane.b32.xlu0 %v8154_v28, %s7088_s22  ;;  %v8211_v12 = vadd.f32 %v511_v40, %v7544_v48  ;;  %v6145_v40 = vunpack.i.h.bf16 %v7642_v6 }
 0x237   : > { %v8181_v57 = vpop.permute.xlu2 %734  ;;  %3006 = vrot.lane.b32.xlu1 %v8154_v28, %s7091_s26 }
 0x238   : > { %v8185_v55 = vpop.permute.xlu0 %2810  ;;  %v8187_v14 = vpop.permute.xlu1 %1741  ;;  %11627 = vst [vmem:[#allocation98_spill] sm:$0xff] %v8211_v12 }
 0x239   : > { %5681 = vmatpush.xpose.msk.msrb.mxu3 %vm553_vm0, %v8077_v49 }
 0x23a   : > { %5780 = vmatpush.xpose.msk.msra.mxu1 %vm553_vm0, %v7991_v36 }
 0x23d   : > { %3008 = vrot.lane.b32.xlu2 %v8168_v47, %s7091_s26  ;;  %5682 = vmatpush.xpose.msk.msrb.mxu3 %vm553_vm0, %v8073_v18  ;;  %v514_v18 = vpop.f32.mrf.mxu1 }
 0x23e   : > { %5781 = vmatpush.xpose.msk.msra.mxu1 %vm553_vm0, %v7907_v51  ;;  %1846 = vrot.lane.b32.xlu0 %v8154_v28, %s7090_s24  ;;  %v6184_v51 = vunpack.i.l.bf16 %v7723_v23  ;;  %v6164_v23 = vunpack.i.l.bf16 %v7705_v62 }
 0x23f   : > { %v8201_v43 = vpop.permute.xlu2 %1745  ;;  %831 = vrot.lane.b32.xlu1 %v8168_v47, %s7088_s22 }
 0x240   : > { %11625 = vst [vmem:[#allocation96_spill] sm:$0xff] %v8201_v43  ;;  %v8205_v49 = vpop.permute.xlu1 %1759  ;;  %v8207_v36 = vpop.permute.xlu0 %2901 }
 0x241   : > { %11626 = vst [vmem:[#allocation97_spill] sm:$0xff] %v8207_v36  ;;  %5683 = vmatpush.xpose.msk.msrb.mxu3 %vm553_vm0, %v7940_v21  ;;  %v6165_v36 = vunpack.i.h.bf16 %v7705_v62  ;;  %v6125_v62 = vunpack.i.h.bf16 %v7678_v5 }
 0x242   : > { %5782 = vmatpush.xpose.msk.msra.mxu1 %vm553_vm0, %v7944_v29 }
 0x245   : > { %833 = vrot.lane.b32.xlu2 %v8211_v12, %s7088_s22  ;;  %5783 = vmatmul.msk.f32.vlgmr.msra.gmra.mxu1 %vm553_vm0, %v7882_v7 }
 0x246   : > { %2400 = vmatpush.msrb.mxu1 %v6185_v46  ;;  %5684 = vmatpush.xpose.msk.msrb.mxu3 %vm553_vm0, %v7970_v63  ;;  %v8240_v63 = vadd.f32 %v514_v18, %v7544_v48  ;;  %v6144_v46 = vunpack.i.l.bf16 %v7642_v6  ;;  %v6124_v6 = vunpack.i.l.bf16 %v7678_v5 }
 0x247   : > { %v8225_v21 = vpop.permute.xlu2 %2905  ;;  %1864 = vrot.lane.b32.xlu0 %v8168_v47, %s7089_s23  ;;  %1850 = vrot.lane.b32.xlu1 %v8211_v12, %s7090_s24 }
 0x248   : > { %2401 = vmatpush.msrb.mxu1 %v6184_v51  ;;  %11628 = vst [vmem:[#allocation99_spill] sm:$0xff] %v8225_v21  ;;  %v8232_v29 = vpop.permute.xlu0 %1743 }
 0x249   : > { %v8234_v7 = vpop.permute.xlu1 %2903  ;;  %11630 = vst [vmem:[#allocation101_spill] sm:$0xff] %v8240_v63 }
 0x24a   : > { %2402 = vmatpush.msrb.mxu1 %v6165_v36  ;;  %11629 = vst [vmem:[#allocation100_spill] sm:$0xff] %v8234_v7  ;;  %5685 = vmatpush.xpose.msk.msrb.mxu3 %vm553_vm0, %v7966_v61  ;;  %v517_v36 = vpop.f32.mrf.mxu1  ;;  %v11651_v7 = vld [vmem:[#allocation26_spill] sm:$0xff] }
 0x24c   : > { %2403 = vmatpush.msrb.mxu1 %v6164_v23 }
 0x24d   : > { %1866 = vrot.lane.b32.xlu2 %v8211_v12, %s7089_s23  ;;  %5784 = vmatmul.msk.f32.gmra.mxu1 %vm553_vm0, %v7946_v13 }
 0x24e   : > { %2404 = vmatpush.msrb.mxu1 %v6145_v40  ;;  %5686 = vmatpush.xpose.msk.msrb.mxu3 %vm553_vm0, %v7869_v22  ;;  %v8264_v22 = vadd.f32 %v517_v36, %v7544_v48 }
 0x24f   : > { %v8250_v61 = vpop.permute.xlu2 %1763  ;;  %3010 = vrot.lane.b32.xlu0 %v8211_v12, %s7091_s26  ;;  %1868 = vrot.lane.b32.xlu1 %v8240_v63, %s7089_s23 }
 0x250   : > { %2405 = vmatpush.msrb.mxu1 %v6144_v46  ;;  %v8257_v51 = vpop.permute.xlu0 %2919  ;;  %11633 = vst [vmem:[#allocation104_spill] sm:$0xff] %v8264_v22 }
 0x251   : > { %11631 = vst [vmem:[#allocation102_spill] sm:$0xff] %v8257_v51  ;;  %5687 = vmatmul.msk.f32.vlgmr.msrb.gmra.mxu3 %vm553_vm0, %v7710_v52  ;;  %v8261_v13 = vpop.permute.xlu1 %2921  ;;  %v11690_v51 = vld [vmem:[#allocation35_spill] sm:$0xff] }
 0x252   : > { %2406 = vmatpush.msrb.mxu1 %v6125_v62  ;;  %11632 = vst [vmem:[#allocation103_spill] sm:$0xff] %v8261_v13  ;;  %v520_v23 = vpop.f32.mrf.mxu1  ;;  %v11696_v13 = vld [vmem:[#allocation9_spill] sm:$0xff] }
 0x253   : > { %v8305_v40 = vadd.f32 %v520_v23, %v7544_v48 }
 0x254   : > { %2407 = vmatpush.msrb.mxu1 %v6124_v6 }
 0x255   : > { %1854 = vrot.lane.b32.xlu2 %v8264_v22, %s7090_s24  ;;  %5785 = vmatmul.msk.f32.gmra.mxu1 %vm553_vm0, %v8007_v41  ;;  %11636 = vst [vmem:[#allocation107_spill] sm:$0xff] %v8305_v40 }
 0x256   : > { %5871 = vmatpush.xpose.msk.msra.mxu1 %vm553_vm0, %v8130_v32 }
 0x257   : > { %v8274_v5 = vpop.permute.xlu2 %2923  ;;  %835 = vrot.lane.b32.xlu0 %v8240_v63, %s7088_s22  ;;  %3012 = vrot.lane.b32.xlu1 %v8240_v63, %s7091_s26 }
 0x258   : > { %11634 = vst [vmem:[#allocation105_spill] sm:$0xff] %v8274_v5  ;;  %v8280_v18 = vpop.permute.xlu0 %736 }
 0x259   : > { %5688 = vmatmul.msk.f32.gmra.mxu3 %vm553_vm0, %v7739_v33  ;;  %v8284_v32 = vpop.permute.xlu1 %738  ;;  %v11668_v33 = vld [vmem:[#allocation7_spill] sm:$0xff] }
 0x25a   : > { %5872 = vmatpush.xpose.msk.msra.mxu1 %vm553_vm0, %v8136_v38 }
 0x25d   : > { %3014 = vrot.lane.b32.xlu2 %v8264_v22, %s7091_s26  ;;  %5786 = vmatmul.msk.f32.gmra.mxu1 %vm553_vm0, %v7962_v35 }
 0x25e   : > { %5873 = vmatpush.xpose.msk.msra.mxu1 %vm553_vm0, %v8134_v50 }
 0x25f   : > { %v741_v41 = vpop.permute.xlu2 %740  ;;  %1852 = vrot.lane.b32.xlu0 %v8240_v63, %s7090_s24  ;;  %837 = vrot.lane.b32.xlu1 %v8264_v22, %s7088_s22 }
 0x260   : > { %v8298_v38 = vpop.permute.xlu0 %1761 }
 0x261   : > { %5689 = vmatmul.msk.f32.gmra.mxu3 %vm553_vm0, %v7755_v54  ;;  %v8302_v50 = vpop.permute.xlu1 %1747  ;;  %v11656_v54 = vld [vmem:[#allocation2_spill] sm:$0xff] }
 0x262   : > { %5874 = vmatpush.xpose.msk.msra.mxu1 %vm553_vm0, %v8025_v25  ;;  %11635 = vst [vmem:[#allocation106_spill] sm:$0xff] %v8302_v50  ;;  %v523_v25 = vpop.f32.mrf.mxu1  ;;  %v11692_v50 = vld [vmem:[#allocation32_spill] sm:$0xff] }
 0x265   : > { %839 = vrot.lane.b32.xlu2 %v8305_v40, %s7088_s22  ;;  %5787 = vmatmul.msk.f32.gmra.mxu1 %vm553_vm0, %v8054_v19 }
 0x266   : > { %5875 = vmatpush.xpose.msk.msra.mxu1 %vm553_vm0, %v8034_v3 }
 0x267   : > { %v8315_v35 = vpop.permute.xlu2 %1751  ;;  %1870 = vrot.lane.b32.xlu0 %v8264_v22, %s7089_s23  ;;  %1856 = vrot.lane.b32.xlu1 %v8305_v40, %s7090_s24 }
 0x268   : > { %11637 = vst [vmem:[#allocation108_spill] sm:$0xff] %v8315_v35  ;;  %v8321_v46 = vpop.permute.xlu0 %2907  ;;  %v11682_v35 = vld [vmem:[#allocation17_spill] sm:$0xff] }
 0x269   : > { %11638 = vst [vmem:[#allocation109_spill] sm:$0xff] %v8321_v46  ;;  %5690 = vmatmul.msk.f32.gmra.mxu3 %vm553_vm0, %v7782_v11  ;;  %v8325_v3 = vpop.permute.xlu1 %1765  ;;  %v11662_v11 = vld [vmem:[#allocation33_spill] sm:$0xff] }
 0x26a   : > { %5876 = vmatpush.xpose.msk.msra.mxu1 %vm553_vm0, %v8030_v26  ;;  %v8330_v26 = vadd.f32 %v523_v25, %v7544_v48  ;;  %v526_v19 = vpop.f32.mrf.mxu1 }
 0x26c   : > { %11639 = vst [vmem:[#allocation110_spill] sm:$0xff] %v8330_v26 }
 0x26d   : > { %1872 = vrot.lane.b32.xlu2 %v8305_v40, %s7089_s23  ;;  %5788 = vmatmul.msk.f32.gmra.mxu1 %vm553_vm0, %v8113_v2  ;;  %v8351_v2 = vadd.f32 %v526_v19, %v7544_v48 }
 0x26e   : > { %5877 = vmatpush.xpose.msk.msra.mxu1 %vm553_vm0, %v7926_v4 }
 0x26f   : > { %v8338_v62 = vpop.permute.xlu2 %2911  ;;  %3016 = vrot.lane.b32.xlu0 %v8305_v40, %s7091_s26  ;;  %1874 = vrot.lane.b32.xlu1 %v8330_v26, %s7089_s23  ;;  %11643 = vst [vmem:[#allocation114_spill] sm:$0xff] %v8351_v2 }
 0x270   : > { %11640 = vst [vmem:[#allocation111_spill] sm:$0xff] %v8338_v62  ;;  %v8344_v4 = vpop.permute.xlu0 %1749 }
 0x271   : > { %11641 = vst [vmem:[#allocation112_spill] sm:$0xff] %v8344_v4  ;;  %5691 = vmatmul.msk.f32.gmra.mxu3 %vm553_vm0, %v7809_v17  ;;  %v8348_v36 = vpop.permute.xlu1 %2909  ;;  %v11684_v4 = vld [vmem:[#allocation15_spill] sm:$0xff] }
 0x272   : > { %5878 = vmatpush.xpose.msk.msra.mxu1 %vm553_vm0, %v7928_v1  ;;  %11642 = vst [vmem:[#allocation113_spill] sm:$0xff] %v8348_v36 }
 0x275   : > { %1860 = vrot.lane.b32.xlu2 %v8351_v2, %s7090_s24  ;;  %5789 = vmatmul.msk.f32.gmra.mxu1 %vm553_vm0, %v8069_v20 }
 0x277   : > { %v8357_v1 = vpop.permute.xlu2 %1769  ;;  %841 = vrot.lane.b32.xlu0 %v8330_v26, %s7088_s22  ;;  %843 = vrot.lane.b32.xlu1 %v8351_v2, %s7088_s22 }
 0x278   : > { %v8363_v6 = vpop.permute.xlu0 %2925 }
 0x279   : > { %5692 = vmatmul.msk.f32.gmra.mxu3 %vm553_vm0, %v7824_v37  ;;  %v8367_v48 = vpop.permute.xlu1 %2927  ;;  %v11652_v37 = vld [vmem:[#allocation16_spill] sm:$0xff] }
 0x27d   : > { %3026 = vrot.lane.b32.xlu2 %v8211_v12, %s7092_s27  ;;  %5790 = vmatmul.msk.f32.gmra.mxu1 %vm553_vm0, %v8148_v60 }
 0x27f   : > { %v8373_v20 = vpop.permute.xlu2 %2929  ;;  %1858 = vrot.lane.b32.xlu0 %v8330_v26, %s7090_s24  ;;  %3018 = vrot.lane.b32.xlu1 %v8330_v26, %s7091_s26 }
 0x280   : > { %v743_v23 = vpop.permute.xlu0 %742 }
 0x281   : > { %5693 = vmatmul.msk.f32.gmra.mxu3 %vm553_vm0, %v7851_v15  ;;  %v745_v25 = vpop.permute.xlu1 %744 }
 0x285   : > { %3020 = vrot.lane.b32.xlu2 %v8351_v2, %s7091_s26 }
 0x287   : > { %v747_v19 = vpop.permute.xlu2 %746  ;;  %1876 = vrot.lane.b32.xlu0 %v8351_v2, %s7089_s23  ;;  %3024 = vrot.lane.b32.xlu1 %v8168_v47, %s7092_s27 }
 0x288   : > { %5695 = vmatpush.xpose.msk.msra.mxu2 %vm553_vm0, %v747_v19  ;;  %v8388_v60 = vpop.permute.xlu0 %1767 }
 0x289   : > { %5694 = vmatmul.msk.f32.gmra.mxu3 %vm553_vm0, %v7874_v45  ;;  %v8392_v62 = vpop.permute.xlu1 %1753 }
 0x28a   : > { %11644 = vst [vmem:[#allocation115_spill] sm:$0xff] %v8392_v62  ;;  %v11678_v62 = vld [vmem:[#allocation29_spill] sm:$0xff] }
 0x28c   : > { %5696 = vmatpush.xpose.msk.msra.mxu2 %vm553_vm0, %v745_v25 }
 0x28f   : > { %3022 = vrot.lane.b32.xlu0 %v8154_v28, %s7092_s27 }
 0x290   : > { %5697 = vmatpush.xpose.msk.msra.mxu2 %vm553_vm0, %v743_v23  ;;  %v8398_v36 = vpop.permute.xlu0 %2913 }
 0x291   : > { %11645 = vst [vmem:[#allocation116_spill] sm:$0xff] %v8398_v36  ;;  %v8400_v46 = vpop.permute.xlu1 %1771  ;;  %v8417_v36 = vpop.f32.mrf.mxu0 }
 0x294   : > { %5698 = vmatpush.xpose.msk.msra.mxu2 %vm553_vm0, %v741_v41 }
 0x298   : > { %5699 = vmatpush.xpose.msk.msra.mxu2 %vm553_vm0, %v8284_v32  ;;  %v8405_v19 = vpop.permute.xlu0 %1755  ;;  %v11648_v32 = vld [vmem:[#allocation38_spill] sm:$0xff] }
 0x299   : > { %11646 = vst [vmem:[#allocation117_spill] sm:$0xff] %v8405_v19  ;;  %v8407_v21 = vpop.permute.xlu1 %2915 }
 0x29a   : > { %11647 = vst [vmem:[#allocation118_spill] sm:$0xff] %v8407_v21  ;;  %v8430_v21 = vpop.f32.mrf.mxu2 }
 0x29c   : > { %5700 = vmatpush.xpose.msk.msra.mxu2 %vm553_vm0, %v8280_v18 }
 0x2a0   : > { %5701 = vmatpush.xpose.msk.msra.mxu2 %vm553_vm0, %v8181_v57  ;;  %v8413_v23 = vpop.permute.xlu0 %2931  ;;  %v11650_v57 = vld [vmem:[#allocation28_spill] sm:$0xff] }
 0x2a1   : > { %v8415_v25 = vpop.permute.xlu1 %1862 }
 0x2a2   : > { %v8449_v17 = vpop.f32.mrf.mxu2 }
 0x2a4   : > { %5702 = vmatpush.xpose.msk.msra.mxu2 %vm553_vm0, %v8165_v39  ;;  %v1951_v39 = vsel %vm918_vm1, %v8417_v36, -inf }
 0x2a7   : > { %5703 = vmatmul.msk.f32.vlgmr.msra.gmra.mxu2 %vm553_vm0, %v7887_v34  ;;  %v11655_v34 = vld [vmem:[#allocation3_spill] sm:$0xff] }
 0x2a8   : > { %1239 = vmatpush.msrb.mxu2 %v7525_v56  ;;  %v8425_v18 = vpop.permute.xlu0 %829  ;;  %v8435_v56 = vpop.f32.mrf.mxu0 }
 0x2a9   : > { %v8427_v41 = vpop.permute.xlu1 %3006 }
 0x2aa   : > { %1240 = vmatpush.msrb.mxu2 %v11648_v32  ;;  %11649 = vst [vmem:[#allocation119_spill] sm:$0xff] %v8427_v41  ;;  %v11653_v32 = vld [vmem:[#allocation14_spill] sm:$0xff] }
 0x2ac   : > { %1241 = vmatpush.msrb.mxu2 %v11650_v57  ;;  %v1954_v57 = vsel %vm918_vm1, %v8435_v56, -inf }
 0x2ae   : > { %1242 = vmatpush.msrb.mxu2 %v11651_v7  ;;  %1952 = vmax.xlane.f32.xlu2 %v1951_v39  ;;  %v11657_v39 = vld [vmem:[#allocation46_spill] sm:$0xff] }
 0x2af   : > { %5704 = vmatmul.msk.f32.gmra.mxu2 %vm553_vm0, %v7916_v31  ;;  %v11659_v31 = vld [vmem:[#allocation44_spill] sm:$0xff] }
 0x2b0   : > { %1243 = vmatpush.msrb.mxu2 %v11652_v37  ;;  %v8441_v41 = vpop.permute.xlu0 %1846  ;;  %v919_v37 = vsel %vm918_vm1, %v8430_v21, -inf  ;;  %v8467_v15 = vpop.f32.mrf.mxu0 }
 0x2b1   : > { %11654 = vst [vmem:[#allocation120_spill] sm:$0xff] %v8441_v41  ;;  %v8445_v7 = vpop.permute.xlu1 %831  ;;  %1955 = vmax.xlane.f32.xlu1 %v1954_v57  ;;  %v922_v57 = vsel %vm918_vm1, %v8449_v17, -inf }
 0x2b2   : > { %1244 = vmatpush.msrb.mxu2 %v11653_v32  ;;  %v8454_v32 = vpop.permute.xlu2 %1848 }
 0x2b3   : > { %11658 = vst [vmem:[#allocation121_spill] sm:$0xff] %v8454_v32 }
 0x2b4   : > { %1245 = vmatpush.msrb.mxu2 %v11655_v34  ;;  %v11660_v34 = vld [vmem:[#allocation34_spill] sm:$0xff] }
 0x2b6   : > { %1246 = vmatpush.msrb.mxu2 %v11656_v54  ;;  %920 = vmax.xlane.f32.xlu2 %v919_v37  ;;  %v11663_v37 = vld [vmem:[#allocation21_spill] sm:$0xff] }
 0x2b7   : > { %5705 = vmatmul.msk.f32.gmra.mxu2 %vm553_vm0, %v7953_v10 }
 0x2b8   : > { %1369 = vmatpush.msra.mxu2 %v11657_v39 }
 0x2b9   : > { %923 = vmax.xlane.f32.xlu0 %v922_v57  ;;  %v8462_v54 = vpop.permute.xlu1 %1850  ;;  %v8464_v39 = vpop.permute.xlu0 %1864  ;;  %v1957_v57 = vsel %vm918_vm1, %v8467_v15, -inf }
 0x2ba   : > { %1370 = vmatpush.msra.mxu2 %v11659_v31  ;;  %11661 = vst [vmem:[#allocation122_spill] sm:$0xff] %v8462_v54  ;;  %v11664_v31 = vld [vmem:[#allocation23_spill] sm:$0xff]  ;;  %v8471_v45 = vpop.permute.xlu2 %3008 }
 0x2bb   : > { %11665 = vst [vmem:[#allocation123_spill] sm:$0xff] %v8471_v45 }
 0x2bc   : > { %1371 = vmatpush.msra.mxu2 %v11660_v34  ;;  %v11666_v34 = vld [vmem:[#allocation8_spill] sm:$0xff] }
 0x2be   : > { %1372 = vmatpush.msra.mxu2 %v11662_v11 }
 0x2bf   : > { %5706 = vmatmul.msk.f32.gmra.mxu2 %vm553_vm0, %v7975_v16 }
 0x2c0   : > { %1373 = vmatpush.msra.mxu2 %v11663_v37 }
 0x2c1   : > { %1958 = vmax.xlane.f32.xlu0 %v1957_v57  ;;  %v8478_v10 = vpop.permute.xlu1 %1868  ;;  %v8480_v11 = vpop.permute.xlu0 %3010 }
 0x2c2   : > { %1374 = vmatpush.msra.mxu2 %v11664_v31  ;;  %11667 = vst [vmem:[#allocation124_spill] sm:$0xff] %v8480_v11  ;;  %v834_v37 = vpop.permute.xlu2 %833 }
 0x2c4   : > { %1375 = vmatpush.msra.mxu2 %v11666_v34 }
 0x2c6   : > { %1376 = vmatpush.msra.mxu2 %v11668_v33 }
 0x2c7   : > { %5707 = vmatmul.msk.f32.gmra.mxu2 %vm553_vm0, %v8017_v9 }
 0x2c9   : > { %v836_v31 = vpop.permute.xlu0 %835  ;;  %v8485_v45 = vpop.permute.xlu1 %3012 }
 0x2ca   : > { %11669 = vst [vmem:[#allocation125_spill] sm:$0xff] %v8485_v45  ;;  %3030 = vrot.lane.b32.xlu1 %v8264_v22, %s7092_s27  ;;  %v8495_v33 = vpop.permute.xlu2 %1866 }
 0x2ce   : > { %3032 = vrot.lane.b32.xlu2 %v8305_v40, %s7092_s27 }
 0x2cf   : > { %5708 = vmatmul.msk.f32.gmra.mxu2 %vm553_vm0, %v8061_v0  ;;  %v8511_v0 = vpop.f32.mrf.mxu2 }
 0x2d1   : > { %v8493_v57 = vpop.permute.xlu0 %1852  ;;  %v838_v34 = vpop.permute.xlu1 %837 }
 0x2d2   : > { %11670 = vst [vmem:[#allocation126_spill] sm:$0xff] %v8493_v57  ;;  %v8507_v16 = vpop.permute.xlu2 %1854  ;;  %v8522_v57 = vpop.f32.mrf.mxu0 }
 0x2d3   : > { %11672 = vst [vmem:[#allocation128_spill] sm:$0xff] %v8507_v16 }
 0x2d4   : > { %v8567_v19 = vpop.f32.mrf.mxu3 }
 0x2d5   : > { %3028 = vrot.lane.b32.xlu0 %v8240_v63, %s7092_s27 }
 0x2d7   : > { %5709 = vmatmul.msk.f32.gmra.mxu2 %vm553_vm0, %v8084_v53 }
 0x2d9   : > { %v8501_v45 = vpop.permute.xlu1 %1856  ;;  %v8503_v11 = vpop.permute.xlu0 %1870 }
 0x2da   : > { %11671 = vst [vmem:[#allocation127_spill] sm:$0xff] %v8501_v45  ;;  %v8517_v24 = vpop.permute.xlu2 %3014  ;;  %v8520_v45 = vpop.f32.mrf.mxu2 }
 0x2db   : > { %11674 = vst [vmem:[#allocation130_spill] sm:$0xff] %v8517_v24  ;;  %v1960_v24 = vsel %vm918_vm1, %v8522_v57, -inf }
 0x2dd   : > { %3034 = vrot.lane.b32.xlu0 %v8330_v26, %s7092_s27 }
 0x2df   : > { %5710 = vmatmul.msk.f32.gmra.mxu2 %vm553_vm0, %v8124_v42  ;;  %v925_v42 = vsel %vm918_vm1, %v8511_v0, -inf }
 0x2e1   : > { %v8513_v9 = vpop.permute.xlu1 %1874  ;;  %v8515_v52 = vpop.permute.xlu0 %3016 }
 0x2e2   : > { %11673 = vst [vmem:[#allocation129_spill] sm:$0xff] %v8515_v52  ;;  %v840_v16 = vpop.permute.xlu2 %839  ;;  %v8528_v52 = vpop.f32.mrf.mxu2 }
 0x2e9   : > { %v844_v53 = vpop.permute.xlu1 %843  ;;  %v842_v54 = vpop.permute.xlu0 %841 }
 0x2ea   : > { %5711 = vmatpush.xpose.msk.msra.mxu3 %vm553_vm0, %v844_v53  ;;  %v8533_v53 = vpop.f32.mrf.mxu0  ;;  %v8535_v32 = vpop.permute.xlu2 %1872 }
 0x2ee   : > { %5712 = vmatpush.xpose.msk.msra.mxu3 %vm553_vm0, %v842_v54  ;;  %v1963_v54 = vsel %vm918_vm1, %v8533_v53, -inf }
 0x2f2   : > { %5713 = vmatpush.xpose.msk.msra.mxu3 %vm553_vm0, %v840_v16  ;;  %v928_v16 = vsel %vm918_vm1, %v8520_v45, -inf }
 0x2f4   : > { %926 = vmax.xlane.f32.xlu1 %v925_v42  ;;  %v8543_v42 = vpop.f32.mrf.mxu2 }
 0x2f6   : > { %5714 = vmatpush.xpose.msk.msra.mxu3 %vm553_vm0, %v838_v34  ;;  %v8545_v34 = vpop.f32.mrf.mxu0 }
 0x2f7   : > { %1961 = vmax.xlane.f32.xlu2 %v1960_v24  ;;  %v8549_v24 = vpop.f32.mrf.mxu1 }
 0x2fa   : > { %5715 = vmatpush.xpose.msk.msra.mxu3 %vm553_vm0, %v836_v31  ;;  %v8551_v31 = vpop.permute.xlu2 %1860 }
 0x2fb   : > { %11675 = vst [vmem:[#allocation131_spill] sm:$0xff] %v8551_v31 }
 0x2fc   : > { %1964 = vmax.xlane.f32.xlu1 %v1963_v54  ;;  %v1966_v54 = vsel %vm918_vm1, %v8545_v34, -inf  ;;  %v8560_v41 = vpop.f32.mrf.mxu2 }
 0x2fe   : > { %5716 = vmatpush.xpose.msk.msra.mxu3 %vm553_vm0, %v834_v37  ;;  %v931_v37 = vsel %vm918_vm1, %v8528_v52, -inf  ;;  %v8565_v31 = vpop.f32.mrf.mxu0 }
 0x2ff   : > { %929 = vmax.xlane.f32.xlu2 %v928_v16  ;;  %v11676_v16 = vld [vmem:[#allocation41_spill] sm:$0xff] }
 0x302   : > { %5717 = vmatpush.xpose.msk.msra.mxu3 %vm553_vm0, %v8445_v7  ;;  %v11677_v7 = vld [vmem:[#allocation39_spill] sm:$0xff] }
 0x304   : > { %v8587_v58 = vpop.f32.mrf.mxu2 }
 0x306   : > { %5718 = vmatpush.xpose.msk.msra.mxu3 %vm553_vm0, %v8425_v18  ;;  %v8570_v18 = vpop.f32.mrf.mxu1 }
 0x307   : > { %1967 = vmax.xlane.f32.xlu0 %v1966_v54  ;;  %932 = vmax.xlane.f32.xlu2 %v931_v37  ;;  %v934_v54 = vsel %vm918_vm1, %v8543_v42, -inf  ;;  %v8574_v37 = vpop.permute.xlu2 %3026 }
 0x308   : > { %11679 = vst [vmem:[#allocation132_spill] sm:$0xff] %v8574_v37  ;;  %v11685_v37 = vld [vmem:[#allocation6_spill] sm:$0xff] }
 0x309   : > { %5719 = vmatmul.msk.f32.vlgmr.msra.gmra.mxu3 %vm553_vm0, %v8154_v28  ;;  %v1969_v28 = vsel %vm918_vm1, %v8565_v31, -inf }
 0x30a   : > { %1304 = vmatpush.msrb.mxu3 %v11676_v16  ;;  %v11680_v16 = vld [vmem:[#allocation27_spill] sm:$0xff] }
 0x30c   : > { %1305 = vmatpush.msrb.mxu3 %v11677_v7  ;;  %v8579_v7 = vpop.permute.xlu0 %1858 }
 0x30d   : > { %11681 = vst [vmem:[#allocation133_spill] sm:$0xff] %v8579_v7  ;;  %v11689_v7 = vld [vmem:[#allocation45_spill] sm:$0xff] }
 0x30e   : > { %1306 = vmatpush.msrb.mxu3 %v11678_v62  ;;  %v8584_v62 = vpop.permute.xlu1 %3018 }
 0x30f   : > { %935 = vmax.xlane.f32.xlu0 %v934_v54  ;;  %1970 = vmax.xlane.f32.xlu2 %v1969_v28  ;;  %11683 = vst [vmem:[#allocation134_spill] sm:$0xff] %v8584_v62  ;;  %v1975_v54 = vsel %vm918_vm1, %v8549_v24, -inf  ;;  %v8594_v28 = vpop.f32.mrf.mxu3  ;;  %v8599_v62 = vpop.f32.mrf.mxu1 }
 0x310   : > { %1307 = vmatpush.msrb.mxu3 %v11680_v16  ;;  %v11686_v16 = vld [vmem:[#allocation10_spill] sm:$0xff] }
 0x311   : > { %5720 = vmatmul.msk.f32.gmra.mxu3 %vm553_vm0, %v8168_v47 }
 0x312   : > { %1308 = vmatpush.msrb.mxu3 %v11682_v35  ;;  %v940_v35 = vsel %vm918_vm1, %v8587_v58, -inf }
 0x314   : > { %1309 = vmatpush.msrb.mxu3 %v11684_v4  ;;  %v11687_v4 = vld [vmem:[#allocation47_spill] sm:$0xff]  ;;  %v8604_v47 = vpop.permute.xlu0 %1876 }
 0x315   : > { %3036 = vrot.lane.b32.xlu1 %v8351_v2, %s7092_s27 }
 0x316   : > { %1310 = vmatpush.msrb.mxu3 %v11685_v37  ;;  %v8602_v37 = vpop.permute.xlu2 %3020 }
 0x317   : > { %1976 = vmax.xlane.f32.xlu0 %v1975_v54  ;;  %941 = vmax.xlane.f32.xlu2 %v940_v35  ;;  %11688 = vst [vmem:[#allocation135_spill] sm:$0xff] %v8602_v37  ;;  %v943_v54 = vsel %vm918_vm1, %v8567_v19, -inf  ;;  %v1978_v35 = vsel %vm918_vm1, %v8570_v18, -inf }
 0x318   : > { %1311 = vmatpush.msrb.mxu3 %v11686_v16  ;;  %v8610_v16 = vpop.permute.xlu1 %3024 }
 0x319   : > { %5721 = vmatmul.msk.f32.gmra.mxu3 %vm553_vm0, %v8211_v12  ;;  %11691 = vst [vmem:[#allocation136_spill] sm:$0xff] %v8610_v16  ;;  %v8620_v12 = vpop.f32.mrf.mxu1 }
 0x31a   : > { %1434 = vmatpush.msra.mxu3 %v11687_v4  ;;  %v11693_v4 = vld [vmem:[#allocation22_spill] sm:$0xff]  ;;  %v1984_v43 = vsel %vm918_vm1, %v8620_v12, -inf }
 0x31c   : > { %1435 = vmatpush.msra.mxu3 %v11689_v7  ;;  %v8618_v7 = vpop.f32.mrf.mxu3 }
 0x31e   : > { %1436 = vmatpush.msra.mxu3 %v11690_v51  ;;  %v11694_v51 = vld [vmem:[#allocation20_spill] sm:$0xff] }
 0x31f   : > { %944 = vmax.xlane.f32.xlu0 %v943_v54  ;;  %1979 = vmax.xlane.f32.xlu2 %v1978_v35  ;;  %v11697_v35 = vld [vmem:[#allocation5_spill] sm:$0xff] }
 0x320   : > { %1437 = vmatpush.msra.mxu3 %v11692_v50  ;;  %v8626_v50 = vpop.permute.xlu0 %3022 }
 0x321   : > { %v1953_v37 = vpop.xlane.xlu2 %1952  ;;  %5722 = vmatmul.msk.f32.gmra.mxu3 %vm553_vm0, %v8240_v63  ;;  %11695 = vst [vmem:[#allocation137_spill] sm:$0xff] %v8626_v50 }
 0x322   : > { %1438 = vmatpush.msra.mxu3 %v11693_v4  ;;  %v2047_v16 = vsub.f32 %v8417_v36, %v1953_v37  ;;  %v949_v36 = vsel %vm918_vm1, %v8618_v7, -inf }
 0x324   : > { %1439 = vmatpush.msra.mxu3 %v11694_v51  ;;  %v2079_v54 = vmul.f32 1.442695, %v2047_v16  ;;  %v1956_v5 = vpop.xlane.xlu1 %1955  ;;  %v8636_v63 = vpop.f32.mrf.mxu3 }
 0x325   : > { %v2048_v4 = vsub.f32 %v8435_v56, %v1956_v5  ;;  %v8642_v56 = vpop.f32.mrf.mxu1 }
 0x326   : > { %1440 = vmatpush.msra.mxu3 %v11696_v13  ;;  %6567 = vpow2.f32 %v2079_v54 }
 0x327   : > { %1985 = vmax.xlane.f32.xlu0 %v1984_v43  ;;  %950 = vmax.xlane.f32.xlu2 %v949_v36  ;;  %v2081_v37 = vmul.f32 1.442695, %v2048_v4 }
 0x328   : > { %1441 = vmatpush.msra.mxu3 %v11697_v35 }
 0x329   : > { %v921_v51 = vpop.xlane.xlu2 %920  ;;  %5723 = vmatmul.msk.f32.gmra.mxu3 %vm553_vm0, %v8264_v22  ;;  %6569 = vpow2.f32 %v2081_v37 }
 0x32a   : > { %v1015_v16 = vsub.f32 %v8430_v21, %v921_v51  ;;  %v952_v21 = vsel %vm918_vm1, %v8636_v63, -inf  ;;  %v1987_v51 = vsel %vm918_vm1, %v8642_v56, -inf }
 0x32c   : > { %v8640_v54 = vpop.eup %6567  ;;  %v1047_v5 = vmul.f32 1.442695, %v1015_v16  ;;  %v924_v35 = vpop.xlane.xlu0 %923 }
 0x32d   : > { %5823 = vmatmul.msk.f32.vlgmr.msra.gmra.mxu0 %vm918_vm1, %v8640_v54  ;;  %v1016_v43 = vsub.f32 %v8449_v17, %v924_v35 }
 0x32e   : > { %6571 = vpow2.f32 %v1047_v5 }
 0x32f   : > { %953 = vmax.xlane.f32.xlu0 %v952_v21  ;;  %1988 = vmax.xlane.f32.xlu2 %v1987_v51  ;;  %v1049_v4 = vmul.f32 1.442695, %v1016_v43  ;;  %v8651_v36 = vpop.eup %6569  ;;  %v11699_v21 = vld [vmem:[#allocation30_spill] sm:$0xff]  ;;  %v8704_v51 = vpop.f32.mrf.mxu3 }
 0x331   : > { %5724 = vmatmul.msk.f32.gmra.mxu3 %vm553_vm0, %v8305_v40  ;;  %6573 = vpow2.f32 %v1049_v4  ;;  %v8706_v4 = vpop.f32.mrf.mxu1 }
 0x334   : > { %v8655_v37 = vpop.eup %6571  ;;  %v1959_v16 = vpop.xlane.xlu0 %1958 }
 0x335   : > { %v2049_v5 = vsub.f32 %v8467_v15, %v1959_v16  ;;  %5727 = vmatmul.msk.f32.vlgmr.msrb.gmra.mxu2 %vm918_vm1, %v8655_v37  ;;  %5824 = vmatmul.msk.f32.gmra.mxu0 %vm918_vm1, %v8651_v36 }
 0x336   : > { %5791 = vmatpush.xpose.msk.msrb.mxu2 %vm553_vm0, %v8400_v46  ;;  %v937_v46 = vsel %vm918_vm1, %v8560_v41, -inf }
 0x337   : > { %v2083_v17 = vmul.f32 1.442695, %v2049_v5  ;;  %v8668_v35 = vpop.eup %6573  ;;  %v8714_v5 = vpop.f32.mrf.mxu3 }
 0x339   : > { %6575 = vpow2.f32 %v2083_v17  ;;  %5725 = vmatmul.msk.f32.gmra.mxu3 %vm553_vm0, %v8330_v26 }
 0x33a   : > { %5792 = vmatpush.xpose.msk.msrb.mxu2 %vm553_vm0, %v8357_v1  ;;  %v11698_v1 = vld [vmem:[#allocation4_spill] sm:$0xff] }
 0x33c   : > { %v8710_v16 = vpop.permute.xlu1 %3030 }
 0x33d   : > { %5728 = vmatmul.msk.f32.gmra.mxu2 %vm918_vm1, %v8668_v35 }
 0x33e   : > { %5793 = vmatpush.xpose.msk.msrb.mxu2 %vm553_vm0, %v8388_v60  ;;  %v8686_v60 = vpop.f32.mrf.mxu0 }
 0x33f   : > { %v8674_v15 = vpop.eup %6575  ;;  %938 = vmax.xlane.f32.xlu1 %v937_v46  ;;  %v1972_v43 = vsel %vm918_vm1, %v8686_v60, -inf  ;;  %v8728_v40 = vpop.f32.mrf.mxu3 }
 0x340   : > { %5825 = vmatmul.msk.f32.gmra.mxu0 %vm918_vm1, %v8674_v15 }
 0x341   : > { %5726 = vmatmul.msk.f32.gmra.mxu3 %vm553_vm0, %v8351_v2  ;;  %v8730_v2 = vpop.f32.mrf.mxu2 }
 0x342   : > { %5794 = vmatpush.xpose.msk.msrb.mxu2 %vm553_vm0, %v8325_v3  ;;  %v946_v3 = vsel %vm918_vm1, %v8594_v28, -inf }
 0x343   : > { %6197 = vrot.lane.b32.xlu0 %v11698_v1, %s7093_s28  ;;  %v8720_v1 = vpop.f32.mrf.mxu1 }
 0x346   : > { %5795 = vmatpush.xpose.msk.msrb.mxu2 %vm553_vm0, %v8250_v61  ;;  %v1981_v61 = vsel %vm918_vm1, %v8599_v62, -inf }
 0x347   : > { %1973 = vmax.xlane.f32.xlu1 %v1972_v43  ;;  %6207 = vrot.lane.b32.xlu2 %v11699_v21, %s7093_s28  ;;  %v8718_v17 = vpop.permute.xlu0 %3028 }
 0x348   : > { %11700 = vst [vmem:[#allocation4_spill] sm:$0xff] %v8718_v17 }
 0x34a   : > { %5796 = vmatpush.xpose.msk.msrb.mxu2 %vm553_vm0, %v8298_v38  ;;  %v955_v38 = vsel %vm918_vm1, %v8704_v51, -inf }
 0x34e   : > { %5797 = vmatpush.xpose.msk.msrb.mxu2 %vm553_vm0, %v8205_v49  ;;  %v8712_v49 = vpop.permute.xlu2 %3032 }
 0x34f   : > { %947 = vmax.xlane.f32.xlu1 %v946_v3 }
 0x352   : > { %5798 = vmatpush.xpose.msk.msrb.mxu2 %vm553_vm0, %v8144_v30  ;;  %v1990_v30 = vsel %vm918_vm1, %v8706_v4, -inf }
 0x357   : > { %1982 = vmax.xlane.f32.xlu1 %v1981_v61 }
 0x35f   : > { %956 = vmax.xlane.f32.xlu1 %v955_v38  ;;  %v1993_v38 = vsel %vm918_vm1, %v8720_v1, -inf }
 0x367   : > { %1991 = vmax.xlane.f32.xlu1 %v1990_v30  ;;  %v927_v46 = vpop.xlane.xlu1 %926  ;;  %v958_v30 = vsel %vm918_vm1, %v8714_v5, -inf }
 0x368   : > { %v1017_v43 = vsub.f32 %v8511_v0, %v927_v46  ;;  %v8733_v46 = vpop.permute.xlu0 %3034 }
 0x36a   : > { %v1962_v21 = vpop.xlane.xlu2 %1961  ;;  %v1051_v3 = vmul.f32 1.442695, %v1017_v43 }
 0x36b   : > { %v2050_v61 = vsub.f32 %v8522_v57, %v1962_v21 }
 0x36c   : > { %6577 = vpow2.f32 %v1051_v3 }
 0x36d   : > { %v2085_v13 = vmul.f32 1.442695, %v2050_v61  ;;  %1994 = vmax.xlane.f32.xlu0 %v1993_v38  ;;  %v8739_v38 = vpop.f32.mrf.mxu1 }
 0x36f   : > { %6579 = vpow2.f32 %v2085_v13  ;;  %v1965_v26 = vpop.xlane.xlu1 %1964  ;;  %v961_v13 = vsel %vm918_vm1, %v8728_v40, -inf }
 0x370   : > { %v2051_v0 = vsub.f32 %v8533_v53, %v1965_v26  ;;  %959 = vmax.xlane.f32.xlu2 %v958_v30  ;;  %v1996_v26 = vsel %vm918_vm1, %v8739_v38, -inf }
 0x372   : > { %v930_v57 = vpop.xlane.xlu2 %929  ;;  %v6578_v43 = vpop.eup %6577  ;;  %v2087_v21 = vmul.f32 1.442695, %v2051_v0 }
 0x373   : > { %v1018_v3 = vsub.f32 %v8520_v45, %v930_v57  ;;  %5729 = vmatmul.msk.f32.gmra.mxu2 %vm918_vm1, %v6578_v43  ;;  %v8744_v45 = vpop.f32.mrf.mxu2 }
 0x374   : > { %6581 = vpow2.f32 %v2087_v21  ;;  %v2143_v21 = vsel %vm918_vm1, %v8640_v54, 0.0 }
 0x375   : > { %v6580_v61 = vpop.eup %6579  ;;  %v1053_v22 = vmul.f32 1.442695, %v1018_v3  ;;  %962 = vmax.xlane.f32.xlu0 %v961_v13 }
 0x376   : > { %5826 = vmatmul.msk.f32.gmra.mxu0 %vm918_vm1, %v6580_v61 }
 0x377   : > { %6583 = vpow2.f32 %v1053_v22 }
 0x378   : > { %1997 = vmax.xlane.f32.xlu2 %v1996_v26  ;;  %v11701_v26 = vld [vmem:[#allocation19_spill] sm:$0xff] }
 0x37a   : > { %v1968_v53 = vpop.xlane.xlu0 %1967  ;;  %v933_v0 = vpop.xlane.xlu2 %932 }
 0x37b   : > { %v2052_v30 = vsub.f32 %v8545_v34, %v1968_v53  ;;  %v8747_v57 = vpop.eup %6581  ;;  %v1019_v50 = vsub.f32 %v8528_v52, %v933_v0  ;;  %v967_v34 = vsel %vm918_vm1, %v8730_v2, -inf }
 0x37d   : > { %v6584_v3 = vpop.eup %6583  ;;  %v2089_v13 = vmul.f32 1.442695, %v2052_v30  ;;  %2144 = vadd.xlane.f32.xlu0 %v2143_v21  ;;  %v1055_v22 = vmul.f32 1.442695, %v1019_v50  ;;  %v1111_v30 = vsel %vm918_vm1, %v8655_v37, 0.0  ;;  %v8765_v21 = vpop.f32.mrf.mxu2 }
 0x37e   : > { %5730 = vmatmul.msk.f32.gmra.mxu2 %vm918_vm1, %v6584_v3  ;;  %5827 = vmatmul.msk.f32.gmra.mxu0 %vm918_vm1, %v8747_v57 }
 0x37f   : > { %6585 = vpow2.f32 %v2089_v13 }
 0x380   : > { %6587 = vpow2.f32 %v1055_v22  ;;  %6202 = vrot.lane.b32.xlu1 %v11701_v26, %s7093_s28  ;;  %968 = vmax.xlane.f32.xlu2 %v967_v34  ;;  %v970_v26 = vsel %vm918_vm1, %v8744_v45, -inf }
 0x382   : > { %v936_v52 = vpop.xlane.xlu0 %935  ;;  %v1971_v54 = vpop.xlane.xlu2 %1970 }
 0x383   : > { %v1020_v53 = vsub.f32 %v8543_v42, %v936_v52  ;;  %v2053_v50 = vsub.f32 %v8565_v31, %v1971_v54  ;;  %v2146_v42 = vsel %vm918_vm1, %v8651_v36, 0.0  ;;  %v1117_v36 = vsel %vm918_vm1, %v6578_v43, 0.0 }
 0x385   : > { %v8763_v0 = vpop.eup %6585  ;;  %v1057_v13 = vmul.f32 1.442695, %v1020_v53  ;;  %1112 = vadd.xlane.f32.xlu0 %v1111_v30  ;;  %v2091_v17 = vmul.f32 1.442695, %v2053_v50  ;;  %v8780_v50 = vpop.f32.mrf.mxu2 }
 0x386   : > { %v8767_v22 = vpop.eup %6587  ;;  %5828 = vmatmul.msk.f32.gmra.mxu0 %vm918_vm1, %v8763_v0  ;;  %v976_v43 = vsel %vm918_vm1, %v8780_v50, -inf }
 0x387   : > { %6589 = vpow2.f32 %v1057_v13  ;;  %5731 = vmatmul.msk.f32.gmra.mxu2 %vm918_vm1, %v8767_v22 }
 0x388   : > { %6591 = vpow2.f32 %v2091_v17  ;;  %2147 = vadd.xlane.f32.xlu2 %v2146_v42  ;;  %v2152_v42 = vsel %vm918_vm1, %v6580_v61, 0.0 }
 0x38a   : > { %v1977_v31 = vpop.xlane.xlu0 %1976  ;;  %v8775_v37 = vpop.xlane.xlu2 %941 }
 0x38b   : > { %v2055_v34 = vsub.f32 %v8549_v24, %v1977_v31 }
 0x38d   : > { %v6590_v52 = vpop.eup %6589  ;;  %v2095_v54 = vmul.f32 1.442695, %v2055_v34  ;;  %971 = vmax.xlane.f32.xlu0 %v970_v26 }
 0x38e   : > { %v6592_v53 = vpop.eup %6591 }
 0x38f   : > { %6593 = vpow2.f32 %v2095_v54  ;;  %5732 = vmatmul.msk.f32.gmra.mxu2 %vm918_vm1, %v6590_v52  ;;  %5829 = vmatmul.msk.f32.gmra.mxu0 %vm918_vm1, %v6592_v53  ;;  %v8794_v54 = vpop.f32.mrf.mxu2 }
 0x390   : > { %1118 = vadd.xlane.f32.xlu2 %v1117_v36  ;;  %v2155_v36 = vsel %vm918_vm1, %v8747_v57, 0.0 }
 0x392   : > { %v945_v17 = vpop.xlane.xlu0 %944  ;;  %v1980_v30 = vpop.xlane.xlu2 %1979 }
 0x393   : > { %v1023_v24 = vsub.f32 %v8567_v19, %v945_v17  ;;  %v2056_v13 = vsub.f32 %v8570_v18, %v1980_v30  ;;  %v1120_v19 = vsel %vm918_vm1, %v6584_v3, 0.0  ;;  %v979_v3 = vsel %vm918_vm1, %v8794_v54, -inf  ;;  %v8822_v30 = vpop.permute.xlu1 %3036 }
 0x395   : > { %v8788_v31 = vpop.eup %6593  ;;  %v1063_v34 = vmul.f32 1.442695, %v1023_v24  ;;  %2153 = vadd.xlane.f32.xlu0 %v2152_v42  ;;  %v2097_v26 = vmul.f32 1.442695, %v2056_v13  ;;  %v8815_v24 = vpop.f32.mrf.mxu3 }
 0x396   : > { %5831 = vmatmul.msk.f32.vlgmr.msrb.gmra.mxu1 %vm918_vm1, %v8788_v31  ;;  %v964_v57 = vsel %vm918_vm1, %v8815_v24, -inf }
 0x397   : > { %6595 = vpow2.f32 %v1063_v34  ;;  %v8809_v17 = vpop.f32.mrf.mxu2  ;;  %v1022_v34 = vsub.f32 %v8587_v58, %v8775_v37 }
 0x398   : > { %6597 = vpow2.f32 %v2097_v26  ;;  %977 = vmax.xlane.f32.xlu2 %v976_v43 }
 0x399   : > { %v1061_v26 = vmul.f32 1.442695, %v1022_v34 }
 0x39a   : > { %v1986_v37 = vpop.xlane.xlu0 %1985 }
 0x39d   : > { %v8797_v18 = vpop.eup %6595  ;;  %1121 = vadd.xlane.f32.xlu0 %v1120_v19 }
 0x39e   : > { %v8799_v61 = vpop.eup %6597  ;;  %5735 = vmatmul.msk.f32.vlgmr.msrb.gmra.mxu3 %vm918_vm1, %v8797_v18 }
 0x39f   : > { %5807 = vmatpush.xpose.msk.msrb.mxu3 %vm553_vm0, %v8604_v47  ;;  %5832 = vmatmul.msk.f32.gmra.mxu1 %vm918_vm1, %v8799_v61  ;;  %v1126_v47 = vsel %vm918_vm1, %v6590_v52, 0.0  ;;  %v8827_v13 = vpop.f32.mrf.mxu2  ;;  %v1114_v52 = vsel %vm918_vm1, %v8668_v35, 0.0 }
 0x3a0   : > { %2156 = vadd.xlane.f32.xlu2 %v2155_v36 }
 0x3a2   : > { %v954_v34 = vpop.xlane.xlu0 %953 }
 0x3a3   : > { %5808 = vmatpush.xpose.msk.msrb.mxu3 %vm553_vm0, %v8513_v9  ;;  %v2161_v9 = vsel %vm918_vm1, %v6592_v53, 0.0 }
 0x3a5   : > { %980 = vmax.xlane.f32.xlu0 %v979_v3 }
 0x3a7   : > { %5809 = vmatpush.xpose.msk.msrb.mxu3 %vm553_vm0, %v8535_v32  ;;  %v985_v32 = vsel %vm918_vm1, %v8827_v13, -inf  ;;  %v8853_v19 = vpop.f32.mrf.mxu2 }
 0x3a8   : > { %1127 = vadd.xlane.f32.xlu2 %v1126_v47 }
 0x3aa   : > { %965 = vmax.xlane.f32.xlu1 %v964_v57 }
 0x3ab   : > { %5810 = vmatpush.xpose.msk.msrb.mxu3 %vm553_vm0, %v8503_v11 }
 0x3ad   : > { %2162 = vadd.xlane.f32.xlu0 %v2161_v9 }
 0x3af   : > { %5811 = vmatpush.xpose.msk.msrb.mxu3 %vm553_vm0, %v8478_v10  ;;  %v2149_v10 = vsel %vm918_vm1, %v8674_v15, 0.0  ;;  %v973_v15 = vsel %vm918_vm1, %v8765_v21, -inf }
 0x3b0   : > { %986 = vmax.xlane.f32.xlu2 %v985_v32  ;;  %v988_v32 = vsel %vm918_vm1, %v8853_v19, -inf }
 0x3b2   : > { %1115 = vadd.xlane.f32.xlu1 %v1114_v52  ;;  %v939_v11 = vpop.xlane.xlu1 %938 }
 0x3b3   : > { %5812 = vmatpush.xpose.msk.msrb.mxu3 %vm553_vm0, %v8495_v33  ;;  %v1021_v53 = vsub.f32 %v8560_v41, %v939_v11  ;;  %v1123_v11 = vsel %vm918_vm1, %v8767_v22, 0.0  ;;  %v1135_v22 = vsel %vm918_vm1, %v8797_v18, 0.0 }
 0x3b5   : > { %v1059_v42 = vmul.f32 1.442695, %v1021_v53 }
 0x3b7   : > { %5813 = vmatpush.xpose.msk.msrb.mxu3 %vm553_vm0, %v8464_v39  ;;  %6599 = vpow2.f32 %v1059_v42  ;;  %v8849_v39 = vpop.f32.mrf.mxu3 }
 0x3b8   : > { %6601 = vpow2.f32 %v1061_v26 }
 0x3ba   : > { %2150 = vadd.xlane.f32.xlu1 %v2149_v10  ;;  %v1974_v33 = vpop.xlane.xlu1 %1973 }
 0x3bb   : > { %5814 = vmatpush.xpose.msk.msrb.mxu3 %vm553_vm0, %v8415_v25  ;;  %v2054_v35 = vsub.f32 %v8686_v60, %v1974_v33  ;;  %v951_v60 = vpop.xlane.xlu2 %950  ;;  %v2058_v33 = vsub.f32 %v8620_v12, %v1986_v37  ;;  %v2158_v12 = vsel %vm918_vm1, %v8763_v0, 0.0  ;;  %v8891_v0 = vpop.permute.xlu0 %6197 }
 0x3bc   : > { %v1025_v9 = vsub.f32 %v8618_v7, %v951_v60 }
 0x3bd   : > { %v6600_v41 = vpop.eup %6599  ;;  %v2093_v43 = vmul.f32 1.442695, %v2054_v35  ;;  %v11702_v35 = vld [vmem:[#allocation69_spill] sm:$0xff] }
 0x3be   : > { %5733 = vmatmul.msk.f32.gmra.mxu2 %vm918_vm1, %v6600_v41  ;;  %v1129_v58 = vsel %vm918_vm1, %v6600_v41, 0.0  ;;  %v8856_v3 = vpop.eup %6601  ;;  %v1067_v53 = vmul.f32 1.442695, %v1025_v9  ;;  %v2170_v41 = vsel %vm918_vm1, %v8799_v61, 0.0 }
 0x3bf   : > { %6603 = vpow2.f32 %v2093_v43  ;;  %1130 = vadd.xlane.f32.xlu0 %v1129_v58  ;;  %v1026_v43 = vsub.f32 %v8636_v63, %v954_v34  ;;  %v2101_v58 = vmul.f32 1.442695, %v2058_v33 }
 0x3c2   : > { %974 = vmax.xlane.f32.xlu1 %v973_v15  ;;  %v948_v25 = vpop.xlane.xlu1 %947 }
 0x3c3   : > { %v1024_v36 = vsub.f32 %v8594_v28, %v948_v25  ;;  %v8865_v28 = vpop.f32.mrf.mxu3  ;;  %v1069_v25 = vmul.f32 1.442695, %v1026_v43 }
 0x3c4   : > { %v994_v63 = vsel %vm918_vm1, %v8865_v28, -inf }
 0x3c5   : > { %v6604_v47 = vpop.eup %6603  ;;  %v1065_v57 = vmul.f32 1.442695, %v1024_v36 }
 0x3c6   : > { %5734 = vmatmul.msk.f32.gmra.mxu2 %vm918_vm1, %v8856_v3  ;;  %5830 = vmatmul.msk.f32.gmra.mxu0 %vm918_vm1, %v6604_v47  ;;  %v2164_v52 = vsel %vm918_vm1, %v6604_v47, 0.0  ;;  %v11703_v47 = vld [vmem:[#allocation66_spill] sm:$0xff] }
 0x3c7   : > { %6605 = vpow2.f32 %v1065_v57  ;;  %989 = vmax.xlane.f32.xlu0 %v988_v32  ;;  %2165 = vadd.xlane.f32.xlu2 %v2164_v52 }
 0x3c8   : > { %6607 = vpow2.f32 %v1067_v53 }
 0x3ca   : > { %1124 = vadd.xlane.f32.xlu1 %v1123_v11  ;;  %v1983_v7 = vpop.xlane.xlu1 %1982 }
 0x3cb   : > { %v2057_v42 = vsub.f32 %v8599_v62, %v1983_v7  ;;  %v1989_v62 = vpop.xlane.xlu2 %1988  ;;  %v8881_v37 = vpop.f32.mrf.mxu3 }
 0x3cc   : > { %v2059_v18 = vsub.f32 %v8642_v56, %v1989_v62  ;;  %v982_v56 = vsel %vm918_vm1, %v8809_v17, -inf }
 0x3cd   : > { %v6606_v10 = vpop.eup %6605  ;;  %v2099_v26 = vmul.f32 1.442695, %v2057_v42 }
 0x3ce   : > { %5736 = vmatmul.msk.f32.gmra.mxu3 %vm918_vm1, %v6606_v10  ;;  %5863 = vmatmul.msk.f32.vlgmr.msrb.gmra.mxu0 %vm553_vm0, %v11702_v35  ;;  %v8883_v60 = vpop.eup %6607  ;;  %v1138_v57 = vsel %vm918_vm1, %v6606_v10, 0.0  ;;  %v2103_v9 = vmul.f32 1.442695, %v2059_v18  ;;  %v11704_v10 = vld [vmem:[#allocation74_spill] sm:$0xff]  ;;  %v1132_v35 = vsel %vm918_vm1, %v8856_v3, 0.0  ;;  %v11705_v3 = vld [vmem:[#allocation76_spill] sm:$0xff] }
 0x3cf   : > { %6609 = vpow2.f32 %v2099_v26  ;;  %2171 = vadd.xlane.f32.xlu0 %v2170_v41  ;;  %1136 = vadd.xlane.f32.xlu2 %v1135_v22  ;;  %v997_v26 = vsel %vm918_vm1, %v8881_v37, -inf }
 0x3d0   : > { %6611 = vpow2.f32 %v2101_v58 }
 0x3d1   : > { %6613 = vpow2.f32 %v1069_v25 }
 0x3d2   : > { %2159 = vadd.xlane.f32.xlu1 %v2158_v12  ;;  %v957_v15 = vpop.xlane.xlu1 %956  ;;  %6615 = vpow2.f32 %v2103_v9 }
 0x3d3   : > { %v1027_v36 = vsub.f32 %v8704_v51, %v957_v15  ;;  %v8899_v32 = vpop.permute.xlu2 %6207  ;;  %v8903_v51 = vpop.f32.mrf.mxu3 }
 0x3d5   : > { %v6610_v61 = vpop.eup %6609  ;;  %v1071_v52 = vmul.f32 1.442695, %v1027_v36 }
 0x3d6   : > { %5737 = vmatmul.msk.f32.gmra.mxu3 %vm918_vm1, %v8883_v60  ;;  %5833 = vmatmul.msk.f32.gmra.mxu1 %vm918_vm1, %v6610_v61  ;;  %v8901_v11 = vpop.eup %6611  ;;  %v2173_v42 = vsel %vm918_vm1, %v6610_v61, 0.0 }
 0x3d7   : > { %5864 = vmatmul.msk.f32.gmra.mxu0 %vm553_vm0, %v11703_v47  ;;  %995 = vmax.xlane.f32.xlu2 %v994_v63  ;;  %v6614_v7 = vpop.eup %6613  ;;  %6617 = vpow2.f32 %v1071_v52  ;;  %v2167_v63 = vsel %vm918_vm1, %v8788_v31, 0.0 }
 0x3d8   : > { %1139 = vadd.xlane.f32.xlu0 %v1138_v57  ;;  %v6616_v43 = vpop.eup %6615  ;;  %v1144_v58 = vsel %vm918_vm1, %v6614_v7, 0.0 }
 0x3d9   : > { %v2179_v61 = vsel %vm918_vm1, %v6616_v43, 0.0 }
 0x3da   : > { %983 = vmax.xlane.f32.xlu1 %v982_v56  ;;  %v1992_v53 = vpop.xlane.xlu1 %1991 }
 0x3db   : > { %v2060_v34 = vsub.f32 %v8706_v4, %v1992_v53  ;;  %v8920_v15 = vpop.f32.mrf.mxu3  ;;  %v11706_v53 = vld [vmem:[#allocation72_spill] sm:$0xff] }
 0x3dc   : > { %v1003_v52 = vsel %vm918_vm1, %v8920_v15, -inf }
 0x3dd   : > { %v2105_v41 = vmul.f32 1.442695, %v2060_v34  ;;  %v6618_v12 = vpop.eup %6617 }
 0x3de   : > { %5738 = vmatmul.msk.f32.gmra.mxu3 %vm918_vm1, %v6614_v7  ;;  %5834 = vmatmul.msk.f32.gmra.mxu1 %vm918_vm1, %v8901_v11 }
 0x3df   : > { %5865 = vmatmul.msk.f32.gmra.mxu0 %vm553_vm0, %v11704_v10  ;;  %2174 = vadd.xlane.f32.xlu2 %v2173_v42  ;;  %6619 = vpow2.f32 %v2105_v41 }
 0x3e0   : > { %v1995_v33 = vpop.xlane.xlu0 %1994  ;;  %998 = vmax.xlane.f32.xlu0 %v997_v26 }
 0x3e1   : > { %v2061_v25 = vsub.f32 %v8720_v1, %v1995_v33 }
 0x3e2   : > { %1133 = vadd.xlane.f32.xlu1 %v1132_v35 }
 0x3e3   : > { %v960_v22 = vpop.xlane.xlu2 %959  ;;  %v2107_v36 = vmul.f32 1.442695, %v2061_v25  ;;  %v8942_v7 = vpop.f32.mrf.mxu3  ;;  %v11710_v25 = vld [vmem:[#allocation62_spill] sm:$0xff] }
 0x3e4   : > { %v1028_v62 = vsub.f32 %v8714_v5, %v960_v22  ;;  %v11708_v22 = vld [vmem:[#allocation79_spill] sm:$0xff] }
 0x3e5   : > { %v6620_v57 = vpop.eup %6619 }
 0x3e6   : > { %v1073_v4 = vmul.f32 1.442695, %v1028_v62  ;;  %5739 = vmatmul.msk.f32.gmra.mxu3 %vm918_vm1, %v6618_v12  ;;  %5835 = vmatmul.msk.f32.gmra.mxu1 %vm918_vm1, %v6616_v43  ;;  %v2182_v35 = vsel %vm918_vm1, %v6620_v57, 0.0  ;;  %v1006_v43 = vsel %vm918_vm1, %v8942_v7, -inf }
 0x3e7   : > { %5866 = vmatmul.msk.f32.gmra.mxu0 %vm553_vm0, %v11705_v3  ;;  %1145 = vadd.xlane.f32.xlu2 %v1144_v58  ;;  %v6190_v3 = vunpack.i.h.bf16 %v11710_v25 }
 0x3e8   : > { %v963_v5 = vpop.xlane.xlu0 %962  ;;  %6621 = vpow2.f32 %v1073_v4  ;;  %2180 = vadd.xlane.f32.xlu0 %v2179_v61  ;;  %v11711_v61 = vld [vmem:[#allocation81_spill] sm:$0xff] }
 0x3e9   : > { %v1029_v18 = vsub.f32 %v8728_v40, %v963_v5  ;;  %6623 = vpow2.f32 %v2107_v36  ;;  %v1147_v40 = vsel %vm918_vm1, %v6618_v12, 0.0 }
 0x3ea   : > { %2168 = vadd.xlane.f32.xlu1 %v2167_v63 }
 0x3eb   : > { %v1998_v47 = vpop.xlane.xlu2 %1997  ;;  %v1075_v56 = vmul.f32 1.442695, %v1029_v18  ;;  %v8961_v12 = vpop.f32.mrf.mxu3 }
 0x3ec   : > { %v2062_v9 = vsub.f32 %v8739_v38, %v1998_v47  ;;  %v991_v38 = vsel %vm918_vm1, %v8849_v39, -inf  ;;  %v2176_v47 = vsel %vm918_vm1, %v8901_v11, 0.0  ;;  %v11716_v11 = vld [vmem:[#allocation78_spill] sm:$0xff] }
 0x3ed   : > { %6625 = vpow2.f32 %v1075_v56 }
 0x3ee   : > { %v8929_v1 = vpop.eup %6621  ;;  %5836 = vmatmul.msk.f32.gmra.mxu1 %vm918_vm1, %v6620_v57  ;;  %v2109_v42 = vmul.f32 1.442695, %v2062_v9  ;;  %v11712_v57 = vld [vmem:[#allocation64_spill] sm:$0xff] }
 0x3ef   : > { %5867 = vmatmul.msk.f32.gmra.mxu0 %vm553_vm0, %v11706_v53  ;;  %1004 = vmax.xlane.f32.xlu2 %v1003_v52  ;;  %v8947_v26 = vpop.eup %6623  ;;  %v6170_v56 = vunpack.i.h.bf16 %v11712_v57  ;;  %v8978_v52 = vpop.f32.mrf.mxu0  ;;  %v6169_v53 = vunpack.i.l.bf16 %v11712_v57 }
 0x3f0   : > { %v8938_v31 = vpop.xlane.xlu0 %2144  ;;  %5740 = vmatmul.msk.f32.gmra.mxu3 %vm918_vm1, %v8929_v1  ;;  %1148 = vadd.xlane.f32.xlu0 %v1147_v40  ;;  %6627 = vpow2.f32 %v2109_v42  ;;  %11713 = vst [vmem:[#allocation69_spill] sm:$0xff] %v8978_v52 }
 0x3f1   : > { %11707 = vst [vmem:[#allocation30_spill] sm:$0xff] %v8938_v31 }
 0x3f2   : > { %992 = vmax.xlane.f32.xlu1 %v991_v38  ;;  %v11714_v38 = vld [vmem:[#allocation61_spill] sm:$0xff] }
 0x3f3   : > { %v969_v34 = vpop.xlane.xlu2 %968  ;;  %v6626_v41 = vpop.eup %6625  ;;  %v6150_v42 = vunpack.i.h.bf16 %v11714_v38 }
 0x3f4   : > { %v1031_v10 = vsub.f32 %v8730_v2, %v969_v34  ;;  %v1141_v2 = vsel %vm918_vm1, %v8883_v60, 0.0  ;;  %v6189_v60 = vunpack.i.l.bf16 %v11710_v25  ;;  %v1153_v63 = vsel %vm918_vm1, %v6626_v41, 0.0  ;;  %v8981_v40 = vpop.f32.mrf.mxu3 }
 0x3f6   : > { %v1079_v33 = vmul.f32 1.442695, %v1031_v10  ;;  %5837 = vmatmul.msk.f32.gmra.mxu1 %vm918_vm1, %v8947_v26  ;;  %v6628_v4 = vpop.eup %6627  ;;  %v6149_v10 = vunpack.i.l.bf16 %v11714_v38 }
 0x3f7   : > { %5868 = vmatmul.msk.f32.gmra.mxu0 %vm553_vm0, %v11708_v22  ;;  %2183 = vadd.xlane.f32.xlu2 %v2182_v35  ;;  %v2188_v5 = vsel %vm918_vm1, %v6628_v4, 0.0  ;;  %v1000_v35 = vsel %vm918_vm1, %v8903_v51, -inf  ;;  %v11718_v22 = vld [vmem:[#allocation55_spill] sm:$0xff] }
 0x3f8   : > { %v8956_v62 = vpop.xlane.xlu0 %1112  ;;  %6629 = vpow2.f32 %v1079_v33  ;;  %5741 = vmatmul.msk.f32.gmra.mxu3 %vm918_vm1, %v6626_v41  ;;  %1007 = vmax.xlane.f32.xlu0 %v1006_v43  ;;  %v1012_v33 = vsel %vm918_vm1, %v8981_v40, -inf  ;;  %v6130_v43 = vunpack.i.h.bf16 %v11718_v22 }
 0x3f9   : > { %11709 = vst [vmem:[#allocation19_spill] sm:$0xff] %v8956_v62 }
 0x3fa   : > { %1142 = vadd.xlane.f32.xlu1 %v1141_v2  ;;  %v6129_v2 = vunpack.i.l.bf16 %v11718_v22 }
 0x3fb   : > { %v9000_v25 = vpop.xlane.xlu2 %2147 }
 0x3fc   : > { %11720 = vst [vmem:[#allocation76_spill] sm:$0xff] %v9000_v25 }
 0x3fe   : > { %v8963_v58 = vpop.eup %6629  ;;  %5838 = vmatmul.msk.f32.gmra.mxu1 %vm918_vm1, %v6628_v4  ;;  %v8998_v4 = vpop.f32.mrf.mxu0 }
 0x3ff   : > { %5869 = vmatmul.msk.f32.gmra.mxu0 %vm553_vm0, %v11711_v61  ;;  %5743 = vmatmul.msk.f32.vlgmr.msra.gmra.mxu2 %vm918_vm1, %v8963_v58  ;;  %11719 = vst [vmem:[#allocation74_spill] sm:$0xff] %v8998_v4 }
 0x400   : > { %v972_v18 = vpop.xlane.xlu0 %971  ;;  %2497 = vmatpush.msra.mxu2 %v6190_v3  ;;  %2189 = vadd.xlane.f32.xlu0 %v2188_v5  ;;  %v11721_v3 = vld [vmem:[#allocation88_spill] sm:$0xff] }
 0x401   : > { %v1032_v36 = vsub.f32 %v8744_v45, %v972_v18  ;;  %1154 = vadd.xlane.f32.xlu2 %v1153_v63  ;;  %v11715_v45 = vld [vmem:[#allocation83_spill] sm:$0xff]  ;;  %v1150_v18 = vsel %vm918_vm1, %v8929_v1, 0.0  ;;  %v9011_v63 = vpop.permute.xlu1 %6202 }
 0x402   : > { %2498 = vmatpush.msra.mxu2 %v6189_v60  ;;  %2177 = vadd.xlane.f32.xlu1 %v2176_v47 }
 0x403   : > { %v1081_v9 = vmul.f32 1.442695, %v1032_v36  ;;  %v9015_v36 = vpop.xlane.xlu2 %1118 }
 0x404   : > { %2499 = vmatpush.msra.mxu2 %v6170_v56  ;;  %11723 = vst [vmem:[#allocation79_spill] sm:$0xff] %v9015_v36  ;;  %v2185_v56 = vsel %vm918_vm1, %v8947_v26, 0.0 }
 0x405   : > { %6631 = vpow2.f32 %v1081_v9 }
 0x406   : > { %2500 = vmatpush.msra.mxu2 %v6169_v53  ;;  %5879 = vmatmul.msk.f32.vlgmr.msra.gmra.mxu1 %vm553_vm0, %v11715_v45  ;;  %v9009_v60 = vpop.f32.mrf.mxu0 }
 0x407   : > { %5870 = vmatmul.msk.f32.gmra.mxu0 %vm553_vm0, %v11716_v11  ;;  %v1009_v11 = vsel %vm918_vm1, %v8961_v12, -inf }
 0x408   : > { %v8988_v34 = vpop.xlane.xlu0 %2153  ;;  %2501 = vmatpush.msra.mxu2 %v6150_v42  ;;  %v11725_v42 = vld [vmem:[#allocation87_spill] sm:$0xff] }
 0x409   : > { %11717 = vst [vmem:[#allocation66_spill] sm:$0xff] %v8988_v34  ;;  %1013 = vmax.xlane.f32.xlu2 %v1012_v33 }
 0x40a   : > { %2502 = vmatpush.msra.mxu2 %v6149_v10  ;;  %1001 = vmax.xlane.f32.xlu1 %v1000_v35 }
 0x40b   : > { %v6632_v41 = vpop.eup %6631  ;;  %v978_v45 = vpop.xlane.xlu2 %977 }
 0x40c   : > { %5744 = vmatmul.msk.f32.gmra.mxu2 %vm918_vm1, %v6632_v41  ;;  %v1162_v5 = vsel %vm918_vm1, %v6632_v41, 0.0 }
 0x40d   : > { %2503 = vmatpush.msra.mxu2 %v6130_v43 }
 0x40e   : > { %5880 = vmatmul.msk.f32.gmra.mxu1 %vm553_vm0, %v11721_v3  ;;  %v9020_v1 = vpop.f32.mrf.mxu0 }
 0x40f   : > { %2504 = vmatpush.msra.mxu2 %v6129_v2  ;;  %11724 = vst [vmem:[#allocation62_spill] sm:$0xff] %v9020_v1 }
 0x410   : > { %v9004_v61 = vpop.xlane.xlu0 %1121 }
 0x411   : > { %11722 = vst [vmem:[#allocation72_spill] sm:$0xff] %v9004_v61  ;;  %1163 = vadd.xlane.f32.xlu2 %v1162_v5 }
 0x412   : > { %1151 = vadd.xlane.f32.xlu1 %v1150_v18 }
 0x413   : > { %v9038_v22 = vpop.xlane.xlu2 %2156 }
 0x414   : > { %11729 = vst [vmem:[#allocation83_spill] sm:$0xff] %v9038_v22 }
 0x416   : > { %5881 = vmatmul.msk.f32.gmra.mxu1 %vm553_vm0, %v8011_v27 }
 0x418   : > { %v981_v47 = vpop.xlane.xlu0 %980 }
 0x419   : > { %v1035_v57 = vsub.f32 %v8794_v54, %v981_v47 }
 0x41a   : > { %2186 = vadd.xlane.f32.xlu1 %v2185_v56 }
 0x41b   : > { %v1087_v9 = vmul.f32 1.442695, %v1035_v57  ;;  %v9048_v3 = vpop.xlane.xlu2 %1127  ;;  %v1034_v57 = vsub.f32 %v8780_v50, %v978_v45 }
 0x41c   : > { %11732 = vst [vmem:[#allocation88_spill] sm:$0xff] %v9048_v3  ;;  %v11825_v3 = vld [vmem:[#allocation50_spill] sm:$0xff] }
 0x41d   : > { %6633 = vpow2.f32 %v1087_v9  ;;  %v966_v53 = vpop.xlane.xlu1 %965 }
 0x41e   : > { %v1030_v38 = vsub.f32 %v8815_v24, %v966_v53  ;;  %5882 = vmatmul.msk.f32.gmra.mxu1 %vm553_vm0, %v11725_v42  ;;  %v9032_v24 = vpop.f32.mrf.mxu0  ;;  %v11734_v53 = vld [vmem:[#allocation13_spill] sm:$0xff] }
 0x41f   : > { %11727 = vst [vmem:[#allocation64_spill] sm:$0xff] %v9032_v24 }
 0x420   : > { %v1077_v27 = vmul.f32 1.442695, %v1030_v38  ;;  %v9036_v41 = vpop.xlane.xlu0 %2162 }
 0x421   : > { %11728 = vst [vmem:[#allocation61_spill] sm:$0xff] %v9036_v41 }
 0x422   : > { %6635 = vpow2.f32 %v1077_v27  ;;  %1010 = vmax.xlane.f32.xlu1 %v1009_v11  ;;  %v1085_v27 = vmul.f32 1.442695, %v1034_v57 }
 0x423   : > { %v6634_v54 = vpop.eup %6633 }
 0x424   : > { %v1171_v26 = vsel %vm918_vm1, %v6634_v54, 0.0 }
 0x425   : > { %1172 = vadd.xlane.f32.xlu2 %v1171_v26  ;;  %v9028_v10 = vpop.xlane.xlu1 %1115 }
 0x426   : > { %11726 = vst [vmem:[#allocation81_spill] sm:$0xff] %v9028_v10  ;;  %5883 = vmatmul.msk.f32.gmra.mxu1 %vm553_vm0, %v8096_v8  ;;  %v9044_v2 = vpop.f32.mrf.mxu0 }
 0x427   : > { %11730 = vst [vmem:[#allocation78_spill] sm:$0xff] %v9044_v2 }
 0x428   : > { %v6636_v33 = vpop.eup %6635 }
 0x429   : > { %5742 = vmatmul.msk.f32.gmra.mxu3 %vm918_vm1, %v6636_v33  ;;  %v1156_v35 = vsel %vm918_vm1, %v6636_v33, 0.0 }
 0x42a   : > { %1157 = vadd.xlane.f32.xlu0 %v1156_v35 }
 0x42d   : > { %v9040_v43 = vpop.xlane.xlu1 %2150 }
 0x42e   : > { %5884 = vmatmul.msk.f32.gmra.mxu1 %vm553_vm0, %v8117_v59  ;;  %v9054_v9 = vpop.f32.mrf.mxu0 }
 0x42f   : > { %11733 = vst [vmem:[#allocation87_spill] sm:$0xff] %v9054_v9 }
 0x432   : > { %v9046_v8 = vpop.xlane.xlu0 %1130 }
 0x433   : > { %11731 = vst [vmem:[#allocation55_spill] sm:$0xff] %v9046_v8 }
 0x435   : > { %v975_v5 = vpop.xlane.xlu1 %974 }
 0x436   : > { %v1033_v18 = vsub.f32 %v8765_v21, %v975_v5  ;;  %5885 = vmatmul.msk.f32.gmra.mxu1 %vm553_vm0, %v8092_v44  ;;  %v11736_v21 = vld [vmem:[#allocation42_spill] sm:$0xff]  ;;  %v987_v44 = vpop.xlane.xlu2 %986 }
 0x438   : > { %v1083_v47 = vmul.f32 1.442695, %v1033_v18 }
 0x43a   : > { %6637 = vpow2.f32 %v1083_v47  ;;  %v990_v56 = vpop.xlane.xlu0 %989 }
 0x43b   : > { %v1038_v59 = vsub.f32 %v8853_v19, %v990_v56  ;;  %6217 = vrot.lane.b32.xlu1 %v11734_v53, %s7093_s28 }
 0x43d   : > { %v1093_v38 = vmul.f32 1.442695, %v1038_v59  ;;  %v9059_v42 = vpop.xlane.xlu1 %1124  ;;  %v1037_v59 = vsub.f32 %v8827_v13, %v987_v44  ;;  %v1159_v13 = vsel %vm918_vm1, %v8963_v58, 0.0 }
 0x43e   : > { %11735 = vst [vmem:[#allocation13_spill] sm:$0xff] %v9059_v42  ;;  %6212 = vrot.lane.b32.xlu0 %v11736_v21, %s7093_s28  ;;  %5886 = vmatmul.msk.f32.gmra.mxu1 %vm553_vm0, %v8185_v55  ;;  %v9071_v33 = vpop.xlane.xlu2 %2165 }
 0x43f   : > { %6639 = vpow2.f32 %v1093_v38  ;;  %11739 = vst [vmem:[#allocation139_spill] sm:$0xff] %v9071_v33 }
 0x440   : > { %v6638_v50 = vpop.eup %6637  ;;  %6641 = vpow2.f32 %v1085_v27  ;;  %v1091_v27 = vmul.f32 1.442695, %v1037_v59 }
 0x441   : > { %5745 = vmatmul.msk.f32.gmra.mxu2 %vm918_vm1, %v6638_v50  ;;  %v1165_v59 = vsel %vm918_vm1, %v6638_v50, 0.0  ;;  %v11749_v50 = vld [vmem:[#allocation67_spill] sm:$0xff] }
 0x442   : > { %v9083_v53 = vpop.xlane.xlu0 %2171 }
 0x443   : > { %v9066_v19 = vpop.f32.mrf.mxu0  ;;  %11741 = vst [vmem:[#allocation141_spill] sm:$0xff] %v9083_v53 }
 0x444   : > { %11737 = vst [vmem:[#allocation42_spill] sm:$0xff] %v9066_v19 }
 0x445   : > { %v6640_v45 = vpop.eup %6639  ;;  %v9068_v11 = vpop.xlane.xlu1 %2159 }
 0x446   : > { %11738 = vst [vmem:[#allocation138_spill] sm:$0xff] %v9068_v11  ;;  %v1180_v26 = vsel %vm918_vm1, %v6640_v45, 0.0  ;;  %v6642_v35 = vpop.eup %6641  ;;  %v9079_v56 = vpop.xlane.xlu2 %1136 }
 0x447   : > { %1181 = vadd.xlane.f32.xlu2 %v1180_v26  ;;  %11740 = vst [vmem:[#allocation140_spill] sm:$0xff] %v9079_v56  ;;  %v1168_v58 = vsel %vm918_vm1, %v6642_v35, 0.0 }
 0x449   : > { %5746 = vmatmul.msk.f32.gmra.mxu2 %vm918_vm1, %v6642_v35 }
 0x44b   : > { %v9074_v55 = vpop.f32.mrf.mxu0 }
 0x44c   : > { %v3111_v47 = vsel %vm918_vm1, %v9074_v55, -inf }
 0x44d   : > { %v984_v5 = vpop.xlane.xlu1 %983 }
 0x44e   : > { %v1036_v18 = vsub.f32 %v8809_v17, %v984_v5  ;;  %v996_v17 = vpop.xlane.xlu2 %995  ;;  %v9090_v5 = vpop.xlane.xlu0 %1139 }
 0x44f   : > { %3112 = vmax.xlane.f32.xlu2 %v3111_v47  ;;  %11744 = vst [vmem:[#allocation144_spill] sm:$0xff] %v9090_v5  ;;  %v1040_v56 = vsub.f32 %v8865_v28, %v996_v17  ;;  %v6194_v28 = vunpack.i.l.bf16 %v11749_v50 }
 0x450   : > { %v1089_v57 = vmul.f32 1.442695, %v1036_v18 }
 0x451   : > { %5747 = vmatmul.msk.f32.gmra.mxu2 %vm918_vm1, %v6634_v54 }
 0x452   : > { %6643 = vpow2.f32 %v1089_v57  ;;  %v11746_v57 = vld [vmem:[#allocation31_spill] sm:$0xff] }
 0x453   : > { %6645 = vpow2.f32 %v1091_v27 }
 0x455   : > { %v9085_v38 = vpop.xlane.xlu1 %1133 }
 0x456   : > { %11742 = vst [vmem:[#allocation142_spill] sm:$0xff] %v9085_v38  ;;  %v9095_v54 = vpop.xlane.xlu2 %2174  ;;  %v999_v5 = vpop.xlane.xlu0 %998  ;;  %v1097_v38 = vmul.f32 1.442695, %v1040_v56  ;;  %v11751_v56 = vld [vmem:[#allocation59_spill] sm:$0xff] }
 0x457   : > { %11745 = vst [vmem:[#allocation145_spill] sm:$0xff] %v9095_v54 }
 0x458   : > { %v6644_v21 = vpop.eup %6643 }
 0x459   : > { %5748 = vmatmul.msk.f32.gmra.mxu2 %vm918_vm1, %v6644_v21  ;;  %v6646_v18 = vpop.eup %6645 }
 0x45a   : > { %v1177_v17 = vsel %vm918_vm1, %v6646_v18, 0.0 }
 0x45d   : > { %v9088_v26 = vpop.xlane.xlu1 %2168 }
 0x45e   : > { %11743 = vst [vmem:[#allocation143_spill] sm:$0xff] %v9088_v26  ;;  %v9117_v35 = vpop.xlane.xlu0 %2180 }
 0x45f   : > { %11750 = vst [vmem:[#allocation67_spill] sm:$0xff] %v9117_v35 }
 0x461   : > { %5749 = vmatmul.msk.f32.gmra.mxu2 %vm918_vm1, %v6646_v18 }
 0x465   : > { %1160 = vadd.xlane.f32.xlu1 %v1159_v13  ;;  %v993_v44 = vpop.xlane.xlu1 %992 }
 0x466   : > { %v1039_v47 = vsub.f32 %v8849_v39, %v993_v44  ;;  %v9106_v39 = vpop.xlane.xlu2 %1145  ;;  %v1174_v44 = vsel %vm918_vm1, %v6644_v21, 0.0  ;;  %v6175_v21 = vunpack.i.h.bf16 %v11751_v56 }
 0x467   : > { %6227 = vrot.lane.b32.xlu2 %v11746_v57, %s7093_s28  ;;  %11748 = vst [vmem:[#allocation146_spill] sm:$0xff] %v9106_v39 }
 0x468   : > { %v1095_v27 = vmul.f32 1.442695, %v1039_v47  ;;  %1166 = vadd.xlane.f32.xlu0 %v1165_v59  ;;  %v6195_v47 = vunpack.i.h.bf16 %v11749_v50  ;;  %v9140_v50 = vpop.xlane.xlu0 %1148 }
 0x469   : > { %5750 = vmatmul.msk.f32.gmra.mxu2 %vm918_vm1, %v6640_v45  ;;  %v1041_v45 = vsub.f32 %v8881_v37, %v999_v5 }
 0x46a   : > { %6647 = vpow2.f32 %v1095_v27 }
 0x46b   : > { %6649 = vpow2.f32 %v1097_v38  ;;  %v1099_v27 = vmul.f32 1.442695, %v1041_v45  ;;  %v11753_v38 = vld [vmem:[#allocation63_spill] sm:$0xff] }
 0x46c   : > { %v6155_v5 = vunpack.i.h.bf16 %v11753_v38  ;;  %v6154_v18 = vunpack.i.l.bf16 %v11753_v38  ;;  %11755 = vst [vmem:[#allocation63_spill] sm:$0xff] %v9140_v50 }
 0x46d   : > { %1169 = vadd.xlane.f32.xlu1 %v1168_v58  ;;  %v9104_v13 = vpop.xlane.xlu1 %1142  ;;  %6651 = vpow2.f32 %v1099_v27 }
 0x46e   : > { %11747 = vst [vmem:[#allocation31_spill] sm:$0xff] %v9104_v13  ;;  %v1005_v58 = vpop.xlane.xlu2 %1004 }
 0x470   : > { %v6648_v57 = vpop.eup %6647  ;;  %1175 = vadd.xlane.f32.xlu0 %v1174_v44  ;;  %v1008_v38 = vpop.xlane.xlu0 %1007 }
 0x471   : > { %5751 = vmatmul.msk.f32.vlgmr.msra.gmra.mxu3 %vm918_vm1, %v6648_v57  ;;  %5799 = vmatmul.msk.f32.vlgmr.msrb.gmra.mxu2 %vm553_vm0, %v8187_v14  ;;  %v6174_v14 = vunpack.i.l.bf16 %v11751_v56  ;;  %v1183_v37 = vsel %vm918_vm1, %v6648_v57, 0.0  ;;  %v9138_v57 = vpop.f32.mrf.mxu0 }
 0x472   : > { %2594 = vmatpush.msra.mxu3 %v6195_v47  ;;  %5887 = vmatpush.xpose.msk.msrb.mxu2 %vm553_vm0, %v8413_v23  ;;  %v9127_v23 = vpop.eup %6649 }
 0x474   : > { %2595 = vmatpush.msra.mxu3 %v6194_v28 }
 0x475   : > { %1178 = vadd.xlane.f32.xlu1 %v1177_v17  ;;  %v9121_v59 = vpop.xlane.xlu1 %2177  ;;  %v1043_v17 = vsub.f32 %v8920_v15, %v1005_v58  ;;  %v1044_v58 = vsub.f32 %v8942_v7, %v1008_v38  ;;  %v11767_v7 = vld [vmem:[#allocation112_spill] sm:$0xff] }
 0x476   : > { %11752 = vst [vmem:[#allocation59_spill] sm:$0xff] %v9121_v59  ;;  %2596 = vmatpush.msra.mxu3 %v6175_v21  ;;  %5888 = vmatpush.xpose.msk.msrb.mxu2 %vm553_vm0, %v8373_v20  ;;  %v11754_v20 = vld [vmem:[#allocation57_spill] sm:$0xff]  ;;  %v11756_v21 = vld [vmem:[#allocation96_spill] sm:$0xff] }
 0x477   : > { %v6135_v44 = vunpack.i.h.bf16 %v11754_v20  ;;  %v6134_v28 = vunpack.i.l.bf16 %v11754_v20  ;;  %v1103_v27 = vmul.f32 1.442695, %v1043_v17  ;;  %v11762_v20 = vld [vmem:[#allocation102_spill] sm:$0xff] }
 0x478   : > { %2597 = vmatpush.msra.mxu3 %v6174_v14  ;;  %1184 = vadd.xlane.f32.xlu0 %v1183_v37  ;;  %v9154_v14 = vpop.xlane.xlu2 %2183  ;;  %v11760_v37 = vld [vmem:[#allocation103_spill] sm:$0xff] }
 0x479   : > { %5752 = vmatmul.msk.f32.gmra.mxu3 %vm918_vm1, %v9127_v23  ;;  %5800 = vmatmul.msk.f32.gmra.mxu2 %vm553_vm0, %v8232_v29  ;;  %v3114_v29 = vsel %vm918_vm1, %v9138_v57, -inf  ;;  %11758 = vst [vmem:[#allocation57_spill] sm:$0xff] %v9154_v14  ;;  %v9166_v15 = vpop.f32.mrf.mxu0 }
 0x47a   : > { %2598 = vmatpush.msra.mxu3 %v6155_v5  ;;  %5889 = vmatpush.xpose.msk.msrb.mxu2 %vm553_vm0, %v8367_v48  ;;  %v6652_v48 = vpop.eup %6651 }
 0x47c   : > { %2599 = vmatpush.msra.mxu3 %v6154_v18  ;;  %v11761_v18 = vld [vmem:[#allocation106_spill] sm:$0xff] }
 0x47d   : > { %v1002_v47 = vpop.xlane.xlu1 %1001 }
 0x47e   : > { %v1042_v45 = vsub.f32 %v8903_v51, %v1002_v47  ;;  %2600 = vmatpush.msra.mxu3 %v6135_v44  ;;  %5890 = vmatpush.xpose.msk.msrb.mxu2 %vm553_vm0, %v8363_v6  ;;  %v11757_v51 = vld [vmem:[#allocation105_spill] sm:$0xff] }
 0x480   : > { %v1101_v56 = vmul.f32 1.442695, %v1042_v45  ;;  %2601 = vmatpush.msra.mxu3 %v6134_v28  ;;  %3115 = vmax.xlane.f32.xlu0 %v3114_v29  ;;  %v9171_v44 = vpop.xlane.xlu2 %1154  ;;  %v1105_v28 = vmul.f32 1.442695, %v1044_v58  ;;  %v11765_v45 = vld [vmem:[#allocation94_spill] sm:$0xff]  ;;  %v11766_v29 = vld [vmem:[#allocation43_spill] sm:$0xff] }
 0x481   : > { %5753 = vmatmul.msk.f32.gmra.mxu3 %vm918_vm1, %v6652_v48  ;;  %5801 = vmatmul.msk.f32.gmra.mxu2 %vm553_vm0, %v11756_v21  ;;  %11763 = vst [vmem:[#allocation105_spill] sm:$0xff] %v9171_v44  ;;  %v9186_v17 = vpop.f32.mrf.mxu0 }
 0x482   : > { %6653 = vpow2.f32 %v1101_v56  ;;  %5891 = vmatpush.xpose.msk.msrb.mxu2 %vm553_vm0, %v11757_v51  ;;  %v1189_v56 = vsel %vm918_vm1, %v6652_v48, 0.0  ;;  %v11768_v51 = vld [vmem:[#allocation18_spill] sm:$0xff]  ;;  %v3120_v48 = vsel %vm918_vm1, %v9186_v17, -inf }
 0x483   : > { %6655 = vpow2.f32 %v1103_v27 }
 0x484   : > { %6657 = vpow2.f32 %v1105_v28 }
 0x485   : > { %v9156_v6 = vpop.xlane.xlu1 %1151 }
 0x486   : > { %11759 = vst [vmem:[#allocation96_spill] sm:$0xff] %v9156_v6  ;;  %5892 = vmatpush.xpose.msk.msrb.mxu2 %vm553_vm0, %v11760_v37 }
 0x488   : > { %v9160_v5 = vpop.eup %6653  ;;  %v1014_v38 = vpop.xlane.xlu2 %1013 }
 0x489   : > { %5754 = vmatmul.msk.f32.gmra.mxu3 %vm918_vm1, %v9160_v5  ;;  %5802 = vmatmul.msk.f32.gmra.mxu2 %vm553_vm0, %v11761_v18  ;;  %v9180_v21 = vpop.eup %6655  ;;  %v1046_v28 = vsub.f32 %v8981_v40, %v1014_v38  ;;  %v11773_v40 = vld [vmem:[#allocation117_spill] sm:$0xff] }
 0x48a   : > { %5893 = vmatpush.xpose.msk.msrb.mxu2 %vm553_vm0, %v11762_v20  ;;  %v9193_v18 = vpop.eup %6657  ;;  %v11769_v20 = vld [vmem:[#allocation108_spill] sm:$0xff]  ;;  %v11775_v38 = vld [vmem:[#allocation25_spill] sm:$0xff] }
 0x48d   : > { %v9173_v47 = vpop.xlane.xlu1 %2186 }
 0x48e   : > { %11764 = vst [vmem:[#allocation103_spill] sm:$0xff] %v9173_v47  ;;  %5894 = vmatpush.xpose.msk.msrb.mxu2 %vm553_vm0, %v11765_v45  ;;  %6232 = vrot.lane.b32.xlu1 %v11766_v29, %s7093_s28  ;;  %v1109_v45 = vmul.f32 1.442695, %v1046_v28 }
 0x490   : > { %1190 = vadd.xlane.f32.xlu2 %v1189_v56  ;;  %v11771_v56 = vld [vmem:[#allocation115_spill] sm:$0xff] }
 0x491   : > { %5755 = vmatmul.msk.f32.gmra.mxu3 %vm918_vm1, %v9180_v21  ;;  %5803 = vmatmul.msk.f32.gmra.mxu2 %vm553_vm0, %v11767_v7 }
 0x494   : > { %6222 = vrot.lane.b32.xlu0 %v11768_v51, %s7093_s28 }
 0x495   : > { %v1011_v27 = vpop.xlane.xlu1 %1010 }
 0x496   : > { %v1045_v37 = vsub.f32 %v8961_v12, %v1011_v27  ;;  %v9202_v12 = vpop.xlane.xlu0 %2189  ;;  %v9216_v27 = vpop.xlane.xlu2 %1163 }
 0x497   : > { %11770 = vst [vmem:[#allocation106_spill] sm:$0xff] %v9202_v12 }
 0x498   : > { %v1107_v58 = vmul.f32 1.442695, %v1045_v37  ;;  %3121 = vmax.xlane.f32.xlu2 %v3120_v48  ;;  %11774 = vst [vmem:[#allocation94_spill] sm:$0xff] %v9216_v27 }
 0x499   : > { %5756 = vmatmul.msk.f32.gmra.mxu3 %vm918_vm1, %v9193_v18  ;;  %5804 = vmatmul.msk.f32.gmra.mxu2 %vm553_vm0, %v11769_v20 }
 0x49a   : > { %6659 = vpow2.f32 %v1107_v58  ;;  %v11776_v58 = vld [vmem:[#allocation120_spill] sm:$0xff] }
 0x49b   : > { %6661 = vpow2.f32 %v1109_v45  ;;  %v6210_v45 = vunpack.i.h.bf16 %v8899_v32 }
 0x49e   : > { %v9210_v51 = vpop.xlane.xlu0 %1157  ;;  %v9222_v20 = vpop.xlane.xlu2 %1172 }
 0x49f   : > { %11772 = vst [vmem:[#allocation102_spill] sm:$0xff] %v9210_v51 }
 0x4a0   : > { %v9200_v29 = vpop.eup %6659  ;;  %11777 = vst [vmem:[#allocation43_spill] sm:$0xff] %v9222_v20 }
 0x4a1   : > { %5757 = vmatmul.msk.f32.gmra.mxu3 %vm918_vm1, %v9200_v29  ;;  %5805 = vmatmul.msk.f32.gmra.mxu2 %vm553_vm0, %v11771_v56  ;;  %v9208_v7 = vpop.eup %6661  ;;  %v6209_v56 = vunpack.i.l.bf16 %v8899_v32  ;;  %v6200_v32 = vunpack.i.h.bf16 %v8891_v0 }
 0x4a9   : > { %5758 = vmatmul.msk.f32.gmra.mxu3 %vm918_vm1, %v9208_v7  ;;  %5806 = vmatmul.msk.f32.gmra.mxu2 %vm553_vm0, %v11773_v40  ;;  %v1186_v40 = vsel %vm918_vm1, %v9127_v23, 0.0  ;;  %v1192_v23 = vsel %vm918_vm1, %v9160_v5, 0.0 }
 0x4b0   : > { %v6213_v37 = vpop.permute.xlu0 %6212  ;;  %6242 = vrot.lane.b32.xlu2 %v11775_v38, %s7093_s28  ;;  %v6205_v38 = vunpack.i.h.bf16 %v9011_v63 }
 0x4b1   : > { %v6215_v48 = vunpack.i.h.bf16 %v6213_v37  ;;  %5815 = vmatmul.msk.f32.vlgmr.msrb.gmra.mxu3 %vm553_vm0, %v11776_v58  ;;  %v6214_v28 = vunpack.i.l.bf16 %v6213_v37  ;;  %v11778_v58 = vld [vmem:[#allocation121_spill] sm:$0xff]  ;;  %v6199_v37 = vunpack.i.l.bf16 %v8891_v0 }
 0x4b2   : > { %5903 = vmatpush.xpose.msk.msrb.mxu3 %vm553_vm0, %v8822_v30 }
 0x4b3   : > { %3455 = vmatpush.msra.mxu0 %v6215_v48  ;;  %v11780_v48 = vld [vmem:[#allocation122_spill] sm:$0xff] }
 0x4b5   : > { %3456 = vmatpush.msra.mxu0 %v6214_v28  ;;  %v11781_v28 = vld [vmem:[#allocation4_spill] sm:$0xff] }
 0x4b6   : > { %5904 = vmatpush.xpose.msk.msrb.mxu3 %vm553_vm0, %v8733_v46  ;;  %v6204_v46 = vunpack.i.l.bf16 %v9011_v63  ;;  %v9250_v63 = vpop.f32.mrf.mxu0 }
 0x4b7   : > { %3457 = vmatpush.msra.mxu0 %v6210_v45  ;;  %v3123_v0 = vsel %vm918_vm1, %v9250_v63, -inf }
 0x4b8   : > { %1187 = vadd.xlane.f32.xlu1 %v1186_v40  ;;  %v11783_v40 = vld [vmem:[#allocation126_spill] sm:$0xff] }
 0x4b9   : > { %5816 = vmatmul.msk.f32.gmra.mxu3 %vm553_vm0, %v11778_v58  ;;  %3458 = vmatpush.msra.mxu0 %v6209_v56  ;;  %v11782_v56 = vld [vmem:[#allocation132_spill] sm:$0xff] }
 0x4ba   : > { %5905 = vmatpush.xpose.msk.msrb.mxu3 %vm553_vm0, %v8712_v49  ;;  %v9237_v30 = vpop.xlane.xlu2 %1181  ;;  %v3117_v49 = vsel %vm918_vm1, %v9166_v15, -inf }
 0x4bb   : > { %11779 = vst [vmem:[#allocation112_spill] sm:$0xff] %v9237_v30  ;;  %3459 = vmatpush.msra.mxu0 %v6205_v38  ;;  %v11784_v38 = vld [vmem:[#allocation136_spill] sm:$0xff] }
 0x4bd   : > { %3460 = vmatpush.msra.mxu0 %v6204_v46  ;;  %v11785_v46 = vld [vmem:[#allocation137_spill] sm:$0xff] }
 0x4be   : > { %5906 = vmatpush.xpose.msk.msrb.mxu3 %vm553_vm0, %v8710_v16  ;;  %1193 = vadd.xlane.f32.xlu0 %v1192_v23  ;;  %v9273_v23 = vpop.f32.mrf.mxu0 }
 0x4bf   : > { %3461 = vmatpush.msra.mxu0 %v6200_v32  ;;  %v11787_v32 = vld [vmem:[#allocation128_spill] sm:$0xff] }
 0x4c0   : > { %3118 = vmax.xlane.f32.xlu1 %v3117_v49  ;;  %v11789_v49 = vld [vmem:[#allocation127_spill] sm:$0xff] }
 0x4c1   : > { %5817 = vmatmul.msk.f32.gmra.mxu3 %vm553_vm0, %v11780_v48  ;;  %3462 = vmatpush.msra.mxu0 %v6199_v37  ;;  %v11790_v48 = vld [vmem:[#allocation36_spill] sm:$0xff] }
 0x4c2   : > { %5907 = vmatpush.xpose.msk.msrb.mxu3 %vm553_vm0, %v11781_v28  ;;  %v3113_v5 = vpop.xlane.xlu2 %3112  ;;  %v1198_v28 = vsel %vm918_vm1, %v9193_v18, 0.0 }
 0x4c3   : > { %v3207_v16 = vsub.f32 %v9074_v55, %v3113_v5  ;;  %v9269_v55 = vpop.f32.mrf.mxu1  ;;  %v11791_v5 = vld [vmem:[#allocation12_spill] sm:$0xff] }
 0x4c4   : > { %11786 = vst [vmem:[#allocation18_spill] sm:$0xff] %v9269_v55 }
 0x4c5   : > { %v3239_v45 = vmul.f32 1.442695, %v3207_v16 }
 0x4c6   : > { %5908 = vmatpush.xpose.msk.msrb.mxu3 %vm553_vm0, %v11782_v56  ;;  %3124 = vmax.xlane.f32.xlu0 %v3123_v0  ;;  %v9287_v0 = vpop.f32.mrf.mxu0 }
 0x4c7   : > { %6663 = vpow2.f32 %v3239_v45  ;;  %v6218_v45 = vpop.permute.xlu1 %6217 }
 0x4c9   : > { %5818 = vmatmul.msk.f32.gmra.mxu3 %vm553_vm0, %v11783_v40  ;;  %v11794_v40 = vld [vmem:[#allocation133_spill] sm:$0xff] }
 0x4ca   : > { %5909 = vmatpush.xpose.msk.msrb.mxu3 %vm553_vm0, %v11784_v38  ;;  %v3129_v38 = vsel %vm918_vm1, %v9287_v0, -inf  ;;  %v6228_v27 = vpop.permute.xlu2 %6227 }
 0x4cb   : > { %v9275_v37 = vpop.f32.mrf.mxu1 }
 0x4cc   : > { %11788 = vst [vmem:[#allocation108_spill] sm:$0xff] %v9275_v37 }
 0x4cd   : > { %v9263_v58 = vpop.eup %6663 }
 0x4ce   : > { %5910 = vmatpush.xpose.msk.msrb.mxu3 %vm553_vm0, %v11785_v46  ;;  %5919 = vmatmul.msk.f32.vlgmr.msra.gmra.mxu0 %vm918_vm1, %v9263_v58  ;;  %v9326_v51 = vpop.f32.mrf.mxu0 }
 0x4d1   : > { %5819 = vmatmul.msk.f32.gmra.mxu3 %vm553_vm0, %v11787_v32  ;;  %v11797_v32 = vld [vmem:[#allocation131_spill] sm:$0xff] }
 0x4d3   : > { %v9289_v56 = vpop.f32.mrf.mxu1 }
 0x4d4   : > { %11793 = vst [vmem:[#allocation117_spill] sm:$0xff] %v9289_v56 }
 0x4d8   : > { %v9297_v18 = vpop.xlane.xlu1 %1160 }
 0x4d9   : > { %5820 = vmatmul.msk.f32.gmra.mxu3 %vm553_vm0, %v11789_v49  ;;  %6247 = vrot.lane.b32.xlu1 %v11790_v48, %s7093_s28  ;;  %11796 = vst [vmem:[#allocation120_spill] sm:$0xff] %v9297_v18  ;;  %v6229_v18 = vunpack.i.l.bf16 %v6228_v27 }
 0x4da   : > { %1199 = vadd.xlane.f32.xlu2 %v1198_v28  ;;  %6237 = vrot.lane.b32.xlu0 %v11791_v5, %s7093_s28 }
 0x4db   : > { %v9285_v16 = vpop.xlane.xlu0 %1166  ;;  %v9301_v49 = vpop.f32.mrf.mxu1 }
 0x4dc   : > { %11792 = vst [vmem:[#allocation115_spill] sm:$0xff] %v9285_v16 }
 0x4dd   : > { %11798 = vst [vmem:[#allocation121_spill] sm:$0xff] %v9301_v49 }
 0x4e0   : > { %v9305_v28 = vpop.xlane.xlu1 %1169 }
 0x4e1   : > { %5821 = vmatmul.msk.f32.gmra.mxu3 %vm553_vm0, %v11794_v40  ;;  %11800 = vst [vmem:[#allocation4_spill] sm:$0xff] %v9305_v28 }
 0x4e2   : > { %3130 = vmax.xlane.f32.xlu2 %v3129_v38 }
 0x4e3   : > { %v9295_v46 = vpop.xlane.xlu0 %1175  ;;  %v9308_v30 = vpop.f32.mrf.mxu1 }
 0x4e4   : > { %11795 = vst [vmem:[#allocation25_spill] sm:$0xff] %v9295_v46  ;;  %v11803_v46 = vld [vmem:[#allocation11_spill] sm:$0xff] }
 0x4e5   : > { %11801 = vst [vmem:[#allocation132_spill] sm:$0xff] %v9308_v30 }
 0x4e8   : > { %v9310_v38 = vpop.xlane.xlu1 %1178 }
 0x4e9   : > { %5822 = vmatmul.msk.f32.gmra.mxu3 %vm553_vm0, %v11797_v32  ;;  %11802 = vst [vmem:[#allocation126_spill] sm:$0xff] %v9310_v38 }
 0x4eb   : > { %v9303_v48 = vpop.xlane.xlu0 %1184  ;;  %v9316_v32 = vpop.f32.mrf.mxu1 }
 0x4ec   : > { %11799 = vst [vmem:[#allocation122_spill] sm:$0xff] %v9303_v48 }
 0x4ed   : > { %11804 = vst [vmem:[#allocation136_spill] sm:$0xff] %v9316_v32 }
 0x4f3   : > { %v3116_v5 = vpop.xlane.xlu0 %3115  ;;  %v9328_v44 = vpop.f32.mrf.mxu1 }
 0x4f4   : > { %v3208_v40 = vsub.f32 %v9138_v57, %v3116_v5  ;;  %v11805_v57 = vld [vmem:[#allocation60_spill] sm:$0xff]  ;;  %11806 = vst [vmem:[#allocation137_spill] sm:$0xff] %v9328_v44 }
 0x4f6   : > { %v3241_v20 = vmul.f32 1.442695, %v3208_v40  ;;  %v6230_v40 = vunpack.i.h.bf16 %v6228_v27  ;;  %v6219_v27 = vunpack.i.l.bf16 %v6218_v45 }
 0x4f8   : > { %6665 = vpow2.f32 %v3241_v20  ;;  %v1195_v20 = vsel %vm918_vm1, %v9180_v21, 0.0  ;;  %v3126_v21 = vsel %vm918_vm1, %v9273_v23, -inf }
 0x4fa   : > { %6257 = vrot.lane.b32.xlu2 %v11803_v46, %s7093_s28  ;;  %v1201_v46 = vsel %vm918_vm1, %v9200_v29, 0.0  ;;  %v3132_v29 = vsel %vm918_vm1, %v9326_v51, -inf }
 0x4fe   : > { %v9314_v16 = vpop.eup %6665 }
 0x4ff   : > { %5920 = vmatmul.msk.f32.gmra.mxu0 %vm918_vm1, %v9314_v16 }
 0x500   : > { %v6233_v48 = vpop.permute.xlu1 %6232 }
 0x501   : > { %v6235_v28 = vunpack.i.h.bf16 %v6233_v48  ;;  %v6234_v5 = vunpack.i.l.bf16 %v6233_v48 }
 0x502   : > { %3849 = vrot.lane.b32.xlu2 %v11805_v57, %s7094_s29 }
 0x503   : > { %3544 = vmatpush.msrb.mxu1 %v6235_v28  ;;  %1196 = vadd.xlane.f32.xlu1 %v1195_v20  ;;  %v6220_v28 = vunpack.i.h.bf16 %v6218_v45  ;;  %v9334_v20 = vpop.f32.mrf.mxu1 }
 0x504   : > { %1202 = vadd.xlane.f32.xlu0 %v1201_v46  ;;  %11807 = vst [vmem:[#allocation128_spill] sm:$0xff] %v9334_v20  ;;  %v11810_v46 = vld [vmem:[#allocation37_spill] sm:$0xff]  ;;  %v11823_v20 = vld [vmem:[#allocation58_spill] sm:$0xff] }
 0x505   : > { %3545 = vmatpush.msrb.mxu1 %v6234_v5 }
 0x506   : > { %v6223_v38 = vpop.permute.xlu0 %6222 }
 0x507   : > { %3546 = vmatpush.msrb.mxu1 %v6230_v40  ;;  %v6225_v6 = vunpack.i.h.bf16 %v6223_v38  ;;  %v6224_v48 = vunpack.i.l.bf16 %v6223_v38  ;;  %v11809_v38 = vld [vmem:[#allocation24_spill] sm:$0xff]  ;;  %v9348_v40 = vpop.xlane.xlu2 %1190 }
 0x508   : > { %11811 = vst [vmem:[#allocation127_spill] sm:$0xff] %v9348_v40 }
 0x509   : > { %3547 = vmatpush.msrb.mxu1 %v6229_v18  ;;  %v11808_v18 = vld [vmem:[#allocation49_spill] sm:$0xff] }
 0x50b   : > { %3548 = vmatpush.msrb.mxu1 %v6225_v6  ;;  %3127 = vmax.xlane.f32.xlu1 %v3126_v21  ;;  %v9336_v5 = vpop.f32.mrf.mxu1 }
 0x50c   : > { %3133 = vmax.xlane.f32.xlu0 %v3132_v29 }
 0x50d   : > { %3549 = vmatpush.msrb.mxu1 %v6224_v48 }
 0x50f   : > { %3550 = vmatpush.msrb.mxu1 %v6220_v28 }
 0x511   : > { %3551 = vmatpush.msrb.mxu1 %v6219_v27  ;;  %v3122_v27 = vpop.xlane.xlu2 %3121 }
 0x513   : > { %v9342_v6 = vpop.f32.mrf.mxu1 }
 0x514   : > { %v3138_v45 = vsel %vm918_vm1, %v9342_v6, -inf }
 0x520   : > { %6252 = vrot.lane.b32.xlu0 %v11808_v18, %s7093_s28 }
 0x524   : > { %6262 = vrot.lane.b32.xlu1 %v11809_v38, %s7093_s28  ;;  %v3210_v38 = vsub.f32 %v9186_v17, %v3122_v27  ;;  %v11815_v17 = vld [vmem:[#allocation52_spill] sm:$0xff]  ;;  %v9377_v27 = vpop.f32.mrf.mxu1 }
 0x526   : > { %v3245_v50 = vmul.f32 1.442695, %v3210_v38 }
 0x528   : > { %6267 = vrot.lane.b32.xlu0 %v11810_v46, %s7093_s28 }
 0x52b   : > { %3139 = vmax.xlane.f32.xlu2 %v3138_v45  ;;  %v9350_v21 = vpop.xlane.xlu1 %1187 }
 0x52c   : > { %11812 = vst [vmem:[#allocation36_spill] sm:$0xff] %v9350_v21  ;;  %v9393_v21 = vpop.f32.mrf.mxu1 }
 0x531   : > { %v9352_v48 = vpop.xlane.xlu0 %1193 }
 0x532   : > { %11813 = vst [vmem:[#allocation12_spill] sm:$0xff] %v9352_v48  ;;  %v11814_v48 = vld [vmem:[#allocation53_spill] sm:$0xff] }
 0x533   : > { %v3119_v29 = vpop.xlane.xlu1 %3118 }
 0x534   : > { %v3209_v28 = vsub.f32 %v9166_v15, %v3119_v29  ;;  %v9363_v15 = vpop.permute.xlu2 %6242  ;;  %v9406_v44 = vpop.f32.mrf.mxu1 }
 0x535   : > { %v3147_v12 = vsel %vm918_vm1, %v9406_v44, -inf }
 0x536   : > { %v3243_v18 = vmul.f32 1.442695, %v3209_v28 }
 0x538   : > { %6667 = vpow2.f32 %v3243_v18  ;;  %v3141_v18 = vsel %vm918_vm1, %v9377_v27, -inf }
 0x539   : > { %v3125_v46 = vpop.xlane.xlu0 %3124  ;;  %6669 = vpow2.f32 %v3245_v50  ;;  %v1204_v50 = vsel %vm918_vm1, %v9208_v7, 0.0 }
 0x53a   : > { %v3211_v45 = vsub.f32 %v9250_v63, %v3125_v46  ;;  %v3135_v46 = vsel %vm918_vm1, %v9336_v5, -inf }
 0x53c   : > { %v3247_v40 = vmul.f32 1.442695, %v3211_v45 }
 0x53e   : > { %v9356_v39 = vpop.eup %6667  ;;  %6671 = vpow2.f32 %v3247_v40  ;;  %v9383_v40 = vpop.f32.mrf.mxu2 }
 0x53f   : > { %5921 = vmatmul.msk.f32.gmra.mxu0 %vm918_vm1, %v9356_v39  ;;  %v9365_v29 = vpop.eup %6669  ;;  %11817 = vst [vmem:[#allocation131_spill] sm:$0xff] %v9383_v40 }
 0x543   : > { %3843 = vrot.lane.b32.xlu2 %v11814_v48, %s7094_s29 }
 0x544   : > { %v9375_v63 = vpop.eup %6671 }
 0x546   : > { %v9389_v45 = vpop.f32.mrf.mxu2 }
 0x547   : > { %5922 = vmatmul.msk.f32.gmra.mxu0 %vm918_vm1, %v9365_v29  ;;  %11818 = vst [vmem:[#allocation11_spill] sm:$0xff] %v9389_v45 }
 0x54b   : > { %3839 = vrot.lane.b32.xlu2 %v11815_v17, %s7094_s29  ;;  %v9400_v8 = vpop.permute.xlu1 %6247 }
 0x54d   : > { %v9371_v28 = vpop.xlane.xlu2 %1199 }
 0x54e   : > { %11816 = vst [vmem:[#allocation133_spill] sm:$0xff] %v9371_v28  ;;  %1205 = vadd.xlane.f32.xlu1 %v1204_v50  ;;  %v9391_v50 = vpop.f32.mrf.mxu2 }
 0x54f   : > { %5923 = vmatmul.msk.f32.gmra.mxu0 %vm918_vm1, %v9375_v63  ;;  %11819 = vst [vmem:[#allocation60_spill] sm:$0xff] %v9391_v50 }
 0x552   : > { %3142 = vmax.xlane.f32.xlu0 %v3141_v18  ;;  %v11820_v18 = vld [vmem:[#allocation56_spill] sm:$0xff] }
 0x555   : > { %v3131_v38 = vpop.xlane.xlu2 %3130 }
 0x556   : > { %3136 = vmax.xlane.f32.xlu1 %v3135_v46  ;;  %v9398_v13 = vpop.f32.mrf.mxu2  ;;  %v11822_v46 = vld [vmem:[#allocation54_spill] sm:$0xff]  ;;  %v3213_v55 = vsub.f32 %v9287_v0, %v3131_v38  ;;  %v3144_v38 = vsel %vm918_vm1, %v9393_v21, -inf }
 0x557   : > { %11821 = vst [vmem:[#allocation49_spill] sm:$0xff] %v9398_v13 }
 0x55d   : > { %v9387_v7 = vpop.permute.xlu2 %6257 }
 0x55e   : > { %v9416_v30 = vpop.f32.mrf.mxu2 }
 0x55f   : > { %11826 = vst [vmem:[#allocation37_spill] sm:$0xff] %v9416_v30 }
 0x565   : > { %v3850_v28 = vpop.permute.xlu2 %3849 }
 0x566   : > { %5951 = vmatpush.xpose.msk.msrb.mxu0 %vm553_vm0, %v3850_v28  ;;  %3845 = vrot.lane.b32.xlu0 %v11820_v18, %s7094_s29  ;;  %v9410_v28 = vpop.permute.xlu0 %6237  ;;  %v9421_v37 = vpop.f32.mrf.mxu2 }
 0x567   : > { %11828 = vst [vmem:[#allocation52_spill] sm:$0xff] %v9421_v37 }
 0x56e   : > { %3841 = vrot.lane.b32.xlu0 %v11822_v46, %s7094_s29 }
 0x56f   : > { %3847 = vrot.lane.b32.xlu1 %v11823_v20, %s7094_s29 }
 0x574   : > { %3148 = vmax.xlane.f32.xlu2 %v3147_v12  ;;  %v3251_v12 = vmul.f32 1.442695, %v3213_v55  ;;  %v9439_v55 = vpop.f32.mrf.mxu1 }
 0x576   : > { %v9412_v47 = vpop.xlane.xlu1 %1196 }
 0x577   : > { %11824 = vst [vmem:[#allocation24_spill] sm:$0xff] %v9412_v47  ;;  %6272 = vrot.lane.b32.xlu1 %v11825_v3, %s7093_s28  ;;  %v9418_v32 = vpop.xlane.xlu0 %1202  ;;  %v9426_v47 = vpop.f32.mrf.mxu2 }
 0x578   : > { %11827 = vst [vmem:[#allocation53_spill] sm:$0xff] %v9418_v32 }
 0x579   : > { %11829 = vst [vmem:[#allocation56_spill] sm:$0xff] %v9426_v47 }
 0x57e   : > { %v3128_v42 = vpop.xlane.xlu1 %3127 }
 0x57f   : > { %v3212_v35 = vsub.f32 %v9273_v23, %v3128_v42  ;;  %v3134_v53 = vpop.xlane.xlu0 %3133  ;;  %v11830_v42 = vld [vmem:[#allocation48_spill] sm:$0xff] }
 0x580   : > { %v3214_v3 = vsub.f32 %v9326_v51, %v3134_v53  ;;  %v3150_v53 = vsel %vm918_vm1, %v9439_v55, -inf }
 0x581   : > { %v3249_v14 = vmul.f32 1.442695, %v3212_v35 }
 0x582   : > { %v3253_v35 = vmul.f32 1.442695, %v3214_v3  ;;  %v9463_v3 = vpop.f32.mrf.mxu1 }
 0x583   : > { %6673 = vpow2.f32 %v3249_v14  ;;  %v9437_v14 = vpop.f32.mrf.mxu2 }
 0x584   : > { %6675 = vpow2.f32 %v3251_v12  ;;  %11831 = vst [vmem:[#allocation54_spill] sm:$0xff] %v9437_v14 }
 0x585   : > { %6677 = vpow2.f32 %v3253_v35 }
 0x589   : > { %v9424_v26 = vpop.eup %6673 }
 0x58a   : > { %5924 = vmatmul.msk.f32.gmra.mxu0 %vm918_vm1, %v9424_v26  ;;  %v9433_v23 = vpop.eup %6675 }
 0x58b   : > { %v9445_v51 = vpop.eup %6677  ;;  %v9449_v0 = vpop.f32.mrf.mxu2 }
 0x58c   : > { %3819 = vrot.lane.b32.xlu2 %v11830_v42, %s7095_s6  ;;  %11832 = vst [vmem:[#allocation58_spill] sm:$0xff] %v9449_v0 }
 0x592   : > { %5925 = vmatmul.msk.f32.gmra.mxu0 %vm918_vm1, %v9433_v23 }
 0x593   : > { %v9455_v12 = vpop.f32.mrf.mxu2 }
 0x594   : > { %3825 = vrot.lane.b32.xlu2 %v11822_v46, %s7095_s6  ;;  %11833 = vst [vmem:[#allocation50_spill] sm:$0xff] %v9455_v12 }
 0x598   : > { %3151 = vmax.xlane.f32.xlu0 %v3150_v53  ;;  %v9467_v53 = vpop.permute.xlu1 %6262 }
 0x59a   : > { %5926 = vmatmul.msk.f32.gmra.mxu0 %vm918_vm1, %v9445_v51 }
 0x59b   : > { %v9457_v46 = vpop.f32.mrf.mxu2 }
 0x59c   : > { %3831 = vrot.lane.b32.xlu2 %v11823_v20, %s7095_s6  ;;  %11834 = vst [vmem:[#allocation48_spill] sm:$0xff] %v9457_v46  ;;  %v11836_v20 = vld [vmem:[#allocation51_spill] sm:$0xff] }
 0x59e   : > { %v3140_v14 = vpop.xlane.xlu2 %3139 }
 0x5a1   : > { %3145 = vmax.xlane.f32.xlu1 %v3144_v38  ;;  %v9473_v38 = vpop.f32.mrf.mxu1 }
 0x5a3   : > { %v9465_v35 = vpop.f32.mrf.mxu2 }
 0x5a4   : > { %11835 = vst [vmem:[#allocation147_spill] sm:$0xff] %v9465_v35  ;;  %v11839_v35 = vld [vmem:[#allocation65_spill] sm:$0xff] }
 0x5ab   : > { %v9475_v32 = vpop.f32.mrf.mxu2 }
 0x5ac   : > { %3835 = vrot.lane.b32.xlu0 %v11830_v42, %s7094_s29  ;;  %11837 = vst [vmem:[#allocation51_spill] sm:$0xff] %v9475_v32  ;;  %v9477_v42 = vpop.permute.xlu0 %6252 }
 0x5b4   : > { %3823 = vrot.lane.b32.xlu0 %v11815_v17, %s7095_s6  ;;  %v3156_v17 = vsel %vm918_vm1, %v9473_v38, -inf  ;;  %v9490_v32 = vpop.permute.xlu0 %6267 }
 0x5ba   : > { %3837 = vrot.lane.b32.xlu1 %v11836_v20, %s7094_s29 }
 0x5bc   : > { %3829 = vrot.lane.b32.xlu0 %v11820_v18, %s7095_s6  ;;  %v9487_v18 = vpop.f32.mrf.mxu2 }
 0x5bd   : > { %11840 = vst [vmem:[#allocation65_spill] sm:$0xff] %v9487_v18 }
 0x5c1   : > { %v9479_v46 = vpop.xlane.xlu1 %1205 }
 0x5c2   : > { %11838 = vst [vmem:[#allocation148_spill] sm:$0xff] %v9479_v46  ;;  %3821 = vrot.lane.b32.xlu1 %v11836_v20, %s7095_s6  ;;  %v3216_v46 = vsub.f32 %v9342_v6, %v3140_v14 }
 0x5c4   : > { %3924 = vrot.lane.b32.xlu0 %v11839_v35, %s7095_s6  ;;  %v3257_v20 = vmul.f32 1.442695, %v3216_v46  ;;  %v9495_v56 = vpop.f32.mrf.mxu2 }
 0x5c5   : > { %3157 = vmax.xlane.f32.xlu2 %v3156_v17  ;;  %v3143_v37 = vpop.xlane.xlu0 %3142  ;;  %11841 = vst [vmem:[#allocation149_spill] sm:$0xff] %v9495_v56 }
 0x5c6   : > { %v3217_v17 = vsub.f32 %v9377_v27, %v3143_v37  ;;  %v3844_v37 = vpop.permute.xlu2 %3843 }
 0x5c9   : > { %v3137_v12 = vpop.xlane.xlu1 %3136 }
 0x5ca   : > { %v3215_v0 = vsub.f32 %v9336_v5, %v3137_v12  ;;  %v3259_v5 = vmul.f32 1.442695, %v3217_v17 }
 0x5cc   : > { %v3255_v47 = vmul.f32 1.442695, %v3215_v0  ;;  %v11842_v0 = vld [vmem:[#allocation68_spill] sm:$0xff] }
 0x5ce   : > { %6679 = vpow2.f32 %v3255_v47  ;;  %v9506_v47 = vpop.f32.mrf.mxu2 }
 0x5cf   : > { %6681 = vpow2.f32 %v3257_v20  ;;  %11843 = vst [vmem:[#allocation68_spill] sm:$0xff] %v9506_v47  ;;  %v3153_v20 = vsel %vm918_vm1, %v9463_v3, -inf }
 0x5d0   : > { %6683 = vpow2.f32 %v3259_v5  ;;  %v3309_v5 = vsel %vm918_vm1, %v9356_v39, 0.0  ;;  %v11844_v39 = vld [vmem:[#allocation80_spill] sm:$0xff] }
 0x5d4   : > { %v9493_v30 = vpop.eup %6679 }
 0x5d5   : > { %5927 = vmatmul.msk.f32.vlgmr.msrb.gmra.mxu1 %vm918_vm1, %v9493_v30  ;;  %v9500_v12 = vpop.eup %6681  ;;  %v3327_v36 = vsel %vm918_vm1, %v9493_v30, 0.0 }
 0x5d6   : > { %v9509_v46 = vpop.eup %6683  ;;  %v9514_v27 = vpop.f32.mrf.mxu2 }
 0x5d8   : > { %v3846_v14 = vpop.permute.xlu0 %3845 }
 0x5dd   : > { %3926 = vrot.lane.b32.xlu2 %v11842_v0, %s7095_s6  ;;  %5928 = vmatmul.msk.f32.gmra.mxu1 %vm918_vm1, %v9500_v12 }
 0x5de   : > { %v9522_v47 = vpop.f32.mrf.mxu2 }
 0x5e0   : > { %v3842_v17 = vpop.permute.xlu0 %3841 }
 0x5e1   : > { %v3848_v6 = vpop.permute.xlu1 %3847 }
 0x5e2   : > { %5952 = vmatpush.xpose.msk.msrb.mxu0 %vm553_vm0, %v3848_v6  ;;  %v3840_v6 = vpop.permute.xlu2 %3839 }
 0x5e5   : > { %5929 = vmatmul.msk.f32.gmra.mxu1 %vm918_vm1, %v9509_v46 }
 0x5e6   : > { %5953 = vmatpush.xpose.msk.msrb.mxu0 %vm553_vm0, %v3846_v14  ;;  %v2002_v14 = vsel %vm918_vm1, %v9522_v47, -inf }
 0x5ea   : > { %5954 = vmatpush.xpose.msk.msrb.mxu0 %vm553_vm0, %v3844_v37  ;;  %v3306_v37 = vsel %vm918_vm1, %v9314_v16, 0.0  ;;  %v3149_v56 = vpop.xlane.xlu2 %3148 }
 0x5ec   : > { %3154 = vmax.xlane.f32.xlu1 %v3153_v20  ;;  %v9533_v20 = vpop.permute.xlu1 %6272 }
 0x5ee   : > { %3310 = vadd.xlane.f32.xlu0 %v3309_v5  ;;  %5955 = vmatpush.xpose.msk.msrb.mxu0 %vm553_vm0, %v3842_v17  ;;  %v9535_v5 = vpop.f32.mrf.mxu3 }
 0x5ef   : > { %11845 = vst [vmem:[#allocation80_spill] sm:$0xff] %v9535_v5 }
 0x5f2   : > { %5956 = vmatpush.xpose.msk.msrb.mxu0 %vm553_vm0, %v3840_v6 }
 0x5f6   : > { %2003 = vmax.xlane.f32.xlu0 %v2002_v14  ;;  %v3219_v14 = vsub.f32 %v9406_v44, %v3149_v56 }
 0x5f8   : > { %v3263_v49 = vmul.f32 1.442695, %v3219_v14 }
 0x605   : > { %3827 = vrot.lane.b32.xlu1 %v11814_v48, %s7095_s6  ;;  %v9539_v48 = vpop.f32.mrf.mxu3 }
 0x606   : > { %3307 = vadd.xlane.f32.xlu2 %v3306_v37  ;;  %11846 = vst [vmem:[#allocation150_spill] sm:$0xff] %v9539_v48  ;;  %v11847_v37 = vld [vmem:[#allocation77_spill] sm:$0xff] }
 0x60a   : > { %3954 = vrot.lane.b32.xlu0 %v11844_v39, %s7094_s29 }
 0x60b   : > { %v3152_v16 = vpop.xlane.xlu0 %3151 }
 0x60d   : > { %v9552_v56 = vpop.f32.mrf.mxu3 }
 0x60e   : > { %11848 = vst [vmem:[#allocation77_spill] sm:$0xff] %v9552_v56 }
 0x614   : > { %v3146_v17 = vpop.xlane.xlu1 %3145 }
 0x615   : > { %v3218_v6 = vsub.f32 %v9393_v21, %v3146_v17  ;;  %v3220_v21 = vsub.f32 %v9439_v55, %v3152_v16  ;;  %v9548_v17 = vpop.f32.mrf.mxu2 }
 0x617   : > { %v3261_v18 = vmul.f32 1.442695, %v3218_v6  ;;  %v3265_v6 = vmul.f32 1.442695, %v3220_v21  ;;  %v9565_v21 = vpop.f32.mrf.mxu3 }
 0x618   : > { %11849 = vst [vmem:[#allocation151_spill] sm:$0xff] %v9565_v21 }
 0x619   : > { %6685 = vpow2.f32 %v3261_v18 }
 0x61a   : > { %6687 = vpow2.f32 %v3263_v49  ;;  %v3303_v49 = vsel %vm918_vm1, %v9263_v58, 0.0 }
 0x61b   : > { %6689 = vpow2.f32 %v3265_v6  ;;  %v3820_v6 = vpop.permute.xlu2 %3819 }
 0x61d   : > { %v9557_v14 = vpop.f32.mrf.mxu2 }
 0x61e   : > { %3952 = vrot.lane.b32.xlu2 %v11847_v37, %s7094_s29  ;;  %v3836_v16 = vpop.permute.xlu0 %3835 }
 0x61f   : > { %v9543_v54 = vpop.eup %6685  ;;  %v9573_v58 = vpop.f32.mrf.mxu3 }
 0x620   : > { %5930 = vmatmul.msk.f32.gmra.mxu1 %vm918_vm1, %v9543_v54  ;;  %v9550_v44 = vpop.eup %6687  ;;  %11850 = vst [vmem:[#allocation152_spill] sm:$0xff] %v9573_v58 }
 0x621   : > { %v9561_v55 = vpop.eup %6689 }
 0x625   : > { %v9571_v56 = vpop.f32.mrf.mxu2 }
 0x626   : > { %v2011_v48 = vsel %vm918_vm1, %v9571_v56, -inf  ;;  %v3824_v21 = vpop.permute.xlu0 %3823 }
 0x628   : > { %5931 = vmatmul.msk.f32.gmra.mxu1 %vm918_vm1, %v9550_v44 }
 0x62c   : > { %v3838_v18 = vpop.permute.xlu1 %3837 }
 0x62d   : > { %5957 = vmatpush.xpose.msk.msrb.mxu0 %vm553_vm0, %v3838_v18  ;;  %v3318_v18 = vsel %vm918_vm1, %v9424_v26, 0.0  ;;  %v2005_v26 = vsel %vm918_vm1, %v9548_v17, -inf  ;;  %v9606_v61 = vpop.f32.mrf.mxu2 }
 0x62f   : > { %3304 = vadd.xlane.f32.xlu1 %v3303_v49 }
 0x630   : > { %5932 = vmatmul.msk.f32.gmra.mxu1 %vm918_vm1, %v9561_v55 }
 0x631   : > { %5958 = vmatpush.xpose.msk.msrb.mxu0 %vm553_vm0, %v3836_v16  ;;  %v9579_v16 = vpop.f32.mrf.mxu3 }
 0x632   : > { %11851 = vst [vmem:[#allocation153_spill] sm:$0xff] %v9579_v16  ;;  %v3830_v16 = vpop.permute.xlu0 %3829 }
 0x634   : > { %3319 = vadd.xlane.f32.xlu0 %v3318_v18  ;;  %5959 = vmatmul.msk.f32.vlgmr.msrb.gmra.mxu0 %vm553_vm0, %v3820_v6  ;;  %v3822_v49 = vpop.permute.xlu1 %3821  ;;  %v3826_v6 = vpop.permute.xlu2 %3825 }
 0x639   : > { %v9588_v18 = vpop.f32.mrf.mxu3 }
 0x63a   : > { %11852 = vst [vmem:[#allocation154_spill] sm:$0xff] %v9588_v18 }
 0x63c   : > { %2012 = vmax.xlane.f32.xlu0 %v2011_v48  ;;  %5960 = vmatmul.msk.f32.gmra.mxu0 %vm553_vm0, %v3822_v49  ;;  %v3315_v48 = vsel %vm918_vm1, %v9375_v63, 0.0  ;;  %v3832_v58 = vpop.permute.xlu2 %3831 }
 0x641   : > { %v9592_v49 = vpop.f32.mrf.mxu3 }
 0x644   : > { %5961 = vmatmul.msk.f32.gmra.mxu0 %vm553_vm0, %v3824_v21  ;;  %v11853_v21 = vld [vmem:[#allocation71_spill] sm:$0xff]  ;;  %v3158_v59 = vpop.xlane.xlu2 %3157 }
 0x645   : > { %11854 = vst [vmem:[#allocation71_spill] sm:$0xff] %v9592_v49  ;;  %v3222_v63 = vsub.f32 %v9473_v38, %v3158_v59 }
 0x647   : > { %2006 = vmax.xlane.f32.xlu2 %v2005_v26  ;;  %v3269_v18 = vmul.f32 1.442695, %v3222_v63 }
 0x648   : > { %3833 = vrot.lane.b32.xlu1 %v11805_v57, %s7095_s6 }
 0x649   : > { %v9594_v26 = vpop.f32.mrf.mxu3 }
 0x64a   : > { %11855 = vst [vmem:[#allocation155_spill] sm:$0xff] %v9594_v26 }
 0x64c   : > { %5962 = vmatmul.msk.f32.gmra.mxu0 %vm553_vm0, %v3826_v6  ;;  %v9597_v6 = vpop.permute.xlu0 %3924 }
 0x64f   : > { %3316 = vadd.xlane.f32.xlu2 %v3315_v48  ;;  %v11856_v48 = vld [vmem:[#allocation73_spill] sm:$0xff] }
 0x650   : > { %3930 = vrot.lane.b32.xlu0 %v11853_v21, %s7095_s6 }
 0x651   : > { %v9602_v50 = vpop.f32.mrf.mxu3 }
 0x652   : > { %11857 = vst [vmem:[#allocation73_spill] sm:$0xff] %v9602_v50  ;;  %v3312_v50 = vsel %vm918_vm1, %v9365_v29, 0.0 }
 0x659   : > { %v9618_v38 = vpop.f32.mrf.mxu3 }
 0x65a   : > { %11859 = vst [vmem:[#allocation157_spill] sm:$0xff] %v9618_v38 }
 0x65f   : > { %v3155_v5 = vpop.xlane.xlu1 %3154 }
 0x660   : > { %v3221_v57 = vsub.f32 %v9463_v3, %v3155_v5  ;;  %v9612_v3 = vpop.permute.xlu2 %3926  ;;  %v9622_v5 = vpop.f32.mrf.mxu2 }
 0x661   : > { %v9608_v26 = vpop.xlane.xlu0 %3310  ;;  %v9632_v38 = vpop.f32.mrf.mxu3 }
 0x662   : > { %v3267_v13 = vmul.f32 1.442695, %v3221_v57  ;;  %11858 = vst [vmem:[#allocation156_spill] sm:$0xff] %v9608_v26 }
 0x663   : > { %11860 = vst [vmem:[#allocation158_spill] sm:$0xff] %v9632_v38  ;;  %v6254_v38 = vunpack.i.l.bf16 %v9477_v42 }
 0x664   : > { %6691 = vpow2.f32 %v3267_v13  ;;  %v1999_v13 = vsel %vm918_vm1, %v9514_v27, -inf }
 0x665   : > { %6693 = vpow2.f32 %v3269_v18 }
 0x667   : > { %3948 = vrot.lane.b32.xlu2 %v11856_v48, %s7094_s29 }
 0x668   : > { %v9634_v24 = vpop.f32.mrf.mxu2 }
 0x669   : > { %v2004_v57 = vpop.xlane.xlu0 %2003  ;;  %v2020_v2 = vsel %vm918_vm1, %v9634_v24, -inf  ;;  %v9640_v29 = vpop.f32.mrf.mxu3 }
 0x66a   : > { %v9604_v49 = vpop.eup %6691  ;;  %11861 = vst [vmem:[#allocation159_spill] sm:$0xff] %v9640_v29 }
 0x66b   : > { %5933 = vmatmul.msk.f32.gmra.mxu1 %vm918_vm1, %v9604_v49  ;;  %v9616_v59 = vpop.eup %6693 }
 0x671   : > { %v9645_v30 = vpop.f32.mrf.mxu3 }
 0x672   : > { %2000 = vmax.xlane.f32.xlu1 %v1999_v13  ;;  %11862 = vst [vmem:[#allocation160_spill] sm:$0xff] %v9645_v30 }
 0x673   : > { %5934 = vmatmul.msk.f32.gmra.mxu1 %vm918_vm1, %v9616_v59 }
 0x677   : > { %v3828_v63 = vpop.permute.xlu1 %3827 }
 0x678   : > { %5963 = vmatmul.msk.f32.gmra.mxu0 %vm553_vm0, %v3828_v63 }
 0x679   : > { %v9625_v18 = vpop.xlane.xlu2 %3307 }
 0x67a   : > { %3313 = vadd.xlane.f32.xlu1 %v3312_v50  ;;  %3328 = vadd.xlane.f32.xlu0 %v3327_v36  ;;  %v2014_v36 = vsel %vm918_vm1, %v9606_v61, -inf  ;;  %v11863_v50 = vld [vmem:[#allocation70_spill] sm:$0xff] }
 0x67c   : > { %v3955_v13 = vpop.permute.xlu0 %3954 }
 0x67d   : > { %5967 = vmatpush.xpose.msk.msra.mxu1 %vm553_vm0, %v3955_v13 }
 0x680   : > { %5964 = vmatmul.msk.f32.gmra.mxu0 %vm553_vm0, %v3830_v16  ;;  %v3324_v16 = vsel %vm918_vm1, %v9445_v51, 0.0  ;;  %v2008_v51 = vsel %vm918_vm1, %v9557_v14, -inf }
 0x681   : > { %v3953_v63 = vpop.permute.xlu2 %3952 }
 0x682   : > { %5968 = vmatpush.xpose.msk.msra.mxu1 %vm553_vm0, %v3953_v63  ;;  %2021 = vmax.xlane.f32.xlu0 %v2020_v2  ;;  %v9653_v2 = vpop.f32.mrf.mxu3 }
 0x683   : > { %11864 = vst [vmem:[#allocation70_spill] sm:$0xff] %v9653_v2 }
 0x688   : > { %5965 = vmatmul.msk.f32.gmra.mxu0 %vm553_vm0, %v3832_v58 }
 0x68a   : > { %v9655_v13 = vpop.f32.mrf.mxu3 }
 0x68b   : > { %11865 = vst [vmem:[#allocation161_spill] sm:$0xff] %v9655_v13 }
 0x690   : > { %2015 = vmax.xlane.f32.xlu2 %v2014_v36 }
 0x692   : > { %v9657_v58 = vpop.f32.mrf.mxu3 }
 0x693   : > { %3928 = vrot.lane.b32.xlu1 %v11863_v50, %s7095_s6 }
 0x696   : > { %3944 = vrot.lane.b32.xlu0 %v11863_v50, %s7094_s29  ;;  %v3336_v50 = vsel %vm918_vm1, %v9543_v54, 0.0  ;;  %v11866_v54 = vld [vmem:[#allocation75_spill] sm:$0xff] }
 0x698   : > { %3325 = vadd.xlane.f32.xlu2 %v3324_v16 }
 0x69a   : > { %v9663_v36 = vpop.f32.mrf.mxu3 }
 0x6a2   : > { %v9661_v63 = vpop.xlane.xlu1 %3304  ;;  %v9670_v16 = vpop.f32.mrf.mxu3 }
 0x6a3   : > { %v2029_v13 = vsel %vm918_vm1, %v9670_v16, -inf }
 0x6b0   : > { %3932 = vrot.lane.b32.xlu2 %v11856_v48, %s7095_s6  ;;  %v3321_v48 = vsel %vm918_vm1, %v9433_v23, 0.0 }
 0x6ba   : > { %v3834_v30 = vpop.permute.xlu1 %3833  ;;  %v2007_v29 = vpop.xlane.xlu2 %2006 }
 0x6bb   : > { %5966 = vmatmul.msk.f32.gmra.mxu0 %vm553_vm0, %v3834_v30  ;;  %v2023_v30 = vsel %vm918_vm1, %v9657_v58, -inf }
 0x6bd   : > { %2009 = vmax.xlane.f32.xlu1 %v2008_v51  ;;  %v3333_v51 = vsel %vm918_vm1, %v9509_v46, 0.0  ;;  %v2065_v46 = vsub.f32 %v9548_v17, %v2007_v29  ;;  %v6239_v17 = vunpack.i.l.bf16 %v9410_v28 }
 0x6c0   : > { %3337 = vadd.xlane.f32.xlu0 %v3336_v50 }
 0x6c5   : > { %3322 = vadd.xlane.f32.xlu1 %v3321_v48 }
 0x6c8   : > { %2030 = vmax.xlane.f32.xlu0 %v2029_v13  ;;  %v2064_v13 = vsub.f32 %v9522_v47, %v2004_v57  ;;  %v6249_v47 = vunpack.i.l.bf16 %v9400_v8  ;;  %v9695_v57 = vpop.f32.mrf.mxu3 }
 0x6ca   : > { %v2113_v2 = vmul.f32 1.442695, %v2064_v13  ;;  %v9723_v13 = vpop.xlane.xlu2 %3316 }
 0x6cb   : > { %11867 = vst [vmem:[#allocation75_spill] sm:$0xff] %v9723_v13 }
 0x6d0   : > { %v9709_v29 = vpop.f32.mrf.mxu3 }
 0x6d9   : > { %2024 = vmax.xlane.f32.xlu2 %v2023_v30 }
 0x6dc   : > { %3940 = vrot.lane.b32.xlu0 %v11839_v35, %s7094_s29  ;;  %v6255_v35 = vunpack.i.h.bf16 %v9477_v42  ;;  %v6244_v42 = vunpack.i.l.bf16 %v9363_v15 }
 0x6de   : > { %3950 = vrot.lane.b32.xlu1 %v11866_v54, %s7094_s29 }
 0x6e1   : > { %3334 = vadd.xlane.f32.xlu2 %v3333_v51  ;;  %v2115_v51 = vmul.f32 1.442695, %v2065_v46  ;;  %v9731_v46 = vpop.xlane.xlu0 %3319 }
 0x6e2   : > { %11869 = vst [vmem:[#allocation163_spill] sm:$0xff] %v9731_v46 }
 0x6e5   : > { %v2001_v23 = vpop.xlane.xlu1 %2000 }
 0x6e6   : > { %v2063_v50 = vsub.f32 %v9514_v27, %v2001_v23  ;;  %v6250_v27 = vunpack.i.h.bf16 %v9400_v8  ;;  %v6240_v8 = vunpack.i.h.bf16 %v9410_v28 }
 0x6e8   : > { %v2111_v48 = vmul.f32 1.442695, %v2063_v50  ;;  %v6245_v50 = vunpack.i.h.bf16 %v9363_v15  ;;  %v2017_v15 = vsel %vm918_vm1, %v9622_v5, -inf }
 0x6ea   : > { %6695 = vpow2.f32 %v2111_v48  ;;  %v3330_v48 = vsel %vm918_vm1, %v9500_v12, 0.0  ;;  %v3342_v12 = vsel %vm918_vm1, %v9561_v55, 0.0  ;;  %v11873_v55 = vld [vmem:[#allocation89_spill] sm:$0xff] }
 0x6eb   : > { %6697 = vpow2.f32 %v2113_v2  ;;  %v3345_v2 = vsel %vm918_vm1, %v9604_v49, 0.0  ;;  %v2032_v49 = vsel %vm918_vm1, %v9695_v57, -inf }
 0x6ec   : > { %6699 = vpow2.f32 %v2115_v51  ;;  %v11870_v51 = vld [vmem:[#allocation85_spill] sm:$0xff] }
 0x6f0   : > { %v9686_v30 = vpop.eup %6695 }
 0x6f1   : > { %5839 = vmatmul.msk.f32.vlgmr.msra.gmra.mxu2 %vm918_vm1, %v9686_v30  ;;  %v9697_v23 = vpop.eup %6697 }
 0x6f2   : > { %3633 = vmatpush.msra.mxu2 %v6255_v35  ;;  %v9725_v35 = vpop.xlane.xlu1 %3313 }
 0x6f3   : > { %11868 = vst [vmem:[#allocation162_spill] sm:$0xff] %v9725_v35 }
 0x6f4   : > { %3634 = vmatpush.msra.mxu2 %v6254_v38  ;;  %v9707_v38 = vpop.eup %6699 }
 0x6f6   : > { %3635 = vmatpush.msra.mxu2 %v6250_v27  ;;  %v3949_v27 = vpop.permute.xlu2 %3948 }
 0x6f8   : > { %3636 = vmatpush.msra.mxu2 %v6249_v47 }
 0x6f9   : > { %3934 = vrot.lane.b32.xlu2 %v11866_v54, %s7095_s6  ;;  %5840 = vmatmul.msk.f32.gmra.mxu2 %vm918_vm1, %v9697_v23  ;;  %v9717_v54 = vpop.f32.mrf.mxu3 }
 0x6fa   : > { %3637 = vmatpush.msra.mxu2 %v6245_v50  ;;  %v2038_v28 = vsel %vm918_vm1, %v9717_v54, -inf }
 0x6fc   : > { %3638 = vmatpush.msra.mxu2 %v6244_v42 }
 0x6fe   : > { %3639 = vmatpush.msra.mxu2 %v6240_v8 }
 0x700   : > { %3640 = vmatpush.msra.mxu2 %v6239_v17  ;;  %v11871_v17 = vld [vmem:[#allocation91_spill] sm:$0xff] }
 0x701   : > { %5841 = vmatmul.msk.f32.gmra.mxu2 %vm918_vm1, %v9707_v38 }
 0x703   : > { %v2016_v50 = vpop.xlane.xlu2 %2015 }
 0x705   : > { %v9733_v47 = vpop.permute.xlu1 %3928 }
 0x706   : > { %3346 = vadd.xlane.f32.xlu0 %v3345_v2 }
 0x708   : > { %2018 = vmax.xlane.f32.xlu1 %v2017_v15 }
 0x70e   : > { %2039 = vmax.xlane.f32.xlu0 %v2038_v28  ;;  %v9745_v28 = vpop.xlane.xlu2 %3325 }
 0x70f   : > { %11872 = vst [vmem:[#allocation85_spill] sm:$0xff] %v9745_v28 }
 0x710   : > { %3331 = vadd.xlane.f32.xlu1 %v3330_v48 }
 0x722   : > { %2033 = vmax.xlane.f32.xlu2 %v2032_v49  ;;  %3938 = vrot.lane.b32.xlu0 %v11844_v39, %s7095_s6  ;;  %v2013_v39 = vpop.xlane.xlu0 %2012 }
 0x723   : > { %v2067_v15 = vsub.f32 %v9571_v56, %v2013_v39 }
 0x729   : > { %3946 = vrot.lane.b32.xlu1 %v11853_v21, %s7094_s29  ;;  %v2119_v21 = vmul.f32 1.442695, %v2067_v15 }
 0x72a   : > { %3343 = vadd.xlane.f32.xlu2 %v3342_v12  ;;  %4033 = vrot.lane.b32.xlu0 %v11870_v51, %s7095_s6  ;;  %v11874_v12 = vld [vmem:[#allocation82_spill] sm:$0xff] }
 0x730   : > { %v2010_v42 = vpop.xlane.xlu1 %2009 }
 0x731   : > { %v2066_v8 = vsub.f32 %v9557_v14, %v2010_v42  ;;  %v2068_v14 = vsub.f32 %v9606_v61, %v2016_v50  ;;  %v9758_v42 = vpop.permute.xlu2 %3932 }
 0x732   : > { %4057 = vrot.lane.b32.xlu0 %v11871_v17, %s7094_s29 }
 0x733   : > { %v2117_v2 = vmul.f32 1.442695, %v2066_v8  ;;  %v2121_v49 = vmul.f32 1.442695, %v2068_v14 }
 0x735   : > { %6701 = vpow2.f32 %v2117_v2 }
 0x736   : > { %6703 = vpow2.f32 %v2119_v21  ;;  %v2026_v21 = vsel %vm918_vm1, %v9663_v36, -inf }
 0x737   : > { %6705 = vpow2.f32 %v2121_v49  ;;  %v6275_v49 = vunpack.i.h.bf16 %v9533_v20 }
 0x738   : > { %v9762_v8 = vpop.xlane.xlu1 %3322 }
 0x739   : > { %11875 = vst [vmem:[#allocation91_spill] sm:$0xff] %v9762_v8 }
 0x73a   : > { %4053 = vrot.lane.b32.xlu0 %v11873_v55, %s7094_s29 }
 0x73b   : > { %v9749_v48 = vpop.eup %6701 }
 0x73c   : > { %5842 = vmatmul.msk.f32.gmra.mxu2 %vm918_vm1, %v9749_v48  ;;  %v9756_v56 = vpop.eup %6703 }
 0x73d   : > { %v9764_v39 = vpop.eup %6705 }
 0x742   : > { %4029 = vrot.lane.b32.xlu2 %v11874_v12, %s7095_s6 }
 0x744   : > { %5843 = vmatmul.msk.f32.gmra.mxu2 %vm918_vm1, %v9756_v56 }
 0x74c   : > { %v2025_v2 = vpop.xlane.xlu2 %2024  ;;  %5844 = vmatmul.msk.f32.gmra.mxu2 %vm918_vm1, %v9764_v39 }
 0x74d   : > { %v2071_v61 = vsub.f32 %v9657_v58, %v2025_v2  ;;  %v6274_v58 = vunpack.i.l.bf16 %v9533_v20  ;;  %v3339_v2 = vsel %vm918_vm1, %v9550_v44, 0.0  ;;  %v2197_v20 = vsel %vm918_vm1, %v9707_v38, 0.0 }
 0x74e   : > { %v6259_v44 = vunpack.i.l.bf16 %v9387_v7 }
 0x74f   : > { %v2127_v50 = vmul.f32 1.442695, %v2071_v61  ;;  %v6270_v61 = vunpack.i.h.bf16 %v9490_v32 }
 0x750   : > { %v3951_v15 = vpop.permute.xlu1 %3950 }
 0x751   : > { %6707 = vpow2.f32 %v2127_v50  ;;  %5969 = vmatpush.xpose.msk.msra.mxu1 %vm553_vm0, %v3951_v15  ;;  %v6269_v50 = vunpack.i.l.bf16 %v9490_v32  ;;  %v6264_v15 = vunpack.i.l.bf16 %v9467_v53 }
 0x753   : > { %2027 = vmax.xlane.f32.xlu1 %v2026_v21  ;;  %v6260_v21 = vunpack.i.h.bf16 %v9387_v7 }
 0x755   : > { %5970 = vmatpush.xpose.msk.msra.mxu1 %vm553_vm0, %v3949_v27  ;;  %v6265_v27 = vunpack.i.h.bf16 %v9467_v53 }
 0x757   : > { %v9773_v14 = vpop.eup %6707 }
 0x758   : > { %5847 = vmatmul.msk.f32.vlgmr.msra.gmra.mxu3 %vm918_vm1, %v9773_v14 }
 0x759   : > { %3722 = vmatpush.msra.mxu3 %v6275_v49  ;;  %v9789_v49 = vpop.f32.mrf.mxu3 }
 0x75a   : > { %v2041_v32 = vsel %vm918_vm1, %v9789_v49, -inf }
 0x75b   : > { %3723 = vmatpush.msra.mxu3 %v6274_v58  ;;  %3340 = vadd.xlane.f32.xlu1 %v3339_v2  ;;  %v9793_v58 = vpop.permute.xlu0 %3930 }
 0x75d   : > { %3724 = vmatpush.msra.mxu3 %v6270_v61 }
 0x75f   : > { %3725 = vmatpush.msra.mxu3 %v6269_v50 }
 0x761   : > { %3726 = vmatpush.msra.mxu3 %v6265_v27  ;;  %v11877_v27 = vld [vmem:[#allocation86_spill] sm:$0xff] }
 0x763   : > { %3727 = vmatpush.msra.mxu3 %v6264_v15  ;;  %v9795_v53 = vpop.xlane.xlu0 %3328 }
 0x764   : > { %2198 = vadd.xlane.f32.xlu0 %v2197_v20  ;;  %11876 = vst [vmem:[#allocation89_spill] sm:$0xff] %v9795_v53 }
 0x765   : > { %3728 = vmatpush.msra.mxu3 %v6260_v21 }
 0x767   : > { %3729 = vmatpush.msra.mxu3 %v6259_v44  ;;  %v11880_v44 = vld [vmem:[#allocation100_spill] sm:$0xff] }
 0x76b   : > { %2042 = vmax.xlane.f32.xlu2 %v2041_v32  ;;  %v2022_v2 = vpop.xlane.xlu0 %2021  ;;  %v3348_v32 = vsel %vm918_vm1, %v9616_v59, 0.0  ;;  %v9839_v59 = vpop.xlane.xlu2 %3334 }
 0x76c   : > { %v2070_v50 = vsub.f32 %v9634_v24, %v2022_v2  ;;  %v2191_v2 = vsel %vm918_vm1, %v9686_v30, 0.0 }
 0x76e   : > { %v2125_v15 = vmul.f32 1.442695, %v2070_v50  ;;  %v11883_v50 = vld [vmem:[#allocation113_spill] sm:$0xff] }
 0x773   : > { %v3945_v20 = vpop.permute.xlu0 %3944 }
 0x774   : > { %3942 = vrot.lane.b32.xlu1 %v11842_v0, %s7094_s29 }
 0x778   : > { %4049 = vrot.lane.b32.xlu0 %v11870_v51, %s7094_s29 }
 0x77b   : > { %v2019_v38 = vpop.xlane.xlu1 %2018 }
 0x77c   : > { %v2069_v7 = vsub.f32 %v9622_v5, %v2019_v38  ;;  %v11879_v5 = vld [vmem:[#allocation97_spill] sm:$0xff]  ;;  %v11881_v38 = vld [vmem:[#allocation99_spill] sm:$0xff] }
 0x77d   : > { %11885 = vst [vmem:[#allocation97_spill] sm:$0xff] %v9839_v59 }
 0x77e   : > { %v2123_v61 = vmul.f32 1.442695, %v2069_v7  ;;  %v2206_v7 = vsel %vm918_vm1, %v9764_v39, 0.0  ;;  %v11887_v39 = vld [vmem:[#allocation111_spill] sm:$0xff] }
 0x780   : > { %6709 = vpow2.f32 %v2123_v61  ;;  %4041 = vrot.lane.b32.xlu0 %v11871_v17, %s7095_s6  ;;  %v2035_v17 = vsel %vm918_vm1, %v9709_v29, -inf  ;;  %v11882_v61 = vld [vmem:[#allocation109_spill] sm:$0xff] }
 0x781   : > { %6711 = vpow2.f32 %v2125_v15  ;;  %v9837_v15 = vpop.xlane.xlu0 %3337 }
 0x782   : > { %11884 = vst [vmem:[#allocation86_spill] sm:$0xff] %v9837_v15  ;;  %v11928_v15 = vld [vmem:[#allocation134_spill] sm:$0xff] }
 0x783   : > { %4035 = vrot.lane.b32.xlu2 %v11877_v27, %s7095_s6  ;;  %v9815_v24 = vpop.xlane.xlu1 %3331 }
 0x784   : > { %11878 = vst [vmem:[#allocation82_spill] sm:$0xff] %v9815_v24 }
 0x786   : > { %v9807_v21 = vpop.eup %6709 }
 0x787   : > { %5845 = vmatmul.msk.f32.gmra.mxu2 %vm918_vm1, %v9807_v21  ;;  %v9811_v0 = vpop.eup %6711 }
 0x78f   : > { %5846 = vmatmul.msk.f32.gmra.mxu2 %vm918_vm1, %v9811_v0 }
 0x797   : > { %5895 = vmatmul.msk.f32.vlgmr.msrb.gmra.mxu2 %vm553_vm0, %v11879_v5  ;;  %v11886_v5 = vld [vmem:[#allocation95_spill] sm:$0xff] }
 0x79b   : > { %v3947_v51 = vpop.permute.xlu1 %3946 }
 0x79c   : > { %5971 = vmatpush.xpose.msk.msra.mxu1 %vm553_vm0, %v3947_v51  ;;  %v11888_v51 = vld [vmem:[#allocation104_spill] sm:$0xff] }
 0x79e   : > { %2036 = vmax.xlane.f32.xlu1 %v2035_v17 }
 0x79f   : > { %5896 = vmatmul.msk.f32.gmra.mxu2 %vm553_vm0, %v11880_v44  ;;  %v2031_v44 = vpop.xlane.xlu0 %2030 }
 0x7a0   : > { %5972 = vmatpush.xpose.msk.msra.mxu1 %vm553_vm0, %v3945_v20  ;;  %v11889_v20 = vld [vmem:[#allocation116_spill] sm:$0xff] }
 0x7a6   : > { %3349 = vadd.xlane.f32.xlu1 %v3348_v32  ;;  %v3935_v32 = vpop.permute.xlu2 %3934 }
 0x7a7   : > { %5897 = vmatmul.msk.f32.gmra.mxu2 %vm553_vm0, %v11881_v38 }
 0x7aa   : > { %2207 = vadd.xlane.f32.xlu0 %v2206_v7 }
 0x7ac   : > { %2192 = vadd.xlane.f32.xlu2 %v2191_v2 }
 0x7ae   : > { %v2034_v2 = vpop.xlane.xlu2 %2033 }
 0x7af   : > { %5898 = vmatmul.msk.f32.gmra.mxu2 %vm553_vm0, %v11882_v61 }
 0x7b7   : > { %5899 = vmatmul.msk.f32.gmra.mxu2 %vm553_vm0, %v11883_v50 }
 0x7be   : > { %4136 = vrot.lane.b32.xlu0 %v11886_v5, %s7095_s6 }
 0x7bf   : > { %3936 = vrot.lane.b32.xlu1 %v11847_v37, %s7095_s6  ;;  %5900 = vmatmul.msk.f32.gmra.mxu2 %vm553_vm0, %v11887_v39  ;;  %v2073_v37 = vsub.f32 %v9670_v16, %v2031_v44  ;;  %v2215_v44 = vsel %vm918_vm1, %v9773_v14, 0.0  ;;  %v9895_v14 = vpop.xlane.xlu2 %3343 }
 0x7c0   : > { %11895 = vst [vmem:[#allocation109_spill] sm:$0xff] %v9895_v14  ;;  %v11913_v14 = vld [vmem:[#allocation123_spill] sm:$0xff] }
 0x7c1   : > { %v2131_v7 = vmul.f32 1.442695, %v2073_v37  ;;  %v11892_v37 = vld [vmem:[#allocation84_spill] sm:$0xff] }
 0x7c4   : > { %4037 = vrot.lane.b32.xlu2 %v11873_v55, %s7095_s6  ;;  %v11890_v55 = vld [vmem:[#allocation118_spill] sm:$0xff] }
 0x7c6   : > { %v2028_v30 = vpop.xlane.xlu1 %2027  ;;  %4142 = vrot.lane.b32.xlu0 %v11888_v51, %s7095_s6 }
 0x7c7   : > { %v2072_v17 = vsub.f32 %v9663_v36, %v2028_v30  ;;  %5901 = vmatmul.msk.f32.gmra.mxu2 %vm553_vm0, %v11889_v20  ;;  %v2074_v36 = vsub.f32 %v9695_v57, %v2034_v2  ;;  %v9871_v30 = vpop.f32.mrf.mxu3  ;;  %v3941_v20 = vpop.permute.xlu0 %3940 }
 0x7c8   : > { %v2044_v57 = vsel %vm918_vm1, %v9871_v30, -inf }
 0x7c9   : > { %v2129_v38 = vmul.f32 1.442695, %v2072_v17  ;;  %v2133_v50 = vmul.f32 1.442695, %v2074_v36  ;;  %v11896_v36 = vld [vmem:[#allocation92_spill] sm:$0xff] }
 0x7cb   : > { %6713 = vpow2.f32 %v2129_v38  ;;  %v2200_v38 = vsel %vm918_vm1, %v9749_v48, 0.0 }
 0x7cc   : > { %4051 = vrot.lane.b32.xlu2 %v11877_v27, %s7094_s29  ;;  %6715 = vpow2.f32 %v2131_v7  ;;  %v11893_v7 = vld [vmem:[#allocation114_spill] sm:$0xff] }
 0x7cd   : > { %6717 = vpow2.f32 %v2133_v50 }
 0x7ce   : > { %v9868_v16 = vpop.xlane.xlu1 %3340 }
 0x7cf   : > { %5902 = vmatmul.msk.f32.gmra.mxu2 %vm553_vm0, %v11890_v55  ;;  %11891 = vst [vmem:[#allocation100_spill] sm:$0xff] %v9868_v16 }
 0x7d1   : > { %v9859_v61 = vpop.eup %6713 }
 0x7d2   : > { %5848 = vmatmul.msk.f32.gmra.mxu3 %vm918_vm1, %v9859_v61  ;;  %v9864_v39 = vpop.eup %6715 }
 0x7d3   : > { %v6718_v27 = vpop.eup %6717 }
 0x7da   : > { %5849 = vmatmul.msk.f32.gmra.mxu3 %vm918_vm1, %v9864_v39 }
 0x7e2   : > { %5850 = vmatmul.msk.f32.gmra.mxu3 %vm918_vm1, %v6718_v27 }
 0x7e6   : > { %v3943_v17 = vpop.permute.xlu1 %3942 }
 0x7e7   : > { %5973 = vmatpush.xpose.msk.msra.mxu1 %vm553_vm0, %v3943_v17 }
 0x7e9   : > { %2045 = vmax.xlane.f32.xlu1 %v2044_v57 }
 0x7eb   : > { %5974 = vmatpush.xpose.msk.msra.mxu1 %vm553_vm0, %v3941_v20 }
 0x7ee   : > { %5975 = vmatmul.msk.f32.vlgmr.msra.gmra.mxu1 %vm553_vm0, %v9597_v6  ;;  %v9893_v6 = vpop.xlane.xlu0 %3346 }
 0x7ef   : > { %11894 = vst [vmem:[#allocation99_spill] sm:$0xff] %v9893_v6 }
 0x7f0   : > { %2216 = vadd.xlane.f32.xlu0 %v2215_v44 }
 0x7f5   : > { %2201 = vadd.xlane.f32.xlu2 %v2200_v38 }
 0x7f6   : > { %5976 = vmatmul.msk.f32.gmra.mxu1 %vm553_vm0, %v9612_v3  ;;  %v9901_v3 = vpop.f32.mrf.mxu0  ;;  %v2040_v55 = vpop.xlane.xlu0 %2039 }
 0x7fe   : > { %5977 = vmatmul.msk.f32.gmra.mxu1 %vm553_vm0, %v9733_v47  ;;  %v9910_v50 = vpop.f32.mrf.mxu0 }
 0x802   : > { %4031 = vrot.lane.b32.xlu1 %v11892_v37, %s7095_s6 }
 0x804   : > { %4148 = vrot.lane.b32.xlu0 %v11893_v7, %s7095_s6 }
 0x806   : > { %5978 = vmatmul.msk.f32.gmra.mxu1 %vm553_vm0, %v9793_v58  ;;  %v9906_v58 = vpop.permute.xlu2 %4029 }
 0x80c   : > { %4152 = vrot.lane.b32.xlu0 %v11886_v5, %s7094_s29  ;;  %v2076_v5 = vsub.f32 %v9717_v54, %v2040_v55  ;;  %v2224_v55 = vsel %vm918_vm1, %v6718_v27, 0.0  ;;  %v11904_v27 = vld [vmem:[#allocation90_spill] sm:$0xff] }
 0x80d   : > { %4047 = vrot.lane.b32.xlu2 %v11892_v37, %s7094_s29  ;;  %v2194_v37 = vsel %vm918_vm1, %v9697_v23, 0.0  ;;  %v2209_v23 = vsel %vm918_vm1, %v9807_v21, 0.0  ;;  %v11907_v21 = vld [vmem:[#allocation98_spill] sm:$0xff] }
 0x80e   : > { %5979 = vmatmul.msk.f32.gmra.mxu1 %vm553_vm0, %v9758_v42  ;;  %v2137_v17 = vmul.f32 1.442695, %v2076_v5  ;;  %v2043_v57 = vpop.xlane.xlu2 %2042 }
 0x80f   : > { %v2077_v20 = vsub.f32 %v9789_v49, %v2043_v57  ;;  %v9947_v57 = vpop.f32.mrf.mxu2 }
 0x810   : > { %11903 = vst [vmem:[#allocation84_spill] sm:$0xff] %v9947_v57 }
 0x811   : > { %v2037_v47 = vpop.xlane.xlu1 %2036  ;;  %v2139_v44 = vmul.f32 1.442695, %v2077_v20 }
 0x812   : > { %v2075_v48 = vsub.f32 %v9709_v29, %v2037_v47  ;;  %v9918_v29 = vpop.f32.mrf.mxu0 }
 0x813   : > { %11897 = vst [vmem:[#allocation113_spill] sm:$0xff] %v9918_v29 }
 0x814   : > { %v2135_v2 = vmul.f32 1.442695, %v2075_v48 }
 0x815   : > { %4043 = vrot.lane.b32.xlu2 %v11896_v36, %s7095_s6 }
 0x816   : > { %6719 = vpow2.f32 %v2135_v2  ;;  %5980 = vmatmul.msk.f32.gmra.mxu1 %vm553_vm0, %v3935_v32  ;;  %v3939_v2 = vpop.permute.xlu0 %3938  ;;  %v10037_v8 = vpop.permute.xlu2 %4035 }
 0x817   : > { %6721 = vpow2.f32 %v2137_v17  ;;  %11927 = vst [vmem:[#allocation165_spill] sm:$0xff] %v10037_v8 }
 0x818   : > { %6723 = vpow2.f32 %v2139_v44 }
 0x819   : > { %v9927_v32 = vpop.xlane.xlu1 %3349 }
 0x81a   : > { %v9925_v54 = vpop.f32.mrf.mxu0  ;;  %11899 = vst [vmem:[#allocation111_spill] sm:$0xff] %v9927_v32 }
 0x81b   : > { %11898 = vst [vmem:[#allocation95_spill] sm:$0xff] %v9925_v54  ;;  %v2221_v54 = vsel %vm918_vm1, %v9864_v39, 0.0 }
 0x81c   : > { %v9914_v42 = vpop.eup %6719 }
 0x81d   : > { %5851 = vmatmul.msk.f32.gmra.mxu3 %vm918_vm1, %v9914_v42  ;;  %v9921_v38 = vpop.eup %6721 }
 0x81e   : > { %v6724_v47 = vpop.eup %6723 }
 0x822   : > { %v9932_v49 = vpop.f32.mrf.mxu0 }
 0x823   : > { %11900 = vst [vmem:[#allocation104_spill] sm:$0xff] %v9932_v49 }
 0x825   : > { %5852 = vmatmul.msk.f32.gmra.mxu3 %vm918_vm1, %v9921_v38 }
 0x82a   : > { %v9936_v5 = vpop.f32.mrf.mxu0 }
 0x82b   : > { %11901 = vst [vmem:[#allocation116_spill] sm:$0xff] %v9936_v5 }
 0x82c   : > { %2195 = vadd.xlane.f32.xlu1 %v2194_v37  ;;  %v9955_v37 = vpop.f32.mrf.mxu2 }
 0x82d   : > { %5853 = vmatmul.msk.f32.gmra.mxu3 %vm918_vm1, %v6724_v47  ;;  %11906 = vst [vmem:[#allocation92_spill] sm:$0xff] %v9955_v37  ;;  %v9974_v37 = vpop.permute.xlu0 %4033 }
 0x831   : > { %v3937_v48 = vpop.permute.xlu1 %3936 }
 0x832   : > { %5981 = vmatmul.msk.f32.gmra.mxu1 %vm553_vm0, %v3937_v48  ;;  %v9941_v17 = vpop.f32.mrf.mxu0 }
 0x833   : > { %11902 = vst [vmem:[#allocation118_spill] sm:$0xff] %v9941_v17  ;;  %v11917_v17 = vld [vmem:[#allocation125_spill] sm:$0xff] }
 0x836   : > { %2225 = vadd.xlane.f32.xlu0 %v2224_v55  ;;  %v11908_v55 = vld [vmem:[#allocation107_spill] sm:$0xff] }
 0x83a   : > { %5982 = vmatmul.msk.f32.gmra.mxu1 %vm553_vm0, %v3939_v2  ;;  %v9951_v20 = vpop.f32.mrf.mxu0 }
 0x83b   : > { %11905 = vst [vmem:[#allocation114_spill] sm:$0xff] %v9951_v20 }
 0x83e   : > { %2210 = vadd.xlane.f32.xlu2 %v2209_v23  ;;  %v9964_v23 = vpop.f32.mrf.mxu2 }
 0x83f   : > { %11909 = vst [vmem:[#allocation90_spill] sm:$0xff] %v9964_v23 }
 0x842   : > { %v9953_v44 = vpop.f32.mrf.mxu0 }
 0x843   : > { %v4239_v16 = vsel %vm918_vm1, %v9953_v44, -inf }
 0x845   : > { %4059 = vrot.lane.b32.xlu1 %v11896_v36, %s7094_s29 }
 0x846   : > { %v9968_v32 = vpop.f32.mrf.mxu2 }
 0x847   : > { %11910 = vst [vmem:[#allocation98_spill] sm:$0xff] %v9968_v32  ;;  %v4058_v32 = vpop.permute.xlu0 %4057 }
 0x84a   : > { %4158 = vrot.lane.b32.xlu0 %v11888_v51, %s7094_s29  ;;  %v9962_v2 = vpop.f32.mrf.mxu0 }
 0x84d   : > { %4055 = vrot.lane.b32.xlu1 %v11904_v27, %s7094_s29 }
 0x852   : > { %v9972_v57 = vpop.f32.mrf.mxu0 }
 0x856   : > { %4138 = vrot.lane.b32.xlu2 %v11907_v21, %s7095_s6 }
 0x85a   : > { %v9981_v23 = vpop.f32.mrf.mxu0 }
 0x85c   : > { %v2046_v48 = vpop.xlane.xlu1 %2045 }
 0x85d   : > { %v2078_v36 = vsub.f32 %v9871_v30, %v2046_v48  ;;  %v11911_v30 = vld [vmem:[#allocation119_spill] sm:$0xff]  ;;  %v9978_v48 = vpop.f32.mrf.mxu2 }
 0x85e   : > { %4144 = vrot.lane.b32.xlu2 %v11908_v55, %s7095_s6  ;;  %11912 = vst [vmem:[#allocation107_spill] sm:$0xff] %v9978_v48 }
 0x85f   : > { %v2141_v51 = vmul.f32 1.442695, %v2078_v36  ;;  %v2233_v36 = vsel %vm918_vm1, %v6724_v47, 0.0  ;;  %v11915_v47 = vld [vmem:[#allocation124_spill] sm:$0xff] }
 0x861   : > { %6725 = vpow2.f32 %v2141_v51  ;;  %v2203_v51 = vsel %vm918_vm1, %v9756_v56, 0.0  ;;  %v4248_v56 = vsel %vm918_vm1, %v9981_v23, -inf }
 0x862   : > { %v9989_v20 = vpop.f32.mrf.mxu0 }
 0x867   : > { %v9966_v6 = vpop.eup %6725 }
 0x868   : > { %5854 = vmatmul.msk.f32.gmra.mxu3 %vm918_vm1, %v9966_v6 }
 0x870   : > { %5911 = vmatmul.msk.f32.vlgmr.msrb.gmra.mxu3 %vm553_vm0, %v11911_v30  ;;  %v9991_v30 = vpop.f32.mrf.mxu2 }
 0x871   : > { %11914 = vst [vmem:[#allocation119_spill] sm:$0xff] %v9991_v30  ;;  %v10009_v30 = vpop.f32.mrf.mxu1 }
 0x872   : > { %11919 = vst [vmem:[#allocation125_spill] sm:$0xff] %v10009_v30 }
 0x874   : > { %2234 = vadd.xlane.f32.xlu0 %v2233_v36  ;;  %v4054_v36 = vpop.permute.xlu0 %4053  ;;  %v10043_v59 = vpop.permute.xlu1 %4031 }
 0x877   : > { %2204 = vadd.xlane.f32.xlu1 %v2203_v51  ;;  %v9999_v51 = vpop.f32.mrf.mxu0 }
 0x878   : > { %5912 = vmatmul.msk.f32.gmra.mxu3 %vm553_vm0, %v11913_v14  ;;  %v9997_v48 = vpop.f32.mrf.mxu2  ;;  %v2218_v14 = vsel %vm918_vm1, %v9859_v61, 0.0  ;;  %v11921_v61 = vld [vmem:[#allocation130_spill] sm:$0xff] }
 0x879   : > { %11916 = vst [vmem:[#allocation123_spill] sm:$0xff] %v9997_v48  ;;  %v10021_v48 = vpop.f32.mrf.mxu1 }
 0x87a   : > { %11922 = vst [vmem:[#allocation130_spill] sm:$0xff] %v10021_v48  ;;  %v11933_v48 = vld [vmem:[#allocation135_spill] sm:$0xff] }
 0x87c   : > { %4240 = vmax.xlane.f32.xlu0 %v4239_v16  ;;  %v10005_v16 = vpop.xlane.xlu0 %2198 }
 0x87d   : > { %11918 = vst [vmem:[#allocation124_spill] sm:$0xff] %v10005_v16 }
 0x880   : > { %5913 = vmatmul.msk.f32.gmra.mxu3 %vm553_vm0, %v11915_v47  ;;  %v4251_v47 = vsel %vm918_vm1, %v9989_v20, -inf  ;;  %v10011_v28 = vpop.f32.mrf.mxu2 }
 0x881   : > { %11920 = vst [vmem:[#allocation164_spill] sm:$0xff] %v10011_v28 }
 0x884   : > { %4249 = vmax.xlane.f32.xlu0 %v4248_v56  ;;  %v10013_v56 = vpop.f32.mrf.mxu0 }
 0x887   : > { %2219 = vadd.xlane.f32.xlu2 %v2218_v14  ;;  %v4050_v14 = vpop.permute.xlu0 %4049 }
 0x888   : > { %5914 = vmatmul.msk.f32.gmra.mxu3 %vm553_vm0, %v11917_v17  ;;  %v4257_v17 = vsel %vm918_vm1, %v10013_v56, -inf  ;;  %v10023_v16 = vpop.f32.mrf.mxu2 }
 0x88c   : > { %4252 = vmax.xlane.f32.xlu0 %v4251_v47  ;;  %v11923_v47 = vld [vmem:[#allocation129_spill] sm:$0xff] }
 0x88f   : > { %v10029_v28 = vpop.permute.xlu0 %4041 }
 0x890   : > { %4039 = vrot.lane.b32.xlu1 %v11904_v27, %s7095_s6  ;;  %5915 = vmatmul.msk.f32.gmra.mxu3 %vm553_vm0, %v11921_v61  ;;  %11924 = vst [vmem:[#allocation129_spill] sm:$0xff] %v10029_v28  ;;  %v3159_v27 = vsel %vm918_vm1, %v10023_v16, -inf  ;;  %v11925_v61 = vld [vmem:[#allocation93_spill] sm:$0xff]  ;;  %v10057_v24 = vpop.f32.mrf.mxu2 }
 0x894   : > { %4258 = vmax.xlane.f32.xlu0 %v4257_v17  ;;  %v10035_v17 = vpop.f32.mrf.mxu1 }
 0x895   : > { %11926 = vst [vmem:[#allocation93_spill] sm:$0xff] %v10035_v17  ;;  %v10053_v17 = vpop.f32.mrf.mxu3 }
 0x896   : > { %11934 = vst [vmem:[#allocation135_spill] sm:$0xff] %v10053_v17 }
 0x898   : > { %4045 = vrot.lane.b32.xlu1 %v11874_v12, %s7094_s29  ;;  %5916 = vmatmul.msk.f32.gmra.mxu3 %vm553_vm0, %v11923_v47  ;;  %v10041_v12 = vpop.xlane.xlu0 %2207  ;;  %v11930_v47 = vld [vmem:[#allocation110_spill] sm:$0xff]  ;;  %v10072_v17 = vpop.f32.mrf.mxu2 }
 0x899   : > { %11929 = vst [vmem:[#allocation134_spill] sm:$0xff] %v10041_v12  ;;  %v11937_v12 = vld [vmem:[#allocation39_spill] sm:$0xff] }
 0x89c   : > { %3160 = vmax.xlane.f32.xlu0 %v3159_v27  ;;  %v10047_v30 = vpop.f32.mrf.mxu1  ;;  %v10049_v27 = vpop.xlane.xlu2 %2192 }
 0x89d   : > { %11931 = vst [vmem:[#allocation110_spill] sm:$0xff] %v10047_v30  ;;  %v10068_v45 = vpop.f32.mrf.mxu3 }
 0x89e   : > { %11932 = vst [vmem:[#allocation166_spill] sm:$0xff] %v10049_v27 }
 0x89f   : > { %4150 = vrot.lane.b32.xlu2 %v11925_v61, %s7094_s29  ;;  %v10061_v11 = vpop.xlane.xlu1 %2195  ;;  %11941 = vst [vmem:[#allocation169_spill] sm:$0xff] %v10068_v45  ;;  %v2212_v45 = vsel %vm918_vm1, %v9811_v0, 0.0 }
 0x8a0   : > { %5917 = vmatmul.msk.f32.gmra.mxu3 %vm553_vm0, %v11928_v15  ;;  %v10055_v53 = vpop.permute.xlu0 %4136  ;;  %v11936_v15 = vld [vmem:[#allocation41_spill] sm:$0xff] }
 0x8a1   : > { %11935 = vst [vmem:[#allocation167_spill] sm:$0xff] %v10055_v53  ;;  %v6296_v22 = vpack.i.bf16 %v11937_v12, %v11936_v15 }
 0x8a2   : > { %11938 = vst [vmem:[#allocation41_spill] sm:$0xff] %v10061_v11 }
 0x8a4   : > { %v10064_v30 = vpop.f32.mrf.mxu1  ;;  %v10066_v27 = vpop.permute.xlu2 %4037 }
 0x8a5   : > { %11939 = vst [vmem:[#allocation39_spill] sm:$0xff] %v10064_v30  ;;  %v10078_v15 = vpop.f32.mrf.mxu3  ;;  %v10082_v30 = vpop.f32.mrf.mxu2 }
 0x8a6   : > { %11940 = vst [vmem:[#allocation168_spill] sm:$0xff] %v10066_v27 }
 0x8a7   : > { %4162 = vrot.lane.b32.xlu2 %v11930_v47, %s7094_s29  ;;  %11944 = vst [vmem:[#allocation172_spill] sm:$0xff] %v10078_v15 }
 0x8a8   : > { %5918 = vmatmul.msk.f32.gmra.mxu3 %vm553_vm0, %v11933_v48  ;;  %v10070_v48 = vpop.permute.xlu0 %4142 }
 0x8a9   : > { %11942 = vst [vmem:[#allocation170_spill] sm:$0xff] %v10070_v48 }
 0x8ac   : > { %v10075_v9 = vpop.f32.mrf.mxu1  ;;  %v4052_v12 = vpop.permute.xlu2 %4051 }
 0x8ad   : > { %11943 = vst [vmem:[#allocation171_spill] sm:$0xff] %v10075_v9  ;;  %v10094_v15 = vpop.f32.mrf.mxu3  ;;  %v11956_v9 = vld [vmem:[#allocation40_spill] sm:$0xff] }
 0x8ae   : > { %11949 = vst [vmem:[#allocation177_spill] sm:$0xff] %v10094_v15 }
 0x8b0   : > { %6297 = vrot.lane.b32.xlu0 %v6296_v22, %s7096_s7  ;;  %v10080_v22 = vpop.xlane.xlu0 %2216 }
 0x8b1   : > { %11945 = vst [vmem:[#allocation173_spill] sm:$0xff] %v10080_v22  ;;  %v10097_v22 = vpop.f32.mrf.mxu2 }
 0x8b4   : > { %v10087_v19 = vpop.f32.mrf.mxu1 }
 0x8b5   : > { %11946 = vst [vmem:[#allocation174_spill] sm:$0xff] %v10087_v19  ;;  %v10104_v19 = vpop.f32.mrf.mxu3 }
 0x8b6   : > { %11951 = vst [vmem:[#allocation179_spill] sm:$0xff] %v10104_v19 }
 0x8b7   : > { %v4060_v10 = vpop.permute.xlu1 %4059 }
 0x8b8   : > { %5983 = vmatpush.xpose.msk.msrb.mxu2 %vm553_vm0, %v4060_v10  ;;  %v10089_v10 = vpop.xlane.xlu2 %2201 }
 0x8b9   : > { %11947 = vst [vmem:[#allocation175_spill] sm:$0xff] %v10089_v10  ;;  %v10109_v15 = vpop.f32.mrf.mxu2 }
 0x8bc   : > { %5984 = vmatpush.xpose.msk.msrb.mxu2 %vm553_vm0, %v4058_v32  ;;  %v10092_v32 = vpop.permute.xlu0 %4148 }
 0x8bd   : > { %11948 = vst [vmem:[#allocation176_spill] sm:$0xff] %v10092_v32 }
 0x8bf   : > { %v4056_v11 = vpop.permute.xlu1 %4055 }
 0x8c0   : > { %5985 = vmatpush.xpose.msk.msrb.mxu2 %vm553_vm0, %v4056_v11  ;;  %v10100_v11 = vpop.f32.mrf.mxu1  ;;  %v4048_v0 = vpop.permute.xlu2 %4047 }
 0x8c1   : > { %11950 = vst [vmem:[#allocation178_spill] sm:$0xff] %v10100_v11  ;;  %v3168_v11 = vsel %vm918_vm1, %v10082_v30, -inf  ;;  %v10121_v19 = vpop.f32.mrf.mxu2 }
 0x8c2   : > { %2213 = vadd.xlane.f32.xlu1 %v2212_v45 }
 0x8c4   : > { %5986 = vmatpush.xpose.msk.msrb.mxu2 %vm553_vm0, %v4054_v36  ;;  %v10102_v45 = vpop.permute.xlu0 %4152  ;;  %v2227_v36 = vsel %vm918_vm1, %v9914_v42, 0.0 }
 0x8c8   : > { %5987 = vmatpush.xpose.msk.msrb.mxu2 %vm553_vm0, %v4052_v12  ;;  %v10111_v12 = vpop.f32.mrf.mxu1  ;;  %v10170_v1 = vpop.permute.xlu2 %4043 }
 0x8cc   : > { %5988 = vmatpush.xpose.msk.msrb.mxu2 %vm553_vm0, %v4050_v14  ;;  %v10113_v10 = vpop.xlane.xlu0 %2225  ;;  %v10115_v14 = vpop.f32.mrf.mxu3 }
 0x8cd   : > { %11952 = vst [vmem:[#allocation180_spill] sm:$0xff] %v10113_v10 }
 0x8ce   : > { %11953 = vst [vmem:[#allocation181_spill] sm:$0xff] %v10115_v14  ;;  %v11955_v14 = vld [vmem:[#allocation101_spill] sm:$0xff] }
 0x8d0   : > { %2228 = vadd.xlane.f32.xlu2 %v2227_v36  ;;  %5989 = vmatpush.xpose.msk.msrb.mxu2 %vm553_vm0, %v4048_v0  ;;  %v10125_v0 = vpop.f32.mrf.mxu1  ;;  %v3177_v36 = vsel %vm918_vm1, %v10121_v19, -inf }
 0x8d4   : > { %v10123_v42 = vpop.permute.xlu0 %4158  ;;  %v10129_v10 = vpop.f32.mrf.mxu3 }
 0x8d5   : > { %11954 = vst [vmem:[#allocation182_spill] sm:$0xff] %v10129_v10  ;;  %v11961_v10 = vld [vmem:[#allocation26_spill] sm:$0xff] }
 0x8d6   : > { %11966 = vst [vmem:[#allocation26_spill] sm:$0xff] %v10170_v1 }
 0x8d8   : > { %v10140_v5 = vpop.f32.mrf.mxu1 }
 0x8da   : > { %3169 = vmax.xlane.f32.xlu0 %v3168_v11  ;;  %v11957_v11 = vld [vmem:[#allocation38_spill] sm:$0xff] }
 0x8db   : > { %4134 = vrot.lane.b32.xlu1 %v11925_v61, %s7095_s6  ;;  %v6276_v33 = vpack.i.bf16 %v11957_v11, %v11956_v9  ;;  %v4266_v61 = vsel %vm918_vm1, %v10125_v0, -inf }
 0x8e0   : > { %v10151_v11 = vpop.f32.mrf.mxu1 }
 0x8e2   : > { %3178 = vmax.xlane.f32.xlu0 %v3177_v36  ;;  %v11960_v36 = vld [vmem:[#allocation28_spill] sm:$0xff] }
 0x8e3   : > { %4140 = vrot.lane.b32.xlu1 %v11955_v14, %s7095_s6  ;;  %v6281_v46 = vpack.i.bf16 %v11961_v10, %v11960_v36 }
 0x8e7   : > { %v10135_v41 = vpop.xlane.xlu0 %2234 }
 0x8e8   : > { %11958 = vst [vmem:[#allocation101_spill] sm:$0xff] %v10135_v41  ;;  %6277 = vrot.lane.b32.xlu2 %v6276_v33, %s7096_s7  ;;  %v11962_v33 = vld [vmem:[#allocation16_spill] sm:$0xff]  ;;  %v11963_v41 = vld [vmem:[#allocation14_spill] sm:$0xff] }
 0x8e9   : > { %v6286_v40 = vpack.i.bf16 %v11963_v41, %v11962_v33 }
 0x8ea   : > { %4267 = vmax.xlane.f32.xlu0 %v4266_v61  ;;  %v10158_v61 = vpop.xlane.xlu1 %2204 }
 0x8eb   : > { %v10142_v49 = vpop.f32.mrf.mxu3  ;;  %11964 = vst [vmem:[#allocation38_spill] sm:$0xff] %v10158_v61 }
 0x8ec   : > { %11959 = vst [vmem:[#allocation40_spill] sm:$0xff] %v10142_v49 }
 0x8ef   : > { %v10146_v13 = vpop.xlane.xlu0 %4240 }
 0x8f0   : > { %6282 = vrot.lane.b32.xlu2 %v6281_v46, %s7096_s7  ;;  %v10164_v46 = vpop.f32.mrf.mxu1 }
 0x8f3   : > { %v10149_v9 = vpop.f32.mrf.mxu3 }
 0x8f7   : > { %v10155_v62 = vpop.xlane.xlu0 %4249 }
 0x8f8   : > { %6287 = vrot.lane.b32.xlu2 %v6286_v40, %s7096_s7  ;;  %v4275_v40 = vsel %vm918_vm1, %v10164_v46, -inf  ;;  %v10178_v61 = vpop.f32.mrf.mxu1 }
 0x8f9   : > { %v4278_v34 = vsel %vm918_vm1, %v10178_v61, -inf }
 0x8fb   : > { %v10160_v49 = vpop.f32.mrf.mxu3 }
 0x8fc   : > { %v3186_v10 = vsel %vm918_vm1, %v10160_v49, -inf }
 0x8fd   : > { %3187 = vmax.xlane.f32.xlu0 %v3186_v10  ;;  %v10180_v10 = vpop.xlane.xlu2 %2210 }
 0x8fe   : > { %11967 = vst [vmem:[#allocation16_spill] sm:$0xff] %v10180_v10 }
 0x8ff   : > { %v10166_v36 = vpop.xlane.xlu0 %4252 }
 0x902   : > { %v10168_v4 = vpop.permute.xlu1 %4039 }
 0x903   : > { %11965 = vst [vmem:[#allocation28_spill] sm:$0xff] %v10168_v4  ;;  %v10172_v41 = vpop.f32.mrf.mxu3 }
 0x905   : > { %4276 = vmax.xlane.f32.xlu0 %v4275_v40  ;;  %v10194_v48 = vpop.permute.xlu2 %4138 }
 0x906   : > { %11968 = vst [vmem:[#allocation14_spill] sm:$0xff] %v10194_v48 }
 0x907   : > { %v10176_v33 = vpop.xlane.xlu0 %4258 }
 0x90a   : > { %v4046_v25 = vpop.permute.xlu1 %4045 }
 0x90b   : > { %v10182_v29 = vpop.f32.mrf.mxu3  ;;  %5990 = vmatpush.xpose.msk.msrb.mxu2 %vm553_vm0, %v4046_v25 }
 0x90d   : > { %2222 = vadd.xlane.f32.xlu1 %v2221_v54  ;;  %4279 = vmax.xlane.f32.xlu0 %v4278_v34  ;;  %v10200_v39 = vpop.permute.xlu2 %4144  ;;  %v2236_v34 = vsel %vm918_vm1, %v9966_v6, 0.0 }
 0x90e   : > { %11969 = vst [vmem:[#allocation183_spill] sm:$0xff] %v10200_v39  ;;  %v11974_v39 = vld [vmem:[#allocation2_spill] sm:$0xff] }
 0x90f   : > { %v3161_v40 = vpop.xlane.xlu0 %3160 }
 0x910   : > { %v3223_v26 = vsub.f32 %v10023_v16, %v3161_v40  ;;  %v11972_v40 = vld [vmem:[#allocation44_spill] sm:$0xff] }
 0x912   : > { %v3271_v35 = vmul.f32 1.442695, %v3223_v26 }
 0x913   : > { %v10190_v32 = vpop.f32.mrf.mxu3 }
 0x914   : > { %6727 = vpow2.f32 %v3271_v35  ;;  %v3195_v10 = vsel %vm918_vm1, %v10190_v32, -inf }
 0x915   : > { %3196 = vmax.xlane.f32.xlu0 %v3195_v10  ;;  %v10206_v16 = vpop.xlane.xlu2 %2219  ;;  %v11971_v10 = vld [vmem:[#allocation46_spill] sm:$0xff] }
 0x916   : > { %11970 = vst [vmem:[#allocation184_spill] sm:$0xff] %v10206_v16  ;;  %v6316_v48 = vpack.i.bf16 %v11972_v40, %v11971_v10 }
 0x91a   : > { %v10196_v25 = vpop.eup %6727 }
 0x91b   : > { %5935 = vmatmul.msk.f32.vlgmr.msra.gmra.mxu2 %vm918_vm1, %v10196_v25 }
 0x91d   : > { %v10213_v6 = vpop.permute.xlu2 %4150 }
 0x921   : > { %2237 = vadd.xlane.f32.xlu2 %v2236_v34  ;;  %v11973_v34 = vld [vmem:[#allocation3_spill] sm:$0xff] }
 0x922   : > { %v6298_v26 = vpop.permute.xlu0 %6297 }
 0x923   : > { %v6299_v54 = vunpack.i.l.bf16 %v6298_v26  ;;  %v6300_v35 = vunpack.i.h.bf16 %v6298_v26  ;;  %v6291_v26 = vpack.i.bf16 %v11974_v39, %v11973_v34 }
 0x925   : > { %4672 = vmatpush.msrb.mxu1 %v6299_v54  ;;  %v10218_v54 = vpop.permute.xlu2 %4162 }
 0x926   : > { %4146 = vrot.lane.b32.xlu1 %v11930_v47, %s7095_s6  ;;  %v10220_v47 = vpop.f32.mrf.mxu3 }
 0x927   : > { %4673 = vmatpush.msrb.mxu1 %v6300_v35 }
 0x929   : > { %6317 = vrot.lane.b32.xlu0 %v6316_v48, %s7096_s7 }
 0x92e   : > { %4164 = vrot.lane.b32.xlu1 %v11893_v7, %s7094_s29  ;;  %v10224_v16 = vpop.f32.mrf.mxu3 }
 0x936   : > { %v10226_v7 = vpop.f32.mrf.mxu3 }
 0x937   : > { %v3204_v39 = vsel %vm918_vm1, %v10226_v7, -inf }
 0x939   : > { %6292 = vrot.lane.b32.xlu2 %v6291_v26, %s7096_s7 }
 0x943   : > { %v10222_v35 = vpop.xlane.xlu2 %2228 }
 0x944   : > { %11975 = vst [vmem:[#allocation46_spill] sm:$0xff] %v10222_v35  ;;  %v2230_v35 = vsel %vm918_vm1, %v9921_v38, 0.0 }
 0x94b   : > { %v6278_v10 = vpop.permute.xlu2 %6277 }
 0x94c   : > { %v6279_v48 = vunpack.i.l.bf16 %v6278_v10  ;;  %v6280_v40 = vunpack.i.h.bf16 %v6278_v10 }
 0x94d   : > { %v10232_v53 = vpop.xlane.xlu0 %3169 }
 0x94e   : > { %4583 = vmatpush.msra.mxu0 %v6279_v48 }
 0x950   : > { %4584 = vmatpush.msra.mxu0 %v6280_v40  ;;  %v4245_v40 = vsel %vm918_vm1, %v9972_v57, -inf }
 0x953   : > { %v6283_v34 = vpop.permute.xlu2 %6282  ;;  %3205 = vmax.xlane.f32.xlu0 %v3204_v39 }
 0x954   : > { %v6284_v26 = vunpack.i.l.bf16 %v6283_v34  ;;  %v6285_v52 = vunpack.i.h.bf16 %v6283_v34  ;;  %v4263_v34 = vsel %vm918_vm1, %v10111_v12, -inf }
 0x955   : > { %v10236_v39 = vpop.xlane.xlu0 %3178 }
 0x956   : > { %4585 = vmatpush.msra.mxu0 %v6284_v26 }
 0x958   : > { %4586 = vmatpush.msra.mxu0 %v6285_v52  ;;  %2231 = vadd.xlane.f32.xlu1 %v2230_v35  ;;  %v10246_v35 = vpop.xlane.xlu1 %2213 }
 0x959   : > { %11976 = vst [vmem:[#allocation44_spill] sm:$0xff] %v10246_v35 }
 0x95b   : > { %v6288_v10 = vpop.permute.xlu2 %6287 }
 0x95c   : > { %v6289_v48 = vunpack.i.l.bf16 %v6288_v10  ;;  %v6290_v1 = vunpack.i.h.bf16 %v6288_v10  ;;  %v11978_v10 = vld [vmem:[#allocation17_spill] sm:$0xff] }
 0x95d   : > { %v10240_v38 = vpop.xlane.xlu0 %4267 }
 0x95e   : > { %4587 = vmatpush.msra.mxu0 %v6289_v48  ;;  %v11979_v48 = vld [vmem:[#allocation15_spill] sm:$0xff] }
 0x960   : > { %4588 = vmatpush.msra.mxu0 %v6290_v1  ;;  %v10250_v1 = vpop.permute.xlu1 %4134 }
 0x961   : > { %11977 = vst [vmem:[#allocation3_spill] sm:$0xff] %v10250_v1 }
 0x962   : > { %4246 = vmax.xlane.f32.xlu2 %v4245_v40  ;;  %v6306_v40 = vpack.i.bf16 %v11979_v48, %v11978_v10 }
 0x96a   : > { %4264 = vmax.xlane.f32.xlu2 %v4263_v34 }
 0x970   : > { %v10244_v52 = vpop.xlane.xlu0 %3187 }
 0x971   : > { %4160 = vrot.lane.b32.xlu1 %v11908_v55, %s7094_s29  ;;  %v10259_v55 = vpop.permute.xlu1 %4140 }
 0x972   : > { %11980 = vst [vmem:[#allocation2_spill] sm:$0xff] %v10259_v55 }
 0x978   : > { %v10252_v26 = vpop.xlane.xlu0 %4276 }
 0x979   : > { %4156 = vrot.lane.b32.xlu1 %v11955_v14, %s7094_s29  ;;  %v4335_v14 = vsub.f32 %v9953_v44, %v10146_v13  ;;  %v4242_v13 = vsel %vm918_vm1, %v9962_v2, -inf  ;;  %v4254_v44 = vsel %vm918_vm1, %v9999_v51, -inf }
 0x97b   : > { %v4367_v31 = vmul.f32 1.442695, %v4335_v14  ;;  %v3162_v14 = vsel %vm918_vm1, %v10057_v24, -inf }
 0x97d   : > { %6729 = vpow2.f32 %v4367_v31  ;;  %v3165_v31 = vsel %vm918_vm1, %v10072_v17, -inf }
 0x980   : > { %v10261_v34 = vpop.xlane.xlu0 %4279  ;;  %v10263_v35 = vpop.xlane.xlu1 %2222 }
 0x981   : > { %4154 = vrot.lane.b32.xlu1 %v11907_v21, %s7094_s29  ;;  %11981 = vst [vmem:[#allocation17_spill] sm:$0xff] %v10263_v35  ;;  %s10861_s29 = scalar_lea.vmem %s11379_s5, %s6049_s25 }
 0x982   : > { %6307 = vrot.lane.b32.xlu2 %v6306_v40, %s7096_s7 }
 0x983   : > { %v10273_v8 = vpop.eup %6729 }
 0x988   : > { %v10267_v1 = vpop.xlane.xlu0 %3196 }
 0x994   : > { %v10269_v28 = vpop.xlane.xlu2 %2237 }
 0x995   : > { %11982 = vst [vmem:[#allocation15_spill] sm:$0xff] %v10269_v28 }
 0x998   : > { %v10271_v10 = vpop.permute.xlu1 %4146 }
 0x999   : > { %11983 = vst [vmem:[#allocation185_spill] sm:$0xff] %v10271_v10 }
 0x99b   : > { %v6318_v21 = vpop.permute.xlu0 %6317 }
 0x99c   : > { %v6293_v48 = vpop.permute.xlu2 %6292  ;;  %v6319_v40 = vunpack.i.l.bf16 %v6318_v21  ;;  %v6320_v55 = vunpack.i.h.bf16 %v6318_v21  ;;  %v10298_v21 = vpop.f32.mrf.mxu1 }
 0x99d   : > { %v6294_v4 = vunpack.i.l.bf16 %v6293_v48  ;;  %v6295_v27 = vunpack.i.h.bf16 %v6293_v48  ;;  %v4281_v48 = vsel %vm918_vm1, %v10298_v21, -inf }
 0x99e   : > { %4761 = vmatpush.msra.mxu2 %v6319_v40  ;;  %v3192_v40 = vsel %vm918_vm1, %v10182_v29, -inf }
 0x99f   : > { %4589 = vmatpush.msra.mxu0 %v6294_v4  ;;  %v3174_v4 = vsel %vm918_vm1, %v10109_v15, -inf }
 0x9a0   : > { %v4165_v35 = vpop.permute.xlu1 %4164  ;;  %4762 = vmatpush.msra.mxu2 %v6320_v55  ;;  %v4269_v55 = vsel %vm918_vm1, %v10140_v5, -inf }
 0x9a1   : > { %4590 = vmatpush.msra.mxu0 %v6295_v27  ;;  %5999 = vmatpush.xpose.msk.msrb.mxu3 %vm553_vm0, %v4165_v35  ;;  %v10288_v27 = vpop.f32.mrf.mxu0 }
 0x9a2   : > { %6015 = vmatmul.msk.f32.vlgmr.msra.gmra.mxu0 %vm918_vm1, %v10273_v8  ;;  %v4260_v35 = vsel %vm918_vm1, %v10288_v27, -inf }
 0x9a5   : > { %6000 = vmatpush.xpose.msk.msrb.mxu3 %vm553_vm0, %v10218_v54  ;;  %v3183_v54 = vsel %vm918_vm1, %v10149_v9, -inf }
 0x9ab   : > { %3166 = vmax.xlane.f32.xlu2 %v3165_v31  ;;  %4243 = vmax.xlane.f32.xlu1 %v4242_v13  ;;  %v10304_v31 = vpop.f32.mrf.mxu1 }
 0x9ac   : > { %v4284_v13 = vsel %vm918_vm1, %v10304_v31, -inf }
 0x9b3   : > { %3175 = vmax.xlane.f32.xlu2 %v3174_v4  ;;  %4255 = vmax.xlane.f32.xlu1 %v4254_v44  ;;  %v11984_v4 = vld [vmem:[#allocation29_spill] sm:$0xff]  ;;  %v11985_v44 = vld [vmem:[#allocation27_spill] sm:$0xff] }
 0x9bb   : > { %3184 = vmax.xlane.f32.xlu2 %v3183_v54  ;;  %4261 = vmax.xlane.f32.xlu1 %v4260_v35  ;;  %v6301_v54 = vpack.i.bf16 %v11985_v44, %v11984_v4  ;;  %v11987_v4 = vld [vmem:[#allocation34_spill] sm:$0xff]  ;;  %v11988_v44 = vld [vmem:[#allocation33_spill] sm:$0xff] }
 0x9c3   : > { %4270 = vmax.xlane.f32.xlu2 %v4269_v55  ;;  %3163 = vmax.xlane.f32.xlu1 %v3162_v14  ;;  %v3201_v55 = vsel %vm918_vm1, %v10224_v16, -inf }
 0x9cb   : > { %4282 = vmax.xlane.f32.xlu2 %v4281_v48  ;;  %v10310_v35 = vpop.xlane.xlu1 %2231  ;;  %v3351_v48 = vsel %vm918_vm1, %v10196_v25, 0.0  ;;  %v3171_v25 = vsel %vm918_vm1, %v10097_v22, -inf }
 0x9cc   : > { %11986 = vst [vmem:[#allocation29_spill] sm:$0xff] %v10310_v35 }
 0x9d3   : > { %3193 = vmax.xlane.f32.xlu2 %v3192_v40 }
 0x9db   : > { %4285 = vmax.xlane.f32.xlu2 %v4284_v13 }
 0x9dc   : > { %6302 = vrot.lane.b32.xlu1 %v6301_v54, %s7096_s7  ;;  %v6321_v54 = vpack.i.bf16 %v11988_v44, %v11987_v4 }
 0x9e3   : > { %3202 = vmax.xlane.f32.xlu2 %v3201_v55  ;;  %v4161_v14 = vpop.permute.xlu1 %4160 }
 0x9e4   : > { %6001 = vmatpush.xpose.msk.msrb.mxu3 %vm553_vm0, %v4161_v14 }
 0x9e8   : > { %6002 = vmatpush.xpose.msk.msrb.mxu3 %vm553_vm0, %v10123_v42  ;;  %v4247_v42 = vpop.xlane.xlu2 %4246 }
 0x9e9   : > { %v4337_v35 = vsub.f32 %v9972_v57, %v4247_v42 }
 0x9eb   : > { %3352 = vadd.xlane.f32.xlu2 %v3351_v48  ;;  %v4157_v40 = vpop.permute.xlu1 %4156  ;;  %v11989_v48 = vld [vmem:[#allocation6_spill] sm:$0xff] }
 0x9ec   : > { %6003 = vmatpush.xpose.msk.msrb.mxu3 %vm553_vm0, %v4157_v40  ;;  %v11990_v40 = vld [vmem:[#allocation10_spill] sm:$0xff] }
 0x9f0   : > { %v10331_v55 = vpop.xlane.xlu2 %4264 }
 0x9f3   : > { %v4155_v13 = vpop.permute.xlu1 %4154 }
 0x9f4   : > { %6004 = vmatpush.xpose.msk.msrb.mxu3 %vm553_vm0, %v4155_v13 }
 0x9f8   : > { %6005 = vmatpush.xpose.msk.msrb.mxu3 %vm553_vm0, %v10102_v45  ;;  %v10333_v14 = vpop.permute.xlu2 %6307  ;;  %v3226_v45 = vsub.f32 %v10082_v30, %v10232_v53 }
 0x9fa   : > { %v3277_v13 = vmul.f32 1.442695, %v3226_v45  ;;  %v4371_v45 = vmul.f32 1.442695, %v4337_v35 }
 0x9fc   : > { %6006 = vmatpush.xpose.msk.msrb.mxu3 %vm553_vm0, %v10213_v6  ;;  %v6311_v6 = vpack.i.bf16 %v11990_v40, %v11989_v48  ;;  %6731 = vpow2.f32 %v3277_v13 }
 0xa02   : > { %v10346_v48 = vpop.eup %6731 }
 0xa03   : > { %6322 = vrot.lane.b32.xlu2 %v6321_v54, %s7096_s7 }
 0xa06   : > { %3172 = vmax.xlane.f32.xlu1 %v3171_v25  ;;  %v3229_v25 = vsub.f32 %v10121_v19, %v10236_v39  ;;  %v4338_v19 = vsub.f32 %v9981_v23, %v10155_v62 }
 0xa08   : > { %v3283_v10 = vmul.f32 1.442695, %v3229_v25 }
 0xa1e   : > { %v3167_v28 = vpop.xlane.xlu2 %3166  ;;  %v4244_v4 = vpop.xlane.xlu1 %4243 }
 0xa1f   : > { %v4336_v44 = vsub.f32 %v9962_v2, %v4244_v4  ;;  %6312 = vrot.lane.b32.xlu1 %v6311_v6, %s7096_s7  ;;  %v3360_v2 = vsel %vm918_vm1, %v10346_v48, 0.0  ;;  %v4373_v6 = vmul.f32 1.442695, %v4338_v19  ;;  %v3232_v4 = vsub.f32 %v10160_v49, %v10244_v52 }
 0xa21   : > { %v4369_v54 = vmul.f32 1.442695, %v4336_v44  ;;  %v4339_v44 = vsub.f32 %v9989_v20, %v10166_v36  ;;  %v3289_v23 = vmul.f32 1.442695, %v3232_v4  ;;  %v3225_v20 = vsub.f32 %v10072_v17, %v3167_v28  ;;  %v10392_v17 = vpop.f32.mrf.mxu2 }
 0xa22   : > { %v4431_v36 = vsel %vm918_vm1, %v10273_v8, 0.0 }
 0xa23   : > { %6733 = vpow2.f32 %v4369_v54  ;;  %v4375_v25 = vmul.f32 1.442695, %v4339_v44 }
 0xa24   : > { %6735 = vpow2.f32 %v3283_v10 }
 0xa25   : > { %6737 = vpow2.f32 %v4371_v45 }
 0xa26   : > { %v10344_v53 = vpop.xlane.xlu2 %3175  ;;  %v4256_v30 = vpop.xlane.xlu1 %4255 }
 0xa27   : > { %v4340_v19 = vsub.f32 %v9999_v51, %v4256_v30  ;;  %v4341_v51 = vsub.f32 %v10013_v56, %v10176_v33 }
 0xa29   : > { %v10348_v40 = vpop.eup %6733  ;;  %v4379_v44 = vmul.f32 1.442695, %v4341_v51 }
 0xa2a   : > { %6016 = vmatmul.msk.f32.gmra.mxu0 %vm918_vm1, %v10348_v40  ;;  %v10359_v35 = vpop.eup %6735 }
 0xa2b   : > { %v6738_v13 = vpop.eup %6737  ;;  %v3369_v62 = vsel %vm918_vm1, %v10359_v35, 0.0 }
 0xa2c   : > { %3361 = vadd.xlane.f32.xlu2 %v3360_v2  ;;  %v4437_v56 = vsel %vm918_vm1, %v6738_v13, 0.0 }
 0xa2e   : > { %v3185_v57 = vpop.xlane.xlu2 %3184  ;;  %v10356_v39 = vpop.xlane.xlu1 %4261 }
 0xa2f   : > { %v3231_v42 = vsub.f32 %v10149_v9, %v3185_v57  ;;  %v3275_v57 = vmul.f32 1.442695, %v3225_v20  ;;  %v4342_v33 = vsub.f32 %v10288_v27, %v10356_v39  ;;  %v6309_v39 = vunpack.i.l.bf16 %v10333_v14 }
 0xa31   : > { %v3287_v10 = vmul.f32 1.442695, %v3231_v42 }
 0xa32   : > { %6017 = vmatmul.msk.f32.gmra.mxu0 %vm918_vm1, %v6738_v13 }
 0xa33   : > { %6739 = vpow2.f32 %v3287_v10 }
 0xa34   : > { %6741 = vpow2.f32 %v4373_v6  ;;  %3370 = vadd.xlane.f32.xlu2 %v3369_v62  ;;  %v4377_v6 = vmul.f32 1.442695, %v4340_v19  ;;  %v3180_v62 = vsel %vm918_vm1, %v10392_v17, -inf }
 0xa35   : > { %6743 = vpow2.f32 %v3289_v23 }
 0xa36   : > { %v10368_v9 = vpop.xlane.xlu2 %4270  ;;  %v3164_v54 = vpop.xlane.xlu1 %3163  ;;  %6745 = vpow2.f32 %v4375_v25  ;;  %v3235_v25 = vsub.f32 %v10190_v32, %v10267_v1  ;;  %v4381_v32 = vmul.f32 1.442695, %v4342_v33  ;;  %v3189_v1 = vsel %vm918_vm1, %v10172_v41, -inf }
 0xa37   : > { %v3224_v45 = vsub.f32 %v10057_v24, %v3164_v54 }
 0xa39   : > { %v10371_v2 = vpop.eup %6739  ;;  %v3273_v49 = vmul.f32 1.442695, %v3224_v45  ;;  %v3295_v45 = vmul.f32 1.442695, %v3235_v25 }
 0xa3a   : > { %v6742_v52 = vpop.eup %6741  ;;  %5943 = vmatmul.msk.f32.vlgmr.msra.gmra.mxu3 %vm918_vm1, %v10371_v2 }
 0xa3b   : > { %6018 = vmatmul.msk.f32.gmra.mxu0 %vm918_vm1, %v6742_v52  ;;  %6747 = vpow2.f32 %v3273_v49  ;;  %v6744_v42 = vpop.eup %6743  ;;  %v4440_v27 = vsel %vm918_vm1, %v6742_v52, 0.0 }
 0xa3c   : > { %4432 = vadd.xlane.f32.xlu2 %v4431_v36  ;;  %v10382_v10 = vpop.eup %6745  ;;  %6749 = vpow2.f32 %v3275_v57  ;;  %v3378_v8 = vsel %vm918_vm1, %v6744_v42, 0.0  ;;  %v3206_v36 = vpop.xlane.xlu0 %3205 }
 0xa3d   : > { %6751 = vpow2.f32 %v4377_v6  ;;  %v3238_v13 = vsub.f32 %v10226_v7, %v3206_v36 }
 0xa3e   : > { %v10380_v24 = vpop.xlane.xlu2 %4282  ;;  %6753 = vpow2.f32 %v4379_v44  ;;  %v3198_v44 = vsel %vm918_vm1, %v10220_v47, -inf }
 0xa3f   : > { %6755 = vpow2.f32 %v3295_v45  ;;  %v3301_v6 = vmul.f32 1.442695, %v3238_v13 }
 0xa40   : > { %6757 = vpow2.f32 %v4381_v32  ;;  %v11991_v32 = vld [vmem:[#allocation21_spill] sm:$0xff] }
 0xa41   : > { %v6748_v4 = vpop.eup %6747  ;;  %6759 = vpow2.f32 %v3301_v6 }
 0xa42   : > { %5944 = vmatmul.msk.f32.gmra.mxu3 %vm918_vm1, %v6744_v42  ;;  %5936 = vmatmul.msk.f32.gmra.mxu2 %vm918_vm1, %v6748_v4  ;;  %v3354_v28 = vsel %vm918_vm1, %v6748_v4, 0.0  ;;  %v10398_v23 = vpop.eup %6749  ;;  %v6310_v4 = vunpack.i.h.bf16 %v10333_v14  ;;  %6761 = vrcp.f32 %v9661_v63 }
 0xa43   : > { %6019 = vmatmul.msk.f32.gmra.mxu0 %vm918_vm1, %v10382_v10  ;;  %3355 = vadd.xlane.f32.xlu0 %v3354_v28  ;;  %v10400_v54 = vpop.eup %6751  ;;  %6763 = vrcp.f32 %v9625_v18  ;;  %v3228_v18 = vsub.f32 %v10109_v15, %v10344_v53  ;;  %v11995_v15 = vld [vmem:[#allocation22_spill] sm:$0xff]  ;;  %v11996_v53 = vld [vmem:[#allocation20_spill] sm:$0xff] }
 0xa44   : > { %3379 = vadd.xlane.f32.xlu2 %v3378_v8  ;;  %v10415_v57 = vpop.eup %6753 }
 0xa45   : > { %v10427_v7 = vpop.eup %6755  ;;  %v3281_v63 = vmul.f32 1.442695, %v3228_v18 }
 0xa46   : > { %v10394_v30 = vpop.xlane.xlu2 %3193  ;;  %v10431_v8 = vpop.eup %6757  ;;  %v3387_v52 = vsel %vm918_vm1, %v10427_v7, 0.0 }
 0xa47   : > { %v10439_v51 = vpop.eup %6759 }
 0xa48   : > { %v6762_v45 = vpop.eup %6761 }
 0xa49   : > { %3181 = vmax.xlane.f32.xlu1 %v3180_v62  ;;  %v3396_v62 = vsel %vm918_vm1, %v10439_v51, 0.0  ;;  %v3787_v36 = vmul.f32 %v6762_v45, %v9901_v3  ;;  %v11993_v3 = vld [vmem:[#allocation35_spill] sm:$0xff]  ;;  %v4344_v45 = vsub.f32 %v10125_v0, %v10240_v38 }
 0xa4a   : > { %5937 = vmatmul.msk.f32.gmra.mxu2 %vm918_vm1, %v10398_v23 }
 0xa4b   : > { %6020 = vmatmul.msk.f32.gmra.mxu0 %vm918_vm1, %v10400_v54 }
 0xa4c   : > { %4438 = vadd.xlane.f32.xlu2 %v4437_v56 }
 0xa4e   : > { %v10411_v49 = vpop.xlane.xlu2 %4285  ;;  %v6303_v20 = vpop.permute.xlu1 %6302 }
 0xa4f   : > { %v6304_v19 = vunpack.i.l.bf16 %v6303_v20  ;;  %v6305_v42 = vunpack.i.h.bf16 %v6303_v20  ;;  %v6764_v20 = vpop.eup %6763 }
 0xa51   : > { %3190 = vmax.xlane.f32.xlu1 %v3189_v1  ;;  %4674 = vmatpush.msrb.mxu1 %v6304_v19  ;;  %v3788_v19 = vmul.f32 %v6764_v20, %v9910_v50  ;;  %v11992_v1 = vld [vmem:[#allocation23_spill] sm:$0xff]  ;;  %v11997_v20 = vld [vmem:[#allocation9_spill] sm:$0xff] }
 0xa52   : > { %5938 = vmatmul.msk.f32.gmra.mxu2 %vm918_vm1, %v10346_v48  ;;  %v4272_v48 = vsel %vm918_vm1, %v10151_v11, -inf  ;;  %v6326_v13 = vpack.i.bf16 %v11992_v1, %v11991_v32 }
 0xa53   : > { %6021 = vmatmul.msk.f32.gmra.mxu0 %vm918_vm1, %v10415_v57  ;;  %4675 = vmatpush.msrb.mxu1 %v6305_v42 }
 0xa54   : > { %4441 = vadd.xlane.f32.xlu2 %v4440_v27 }
 0xa55   : > { %4676 = vmatpush.msrb.mxu1 %v6309_v39  ;;  %v6341_v39 = vpack.i.bf16 %v3788_v19, %v3787_v36  ;;  %v4385_v19 = vmul.f32 1.442695, %v4344_v45  ;;  %v4347_v45 = vsub.f32 %v10164_v46, %v10252_v26  ;;  %v4348_v46 = vsub.f32 %v10178_v61, %v10261_v34 }
 0xa56   : > { %v10425_v28 = vpop.xlane.xlu2 %3202  ;;  %v4349_v61 = vsub.f32 %v10298_v21, %v10380_v24  ;;  %v4350_v21 = vsub.f32 %v10304_v31, %v10411_v49 }
 0xa57   : > { %4677 = vmatpush.msrb.mxu1 %v6310_v4  ;;  %v11994_v4 = vld [vmem:[#allocation32_spill] sm:$0xff]  ;;  %v4393_v26 = vmul.f32 1.442695, %v4348_v46 }
 0xa58   : > { %v6356_v50 = vpack.i.bf16 %v11994_v4, %v11993_v3 }
 0xa59   : > { %4273 = vmax.xlane.f32.xlu1 %v4272_v48 }
 0xa5b   : > { %6022 = vmatmul.msk.f32.gmra.mxu0 %vm918_vm1, %v10431_v8 }
 0xa5c   : > { %3388 = vadd.xlane.f32.xlu2 %v3387_v52  ;;  %v4343_v52 = vsub.f32 %v10111_v12, %v10331_v55 }
 0xa5e   : > { %v10437_v14 = vpop.xlane.xlu2 %3352 }
 0xa61   : > { %3199 = vmax.xlane.f32.xlu1 %v3198_v44  ;;  %v6361_v44 = vpack.i.bf16 %v11996_v53, %v11995_v15 }
 0xa64   : > { %3397 = vadd.xlane.f32.xlu2 %v3396_v62 }
 0xa66   : > { %v6323_v25 = vpop.permute.xlu2 %6322 }
 0xa67   : > { %v6324_v56 = vunpack.i.l.bf16 %v6323_v25  ;;  %v6325_v33 = vunpack.i.h.bf16 %v6323_v25 }
 0xa69   : > { %4763 = vmatpush.msra.mxu2 %v6324_v56  ;;  %v4383_v56 = vmul.f32 1.442695, %v4343_v52 }
 0xa6b   : > { %4764 = vmatpush.msra.mxu2 %v6325_v33 }
 0xa79   : > { %v3173_v42 = vpop.xlane.xlu1 %3172 }
 0xa7a   : > { %v3227_v27 = vsub.f32 %v10097_v22, %v3173_v42  ;;  %6327 = vrot.lane.b32.xlu1 %v6326_v13, %s7096_s7 }
 0xa7c   : > { %v3279_v6 = vmul.f32 1.442695, %v3227_v27  ;;  %6342 = vrot.lane.b32.xlu2 %v6341_v39, %s7093_s28  ;;  %v3642_v27 = vpop.f32.mrf.mxu2 }
 0xa7e   : > { %6765 = vpow2.f32 %v3279_v6  ;;  %v11999_v6 = vld [vmem:[#allocation7_spill] sm:$0xff] }
 0xa7f   : > { %6767 = vrcp.f32 %v9040_v43  ;;  %v4434_v43 = vsel %vm918_vm1, %v10348_v40, 0.0 }
 0xa80   : > { %6769 = vpow2.f32 %v3281_v63 }
 0xa81   : > { %6771 = vpow2.f32 %v4383_v56 }
 0xa82   : > { %6773 = vpow2.f32 %v4385_v19 }
 0xa84   : > { %v6766_v48 = vpop.eup %6765  ;;  %6357 = vrot.lane.b32.xlu2 %v6356_v50, %s7096_s7 }
 0xa85   : > { %5939 = vmatmul.msk.f32.gmra.mxu2 %vm918_vm1, %v6766_v48  ;;  %v3363_v22 = vsel %vm918_vm1, %v6766_v48, 0.0  ;;  %v6768_v62 = vpop.eup %6767 }
 0xa86   : > { %3364 = vadd.xlane.f32.xlu0 %v3363_v22  ;;  %v6770_v25 = vpop.eup %6769  ;;  %v2661_v33 = vmul.f32 %v6768_v62, %v9009_v60  ;;  %v4345_v60 = vsub.f32 %v10140_v5, %v10368_v9 }
 0xa87   : > { %v10477_v40 = vpop.eup %6771  ;;  %v3366_v13 = vsel %vm918_vm1, %v6770_v25, 0.0 }
 0xa88   : > { %v6366_v36 = vpack.i.bf16 %v11997_v20, %v2661_v33  ;;  %v4387_v0 = vmul.f32 1.442695, %v4345_v60  ;;  %v10483_v38 = vpop.eup %6773  ;;  %v4446_v33 = vsel %vm918_vm1, %v10400_v54, 0.0  ;;  %v4391_v20 = vmul.f32 1.442695, %v4347_v45 }
 0xa8a   : > { %6775 = vpow2.f32 %v4387_v0 }
 0xa8b   : > { %6777 = vrcp.f32 %v10437_v14 }
 0xa8c   : > { %6362 = vrot.lane.b32.xlu2 %v6361_v44, %s7096_s7 }
 0xa8d   : > { %5940 = vmatmul.msk.f32.gmra.mxu2 %vm918_vm1, %v6770_v25 }
 0xa8e   : > { %4435 = vadd.xlane.f32.xlu0 %v4434_v43 }
 0xa90   : > { %v10489_v1 = vpop.eup %6775 }
 0xa91   : > { %v6313_v12 = vpop.permute.xlu1 %6312  ;;  %v6778_v63 = vpop.eup %6777 }
 0xa92   : > { %v6314_v55 = vunpack.i.l.bf16 %v6313_v12  ;;  %v6315_v32 = vunpack.i.h.bf16 %v6313_v12  ;;  %v10502_v14 = vmul.f32 %v6778_v63, %v3642_v27  ;;  %v12003_v63 = vld [vmem:[#allocation30_spill] sm:$0xff] }
 0xa94   : > { %6367 = vrot.lane.b32.xlu2 %v6366_v36, %s7096_s7  ;;  %4678 = vmatpush.msrb.mxu1 %v6314_v55 }
 0xa95   : > { %5941 = vmatmul.msk.f32.gmra.mxu2 %vm918_vm1, %v10359_v35  ;;  %v3357_v35 = vsel %vm918_vm1, %v10398_v23, 0.0  ;;  %v11998_v23 = vld [vmem:[#allocation8_spill] sm:$0xff] }
 0xa96   : > { %4679 = vmatpush.msrb.mxu1 %v6315_v32  ;;  %v6331_v18 = vpack.i.bf16 %v11999_v6, %v11998_v23  ;;  %v12002_v23 = vld [vmem:[#allocation28_spill] sm:$0xff] }
 0xa97   : > { %6023 = vmatmul.msk.f32.vlgmr.msrb.gmra.mxu1 %vm918_vm1, %v10477_v40 }
 0xa9f   : > { %6024 = vmatmul.msk.f32.gmra.mxu1 %vm918_vm1, %v10483_v38  ;;  %v3362_v25 = vpop.xlane.xlu2 %3361 }
 0xaa4   : > { %3358 = vadd.xlane.f32.xlu1 %v3357_v35  ;;  %v4395_v35 = vmul.f32 1.442695, %v4349_v61 }
 0xaa7   : > { %6025 = vmatmul.msk.f32.gmra.mxu1 %vm918_vm1, %v10489_v1  ;;  %v3371_v31 = vpop.xlane.xlu2 %3370 }
 0xaac   : > { %3367 = vadd.xlane.f32.xlu1 %v3366_v13  ;;  %v4397_v13 = vmul.f32 1.442695, %v4350_v21 }
 0xab6   : > { %v3356_v9 = vpop.xlane.xlu0 %3355 }
 0xab7   : > { %6779 = vrcp.f32 %v3356_v9 }
 0xabc   : > { %v3182_v5 = vpop.xlane.xlu1 %3181 }
 0xabd   : > { %v3230_v42 = vsub.f32 %v10392_v17, %v3182_v5  ;;  %v6780_v50 = vpop.eup %6779  ;;  %v3234_v17 = vsub.f32 %v10182_v29, %v10394_v30  ;;  %v3375_v5 = vsel %vm918_vm1, %v10371_v2, 0.0  ;;  %v4443_v2 = vsel %vm918_vm1, %v10382_v10, 0.0  ;;  %v12005_v10 = vld [vmem:[#allocation3_spill] sm:$0xff] }
 0xabf   : > { %v3285_v39 = vmul.f32 1.442695, %v3230_v42  ;;  %v3293_v44 = vmul.f32 1.442695, %v3234_v17 }
 0xac1   : > { %6781 = vpow2.f32 %v3285_v39  ;;  %v12001_v39 = vld [vmem:[#allocation168_spill] sm:$0xff] }
 0xac4   : > { %v3191_v3 = vpop.xlane.xlu1 %3190 }
 0xac5   : > { %v3233_v4 = vsub.f32 %v10172_v41, %v3191_v3  ;;  %6332 = vrot.lane.b32.xlu1 %v6331_v18, %s7096_s7  ;;  %v3645_v48 = vpop.f32.mrf.mxu2  ;;  %v4433_v18 = vpop.xlane.xlu2 %4432 }
 0xac6   : > { %v10504_v15 = vmul.f32 %v6780_v50, %v3645_v48  ;;  %v4592_v3 = vpop.f32.mrf.mxu0 }
 0xac7   : > { %v6782_v22 = vpop.eup %6781  ;;  %v3291_v52 = vmul.f32 1.442695, %v3233_v4  ;;  %v12004_v4 = vld [vmem:[#allocation129_spill] sm:$0xff] }
 0xac8   : > { %5942 = vmatmul.msk.f32.gmra.mxu2 %vm918_vm1, %v6782_v22  ;;  %v3372_v53 = vsel %vm918_vm1, %v6782_v22, 0.0 }
 0xac9   : > { %6783 = vpow2.f32 %v3291_v52  ;;  %3373 = vadd.xlane.f32.xlu0 %v3372_v53 }
 0xaca   : > { %6785 = vpow2.f32 %v3293_v44  ;;  %v12006_v44 = vld [vmem:[#allocation26_spill] sm:$0xff] }
 0xacb   : > { %6787 = vrcp.f32 %v3362_v25 }
 0xacc   : > { %v4274_v62 = vpop.xlane.xlu1 %4273 }
 0xacd   : > { %v4346_v56 = vsub.f32 %v10151_v11, %v4274_v62  ;;  %v10511_v29 = vpop.f32.mrf.mxu2  ;;  %v12007_v62 = vld [vmem:[#allocation167_spill] sm:$0xff] }
 0xace   : > { %v4595_v52 = vpop.f32.mrf.mxu0 }
 0xacf   : > { %v6784_v30 = vpop.eup %6783  ;;  %v4389_v43 = vmul.f32 1.442695, %v4346_v56 }
 0xad0   : > { %5945 = vmatmul.msk.f32.gmra.mxu3 %vm918_vm1, %v6784_v30  ;;  %5991 = vmatmul.msk.f32.vlgmr.msrb.gmra.mxu2 %vm553_vm0, %v9906_v58  ;;  %v10520_v12 = vpop.eup %6785  ;;  %v4449_v58 = vsel %vm918_vm1, %v10415_v57, 0.0  ;;  %v3237_v57 = vsub.f32 %v10224_v16, %v10425_v28 }
 0xad1   : > { %6789 = vpow2.f32 %v4389_v43  ;;  %4447 = vadd.xlane.f32.xlu0 %v4446_v33  ;;  %v6788_v55 = vpop.eup %6787  ;;  %v12008_v43 = vld [vmem:[#allocation69_spill] sm:$0xff] }
 0xad2   : > { %6791 = vpow2.f32 %v4391_v20  ;;  %v3299_v0 = vmul.f32 1.442695, %v3237_v57 }
 0xad4   : > { %v3200_v11 = vpop.xlane.xlu1 %3199 }
 0xad5   : > { %v3651_v36 = vpop.f32.mrf.mxu2  ;;  %v3236_v32 = vsub.f32 %v10220_v47, %v3200_v11  ;;  %v12009_v11 = vld [vmem:[#allocation47_spill] sm:$0xff] }
 0xad6   : > { %v10525_v60 = vmul.f32 %v6788_v55, %v3651_v36  ;;  %v12010_v36 = vld [vmem:[#allocation14_spill] sm:$0xff] }
 0xad7   : > { %v10522_v19 = vpop.eup %6789  ;;  %v3297_v47 = vmul.f32 1.442695, %v3236_v32 }
 0xad8   : > { %5946 = vmatmul.msk.f32.gmra.mxu3 %vm918_vm1, %v10520_v12  ;;  %5992 = vmatmul.msk.f32.gmra.mxu2 %vm553_vm0, %v10043_v59  ;;  %v10537_v54 = vpop.eup %6791  ;;  %v3381_v59 = vsel %vm918_vm1, %v6784_v30, 0.0 }
 0xad9   : > { %6026 = vmatmul.msk.f32.gmra.mxu1 %vm918_vm1, %v10522_v19  ;;  %4450 = vadd.xlane.f32.xlu0 %v4449_v58  ;;  %6793 = vpow2.f32 %v3297_v47  ;;  %v12011_v47 = vld [vmem:[#allocation2_spill] sm:$0xff] }
 0xada   : > { %6795 = vpow2.f32 %v4393_v26 }
 0xadb   : > { %6797 = vpow2.f32 %v3299_v0 }
 0xadc   : > { %6799 = vpow2.f32 %v4395_v35 }
 0xadd   : > { %6801 = vpow2.f32 %v4397_v13 }
 0xade   : > { %6803 = vrcp.f32 %v12003_v63 }
 0xadf   : > { %v6794_v34 = vpop.eup %6793  ;;  %6805 = vrcp.f32 %v4433_v18 }
 0xae0   : > { %5947 = vmatmul.msk.f32.gmra.mxu3 %vm918_vm1, %v10427_v7  ;;  %5993 = vmatmul.msk.f32.gmra.mxu2 %vm553_vm0, %v9974_v37  ;;  %v10550_v7 = vpop.eup %6795  ;;  %v12000_v37 = vld [vmem:[#allocation165_spill] sm:$0xff]  ;;  %v3390_v16 = vsel %vm918_vm1, %v6794_v34, 0.0 }
 0xae1   : > { %6027 = vmatmul.msk.f32.gmra.mxu1 %vm918_vm1, %v10537_v54  ;;  %3382 = vadd.xlane.f32.xlu0 %v3381_v59  ;;  %v10562_v9 = vpop.eup %6797 }
 0xae2   : > { %v10564_v27 = vpop.eup %6799  ;;  %v3393_v18 = vsel %vm918_vm1, %v10562_v9, 0.0 }
 0xae3   : > { %v10574_v49 = vpop.eup %6801 }
 0xae4   : > { %v6804_v50 = vpop.eup %6803 }
 0xae5   : > { %v6806_v48 = vpop.eup %6805  ;;  %v2659_v33 = vmul.f32 %v6804_v50, %v12008_v43 }
 0xae6   : > { %v4915_v25 = vmul.f32 %v6806_v48, %v4592_v3  ;;  %v12020_v48 = vld [vmem:[#allocation113_spill] sm:$0xff] }
 0xae7   : > { %v6336_v55 = vpack.i.bf16 %v12009_v11, %v2659_v33  ;;  %v5443_v33 = vld [vmem:[%s11377_s3 + $0x70] sm:$0xff] }
 0xae8   : > { %5948 = vmatmul.msk.f32.gmra.mxu3 %vm918_vm1, %v6794_v34  ;;  %5994 = vmatmul.msk.f32.gmra.mxu2 %vm553_vm0, %v12000_v37  ;;  %v12012_v34 = vld [vmem:[#allocation170_spill] sm:$0xff] }
 0xae9   : > { %6028 = vmatmul.msk.f32.gmra.mxu1 %vm918_vm1, %v10550_v7  ;;  %3391 = vadd.xlane.f32.xlu0 %v3390_v16  ;;  %v12013_v16 = vld [vmem:[#allocation183_spill] sm:$0xff] }
 0xaec   : > { %v6328_v24 = vpop.permute.xlu1 %6327 }
 0xaed   : > { %v6329_v28 = vunpack.i.l.bf16 %v6328_v24  ;;  %v6330_v42 = vunpack.i.h.bf16 %v6328_v24  ;;  %v12014_v24 = vld [vmem:[#allocation185_spill] sm:$0xff] }
 0xaef   : > { %3376 = vadd.xlane.f32.xlu1 %v3375_v5  ;;  %4765 = vmatpush.msra.mxu2 %v6329_v28  ;;  %v12015_v5 = vld [vmem:[#allocation176_spill] sm:$0xff] }
 0xaf0   : > { %5949 = vmatmul.msk.f32.gmra.mxu3 %vm918_vm1, %v10562_v9  ;;  %5995 = vmatmul.msk.f32.gmra.mxu2 %vm553_vm0, %v12001_v39  ;;  %v5444_v9 = vld [vmem:[%s11377_s3 + $0x78] sm:$0xff] }
 0xaf1   : > { %6029 = vmatmul.msk.f32.gmra.mxu1 %vm918_vm1, %v10564_v27  ;;  %4766 = vmatpush.msra.mxu2 %v6330_v42  ;;  %v3384_v42 = vsel %vm918_vm1, %v10520_v12, 0.0  ;;  %v12018_v12 = vld [vmem:[#allocation66_spill] sm:$0xff] }
 0xaf2   : > { %5449 = vmatpush.msrb.mxu0 %v5444_v9 }
 0xaf4   : > { %5450 = vmatpush.msrb.mxu0 %v5443_v33 }
 0xaf7   : > { %4444 = vadd.xlane.f32.xlu1 %v4443_v2  ;;  %v10625_v2 = vpop.xlane.xlu2 %3379 }
 0xaf8   : > { %5950 = vmatmul.msk.f32.gmra.mxu3 %vm918_vm1, %v10439_v51  ;;  %5996 = vmatmul.msk.f32.gmra.mxu2 %vm553_vm0, %v12002_v23 }
 0xaf9   : > { %6030 = vmatmul.msk.f32.gmra.mxu1 %vm918_vm1, %v10574_v49  ;;  %v3365_v6 = vpop.xlane.xlu0 %3364 }
 0xafa   : > { %6807 = vrcp.f32 %v3365_v6  ;;  %v12017_v6 = vld [vmem:[#allocation156_spill] sm:$0xff] }
 0xaff   : > { %v10636_v50 = vpop.xlane.xlu2 %4438 }
 0xb00   : > { %5997 = vmatmul.msk.f32.gmra.mxu2 %vm553_vm0, %v12004_v4  ;;  %6007 = vmatmul.msk.f32.vlgmr.msrb.gmra.mxu3 %vm553_vm0, %v12005_v10  ;;  %v6808_v22 = vpop.eup %6807  ;;  %v12019_v10 = vld [vmem:[#allocation95_spill] sm:$0xff] }
 0xb01   : > { %v4436_v51 = vpop.xlane.xlu0 %4435 }
 0xb02   : > { %6809 = vrcp.f32 %v4436_v51 }
 0xb03   : > { %6811 = vrcp.f32 %v3371_v31  ;;  %v12016_v31 = vld [vmem:[#allocation162_spill] sm:$0xff] }
 0xb08   : > { %v6810_v17 = vpop.eup %6809  ;;  %v3654_v53 = vpop.f32.mrf.mxu2  ;;  %5998 = vmatmul.msk.f32.gmra.mxu2 %vm553_vm0, %v12006_v44  ;;  %6008 = vmatmul.msk.f32.gmra.mxu3 %vm553_vm0, %v12007_v62 }
 0xb09   : > { %v4916_v56 = vmul.f32 %v6810_v17, %v4595_v52  ;;  %v10591_v30 = vmul.f32 %v6808_v22, %v3654_v53  ;;  %v6812_v58 = vpop.eup %6811 }
 0xb0b   : > { %v6346_v45 = vpack.i.bf16 %v4916_v56, %v4915_v25  ;;  %v12021_v25 = vld [vmem:[#allocation76_spill] sm:$0xff] }
 0xb0d   : > { %6347 = vrot.lane.b32.xlu0 %v6346_v45, %s7088_s22  ;;  %v12022_v45 = vld [vmem:[#allocation62_spill] sm:$0xff] }
 0xb10   : > { %6337 = vrot.lane.b32.xlu1 %v6336_v55, %s7096_s7  ;;  %v3657_v20 = vpop.f32.mrf.mxu2  ;;  %6009 = vmatmul.msk.f32.gmra.mxu3 %vm553_vm0, %v12010_v36  ;;  %v10659_v36 = vpop.xlane.xlu2 %4441 }
 0xb17   : > { %v3359_v32 = vpop.xlane.xlu1 %3358 }
 0xb18   : > { %6813 = vrcp.f32 %v3359_v32  ;;  %v3660_v46 = vpop.f32.mrf.mxu2  ;;  %6010 = vmatmul.msk.f32.gmra.mxu3 %vm553_vm0, %v12011_v47  ;;  %v5441_v32 = vld [vmem:[%s11377_s3 + $0x60] sm:$0xff] }
 0xb19   : > { %v10601_v26 = vmul.f32 %v6812_v58, %v3660_v46  ;;  %v12023_v58 = vld [vmem:[#allocation5_spill] sm:$0xff] }
 0xb1e   : > { %v6814_v59 = vpop.eup %6813 }
 0xb1f   : > { %v10604_v57 = vmul.f32 %v6814_v59, %v10511_v29  ;;  %v3368_v61 = vpop.xlane.xlu1 %3367  ;;  %v4452_v29 = vsel %vm918_vm1, %v10431_v8, 0.0  ;;  %v10628_v8 = vpop.f32.mrf.mxu3  ;;  %v5440_v59 = vld [vmem:[%s11377_s3 + $0x58] sm:$0xff] }
 0xb20   : > { %6815 = vrcp.f32 %v3368_v61  ;;  %6011 = vmatmul.msk.f32.gmra.mxu3 %vm553_vm0, %v12012_v34 }
 0xb21   : > { %6817 = vrcp.f32 %v12016_v31  ;;  %v3389_v31 = vpop.xlane.xlu2 %3388 }
 0xb22   : > { %6819 = vrcp.f32 %v12017_v6 }
 0xb23   : > { %6821 = vrcp.f32 %v12018_v12  ;;  %v5434_v12 = vld [vmem:[%s11377_s3 + $0x28] sm:$0xff] }
 0xb26   : > { %v6816_v35 = vpop.eup %6815 }
 0xb27   : > { %v10610_v37 = vmul.f32 %v6816_v35, %v3657_v20  ;;  %v6818_v63 = vpop.eup %6817  ;;  %v10642_v44 = vpop.f32.mrf.mxu3  ;;  %v5442_v20 = vld [vmem:[%s11377_s3 + $0x68] sm:$0xff]  ;;  %v5439_v35 = vld [vmem:[%s11377_s3 + $0x50] sm:$0xff] }
 0xb28   : > { %6012 = vmatmul.msk.f32.gmra.mxu3 %vm553_vm0, %v12013_v16  ;;  %v6820_v3 = vpop.eup %6819  ;;  %v3790_v51 = vmul.f32 %v6818_v63, %v12019_v10  ;;  %5451 = vmatpush.msrb.mxu0 %v5442_v20  ;;  %v5433_v10 = vld [vmem:[%s11377_s3 + $0x20] sm:$0xff] }
 0xb29   : > { %v3789_v22 = vmul.f32 %v6820_v3, %v12020_v48  ;;  %v6822_v52 = vpop.eup %6821  ;;  %v5435_v3 = vld [vmem:[%s11377_s3 + $0x30] sm:$0xff] }
 0xb2a   : > { %v2662_v11 = vmul.f32 %v6822_v52, %v12022_v45  ;;  %5452 = vmatpush.msrb.mxu0 %v5441_v32 }
 0xb2b   : > { %v6371_v17 = vpack.i.bf16 %v3790_v51, %v3789_v22  ;;  %v5432_v51 = vld [vmem:[%s11377_s3 + $0x18] sm:$0xff] }
 0xb2c   : > { %v6381_v46 = vpack.i.bf16 %v2662_v11, %v12023_v58  ;;  %5453 = vmatpush.msrb.mxu0 %v5440_v59 }
 0xb2e   : > { %5454 = vmatpush.msrb.mxu0 %v5439_v35 }
 0xb30   : > { %6013 = vmatmul.msk.f32.gmra.mxu3 %vm553_vm0, %v12014_v24  ;;  %v12024_v24 = vld [vmem:[#allocation74_spill] sm:$0xff] }
 0xb37   : > { %v6333_v28 = vpop.permute.xlu1 %6332  ;;  %4453 = vadd.xlane.f32.xlu0 %v4452_v29 }
 0xb38   : > { %v6334_v13 = vunpack.i.l.bf16 %v6333_v28  ;;  %6014 = vmatmul.msk.f32.gmra.mxu3 %vm553_vm0, %v12015_v5  ;;  %v6335_v39 = vunpack.i.h.bf16 %v6333_v28  ;;  %v5438_v28 = vld [vmem:[%s11377_s3 + $0x48] sm:$0xff]  ;;  %v5436_v5 = vld [vmem:[%s11377_s3 + $0x38] sm:$0xff] }
 0xb39   : > { %5455 = vmatpush.msrb.mxu0 %v5438_v28 }
 0xb3a   : > { %3385 = vadd.xlane.f32.xlu1 %v3384_v42  ;;  %4767 = vmatpush.msra.mxu2 %v6334_v13  ;;  %v5437_v13 = vld [vmem:[%s11377_s3 + $0x40] sm:$0xff]  ;;  %v12025_v42 = vld [vmem:[#allocation45_spill] sm:$0xff] }
 0xb3b   : > { %5456 = vmatpush.msrb.mxu0 %v5437_v13 }
 0xb3c   : > { %v3374_v23 = vpop.xlane.xlu0 %3373  ;;  %4768 = vmatpush.msra.mxu2 %v6335_v39 }
 0xb3d   : > { %6823 = vrcp.f32 %v3374_v23  ;;  %5457 = vmatpush.msrb.mxu0 %v5436_v5 }
 0xb3e   : > { %6825 = vrcp.f32 %v12021_v25  ;;  %v5429_v25 = vld [vmem:[%s11377_s3] sm:$0xff] }
 0xb3f   : > { %5458 = vmatpush.msrb.mxu0 %v5435_v3  ;;  %v12027_v3 = vld [vmem:[#allocation131_spill] sm:$0xff] }
 0xb41   : > { %5459 = vmatpush.msrb.mxu0 %v5434_v12 }
 0xb42   : > { %3394 = vadd.xlane.f32.xlu1 %v3393_v18 }
 0xb43   : > { %v6824_v53 = vpop.eup %6823  ;;  %5460 = vmatpush.msrb.mxu0 %v5433_v10 }
 0xb44   : > { %v10633_v4 = vpop.xlane.xlu0 %4447  ;;  %v6826_v47 = vpop.eup %6825 }
 0xb45   : > { %v2660_v29 = vmul.f32 %v6826_v47, %v12024_v24  ;;  %5461 = vmatpush.msrb.mxu0 %v5432_v51 }
 0xb47   : > { %v6351_v39 = vpack.i.bf16 %v2660_v29, %v12025_v42 }
 0xb4b   : > { %6372 = vrot.lane.b32.xlu0 %v6371_v17, %s7093_s28  ;;  %v3663_v62 = vpop.f32.mrf.mxu2 }
 0xb4c   : > { %v10646_v56 = vmul.f32 %v6824_v53, %v3663_v62  ;;  %v10648_v43 = vpop.xlane.xlu0 %4450  ;;  %v5431_v62 = vld [vmem:[%s11377_s3 + $0x10] sm:$0xff] }
 0xb4d   : > { %5462 = vmatpush.msrb.mxu0 %v5431_v62 }
 0xb53   : > { %6382 = vrot.lane.b32.xlu0 %v6381_v46, %s7096_s7  ;;  %v3737_v61 = vpop.f32.mrf.mxu3  ;;  %v10669_v34 = vpop.f32.mrf.mxu2 }
 0xb54   : > { %v3383_v16 = vpop.xlane.xlu0 %3382 }
 0xb55   : > { %6827 = vrcp.f32 %v3383_v16 }
 0xb56   : > { %6829 = vrcp.f32 %v3389_v31 }
 0xb57   : > { %6831 = vrcp.f32 %v10625_v2  ;;  %v5430_v2 = vld [vmem:[%s11377_s3 + $0x8] sm:$0xff] }
 0xb58   : > { %5463 = vmatpush.msrb.mxu0 %v5430_v2 }
 0xb5a   : > { %5464 = vmatpush.msrb.mxu0 %v5429_v25 }
 0xb5b   : > { %v6828_v23 = vpop.eup %6827  ;;  %6352 = vrot.lane.b32.xlu1 %v6351_v39, %s7096_s7  ;;  %v10686_v6 = vpop.f32.mrf.mxu3 }
 0xb5c   : > { %v10688_v18 = vpop.f32.mrf.mxu2  ;;  %v10690_v63 = vmul.f32 %v6828_v23, %v3737_v61  ;;  %v3392_v48 = vpop.xlane.xlu0 %3391 }
 0xb5d   : > { %v6830_v17 = vpop.eup %6829  ;;  %v3398_v61 = vpop.xlane.xlu2 %3397  ;;  %v4290_v5 = vsel %vm918_vm1, %v10688_v18, -inf }
 0xb5e   : > { %v6832_v33 = vpop.eup %6831 }
 0xb5f   : > { %v10719_v11 = vmul.f32 %v6832_v33, %v10642_v44  ;;  %v12026_v44 = vld [vmem:[#allocation19_spill] sm:$0xff] }
 0xb62   : > { %v3377_v22 = vpop.xlane.xlu1 %3376 }
 0xb63   : > { %6833 = vrcp.f32 %v3377_v22  ;;  %v3743_v52 = vpop.f32.mrf.mxu3  ;;  %v4455_v22 = vsel %vm918_vm1, %v10477_v40, 0.0 }
 0xb64   : > { %v10705_v9 = vpop.f32.mrf.mxu2  ;;  %v10707_v53 = vmul.f32 %v6830_v17, %v3743_v52  ;;  %6835 = vrcp.f32 %v3392_v48 }
 0xb65   : > { %6837 = vrcp.f32 %v3398_v61  ;;  %v10741_v39 = vpop.permute.xlu2 %6342 }
 0xb66   : > { %6839 = vrcp.f32 %v12026_v44  ;;  %v6344_v17 = vunpack.i.l.bf16 %v10741_v39 }
 0xb67   : > { %6841 = vrcp.f32 %v10659_v36  ;;  %v4458_v36 = vsel %vm918_vm1, %v10483_v38, 0.0 }
 0xb68   : > { %6843 = vrcp.f32 %v10636_v50 }
 0xb69   : > { %v6834_v45 = vpop.eup %6833 }
 0xb6a   : > { %v10722_v20 = vmul.f32 %v6834_v45, %v10628_v8  ;;  %v6836_v32 = vpop.eup %6835  ;;  %v4445_v24 = vpop.xlane.xlu1 %4444 }
 0xb6b   : > { %v3746_v58 = vpop.f32.mrf.mxu3  ;;  %v6838_v8 = vpop.eup %6837 }
 0xb6c   : > { %v10724_v46 = vpop.f32.mrf.mxu2  ;;  %v10726_v47 = vmul.f32 %v6836_v32, %v3746_v58  ;;  %v6840_v42 = vpop.eup %6839 }
 0xb6d   : > { %v1499_v12 = vmul.f32 %v6840_v42, %v12027_v3  ;;  %v4296_v25 = vsel %vm918_vm1, %v10724_v46, -inf  ;;  %v4598_v45 = vpop.f32.mrf.mxu0  ;;  %v6842_v44 = vpop.eup %6841  ;;  %v12028_v42 = vld [vmem:[#allocation75_spill] sm:$0xff] }
 0xb6e   : > { %6845 = vrcp.f32 %v12028_v42  ;;  %v12029_v3 = vld [vmem:[#allocation163_spill] sm:$0xff] }
 0xb6f   : > { %6847 = vrcp.f32 %v12029_v3 }
 0xb70   : > { %6849 = vrcp.f32 %v4445_v24 }
 0xb71   : > { %6851 = vrcp.f32 %v10633_v4 }
 0xb73   : > { %v10730_v35 = vpop.f32.mrf.mxu3 }
 0xb74   : > { %v10732_v16 = vpop.f32.mrf.mxu2 }
 0xb75   : > { %v4299_v61 = vsel %vm918_vm1, %v10732_v16, -inf }
 0xb7b   : > { %v3752_v29 = vpop.f32.mrf.mxu3 }
 0xb7c   : > { %v10735_v28 = vpop.f32.mrf.mxu2  ;;  %v10737_v13 = vmul.f32 %v6838_v8, %v3752_v29  ;;  %v4601_v8 = vpop.f32.mrf.mxu0 }
 0xb7d   : > { %4291 = vmax.xlane.f32.xlu0 %v4290_v5  ;;  %v4302_v29 = vsel %vm918_vm1, %v10735_v28, -inf  ;;  %v6844_v5 = vpop.eup %6843 }
 0xb7f   : > { %v10743_v31 = vpop.permute.xlu0 %6347 }
 0xb80   : > { %v6349_v62 = vunpack.i.l.bf16 %v10743_v31 }
 0xb82   : > { %v6338_v23 = vpop.permute.xlu1 %6337 }
 0xb83   : > { %v6340_v10 = vunpack.i.h.bf16 %v6338_v23  ;;  %v6339_v51 = vunpack.i.l.bf16 %v6338_v23  ;;  %v4918_v23 = vmul.f32 %v6842_v44, %v4601_v8 }
 0xb84   : > { %v10746_v48 = vpop.f32.mrf.mxu2 }
 0xb85   : > { %v4305_v52 = vsel %vm918_vm1, %v10746_v48, -inf  ;;  %v5332_v2 = vsel %vm5331_vm2, %v1499_v12, %v6339_v51  ;;  %4456 = vadd.xlane.f32.xlu1 %v4455_v22  ;;  %4850 = vmatpush.msra.mxu3 %v6340_v10  ;;  %v4917_v12 = vmul.f32 %v6844_v5, %v4598_v45  ;;  %v6846_v51 = vpop.eup %6845  ;;  %v4604_v22 = vpop.f32.mrf.mxu0  ;;  %v12033_v45 = vld [vmem:[#allocation139_spill] sm:$0xff] }
 0xb86   : > { %4297 = vmax.xlane.f32.xlu0 %v4296_v25  ;;  %4306 = vmax.xlane.f32.xlu2 %v4305_v52  ;;  %v5364_v40 = vsel %vm918_vm1, %v5332_v2, %v6344_v17  ;;  %v6848_v50 = vpop.eup %6847  ;;  %v12030_v17 = vld [vmem:[#allocation104_spill] sm:$0xff]  ;;  %v12032_v25 = vld [vmem:[#allocation61_spill] sm:$0xff] }
 0xb87   : > { %v5397_v33 = vsel %vm5396_vm3, %v5364_v40, %v6349_v62  ;;  %v6376_v10 = vpack.i.bf16 %v4918_v23, %v4917_v12  ;;  %v3791_v52 = vmul.f32 %v6846_v51, %v12030_v17  ;;  %v12031_v62 = vld [vmem:[#allocation116_spill] sm:$0xff]  ;;  %6853 = vrcp.f32 %v12032_v25  ;;  %v12035_v23 = vld [vmem:[#allocation87_spill] sm:$0xff]  ;;  %v6358_v17 = vpop.permute.xlu2 %6357 }
 0xb88   : > { %5465 = vmatmul.f32.vlgmr.msrb.gmra.mxu0 %v5397_v33  ;;  %v3792_v2 = vmul.f32 %v6848_v50, %v12031_v62  ;;  %v6850_v33 = vpop.eup %6849  ;;  %6855 = vrcp.f32 %v12033_v45  ;;  %v12036_v62 = vld [vmem:[#allocation81_spill] sm:$0xff] }
 0xb89   : > { %v6852_v38 = vpop.eup %6851 }
 0xb8a   : > { %v6391_v40 = vpack.i.bf16 %v3792_v2, %v3791_v52 }
 0xb8c   : > { %v10759_v32 = vpop.f32.mrf.mxu2 }
 0xb8d   : > { %v4308_v58 = vsel %vm918_vm1, %v10759_v32, -inf  ;;  %v6854_v44 = vpop.eup %6853 }
 0xb8e   : > { %4300 = vmax.xlane.f32.xlu0 %v4299_v61  ;;  %4309 = vmax.xlane.f32.xlu2 %v4308_v58  ;;  %v4919_v58 = vmul.f32 %v6850_v33, %v4604_v22  ;;  %v4607_v61 = vpop.f32.mrf.mxu0  ;;  %v6856_v24 = vpop.eup %6855  ;;  %v2665_v3 = vmul.f32 %v6854_v44, %v12035_v23 }
 0xb8f   : > { %v4920_v8 = vmul.f32 %v6852_v38, %v4607_v61 }
 0xb91   : > { %v6396_v42 = vpack.i.bf16 %v4920_v8, %v4919_v58  ;;  %v12037_v58 = vld [vmem:[#allocation11_spill] sm:$0xff] }
 0xb96   : > { %4303 = vmax.xlane.f32.xlu0 %v4302_v29  ;;  %v12034_v29 = vld [vmem:[#allocation42_spill] sm:$0xff] }
 0xb97   : > { %v2666_v5 = vmul.f32 %v6856_v24, %v12034_v29  ;;  %v6345_v29 = vunpack.i.h.bf16 %v10741_v39 }
 0xb99   : > { %v6401_v12 = vpack.i.bf16 %v2666_v5, %v2665_v3  ;;  %v4293_v5 = vsel %vm918_vm1, %v10705_v9, -inf }
 0xb9e   : > { %4459 = vadd.xlane.f32.xlu0 %v4458_v36  ;;  %6377 = vrot.lane.b32.xlu1 %v6376_v10, %s7088_s22  ;;  %v10783_v10 = vpop.f32.mrf.mxu3 }
 0xba6   : > { %6392 = vrot.lane.b32.xlu2 %v6391_v40, %s7093_s28  ;;  %v10791_v22 = vpop.f32.mrf.mxu3  ;;  %v4287_v40 = vsel %vm918_vm1, %v10669_v34, -inf }
 0xbaa   : > { %v4454_v2 = vpop.xlane.xlu0 %4453 }
 0xbad   : > { %v3386_v4 = vpop.xlane.xlu1 %3385 }
 0xbae   : > { %6857 = vrcp.f32 %v3386_v4  ;;  %6397 = vrot.lane.b32.xlu2 %v6396_v42, %s7088_s22  ;;  %v10793_v52 = vpop.f32.mrf.mxu3  ;;  %v6359_v42 = vunpack.i.l.bf16 %v6358_v17  ;;  %v6350_v4 = vunpack.i.h.bf16 %v10743_v31  ;;  %v4314_v31 = vsel %vm918_vm1, %v10791_v22, -inf }
 0xbaf   : > { %6859 = vrcp.f32 %v12036_v62 }
 0xbb2   : > { %6402 = vrot.lane.b32.xlu0 %v6401_v12, %s7096_s7  ;;  %v6360_v12 = vunpack.i.h.bf16 %v6358_v17  ;;  %v12038_v17 = vld [vmem:[#allocation138_spill] sm:$0xff] }
 0xbb3   : > { %6861 = vrcp.f32 %v12038_v17 }
 0xbb4   : > { %v6858_v51 = vpop.eup %6857 }
 0xbb5   : > { %v10787_v36 = vmul.f32 %v6858_v51, %v10686_v6  ;;  %v10796_v25 = vpop.xlane.xlu1 %3394  ;;  %v6860_v33 = vpop.eup %6859 }
 0xbb6   : > { %v6363_v6 = vpop.permute.xlu2 %6362  ;;  %v1500_v61 = vmul.f32 %v6860_v33, %v12037_v58  ;;  %v10803_v44 = vpop.f32.mrf.mxu3 }
 0xbb7   : > { %v6364_v62 = vunpack.i.l.bf16 %v6363_v6 }
 0xbbd   : > { %v10800_v45 = vpop.permute.xlu0 %6372 }
 0xbbe   : > { %v10812_v39 = vpop.permute.xlu2 %6367  ;;  %v10819_v58 = vpop.f32.mrf.mxu3  ;;  %v6375_v41 = vunpack.i.h.bf16 %v10800_v45 }
 0xbc5   : > { %v10816_v33 = vpop.permute.xlu0 %6382 }
 0xbc6   : > { %v6385_v0 = vunpack.i.h.bf16 %v10816_v33 }
 0xbc8   : > { %4288 = vmax.xlane.f32.xlu1 %v4287_v40  ;;  %v6365_v40 = vunpack.i.h.bf16 %v6363_v6  ;;  %v4323_v6 = vsel %vm918_vm1, %v10819_v58, -inf }
 0xbcd   : > { %v6353_v38 = vpop.permute.xlu1 %6352 }
 0xbce   : > { %v6355_v8 = vunpack.i.h.bf16 %v6353_v38  ;;  %v6354_v24 = vunpack.i.l.bf16 %v6353_v38  ;;  %v6370_v38 = vunpack.i.h.bf16 %v10812_v39 }
 0xbd0   : > { %4851 = vmatpush.msra.mxu3 %v6354_v24  ;;  %4294 = vmax.xlane.f32.xlu1 %v4293_v5  ;;  %v5333_v23 = vsel %vm5331_vm2, %v1500_v61, %v6355_v8  ;;  %v6384_v61 = vunpack.i.l.bf16 %v10816_v33  ;;  %v12039_v8 = vld [vmem:[#allocation83_spill] sm:$0xff]  ;;  %v4317_v24 = vsel %vm918_vm1, %v10793_v52, -inf  ;;  %v6862_v5 = vpop.eup %6861  ;;  %v4461_v33 = vsel %vm918_vm1, %v10489_v1, 0.0 }
 0xbd1   : > { %v5365_v3 = vsel %vm918_vm1, %v5333_v23, %v6345_v29  ;;  %6863 = vrcp.f32 %v12039_v8  ;;  %v4610_v29 = vpop.f32.mrf.mxu0 }
 0xbd2   : > { %4852 = vmatpush.msra.mxu3 %v6359_v42  ;;  %v5398_v51 = vsel %vm5396_vm3, %v5365_v3, %v6350_v4  ;;  %6865 = vrcp.f32 %v4454_v2  ;;  %v12040_v4 = vld [vmem:[#allocation78_spill] sm:$0xff]  ;;  %v12041_v3 = vld [vmem:[#allocation64_spill] sm:$0xff] }
 0xbd3   : > { %5468 = vmatmul.f32.gmra.mxu0 %v5398_v51  ;;  %v2664_v23 = vmul.f32 %v6862_v5, %v12040_v4  ;;  %6867 = vrcp.f32 %v10648_v43  ;;  %v4320_v51 = vsel %vm918_vm1, %v10803_v44, -inf  ;;  %v4464_v43 = vsel %vm918_vm1, %v10522_v19, 0.0  ;;  %v10854_v19 = vld [vmem:[%s11378_s4] ss:$0 sm:$0xff] }
 0xbd4   : > { %4853 = vmatpush.msra.mxu3 %v6360_v12  ;;  %v4470_v5 = vsel %vm918_vm1, %v10550_v7, 0.0 }
 0xbd6   : > { %4854 = vmatpush.msra.mxu3 %v6364_v62 }
 0xbd7   : > { %4315 = vmax.xlane.f32.xlu2 %v4314_v31  ;;  %v6864_v42 = vpop.eup %6863 }
 0xbd8   : > { %4855 = vmatpush.msra.mxu3 %v6365_v40  ;;  %v2663_v12 = vmul.f32 %v6864_v42, %v12041_v3  ;;  %v6866_v62 = vpop.eup %6865  ;;  %v10833_v40 = vpop.f32.mrf.mxu3 }
 0xbd9   : > { %v4613_v17 = vpop.f32.mrf.mxu0 }
 0xbda   : > { %4856 = vmatpush.msra.mxu3 %v6370_v38  ;;  %v6386_v31 = vpack.i.bf16 %v2664_v23, %v2663_v12  ;;  %v6868_v38 = vpop.eup %6867  ;;  %v4922_v2 = vmul.f32 %v6866_v62, %v4613_v17  ;;  %v12042_v23 = vld [vmem:[#allocation79_spill] sm:$0xff]  ;;  %v12043_v12 = vld [vmem:[#allocation82_spill] sm:$0xff]  ;;  %v12045_v17 = vld [vmem:[#allocation72_spill] sm:$0xff] }
 0xbdb   : > { %6869 = vrcp.f32 %v12042_v23  ;;  %v12047_v23 = vld [vmem:[#allocation130_spill] sm:$0xff] }
 0xbdc   : > { %4324 = vmax.xlane.f32.xlu0 %v4323_v6  ;;  %4857 = vmatpush.msra.mxu3 %v6384_v61  ;;  %v4921_v61 = vmul.f32 %v6868_v38, %v4610_v29  ;;  %6871 = vrcp.f32 %v12043_v12 }
 0xbde   : > { %v6411_v6 = vpack.i.bf16 %v4922_v2, %v4921_v61  ;;  %v6369_v2 = vunpack.i.l.bf16 %v10812_v39 }
 0xbdf   : > { %4318 = vmax.xlane.f32.xlu2 %v4317_v24 }
 0xbe0   : > { %v10839_v8 = vpop.f32.mrf.mxu3 }
 0xbe1   : > { %v6870_v38 = vpop.eup %6869 }
 0xbe2   : > { %v6872_v61 = vpop.eup %6871 }
 0xbe3   : > { %v3796_v12 = vmul.f32 %v6872_v61, %v12047_v23  ;;  %v12049_v61 = vld [vmem:[#allocation49_spill] sm:$0xff] }
 0xbe7   : > { %4321 = vmax.xlane.f32.xlu2 %v4320_v51 }
 0xbe8   : > { %v10845_v42 = vpop.f32.mrf.mxu3 }
 0xbe9   : > { %6387 = vrot.lane.b32.xlu1 %v6386_v31, %s7096_s7  ;;  %v4332_v29 = vsel %vm918_vm1, %v10845_v42, -inf  ;;  %v12044_v31 = vld [vmem:[#allocation89_spill] sm:$0xff] }
 0xbea   : > { %6873 = vrcp.f32 %v12044_v31  ;;  %v4311_v31 = vsel %vm918_vm1, %v10783_v10, -inf }
 0xbeb   : > { %6875 = vrcp.f32 %v12045_v17  ;;  %v12048_v17 = vld [vmem:[#allocation125_spill] sm:$0xff] }
 0xbef   : > { %4465 = vadd.xlane.f32.xlu2 %v4464_v43  ;;  %v6374_v43 = vunpack.i.l.bf16 %v10800_v45 }
 0xbf0   : > { %6412 = vrot.lane.b32.xlu0 %v6411_v6, %s7088_s22  ;;  %v10841_v24 = vpop.xlane.xlu0 %4291  ;;  %v12046_v6 = vld [vmem:[#allocation60_spill] sm:$0xff] }
 0xbf7   : > { %4471 = vadd.xlane.f32.xlu2 %v4470_v5  ;;  %v1501_v5 = vmul.f32 %v6870_v38, %v12046_v6 }
 0xbf8   : > { %v4457_v51 = vpop.xlane.xlu1 %4456 }
 0xbf9   : > { %v10847_v4 = vpop.xlane.xlu0 %4297  ;;  %v5334_v59 = vsel %vm5331_vm2, %v1501_v5, %v6369_v2 }
 0xbfa   : > { %v5366_v39 = vsel %vm918_vm1, %v5334_v59, %v6374_v43  ;;  %v4329_v59 = vsel %vm918_vm1, %v10839_v8, -inf }
 0xbff   : > { %4333 = vmax.xlane.f32.xlu2 %v4332_v29  ;;  %v6874_v29 = vpop.eup %6873 }
 0xc00   : > { %v3795_v21 = vmul.f32 %v6874_v29, %v12048_v17  ;;  %v4681_v29 = vpop.f32.mrf.mxu1 }
 0xc01   : > { %v10866_v62 = vpop.xlane.xlu0 %4300 }
 0xc02   : > { %v6421_v23 = vpack.i.bf16 %v3796_v12, %v3795_v21  ;;  %v12050_v12 = vld [vmem:[#allocation59_spill] sm:$0xff] }
 0xc05   : > { %v5466_v7 = vpop.f32.mrf.mxu0 }
 0xc06   : > { %v5467_v3 = vadd.f32 %v10854_v19, %v5466_v7 }
 0xc08   : > { %5562 = vst [vmem:[%s10861_s29] sm:$0xff] %v5467_v3  ;;  %v6876_v3 = vpop.eup %6875 }
 0xc09   : > { %v10876_v55 = vpop.xlane.xlu0 %4303  ;;  %v1502_v6 = vmul.f32 %v6876_v3, %v12049_v61  ;;  %v4684_v3 = vpop.f32.mrf.mxu1  ;;  %v12053_v61 = vld [vmem:[#allocation121_spill] sm:$0xff] }
 0xc0b   : > { %v5335_v5 = vsel %vm5331_vm2, %v1502_v6, %v6385_v0  ;;  %v4467_v0 = vsel %vm918_vm1, %v10537_v54, 0.0  ;;  %v12052_v54 = vld [vmem:[#allocation97_spill] sm:$0xff] }
 0xc10   : > { %v6378_v7 = vpop.permute.xlu1 %6377 }
 0xc11   : > { %v6379_v50 = vunpack.i.l.bf16 %v6378_v7  ;;  %v6380_v2 = vunpack.i.h.bf16 %v6378_v7  ;;  %v4460_v21 = vpop.xlane.xlu0 %4459 }
 0xc12   : > { %6877 = vrcp.f32 %v4460_v21  ;;  %v12057_v21 = vld [vmem:[#allocation85_spill] sm:$0xff] }
 0xc13   : > { %4312 = vmax.xlane.f32.xlu1 %v4311_v31  ;;  %v5399_v38 = vsel %vm5396_vm3, %v5366_v39, %v6379_v50  ;;  %v5367_v50 = vsel %vm918_vm1, %v5335_v5, %v6375_v41  ;;  %6879 = vrcp.f32 %v4457_v51  ;;  %v12051_v31 = vld [vmem:[#allocation145_spill] sm:$0xff]  ;;  %v4326_v39 = vsel %vm918_vm1, %v10833_v40, -inf }
 0xc14   : > { %5471 = vmatmul.f32.gmra.mxu0 %v5399_v38  ;;  %v5400_v43 = vsel %vm5396_vm3, %v5367_v50, %v6380_v2  ;;  %6881 = vrcp.f32 %v12050_v12  ;;  %v12055_v2 = vld [vmem:[#allocation117_spill] sm:$0xff]  ;;  %v12056_v50 = vld [vmem:[#allocation91_spill] sm:$0xff] }
 0xc15   : > { %6883 = vrcp.f32 %v12051_v31 }
 0xc16   : > { %6885 = vrcp.f32 %v12052_v54 }
 0xc17   : > { %6422 = vrot.lane.b32.xlu2 %v6421_v23, %s7093_s28  ;;  %v12054_v23 = vld [vmem:[#allocation86_spill] sm:$0xff] }
 0xc18   : > { %v6878_v45 = vpop.eup %6877  ;;  %6887 = vrcp.f32 %v12054_v23  ;;  %v12063_v23 = vld [vmem:[#allocation114_spill] sm:$0xff] }
 0xc19   : > { %v6880_v7 = vpop.eup %6879  ;;  %v4924_v1 = vmul.f32 %v6878_v45, %v4684_v3  ;;  %6889 = vrcp.f32 %v12056_v50  ;;  %v12059_v45 = vld [vmem:[#allocation110_spill] sm:$0xff] }
 0xc1a   : > { %4330 = vmax.xlane.f32.xlu0 %v4329_v59  ;;  %v4923_v41 = vmul.f32 %v6880_v7, %v4681_v29  ;;  %v6882_v38 = vpop.eup %6881  ;;  %6891 = vrcp.f32 %v12057_v21  ;;  %v12058_v29 = vld [vmem:[#allocation93_spill] sm:$0xff] }
 0xc1b   : > { %4462 = vadd.xlane.f32.xlu1 %v4461_v33  ;;  %v6884_v51 = vpop.eup %6883  ;;  %v2670_v6 = vmul.f32 %v6882_v38, %v12053_v61  ;;  %v12061_v38 = vld [vmem:[#allocation118_spill] sm:$0xff]  ;;  %v12062_v61 = vld [vmem:[#allocation141_spill] sm:$0xff] }
 0xc1c   : > { %5474 = vmatmul.f32.gmra.mxu0 %v5400_v43  ;;  %v6426_v17 = vpack.i.bf16 %v4924_v1, %v4923_v41  ;;  %v2669_v5 = vmul.f32 %v6884_v51, %v12055_v2  ;;  %v6886_v33 = vpop.eup %6885 }
 0xc1e   : > { %v6431_v59 = vpack.i.bf16 %v2670_v6, %v2669_v5  ;;  %v6888_v43 = vpop.eup %6887  ;;  %v4476_v6 = vsel %vm918_vm1, %v10574_v49, 0.0  ;;  %v12065_v49 = vld [vmem:[#allocation108_spill] sm:$0xff] }
 0xc1f   : > { %v3798_v7 = vmul.f32 %v6888_v43, %v12059_v45  ;;  %v6890_v12 = vpop.eup %6889 }
 0xc20   : > { %v6892_v41 = vpop.eup %6891  ;;  %v3793_v51 = vmul.f32 %v6890_v12, %v12061_v38 }
 0xc21   : > { %v3794_v2 = vmul.f32 %v6892_v41, %v12063_v23 }
 0xc23   : > { %4468 = vadd.xlane.f32.xlu1 %v4467_v0  ;;  %v3797_v0 = vmul.f32 %v6886_v33, %v12058_v29  ;;  %v6406_v5 = vpack.i.bf16 %v3794_v2, %v3793_v51  ;;  %v12064_v29 = vld [vmem:[#allocation18_spill] sm:$0xff]  ;;  %v12068_v51 = vld [vmem:[#allocation100_spill] sm:$0xff] }
 0xc25   : > { %v6436_v31 = vpack.i.bf16 %v3798_v7, %v3797_v0  ;;  %v12066_v7 = vld [vmem:[#allocation57_spill] sm:$0xff] }
 0xc2b   : > { %4327 = vmax.xlane.f32.xlu1 %v4326_v39  ;;  %v12060_v39 = vld [vmem:[#allocation143_spill] sm:$0xff] }
 0xc2c   : > { %6893 = vrcp.f32 %v12060_v39  ;;  %v4354_v39 = vsub.f32 %v10724_v46, %v10847_v4 }
 0xc2d   : > { %6895 = vrcp.f32 %v12062_v61  ;;  %v12069_v61 = vld [vmem:[#allocation13_spill] sm:$0xff] }
 0xc2e   : > { %6427 = vrot.lane.b32.xlu0 %v6426_v17, %s7088_s22  ;;  %v10912_v17 = vpop.xlane.xlu2 %4306 }
 0xc36   : > { %6432 = vrot.lane.b32.xlu0 %v6431_v59, %s7096_s7  ;;  %v6894_v59 = vpop.eup %6893  ;;  %v10926_v45 = vpop.xlane.xlu2 %4309 }
 0xc37   : > { %v6896_v50 = vpop.eup %6895  ;;  %v2667_v0 = vmul.f32 %v6894_v59, %v12064_v29 }
 0xc3b   : > { %v4289_v3 = vpop.xlane.xlu1 %4288 }
 0xc3c   : > { %v4351_v1 = vsub.f32 %v10669_v34, %v4289_v3  ;;  %v4352_v34 = vsub.f32 %v10688_v18, %v10841_v24  ;;  %v2668_v18 = vmul.f32 %v6896_v50, %v12065_v49 }
 0xc3e   : > { %v4399_v54 = vmul.f32 1.442695, %v4351_v1  ;;  %6437 = vrot.lane.b32.xlu0 %v6436_v31, %s7093_s28  ;;  %v4401_v33 = vmul.f32 1.442695, %v4352_v34  ;;  %v6416_v12 = vpack.i.bf16 %v2668_v18, %v2667_v0  ;;  %v12067_v1 = vld [vmem:[#allocation67_spill] sm:$0xff]  ;;  %v12071_v34 = vld [vmem:[#allocation109_spill] sm:$0xff]  ;;  %v4355_v0 = vsub.f32 %v10732_v16, %v10866_v62 }
 0xc3f   : > { %v12074_v18 = vld [vmem:[#allocation39_spill] sm:$0xff] }
 0xc40   : > { %6897 = vpow2.f32 %v4399_v54  ;;  %4477 = vadd.xlane.f32.xlu2 %v4476_v6  ;;  %v12070_v6 = vld [vmem:[#allocation136_spill] sm:$0xff] }
 0xc41   : > { %6899 = vpow2.f32 %v4401_v33  ;;  %v4405_v33 = vmul.f32 1.442695, %v4354_v39 }
 0xc42   : > { %6901 = vrcp.f32 %v12066_v7 }
 0xc43   : > { %v4295_v43 = vpop.xlane.xlu1 %4294  ;;  %6903 = vrcp.f32 %v12067_v1 }
 0xc44   : > { %6407 = vrot.lane.b32.xlu1 %v6406_v5, %s7093_s28  ;;  %v4353_v24 = vsub.f32 %v10705_v9, %v4295_v43  ;;  %v6393_v9 = vpop.permute.xlu2 %6392  ;;  %v12072_v5 = vld [vmem:[#allocation132_spill] sm:$0xff] }
 0xc45   : > { %v12073_v43 = vld [vmem:[#allocation88_spill] sm:$0xff] }
 0xc46   : > { %v10923_v21 = vpop.eup %6897  ;;  %v4403_v3 = vmul.f32 1.442695, %v4353_v24 }
 0xc47   : > { %6031 = vmatmul.msk.f32.vlgmr.msra.gmra.mxu2 %vm918_vm1, %v10923_v21  ;;  %v6900_v31 = vpop.eup %6899 }
 0xc48   : > { %v6902_v41 = vpop.eup %6901  ;;  %6905 = vpow2.f32 %v4403_v3  ;;  %v12075_v3 = vld [vmem:[#allocation37_spill] sm:$0xff] }
 0xc49   : > { %6907 = vrcp.f32 %v12068_v51  ;;  %v2672_v23 = vmul.f32 %v6902_v41, %v12070_v6  ;;  %v6904_v2 = vpop.eup %6903  ;;  %v12076_v41 = vld [vmem:[#allocation171_spill] sm:$0xff] }
 0xc4a   : > { %6909 = vrcp.f32 %v12069_v61  ;;  %v2671_v59 = vmul.f32 %v6904_v2, %v12072_v5  ;;  %v6394_v61 = vunpack.i.l.bf16 %v6393_v9  ;;  %v12077_v5 = vld [vmem:[#allocation52_spill] sm:$0xff] }
 0xc4b   : > { %6911 = vrcp.f32 %v12071_v34 }
 0xc4c   : > { %6417 = vrot.lane.b32.xlu1 %v6416_v12, %s7096_s7  ;;  %v6446_v46 = vpack.i.bf16 %v2672_v23, %v2671_v59  ;;  %6913 = vrcp.f32 %v12073_v43  ;;  %v6398_v7 = vpop.permute.xlu2 %6397  ;;  %v6395_v43 = vunpack.i.h.bf16 %v6393_v9 }
 0xc4d   : > { %6915 = vpow2.f32 %v4405_v33  ;;  %v6399_v23 = vunpack.i.l.bf16 %v6398_v7  ;;  %v4356_v33 = vsub.f32 %v10735_v28, %v10876_v55  ;;  %v4357_v55 = vsub.f32 %v10746_v48, %v10912_v17 }
 0xc4e   : > { %v10945_v50 = vpop.eup %6905  ;;  %v4473_v48 = vsel %vm918_vm1, %v10564_v27, 0.0 }
 0xc4f   : > { %6032 = vmatmul.msk.f32.gmra.mxu2 %vm918_vm1, %v6900_v31  ;;  %v6908_v4 = vpop.eup %6907 }
 0xc50   : > { %v5469_v38 = vpop.f32.mrf.mxu0  ;;  %v6910_v29 = vpop.eup %6909  ;;  %v3799_v24 = vmul.f32 %v6908_v4, %v12074_v18  ;;  %v6400_v18 = vunpack.i.h.bf16 %v6398_v7  ;;  %v4358_v7 = vsub.f32 %v10759_v32, %v10926_v45 }
 0xc51   : > { %v5470_v54 = vadd.f32 %v10854_v19, %v5469_v38  ;;  %v6912_v49 = vpop.eup %6911  ;;  %v1503_v1 = vmul.f32 %v6910_v29, %v12075_v3  ;;  %v4407_v38 = vmul.f32 1.442695, %v4355_v0  ;;  %v4409_v29 = vmul.f32 1.442695, %v4356_v33  ;;  %v4687_v32 = vpop.f32.mrf.mxu1 }
 0xc52   : > { %v3800_v39 = vmul.f32 %v6912_v49, %v12076_v41  ;;  %v4479_v41 = vsel %vm918_vm1, %v10923_v21, 0.0 }
 0xc53   : > { %5563 = vst [vmem:[%s10861_s29 + $0x8] sm:$0xff] %v5470_v54  ;;  %v6914_v54 = vpop.eup %6913  ;;  %6917 = vpow2.f32 %v4407_v38 }
 0xc54   : > { %v6916_v6 = vpop.eup %6915  ;;  %v6451_v34 = vpack.i.bf16 %v3800_v39, %v3799_v24  ;;  %v1504_v59 = vmul.f32 %v6914_v54, %v12077_v5  ;;  %v4482_v24 = vsel %vm918_vm1, %v6900_v31, 0.0  ;;  %6919 = vpow2.f32 %v4409_v29  ;;  %v4316_v9 = vpop.xlane.xlu2 %4315  ;;  %v12078_v5 = vld [vmem:[#allocation41_spill] sm:$0xff] }
 0xc55   : > { %v4413_v31 = vmul.f32 1.442695, %v4358_v7  ;;  %v4488_v54 = vsel %vm918_vm1, %v6916_v6, 0.0 }
 0xc57   : > { %6033 = vmatmul.msk.f32.gmra.mxu2 %vm918_vm1, %v10945_v50 }
 0xc58   : > { %6447 = vrot.lane.b32.xlu2 %v6446_v46, %s7096_s7 }
 0xc59   : > { %v10966_v49 = vpop.eup %6917 }
 0xc5a   : > { %v10974_v3 = vpop.eup %6919 }
 0xc5b   : > { %v6388_v12 = vpop.permute.xlu1 %6387 }
 0xc5c   : > { %v6389_v51 = vunpack.i.l.bf16 %v6388_v12  ;;  %v6390_v2 = vunpack.i.h.bf16 %v6388_v12  ;;  %v4411_v12 = vmul.f32 1.442695, %v4357_v55  ;;  %v11004_v55 = vpop.permute.xlu0 %6402 }
 0xc5e   : > { %v5336_v16 = vsel %vm5331_vm2, %v1503_v1, %v6389_v51  ;;  %v5337_v4 = vsel %vm5331_vm2, %v1504_v59, %v6390_v2  ;;  %6921 = vpow2.f32 %v4411_v12  ;;  %v4319_v1 = vpop.xlane.xlu2 %4318  ;;  %v4360_v2 = vsub.f32 %v10791_v22, %v4316_v9 }
 0xc5f   : > { %6034 = vmatmul.msk.f32.gmra.mxu2 %vm918_vm1, %v6916_v6  ;;  %v5368_v62 = vsel %vm918_vm1, %v5336_v16, %v6394_v61  ;;  %v5369_v0 = vsel %vm918_vm1, %v5337_v4, %v6395_v43  ;;  %6923 = vpow2.f32 %v4413_v31  ;;  %v4690_v61 = vpop.f32.mrf.mxu1  ;;  %v4361_v22 = vsub.f32 %v10793_v52, %v4319_v1  ;;  %v12080_v52 = vld [vmem:[#allocation103_spill] sm:$0xff] }
 0xc60   : > { %6452 = vrot.lane.b32.xlu2 %v6451_v34, %s7093_s28  ;;  %v5401_v46 = vsel %vm5396_vm3, %v5368_v62, %v6399_v23  ;;  %v5402_v28 = vsel %vm5396_vm3, %v5369_v0, %v6400_v18  ;;  %v4417_v34 = vmul.f32 1.442695, %v4360_v2  ;;  %v12083_v2 = vld [vmem:[#allocation106_spill] sm:$0xff] }
 0xc61   : > { %5477 = vmatmul.f32.gmra.mxu0 %v5401_v46  ;;  %v12079_v46 = vld [vmem:[#allocation166_spill] sm:$0xff]  ;;  %v4419_v18 = vmul.f32 1.442695, %v4361_v22 }
 0xc64   : > { %v10982_v17 = vpop.eup %6921 }
 0xc65   : > { %v10988_v39 = vpop.eup %6923 }
 0xc66   : > { %v4322_v38 = vpop.xlane.xlu2 %4321 }
 0xc67   : > { %6035 = vmatmul.msk.f32.gmra.mxu2 %vm918_vm1, %v10966_v49  ;;  %v4693_v33 = vpop.f32.mrf.mxu1 }
 0xc68   : > { %4483 = vadd.xlane.f32.xlu0 %v4482_v24 }
 0xc69   : > { %5480 = vmatmul.f32.gmra.mxu0 %v5402_v28 }
 0xc6e   : > { %v4466_v51 = vpop.xlane.xlu2 %4465 }
 0xc6f   : > { %6036 = vmatmul.msk.f32.gmra.mxu2 %vm918_vm1, %v10974_v3 }
 0xc76   : > { %4474 = vadd.xlane.f32.xlu1 %v4473_v48  ;;  %v12081_v48 = vld [vmem:[#allocation92_spill] sm:$0xff] }
 0xc77   : > { %6037 = vmatmul.msk.f32.gmra.mxu2 %vm918_vm1, %v10982_v17 }
 0xc7e   : > { %4480 = vadd.xlane.f32.xlu1 %v4479_v41 }
 0xc7f   : > { %6038 = vmatmul.msk.f32.gmra.mxu2 %vm918_vm1, %v10988_v39 }
 0xc86   : > { %v4313_v45 = vpop.xlane.xlu1 %4312 }
 0xc87   : > { %v4359_v27 = vsub.f32 %v10783_v10, %v4313_v45  ;;  %v4472_v10 = vpop.xlane.xlu2 %4471 }
 0xc89   : > { %v4415_v23 = vmul.f32 1.442695, %v4359_v27  ;;  %4489 = vadd.xlane.f32.xlu2 %v4488_v54  ;;  %v12082_v27 = vld [vmem:[#allocation84_spill] sm:$0xff]  ;;  %v4696_v54 = vpop.f32.mrf.mxu1 }
 0xc8b   : > { %6925 = vpow2.f32 %v4415_v23 }
 0xc8c   : > { %6927 = vrcp.f32 %v4466_v51 }
 0xc8e   : > { %v4463_v21 = vpop.xlane.xlu1 %4462 }
 0xc8f   : > { %6929 = vrcp.f32 %v4463_v21 }
 0xc90   : > { %6931 = vrcp.f32 %v12078_v5  ;;  %v4325_v5 = vpop.xlane.xlu0 %4324 }
 0xc91   : > { %v10995_v16 = vpop.eup %6925  ;;  %v5472_v62 = vpop.f32.mrf.mxu0  ;;  %6933 = vpow2.f32 %v4417_v34 }
 0xc92   : > { %v5473_v59 = vadd.f32 %v10854_v19, %v5472_v62  ;;  %6039 = vmatmul.msk.f32.vlgmr.msra.gmra.mxu3 %vm918_vm1, %v10995_v16  ;;  %v6928_v6 = vpop.eup %6927  ;;  %6935 = vrcp.f32 %v12079_v46  ;;  %v12086_v46 = vld [vmem:[#allocation99_spill] sm:$0xff] }
 0xc93   : > { %6937 = vrcp.f32 %v4472_v10  ;;  %v4926_v43 = vmul.f32 %v6928_v6, %v4690_v61  ;;  %v12084_v6 = vld [vmem:[#allocation111_spill] sm:$0xff] }
 0xc94   : > { %5564 = vst [vmem:[%s10861_s29 + $0x10] sm:$0xff] %v5473_v59 }
 0xc95   : > { %v6930_v4 = vpop.eup %6929 }
 0xc96   : > { %v4925_v29 = vmul.f32 %v6930_v4, %v4687_v32  ;;  %v4469_v0 = vpop.xlane.xlu1 %4468  ;;  %v6932_v24 = vpop.eup %6931  ;;  %v4362_v32 = vsub.f32 %v10803_v44, %v4322_v38  ;;  %v4363_v44 = vsub.f32 %v10819_v58, %v4325_v5  ;;  %v12085_v38 = vld [vmem:[#allocation137_spill] sm:$0xff]  ;;  %v12087_v4 = vld [vmem:[#allocation128_spill] sm:$0xff] }
 0xc97   : > { %6939 = vrcp.f32 %v4469_v0  ;;  %v11006_v9 = vpop.eup %6933  ;;  %v2676_v41 = vmul.f32 %v6932_v24, %v12081_v48  ;;  %v12090_v48 = vld [vmem:[#allocation174_spill] sm:$0xff] }
 0xc98   : > { %v6441_v28 = vpack.i.bf16 %v4926_v43, %v4925_v29  ;;  %v6936_v7 = vpop.eup %6935  ;;  %6941 = vrcp.f32 %v12080_v52  ;;  %v4421_v21 = vmul.f32 1.442695, %v4362_v32  ;;  %v4423_v29 = vmul.f32 1.442695, %v4363_v44  ;;  %v12091_v32 = vld [vmem:[#allocation55_spill] sm:$0xff] }
 0xc99   : > { %v5475_v12 = vpop.f32.mrf.mxu0  ;;  %v6938_v1 = vpop.eup %6937  ;;  %6943 = vpow2.f32 %v4419_v18  ;;  %v2675_v51 = vmul.f32 %v6936_v7, %v12082_v27  ;;  %v12088_v7 = vpack.i.bf16 %v10504_v15, %v10502_v14  ;;  %v12092_v15 = vld [vmem:[#allocation142_spill] sm:$0xff] }
 0xc9a   : > { %v5476_v31 = vadd.f32 %v10854_v19, %v5475_v12  ;;  %6040 = vmatmul.msk.f32.gmra.mxu3 %vm918_vm1, %v11006_v9  ;;  %6442 = vrot.lane.b32.xlu1 %v6441_v28, %s7088_s22  ;;  %v4928_v61 = vmul.f32 %v6938_v1, %v4696_v54  ;;  %6945 = vrcp.f32 %v12083_v2  ;;  %v6413_v18 = vpop.permute.xlu0 %6412  ;;  %v6404_v54 = vunpack.i.l.bf16 %v11004_v55 }
 0xc9b   : > { %v6476_v34 = vpack.i.bf16 %v2676_v41, %v2675_v51  ;;  %6947 = vrcp.f32 %v12084_v6  ;;  %v4334_v6 = vpop.xlane.xlu2 %4333 }
 0xc9c   : > { %5565 = vst [vmem:[%s10861_s29 + $0x18] sm:$0xff] %v5476_v31  ;;  %6949 = vpow2.f32 %v4421_v21  ;;  %v12089_v31 = vld [vmem:[#allocation178_spill] sm:$0xff] }
 0xc9d   : > { %v6940_v45 = vpop.eup %6939  ;;  %6951 = vrcp.f32 %v12086_v46 }
 0xc9e   : > { %v4927_v23 = vmul.f32 %v6940_v45, %v4693_v33  ;;  %v6942_v62 = vpop.eup %6941  ;;  %v4328_v24 = vpop.xlane.xlu1 %4327  ;;  %6953 = vpow2.f32 %v4423_v29  ;;  %v12095_v29 = vld [vmem:[#allocation54_spill] sm:$0xff] }
 0xc9f   : > { %v11018_v59 = vpop.eup %6943  ;;  %v2673_v33 = vmul.f32 %v6942_v62, %v12085_v38  ;;  %v4364_v52 = vsub.f32 %v10833_v40, %v4328_v24  ;;  %6955 = vrcp.f32 %v12091_v32 }
 0xca0   : > { %v6456_v10 = vpack.i.bf16 %v4928_v61, %v4927_v23  ;;  %v6946_v22 = vpop.eup %6945  ;;  %6957 = vrcp.f32 %v12092_v15  ;;  %v12093_v23 = vld [vmem:[#allocation56_spill] sm:$0xff] }
 0xca1   : > { %6477 = vrot.lane.b32.xlu2 %v6476_v34, %s7096_s7  ;;  %v2674_v43 = vmul.f32 %v6946_v22, %v12087_v4  ;;  %v6948_v0 = vpop.eup %6947  ;;  %v4425_v45 = vmul.f32 1.442695, %v4364_v52  ;;  %v6405_v22 = vunpack.i.h.bf16 %v11004_v55  ;;  %v4366_v4 = vsub.f32 %v10845_v42, %v4334_v6 }
 0xca2   : > { %6041 = vmatmul.msk.f32.gmra.mxu3 %vm918_vm1, %v11018_v59  ;;  %6457 = vrot.lane.b32.xlu0 %v6456_v10, %s7088_s22  ;;  %v11029_v12 = vpop.eup %6949  ;;  %v3802_v1 = vmul.f32 %v6948_v0, %v12089_v31  ;;  %v4331_v27 = vpop.xlane.xlu0 %4330  ;;  %v6414_v10 = vunpack.i.l.bf16 %v6413_v18  ;;  %v6415_v55 = vunpack.i.h.bf16 %v6413_v18 }
 0xca3   : > { %v6461_v28 = vpack.i.bf16 %v2674_v43, %v2673_v33  ;;  %v6952_v58 = vpop.eup %6951  ;;  %v4365_v40 = vsub.f32 %v10839_v8, %v4331_v27  ;;  %6959 = vpow2.f32 %v4425_v45  ;;  %v12094_v33 = vld [vmem:[#allocation140_spill] sm:$0xff]  ;;  %v6423_v32 = vpop.permute.xlu2 %6422  ;;  %v4485_v27 = vsel %vm918_vm1, %v10945_v50, 0.0 }
 0xca4   : > { %v3801_v41 = vmul.f32 %v6952_v58, %v12090_v48  ;;  %v11042_v14 = vpop.eup %6953  ;;  %6961 = vrcp.f32 %v12094_v33  ;;  %v4429_v58 = vmul.f32 1.442695, %v4366_v4  ;;  %v12096_v48 = vld [vmem:[#allocation144_spill] sm:$0xff]  ;;  %v4500_v4 = vsel %vm918_vm1, %v10988_v39, 0.0 }
 0xca5   : > { %v6956_v61 = vpop.eup %6955  ;;  %v4427_v34 = vmul.f32 1.442695, %v4365_v40 }
 0xca6   : > { %v6466_v51 = vpack.i.bf16 %v3802_v1, %v3801_v41  ;;  %v1505_v2 = vmul.f32 %v6956_v61, %v12093_v23  ;;  %v6958_v5 = vpop.eup %6957  ;;  %v12097_v41 = vld [vmem:[#allocation80_spill] sm:$0xff] }
 0xca7   : > { %6963 = vpow2.f32 %v4427_v34  ;;  %v1506_v0 = vmul.f32 %v6958_v5, %v12095_v29 }
 0xca8   : > { %v5338_v44 = vsel %vm5331_vm2, %v1505_v2, %v6404_v54  ;;  %6965 = vrcp.f32 %v12096_v48 }
 0xca9   : > { %6482 = vrot.lane.b32.xlu2 %v12088_v7, %s7093_s28  ;;  %v11052_v38 = vpop.eup %6959  ;;  %6967 = vpow2.f32 %v4429_v58 }
 0xcaa   : > { %6042 = vmatmul.msk.f32.gmra.mxu3 %vm918_vm1, %v11029_v12  ;;  %6462 = vrot.lane.b32.xlu0 %v6461_v28, %s7096_s7  ;;  %v5339_v28 = vsel %vm5331_vm2, %v1506_v0, %v6405_v22  ;;  %v6962_v7 = vpop.eup %6961  ;;  %v6428_v15 = vpop.permute.xlu0 %6427  ;;  %v4494_v22 = vsel %vm918_vm1, %v10974_v3, 0.0  ;;  %v4503_v3 = vsel %vm918_vm1, %v10995_v16, 0.0 }
 0xcab   : > { %v1507_v42 = vmul.f32 %v6962_v7, %v12097_v41  ;;  %v6429_v61 = vunpack.i.l.bf16 %v6428_v15  ;;  %v4699_v0 = vpop.f32.mrf.mxu1 }
 0xcad   : > { %v11064_v1 = vpop.eup %6963 }
 0xcae   : > { %v6966_v40 = vpop.eup %6965 }
 0xcaf   : > { %v11075_v2 = vpop.eup %6967 }
 0xcb2   : > { %6467 = vrot.lane.b32.xlu0 %v6466_v51, %s7093_s28  ;;  %6043 = vmatmul.msk.f32.gmra.mxu3 %vm918_vm1, %v11042_v14  ;;  %v6424_v51 = vunpack.i.l.bf16 %v6423_v32 }
 0xcb3   : > { %v4478_v29 = vpop.xlane.xlu2 %4477 }
 0xcb4   : > { %6969 = vrcp.f32 %v4478_v29 }
 0xcb6   : > { %v6408_v21 = vpop.permute.xlu1 %6407 }
 0xcb7   : > { %v6409_v62 = vunpack.i.l.bf16 %v6408_v21  ;;  %v6410_v43 = vunpack.i.h.bf16 %v6408_v21  ;;  %v12098_v21 = vld [vmem:[#allocation150_spill] sm:$0xff] }
 0xcb8   : > { %v1508_v34 = vmul.f32 %v6966_v40, %v12098_v21  ;;  %v12101_v21 = vld [vmem:[#allocation98_spill] sm:$0xff] }
 0xcb9   : > { %v5370_v8 = vsel %vm918_vm1, %v5338_v44, %v6409_v62  ;;  %v5371_v52 = vsel %vm918_vm1, %v5339_v28, %v6410_v43  ;;  %v4491_v62 = vsel %vm918_vm1, %v10966_v49, 0.0  ;;  %v6430_v44 = vunpack.i.h.bf16 %v6428_v15 }
 0xcba   : > { %6044 = vmatmul.msk.f32.gmra.mxu3 %vm918_vm1, %v11052_v38  ;;  %v5403_v46 = vsel %vm5396_vm3, %v5370_v8, %v6414_v10  ;;  %v5404_v45 = vsel %vm5396_vm3, %v5371_v52, %v6415_v55  ;;  %v6425_v10 = vunpack.i.h.bf16 %v6423_v32  ;;  %v11086_v8 = vpop.permute.xlu0 %6432  ;;  %v6970_v52 = vpop.eup %6969 }
 0xcbb   : > { %5483 = vmatmul.f32.gmra.mxu0 %v5403_v46 }
 0xcbe   : > { %v6418_v24 = vpop.permute.xlu1 %6417 }
 0xcbf   : > { %v6419_v31 = vunpack.i.l.bf16 %v6418_v24  ;;  %v6420_v23 = vunpack.i.h.bf16 %v6418_v24 }
 0xcc1   : > { %v5340_v18 = vsel %vm5331_vm2, %v1507_v42, %v6419_v31  ;;  %v5341_v5 = vsel %vm5331_vm2, %v1508_v34, %v6420_v23  ;;  %v4702_v31 = vpop.f32.mrf.mxu1 }
 0xcc2   : > { %6045 = vmatmul.msk.f32.gmra.mxu3 %vm918_vm1, %v11064_v1  ;;  %v5372_v54 = vsel %vm918_vm1, %v5340_v18, %v6424_v51  ;;  %v5373_v6 = vsel %vm918_vm1, %v5341_v5, %v6425_v10  ;;  %v11094_v43 = vpop.permute.xlu0 %6437  ;;  %v4930_v48 = vmul.f32 %v6970_v52, %v4702_v31  ;;  %v12100_v51 = vld [vmem:[#allocation124_spill] sm:$0xff]  ;;  %v12103_v5 = vld [vmem:[#allocation31_spill] sm:$0xff] }
 0xcc3   : > { %5486 = vmatmul.f32.gmra.mxu0 %v5404_v45  ;;  %v5405_v50 = vsel %vm5396_vm3, %v5372_v54, %v6429_v61  ;;  %v5406_v33 = vsel %vm5396_vm3, %v5373_v6, %v6430_v44  ;;  %v12104_v6 = vld [vmem:[#allocation38_spill] sm:$0xff] }
 0xcc4   : > { %4486 = vadd.xlane.f32.xlu1 %v4485_v27  ;;  %v12099_v27 = vld [vmem:[#allocation175_spill] sm:$0xff] }
 0xcca   : > { %6046 = vmatmul.msk.f32.gmra.mxu3 %vm918_vm1, %v11075_v2  ;;  %v4770_v55 = vpop.f32.mrf.mxu2 }
 0xccb   : > { %5489 = vmatmul.f32.gmra.mxu0 %v5405_v50  ;;  %v12102_v50 = vld [vmem:[#allocation90_spill] sm:$0xff] }
 0xccc   : > { %4492 = vadd.xlane.f32.xlu1 %v4491_v62 }
 0xcd2   : > { %v4773_v16 = vpop.f32.mrf.mxu2 }
 0xcd3   : > { %5492 = vmatmul.f32.gmra.mxu0 %v5406_v33  ;;  %v12105_v33 = vld [vmem:[#allocation134_spill] sm:$0xff] }
 0xcdb   : > { %v4484_v58 = vpop.xlane.xlu0 %4483 }
 0xcdc   : > { %4495 = vadd.xlane.f32.xlu0 %v4494_v22  ;;  %v6434_v22 = vunpack.i.l.bf16 %v11086_v8 }
 0xcde   : > { %v5478_v46 = vpop.f32.mrf.mxu0 }
 0xcdf   : > { %v5479_v49 = vadd.f32 %v10854_v19, %v5478_v46  ;;  %v12106_v46 = vld [vmem:[#allocation146_spill] sm:$0xff] }
 0xce1   : > { %5566 = vst [vmem:[%s10861_s29 + $0x20] sm:$0xff] %v5479_v49  ;;  %v6439_v49 = vunpack.i.l.bf16 %v11094_v43 }
 0xce4   : > { %4501 = vadd.xlane.f32.xlu0 %v4500_v4  ;;  %v12107_v4 = vld [vmem:[#allocation77_spill] sm:$0xff] }
 0xce6   : > { %v5481_v24 = vpop.f32.mrf.mxu0 }
 0xce7   : > { %v5482_v28 = vadd.f32 %v10854_v19, %v5481_v24 }
 0xce9   : > { %5567 = vst [vmem:[%s10861_s29 + $0x28] sm:$0xff] %v5482_v28  ;;  %v4475_v7 = vpop.xlane.xlu1 %4474  ;;  %v6448_v28 = vpop.permute.xlu2 %6447 }
 0xcea   : > { %6971 = vrcp.f32 %v4475_v7 }
 0xceb   : > { %6973 = vrcp.f32 %v4484_v58 }
 0xcec   : > { %4504 = vadd.xlane.f32.xlu0 %v4503_v3  ;;  %v12108_v3 = vpack.i.bf16 %v10525_v60, %v10604_v57  ;;  %v6440_v60 = vunpack.i.h.bf16 %v11094_v43  ;;  %v12112_v57 = vld [vmem:[#allocation151_spill] sm:$0xff]  ;;  %v6449_v43 = vunpack.i.l.bf16 %v6448_v28 }
 0xcf0   : > { %v6972_v39 = vpop.eup %6971 }
 0xcf1   : > { %v4929_v41 = vmul.f32 %v6972_v39, %v4699_v0  ;;  %v4481_v42 = vpop.xlane.xlu1 %4480  ;;  %v6974_v45 = vpop.eup %6973  ;;  %v12109_v39 = vld [vmem:[#allocation107_spill] sm:$0xff] }
 0xcf2   : > { %6975 = vrcp.f32 %v4481_v42  ;;  %v4932_v15 = vmul.f32 %v6974_v45, %v4773_v16  ;;  %v12110_v42 = vld [vmem:[#allocation119_spill] sm:$0xff]  ;;  %v6435_v45 = vunpack.i.h.bf16 %v11086_v8 }
 0xcf3   : > { %v6471_v32 = vpack.i.bf16 %v4930_v48, %v4929_v41  ;;  %6977 = vrcp.f32 %v12099_v27  ;;  %v12111_v27 = vld [vmem:[#allocation63_spill] sm:$0xff] }
 0xcf4   : > { %6979 = vrcp.f32 %v12100_v51 }
 0xcf5   : > { %6472 = vrot.lane.b32.xlu1 %v6471_v32, %s7088_s22  ;;  %6981 = vrcp.f32 %v12103_v5  ;;  %v12116_v5 = vld [vmem:[#allocation152_spill] sm:$0xff] }
 0xcf6   : > { %6983 = vrcp.f32 %v12104_v6 }
 0xcf7   : > { %6985 = vrcp.f32 %v12105_v33  ;;  %v12117_v33 = vpack.i.bf16 %v10610_v37, %v10591_v30  ;;  %v12120_v37 = vld [vmem:[#allocation153_spill] sm:$0xff] }
 0xcf8   : > { %v6976_v18 = vpop.eup %6975  ;;  %6987 = vrcp.f32 %v12106_v46 }
 0xcf9   : > { %v4931_v40 = vmul.f32 %v6976_v18, %v4770_v55  ;;  %v6978_v61 = vpop.eup %6977  ;;  %6989 = vrcp.f32 %v12111_v27 }
 0xcfa   : > { %v6980_v23 = vpop.eup %6979  ;;  %v2678_v34 = vmul.f32 %v6978_v61, %v12101_v21  ;;  %v6453_v61 = vpop.permute.xlu2 %6452  ;;  %v12114_v21 = vld [vmem:[#allocation16_spill] sm:$0xff] }
 0xcfb   : > { %v6486_v54 = vpack.i.bf16 %v4932_v15, %v4931_v40  ;;  %v2677_v62 = vmul.f32 %v6980_v23, %v12102_v50  ;;  %v6982_v44 = vpop.eup %6981  ;;  %v12113_v40 = vld [vmem:[#allocation44_spill] sm:$0xff]  ;;  %v6455_v30 = vunpack.i.h.bf16 %v6453_v61 }
 0xcfc   : > { %v1509_v29 = vmul.f32 %v6982_v44, %v12107_v4  ;;  %v6984_v0 = vpop.eup %6983  ;;  %6991 = vrcp.f32 %v12113_v40  ;;  %v12115_v50 = vld [vmem:[#allocation96_spill] sm:$0xff] }
 0xcfd   : > { %6487 = vrot.lane.b32.xlu2 %v6486_v54, %s7088_s22  ;;  %v6491_v10 = vpack.i.bf16 %v2678_v34, %v2677_v62  ;;  %v6986_v52 = vpop.eup %6985  ;;  %v2679_v31 = vmul.f32 %v6984_v0, %v12109_v39  ;;  %6993 = vrcp.f32 %v12114_v21  ;;  %v6454_v62 = vunpack.i.l.bf16 %v6453_v61 }
 0xcfe   : > { %v5342_v58 = vsel %vm5331_vm2, %v1509_v29, %v6434_v22  ;;  %v6988_v41 = vpop.eup %6987  ;;  %v2680_v32 = vmul.f32 %v6986_v52, %v12110_v42  ;;  %6995 = vrcp.f32 %v12115_v50  ;;  %v12118_v29 = vld [vmem:[#allocation164_spill] sm:$0xff]  ;;  %v6450_v52 = vunpack.i.h.bf16 %v6448_v28 }
 0xcff   : > { %v5374_v55 = vsel %vm918_vm1, %v5342_v58, %v6439_v49  ;;  %v1510_v18 = vmul.f32 %v6988_v41, %v12112_v57  ;;  %v6990_v8 = vpop.eup %6989  ;;  %v4497_v49 = vsel %vm918_vm1, %v10982_v17, 0.0  ;;  %v4509_v28 = vsel %vm918_vm1, %v11018_v59, 0.0 }
 0xd00   : > { %v6506_v16 = vpack.i.bf16 %v2680_v32, %v2679_v31  ;;  %v4515_v50 = vsel %vm918_vm1, %v11042_v14, 0.0  ;;  %v12121_v14 = vld [vmem:[#allocation105_spill] sm:$0xff] }
 0xd01   : > { %v5343_v15 = vsel %vm5331_vm2, %v1510_v18, %v6435_v45  ;;  %v4776_v45 = vpop.f32.mrf.mxu2 }
 0xd02   : > { %v5375_v54 = vsel %vm918_vm1, %v5343_v15, %v6440_v60  ;;  %v6992_v44 = vpop.eup %6991  ;;  %v4490_v32 = vpop.xlane.xlu2 %4489 }
 0xd03   : > { %v6994_v46 = vpop.eup %6993  ;;  %v2682_v0 = vmul.f32 %v6992_v44, %v12118_v29  ;;  %6997 = vrcp.f32 %v4490_v32  ;;  %v4521_v44 = vsel %vm918_vm1, %v11064_v1, 0.0  ;;  %v12123_v1 = vld [vmem:[#allocation154_spill] sm:$0xff] }
 0xd05   : > { %6492 = vrot.lane.b32.xlu2 %v6491_v10, %s7096_s7  ;;  %v1511_v10 = vmul.f32 %v6990_v8, %v12116_v5 }
 0xd07   : > { %v5344_v22 = vsel %vm5331_vm2, %v1511_v10, %v6449_v43 }
 0xd08   : > { %v5376_v4 = vsel %vm918_vm1, %v5344_v22, %v6454_v62 }
 0xd0a   : > { %v6478_v29 = vpop.permute.xlu2 %6477 }
 0xd0c   : > { %v6443_v24 = vpop.permute.xlu1 %6442 }
 0xd0d   : > { %v6444_v7 = vunpack.i.l.bf16 %v6443_v24  ;;  %6497 = vrot.lane.b32.xlu2 %v12108_v3, %s7093_s28  ;;  %v6445_v51 = vunpack.i.h.bf16 %v6443_v24  ;;  %v12119_v3 = vld [vmem:[#allocation123_spill] sm:$0xff] }
 0xd0e   : > { %v2681_v58 = vmul.f32 %v6994_v46, %v12119_v3 }
 0xd0f   : > { %v5407_v48 = vsel %vm5396_vm3, %v5374_v55, %v6444_v7  ;;  %v5408_v23 = vsel %vm5396_vm3, %v5375_v54, %v6445_v51  ;;  %v6996_v7 = vpop.eup %6995 }
 0xd10   : > { %5495 = vmatmul.f32.gmra.mxu0 %v5407_v48  ;;  %v1512_v55 = vmul.f32 %v6996_v7, %v12120_v37  ;;  %v6521_v31 = vpack.i.bf16 %v2682_v0, %v2681_v58  ;;  %v4506_v48 = vsel %vm918_vm1, %v11006_v9, 0.0  ;;  %v6998_v9 = vpop.eup %6997  ;;  %v12124_v58 = vld [vmem:[#allocation102_spill] sm:$0xff] }
 0xd12   : > { %v5345_v17 = vsel %vm5331_vm2, %v1512_v55, %v6450_v52 }
 0xd13   : > { %v5377_v41 = vsel %vm918_vm1, %v5345_v17, %v6455_v30 }
 0xd14   : > { %v6458_v34 = vpop.permute.xlu0 %6457 }
 0xd15   : > { %6507 = vrot.lane.b32.xlu2 %v6506_v16, %s7096_s7  ;;  %v6459_v6 = vunpack.i.l.bf16 %v6458_v34  ;;  %v6460_v39 = vunpack.i.h.bf16 %v6458_v34  ;;  %v4779_v16 = vpop.f32.mrf.mxu2 }
 0xd16   : > { %v4934_v15 = vmul.f32 %v6998_v9, %v4779_v16  ;;  %v6479_v16 = vunpack.i.l.bf16 %v6478_v29 }
 0xd17   : > { %v5409_v24 = vsel %vm5396_vm3, %v5376_v4, %v6459_v6  ;;  %v5410_v42 = vsel %vm5396_vm3, %v5377_v41, %v6460_v39 }
 0xd18   : > { %5498 = vmatmul.f32.gmra.mxu0 %v5408_v23 }
 0xd1c   : > { %v6463_v18 = vpop.permute.xlu0 %6462 }
 0xd1d   : > { %6512 = vrot.lane.b32.xlu2 %v12117_v33, %s7093_s28  ;;  %v4782_v43 = vpop.f32.mrf.mxu2  ;;  %v6465_v17 = vunpack.i.h.bf16 %v6463_v18 }
 0xd1f   : > { %4498 = vadd.xlane.f32.xlu1 %v4497_v49 }
 0xd20   : > { %5501 = vmatmul.f32.gmra.mxu0 %v5409_v24  ;;  %v6464_v24 = vunpack.i.l.bf16 %v6463_v18 }
 0xd24   : > { %v6468_v23 = vpop.permute.xlu0 %6467 }
 0xd25   : > { %6522 = vrot.lane.b32.xlu2 %v6521_v31, %s7096_s7  ;;  %v4785_v22 = vpop.f32.mrf.mxu2  ;;  %v6469_v7 = vunpack.i.l.bf16 %v6468_v23  ;;  %v6483_v31 = vpop.permute.xlu2 %6482  ;;  %v6470_v41 = vunpack.i.h.bf16 %v6468_v23 }
 0xd27   : > { %4507 = vadd.xlane.f32.xlu1 %v4506_v48  ;;  %v12125_v48 = vld [vmem:[#allocation120_spill] sm:$0xff] }
 0xd28   : > { %5504 = vmatmul.f32.gmra.mxu0 %v5410_v42  ;;  %v12126_v42 = vld [vmem:[#allocation71_spill] sm:$0xff] }
 0xd2f   : > { %4510 = vadd.xlane.f32.xlu1 %v4509_v28 }
 0xd37   : > { %v4487_v27 = vpop.xlane.xlu1 %4486 }
 0xd38   : > { %6999 = vrcp.f32 %v4487_v27  ;;  %v5484_v60 = vpop.f32.mrf.mxu0 }
 0xd39   : > { %v5485_v57 = vadd.f32 %v10854_v19, %v5484_v60 }
 0xd3b   : > { %5568 = vst [vmem:[%s10861_s29 + $0x30] sm:$0xff] %v5485_v57  ;;  %v12128_v57 = vld [vmem:[#allocation184_spill] sm:$0xff] }
 0xd3e   : > { %v7000_v51 = vpop.eup %6999 }
 0xd3f   : > { %v4933_v40 = vmul.f32 %v7000_v51, %v4776_v45  ;;  %v4493_v34 = vpop.xlane.xlu1 %4492  ;;  %v12127_v45 = vpack.i.bf16 %v10719_v11, %v10722_v20  ;;  %v12129_v51 = vld [vmem:[#allocation173_spill] sm:$0xff]  ;;  %v12131_v11 = vpack.i.bf16 %v10787_v36, %v10690_v63  ;;  %v12132_v20 = vld [vmem:[#allocation94_spill] sm:$0xff]  ;;  %v6485_v63 = vunpack.i.h.bf16 %v6483_v31 }
 0xd40   : > { %v5487_v54 = vpop.f32.mrf.mxu0  ;;  %7001 = vrcp.f32 %v4493_v34  ;;  %v12135_v36 = vld [vmem:[#allocation50_spill] sm:$0xff] }
 0xd41   : > { %v5488_v59 = vadd.f32 %v10854_v19, %v5487_v54  ;;  %v6501_v61 = vpack.i.bf16 %v4934_v15, %v4933_v40  ;;  %v6484_v15 = vunpack.i.l.bf16 %v6483_v31  ;;  %v12130_v40 = vld [vmem:[#allocation58_spill] sm:$0xff] }
 0xd43   : > { %5569 = vst [vmem:[%s10861_s29 + $0x38] sm:$0xff] %v5488_v59  ;;  %6502 = vrot.lane.b32.xlu0 %v6501_v61, %s7088_s22 }
 0xd46   : > { %v7002_v6 = vpop.eup %7001 }
 0xd47   : > { %v4935_v46 = vmul.f32 %v7002_v6, %v4782_v43  ;;  %v12133_v43 = vld [vmem:[#allocation169_spill] sm:$0xff] }
 0xd48   : > { %v5490_v8 = vpop.f32.mrf.mxu0 }
 0xd49   : > { %v5491_v21 = vadd.f32 %v10854_v19, %v5490_v8 }
 0xd4b   : > { %5570 = vst [vmem:[%s10861_s29 + $0x40] sm:$0xff] %v5491_v21 }
 0xd4e   : > { %4516 = vadd.xlane.f32.xlu2 %v4515_v50 }
 0xd4f   : > { %v4496_v62 = vpop.xlane.xlu0 %4495 }
 0xd50   : > { %7003 = vrcp.f32 %v4496_v62  ;;  %v5493_v5 = vpop.f32.mrf.mxu0  ;;  %v6480_v62 = vunpack.i.h.bf16 %v6478_v29 }
 0xd51   : > { %v5494_v10 = vadd.f32 %v10854_v19, %v5493_v5  ;;  %7005 = vrcp.f32 %v12121_v14  ;;  %v12122_v19 = vpack.i.bf16 %v10646_v56, %v10601_v26  ;;  %v4512_v26 = vsel %vm918_vm1, %v11029_v12, 0.0 }
 0xd52   : > { %7007 = vrcp.f32 %v12124_v58 }
 0xd53   : > { %5571 = vst [vmem:[%s10861_s29 + $0x48] sm:$0xff] %v5494_v10  ;;  %7009 = vrcp.f32 %v12125_v48  ;;  %v12134_v10 = vld [vmem:[#allocation135_spill] sm:$0xff] }
 0xd54   : > { %7011 = vrcp.f32 %v12128_v57 }
 0xd55   : > { %7013 = vrcp.f32 %v12129_v51 }
 0xd56   : > { %v7004_v33 = vpop.eup %7003  ;;  %4522 = vadd.xlane.f32.xlu2 %v4521_v44  ;;  %7015 = vrcp.f32 %v12132_v20 }
 0xd57   : > { %v4936_v49 = vmul.f32 %v7004_v33, %v4785_v22  ;;  %v7006_v0 = vpop.eup %7005  ;;  %v6488_v18 = vpop.permute.xlu2 %6487 }
 0xd58   : > { %v1513_v3 = vmul.f32 %v7006_v0, %v12123_v1  ;;  %v7008_v56 = vpop.eup %7007  ;;  %v6489_v59 = vunpack.i.l.bf16 %v6488_v18  ;;  %v6490_v33 = vunpack.i.h.bf16 %v6488_v18  ;;  %v4502_v14 = vpop.xlane.xlu0 %4501  ;;  %v11211_v0 = vld [vmem:[%s11378_s4] ss:$0 sm:$0xff] }
 0xd59   : > { %v6516_v4 = vpack.i.bf16 %v4936_v49, %v4935_v46  ;;  %v1514_v28 = vmul.f32 %v7008_v56, %v12126_v42  ;;  %v7010_v9 = vpop.eup %7009  ;;  %7017 = vrcp.f32 %v4502_v14  ;;  %v4859_v1 = vpop.f32.mrf.mxu3  ;;  %v4518_v14 = vsel %vm918_vm1, %v11052_v38, 0.0 }
 0xd5a   : > { %v5346_v37 = vsel %vm5331_vm2, %v1513_v3, %v6464_v24  ;;  %v1515_v54 = vmul.f32 %v7010_v9, %v12130_v40  ;;  %v7012_v61 = vpop.eup %7011  ;;  %v4788_v24 = vpop.f32.mrf.mxu2 }
 0xd5b   : > { %6517 = vrot.lane.b32.xlu1 %v6516_v4, %s7088_s22  ;;  %v5378_v55 = vsel %vm918_vm1, %v5346_v37, %v6469_v7  ;;  %v5347_v27 = vsel %vm5331_vm2, %v1514_v28, %v6465_v17  ;;  %v7014_v21 = vpop.eup %7013  ;;  %v2684_v50 = vmul.f32 %v7012_v61, %v12133_v43  ;;  %v12138_v61 = vld [vmem:[#allocation48_spill] sm:$0xff] }
 0xd5c   : > { %v5379_v60 = vsel %vm918_vm1, %v5347_v27, %v6470_v41  ;;  %v5348_v23 = vsel %vm5331_vm2, %v1515_v54, %v6479_v16  ;;  %v7016_v5 = vpop.eup %7015  ;;  %v2683_v6 = vmul.f32 %v7014_v21, %v12134_v10 }
 0xd5d   : > { %v5380_v8 = vsel %vm918_vm1, %v5348_v23, %v6484_v15  ;;  %v1516_v44 = vmul.f32 %v7016_v5, %v12135_v36  ;;  %v12136_v15 = vld [vmem:[#allocation115_spill] sm:$0xff] }
 0xd5e   : > { %v5413_v34 = vsel %vm5396_vm3, %v5380_v8, %v6489_v59  ;;  %v6536_v22 = vpack.i.bf16 %v2684_v50, %v2683_v6 }
 0xd5f   : > { %v5349_v46 = vsel %vm5331_vm2, %v1516_v44, %v6480_v62 }
 0xd60   : > { %v5381_v49 = vsel %vm918_vm1, %v5349_v46, %v6485_v63  ;;  %v4505_v58 = vpop.xlane.xlu0 %4504  ;;  %v12139_v63 = vld [vmem:[#allocation147_spill] sm:$0xff] }
 0xd61   : > { %v5414_v4 = vsel %vm5396_vm3, %v5381_v49, %v6490_v33  ;;  %v4862_v42 = vpop.f32.mrf.mxu3 }
 0xd63   : > { %6527 = vrot.lane.b32.xlu1 %v12122_v19, %s7093_s28 }
 0xd67   : > { %v6473_v52 = vpop.permute.xlu1 %6472 }
 0xd68   : > { %v6474_v30 = vunpack.i.l.bf16 %v6473_v52  ;;  %v6475_v32 = vunpack.i.h.bf16 %v6473_v52 }
 0xd69   : > { %v4865_v51 = vpop.f32.mrf.mxu3 }
 0xd6a   : > { %v5411_v39 = vsel %vm5396_vm3, %v5378_v55, %v6474_v30  ;;  %v5412_v12 = vsel %vm5396_vm3, %v5379_v60, %v6475_v32  ;;  %v7018_v30 = vpop.eup %7017  ;;  %v4791_v55 = vpop.f32.mrf.mxu2 }
 0xd6b   : > { %5507 = vmatmul.f32.gmra.mxu0 %v5411_v39  ;;  %v4938_v39 = vmul.f32 %v7018_v30, %v4791_v55  ;;  %v4524_v55 = vsel %vm918_vm1, %v11075_v2, 0.0 }
 0xd6d   : > { %4513 = vadd.xlane.f32.xlu0 %v4512_v26 }
 0xd6e   : > { %6542 = vrot.lane.b32.xlu2 %v12127_v45, %s7093_s28 }
 0xd71   : > { %v4868_v2 = vpop.f32.mrf.mxu3 }
 0xd73   : > { %5510 = vmatmul.f32.gmra.mxu0 %v5412_v12  ;;  %v6493_v12 = vpop.permute.xlu2 %6492 }
 0xd74   : > { %v6494_v59 = vunpack.i.l.bf16 %v6493_v12  ;;  %v6495_v5 = vunpack.i.h.bf16 %v6493_v12 }
 0xd76   : > { %6557 = vrot.lane.b32.xlu2 %v12131_v11, %s7093_s28  ;;  %v12137_v11 = vld [vmem:[#allocation4_spill] sm:$0xff] }
 0xd7b   : > { %5513 = vmatmul.f32.gmra.mxu0 %v5413_v34  ;;  %v6498_v40 = vpop.permute.xlu2 %6497 }
 0xd7c   : > { %v6499_v20 = vunpack.i.l.bf16 %v6498_v40  ;;  %v6500_v6 = vunpack.i.h.bf16 %v6498_v40 }
 0xd81   : > { %6537 = vrot.lane.b32.xlu0 %v6536_v22, %s7096_s7 }
 0xd83   : > { %5516 = vmatmul.f32.gmra.mxu0 %v5414_v4  ;;  %v6508_v10 = vpop.permute.xlu2 %6507  ;;  %v12140_v4 = vld [vmem:[#allocation43_spill] sm:$0xff] }
 0xd8b   : > { %v6513_v49 = vpop.permute.xlu2 %6512 }
 0xd8d   : > { %v5496_v29 = vpop.f32.mrf.mxu0 }
 0xd8e   : > { %v5497_v19 = vadd.f32 %v11211_v0, %v5496_v29  ;;  %v6509_v29 = vunpack.i.l.bf16 %v6508_v10 }
 0xd90   : > { %5572 = vst [vmem:[%s10861_s29 + $0x50] sm:$0xff] %v5497_v19 }
 0xd92   : > { %v4499_v7 = vpop.xlane.xlu1 %4498 }
 0xd93   : > { %7019 = vrcp.f32 %v4499_v7  ;;  %v6514_v7 = vunpack.i.l.bf16 %v6513_v49 }
 0xd94   : > { %7021 = vrcp.f32 %v4505_v58 }
 0xd95   : > { %v5499_v3 = vpop.f32.mrf.mxu0 }
 0xd96   : > { %v5500_v52 = vadd.f32 %v11211_v0, %v5499_v3 }
 0xd98   : > { %5573 = vst [vmem:[%s10861_s29 + $0x58] sm:$0xff] %v5500_v52  ;;  %v11239_v52 = vpop.permute.xlu2 %6522 }
 0xd99   : > { %v7020_v37 = vpop.eup %7019 }
 0xd9a   : > { %v4937_v31 = vmul.f32 %v7020_v37, %v4788_v24  ;;  %v4508_v17 = vpop.xlane.xlu1 %4507  ;;  %v7022_v41 = vpop.eup %7021  ;;  %v12141_v24 = vld [vmem:[#allocation25_spill] sm:$0xff] }
 0xd9b   : > { %7023 = vrcp.f32 %v4508_v17  ;;  %v4939_v32 = vmul.f32 %v7022_v41, %v4859_v1  ;;  %v12142_v1 = vld [vmem:[#allocation51_spill] sm:$0xff]  ;;  %v12143_v17 = vld [vmem:[#allocation17_spill] sm:$0xff] }
 0xd9c   : > { %v6531_v26 = vpack.i.bf16 %v4938_v39, %v4937_v31 }
 0xd9d   : > { %v5502_v56 = vpop.f32.mrf.mxu0 }
 0xd9e   : > { %v5503_v48 = vadd.f32 %v11211_v0, %v5502_v56  ;;  %6532 = vrot.lane.b32.xlu1 %v6531_v26, %s7088_s22  ;;  %v6510_v26 = vunpack.i.h.bf16 %v6508_v10  ;;  %v6515_v56 = vunpack.i.h.bf16 %v6513_v49  ;;  %v12151_v10 = vld [vmem:[#allocation179_spill] sm:$0xff] }
 0xda0   : > { %5574 = vst [vmem:[%s10861_s29 + $0x60] sm:$0xff] %v5503_v48  ;;  %v12144_v48 = vld [vmem:[#allocation65_spill] sm:$0xff] }
 0xda1   : > { %v7024_v28 = vpop.eup %7023 }
 0xda2   : > { %v4940_v45 = vmul.f32 %v7024_v28, %v4862_v42  ;;  %v4511_v27 = vpop.xlane.xlu1 %4510  ;;  %v12145_v42 = vld [vmem:[#allocation180_spill] sm:$0xff] }
 0xda3   : > { %7025 = vrcp.f32 %v4511_v27 }
 0xda4   : > { %v6546_v60 = vpack.i.bf16 %v4940_v45, %v4939_v32  ;;  %7027 = vrcp.f32 %v12136_v15 }
 0xda5   : > { %v5505_v57 = vpop.f32.mrf.mxu0  ;;  %7029 = vrcp.f32 %v12137_v11 }
 0xda6   : > { %v5506_v9 = vadd.f32 %v11211_v0, %v5505_v57  ;;  %6547 = vrot.lane.b32.xlu0 %v6546_v60, %s7088_s22  ;;  %7031 = vrcp.f32 %v12140_v4 }
 0xda7   : > { %7033 = vrcp.f32 %v12141_v24 }
 0xda8   : > { %5575 = vst [vmem:[%s10861_s29 + $0x68] sm:$0xff] %v5506_v9  ;;  %7035 = vrcp.f32 %v12143_v17  ;;  %v12146_v9 = vld [vmem:[#allocation172_spill] sm:$0xff] }
 0xda9   : > { %v7026_v18 = vpop.eup %7025  ;;  %7037 = vrcp.f32 %v12145_v42  ;;  %v6525_v42 = vunpack.i.h.bf16 %v11239_v52 }
 0xdaa   : > { %v4941_v16 = vmul.f32 %v7026_v18, %v4865_v51  ;;  %v7028_v54 = vpop.eup %7027  ;;  %v12147_v51 = vld [vmem:[#allocation177_spill] sm:$0xff] }
 0xdab   : > { %v1517_v23 = vmul.f32 %v7028_v54, %v12138_v61  ;;  %v7030_v62 = vpop.eup %7029  ;;  %v12149_v61 = vld [vmem:[#allocation46_spill] sm:$0xff] }
 0xdac   : > { %5287 = vrot.lane.b32.xlu2 %v4941_v16, %s7088_s22  ;;  %v1518_v36 = vmul.f32 %v7030_v62, %v12139_v63  ;;  %v7032_v19 = vpop.eup %7031  ;;  %v12150_v62 = vld [vmem:[#allocation181_spill] sm:$0xff] }
 0xdad   : > { %v5350_v34 = vsel %vm5331_vm2, %v1517_v23, %v6494_v59  ;;  %v1519_v3 = vmul.f32 %v7032_v19, %v12142_v1  ;;  %v7034_v31 = vpop.eup %7033  ;;  %v4871_v59 = vpop.f32.mrf.mxu3 }
 0xdae   : > { %v5382_v43 = vsel %vm918_vm1, %v5350_v34, %v6499_v20  ;;  %v5351_v33 = vsel %vm5331_vm2, %v1518_v36, %v6495_v5  ;;  %v1520_v41 = vmul.f32 %v7034_v31, %v12144_v48  ;;  %v7036_v60 = vpop.eup %7035  ;;  %v12148_v20 = vld [vmem:[#allocation29_spill] sm:$0xff] }
 0xdaf   : > { %v5383_v22 = vsel %vm918_vm1, %v5351_v33, %v6500_v6  ;;  %v5352_v37 = vsel %vm5331_vm2, %v1519_v3, %v6509_v29  ;;  %v7038_v12 = vpop.eup %7037  ;;  %v2685_v18 = vmul.f32 %v7036_v60, %v12146_v9 }
 0xdb0   : > { %v5384_v39 = vsel %vm918_vm1, %v5352_v37, %v6514_v7  ;;  %v5353_v45 = vsel %vm5331_vm2, %v1520_v41, %v6510_v26  ;;  %v2686_v16 = vmul.f32 %v7038_v12, %v12147_v51  ;;  %v12154_v7 = vld [vmem:[#allocation126_spill] sm:$0xff] }
 0xdb1   : > { %v5385_v27 = vsel %vm918_vm1, %v5353_v45, %v6515_v56 }
 0xdb2   : > { %v6551_v40 = vpack.i.bf16 %v2686_v16, %v2685_v18  ;;  %v12159_v16 = vld [vmem:[#allocation36_spill] sm:$0xff] }
 0xdb5   : > { %v6503_v8 = vpop.permute.xlu0 %6502  ;;  %v11275_v49 = vpop.f32.mrf.mxu3 }
 0xdb6   : > { %v6504_v21 = vunpack.i.l.bf16 %v6503_v8  ;;  %v6505_v44 = vunpack.i.h.bf16 %v6503_v8 }
 0xdb8   : > { %v5415_v50 = vsel %vm5396_vm3, %v5382_v43, %v6504_v21  ;;  %v5416_v46 = vsel %vm5396_vm3, %v5383_v22, %v6505_v44 }
 0xdb9   : > { %5519 = vmatmul.f32.gmra.mxu0 %v5415_v50 }
 0xdbd   : > { %v4877_v1 = vpop.f32.mrf.mxu3 }
 0xdc1   : > { %5522 = vmatmul.f32.gmra.mxu0 %v5416_v46  ;;  %v4517_v32 = vpop.xlane.xlu2 %4516 }
 0xdc2   : > { %7039 = vrcp.f32 %v4517_v32  ;;  %v12157_v32 = vld [vmem:[#allocation122_spill] sm:$0xff] }
 0xdc8   : > { %4519 = vadd.xlane.f32.xlu1 %v4518_v14  ;;  %v7040_v15 = vpop.eup %7039  ;;  %v12153_v14 = vld [vmem:[#allocation182_spill] sm:$0xff] }
 0xdc9   : > { %v4943_v11 = vmul.f32 %v7040_v15, %v4871_v59 }
 0xdcd   : > { %v6518_v58 = vpop.permute.xlu1 %6517 }
 0xdce   : > { %v6519_v30 = vunpack.i.l.bf16 %v6518_v58  ;;  %v6520_v28 = vunpack.i.h.bf16 %v6518_v58 }
 0xdd0   : > { %4525 = vadd.xlane.f32.xlu0 %v4524_v55  ;;  %v5417_v38 = vsel %vm5396_vm3, %v5384_v39, %v6519_v30  ;;  %v5418_v57 = vsel %vm5396_vm3, %v5385_v27, %v6520_v28  ;;  %v6524_v30 = vunpack.i.l.bf16 %v11239_v52  ;;  %v12155_v55 = vld [vmem:[#allocation149_spill] sm:$0xff]  ;;  %v12160_v52 = vld [vmem:[#allocation155_spill] sm:$0xff] }
 0xdd1   : > { %5525 = vmatmul.f32.gmra.mxu0 %v5417_v38  ;;  %v12156_v38 = vld [vmem:[#allocation112_spill] sm:$0xff] }
 0xdd5   : > { %v6528_v3 = vpop.permute.xlu1 %6527 }
 0xdd6   : > { %v6529_v37 = vunpack.i.l.bf16 %v6528_v3  ;;  %v6530_v45 = vunpack.i.h.bf16 %v6528_v3 }
 0xdd9   : > { %5528 = vmatmul.f32.gmra.mxu0 %v5418_v57 }
 0xde0   : > { %v4514_v54 = vpop.xlane.xlu0 %4513 }
 0xde1   : > { %7041 = vrcp.f32 %v4514_v54  ;;  %6552 = vrot.lane.b32.xlu1 %v6551_v40, %s7096_s7 }
 0xde2   : > { %7043 = vrcp.f32 %v12148_v20 }
 0xde3   : > { %7045 = vrcp.f32 %v12149_v61 }
 0xde4   : > { %5291 = vrot.lane.b32.xlu0 %v4943_v11, %s7088_s22 }
 0xde7   : > { %v7042_v23 = vpop.eup %7041 }
 0xde8   : > { %v5508_v8 = vpop.f32.mrf.mxu0  ;;  %v4942_v21 = vmul.f32 %v7042_v23, %v4868_v2  ;;  %v7044_v34 = vpop.eup %7043  ;;  %v12158_v2 = vld [vmem:[#allocation68_spill] sm:$0xff] }
 0xde9   : > { %v5509_v43 = vadd.f32 %v11211_v0, %v5508_v8  ;;  %5163 = vrot.lane.b32.xlu1 %v10707_v53, %s7093_s28  ;;  %v7046_v50 = vpop.eup %7045  ;;  %v2688_v5 = vmul.f32 %v7044_v34, %v12150_v62  ;;  %v12152_v53 = vld [vmem:[#allocation101_spill] sm:$0xff] }
 0xdea   : > { %5289 = vrot.lane.b32.xlu2 %v4942_v21, %s7088_s22  ;;  %v2687_v6 = vmul.f32 %v7046_v50, %v12151_v10  ;;  %7047 = vrcp.f32 %v12152_v53  ;;  %v12161_v34 = vld [vmem:[#allocation73_spill] sm:$0xff] }
 0xdeb   : > { %5576 = vst [vmem:[%s10861_s29 + $0x70] sm:$0xff] %v5509_v43 }
 0xdec   : > { %5169 = vrot.lane.b32.xlu0 %v10737_v13, %s7093_s28  ;;  %v6561_v36 = vpack.i.bf16 %v2688_v5, %v2687_v6  ;;  %v4523_v13 = vpop.xlane.xlu2 %4522 }
 0xded   : > { %7049 = vrcp.f32 %v4523_v13 }
 0xdee   : > { %7051 = vrcp.f32 %v12154_v7  ;;  %v12163_v7 = vld [vmem:[#allocation127_spill] sm:$0xff] }
 0xdef   : > { %7053 = vrcp.f32 %v12156_v38  ;;  %v12165_v38 = vld [vmem:[#allocation40_spill] sm:$0xff] }
 0xdf0   : > { %v5511_v63 = vpop.f32.mrf.mxu0  ;;  %v7048_v46 = vpop.eup %7047  ;;  %7055 = vrcp.f32 %v12157_v32 }
 0xdf1   : > { %v5512_v44 = vadd.f32 %v11211_v0, %v5511_v63  ;;  %v2689_v29 = vmul.f32 %v7048_v46, %v12153_v14  ;;  %7057 = vrcp.f32 %v12159_v16 }
 0xdf2   : > { %6562 = vrot.lane.b32.xlu2 %v6561_v36, %s7096_s7 }
 0xdf3   : > { %5577 = vst [vmem:[%s10861_s29 + $0x78] sm:$0xff] %v5512_v44  ;;  %v7050_v24 = vpop.eup %7049  ;;  %v6538_v41 = vpop.permute.xlu0 %6537 }
 0xdf4   : > { %v7052_v58 = vpop.eup %7051  ;;  %v6539_v9 = vunpack.i.l.bf16 %v6538_v41  ;;  %v6543_v54 = vpop.permute.xlu2 %6542  ;;  %v6540_v8 = vunpack.i.h.bf16 %v6538_v41 }
 0xdf5   : > { %v1521_v39 = vmul.f32 %v7052_v58, %v12155_v55  ;;  %v7054_v28 = vpop.eup %7053  ;;  %v6544_v20 = vunpack.i.l.bf16 %v6543_v54  ;;  %v6545_v5 = vunpack.i.h.bf16 %v6543_v54 }
 0xdf6   : > { %v1522_v27 = vmul.f32 %v7054_v28, %v12158_v2  ;;  %v7056_v51 = vpop.eup %7055  ;;  %v12167_v2 = vld [vmem:[#allocation158_spill] sm:$0xff] }
 0xdf7   : > { %v5354_v26 = vsel %vm5331_vm2, %v1521_v39, %v6524_v30  ;;  %v1523_v40 = vmul.f32 %v7056_v51, %v12160_v52  ;;  %v7058_v61 = vpop.eup %7057 }
 0xdf8   : > { %v5514_v33 = vpop.f32.mrf.mxu0  ;;  %v5386_v56 = vsel %vm918_vm1, %v5354_v26, %v6529_v37  ;;  %v5355_v57 = vsel %vm5331_vm2, %v1522_v27, %v6525_v42  ;;  %v1524_v43 = vmul.f32 %v7058_v61, %v12161_v34 }
 0xdf9   : > { %v5515_v22 = vadd.f32 %v11211_v0, %v5514_v33  ;;  %v5387_v12 = vsel %vm918_vm1, %v5355_v57, %v6530_v45  ;;  %v5356_v11 = vsel %vm5331_vm2, %v1523_v40, %v6539_v9  ;;  %v12168_v57 = vld [vmem:[#allocation24_spill] sm:$0xff]  ;;  %v12169_v40 = vld [vmem:[#allocation159_spill] sm:$0xff] }
 0xdfa   : > { %5165 = vrot.lane.b32.xlu2 %v10726_v47, %s7093_s28  ;;  %v4945_v47 = vmul.f32 %v7050_v24, %v4877_v1  ;;  %v5388_v23 = vsel %vm918_vm1, %v5356_v11, %v6544_v20  ;;  %v5357_v62 = vsel %vm5331_vm2, %v1524_v43, %v6540_v8  ;;  %v4880_v24 = vpop.f32.mrf.mxu3 }
 0xdfb   : > { %5578 = vst [vmem:[%s10861_s29 + $0x80] sm:$0xff] %v5515_v22  ;;  %v5389_v10 = vsel %vm918_vm1, %v5357_v62, %v6545_v5 }
 0xdfc   : > { %v6558_v13 = vpop.permute.xlu2 %6557 }
 0xdfd   : > { %v6560_v9 = vunpack.i.h.bf16 %v6558_v13 }
 0xe00   : > { %v5517_v4 = vpop.f32.mrf.mxu0 }
 0xe01   : > { %v5518_v19 = vadd.f32 %v11211_v0, %v5517_v4 }
 0xe02   : > { %5039 = vrot.lane.b32.xlu2 %v2689_v29, %s7096_s7 }
 0xe03   : > { %5579 = vst [vmem:[%s10861_s29 + $0x88] sm:$0xff] %v5518_v19  ;;  %v12162_v19 = vld [vmem:[#allocation15_spill] sm:$0xff] }
 0xe06   : > { %v5288_v1 = vpop.permute.xlu2 %5287 }
 0xe0a   : > { %5295 = vrot.lane.b32.xlu2 %v4945_v47, %s7088_s22 }
 0xe10   : > { %v6533_v31 = vpop.permute.xlu1 %6532 }
 0xe11   : > { %v6534_v17 = vunpack.i.l.bf16 %v6533_v31  ;;  %v6535_v60 = vunpack.i.h.bf16 %v6533_v31 }
 0xe13   : > { %v5419_v48 = vsel %vm5396_vm3, %v5386_v56, %v6534_v17  ;;  %v5420_v18 = vsel %vm5396_vm3, %v5387_v12, %v6535_v60  ;;  %v12166_v17 = vld [vmem:[#allocation157_spill] sm:$0xff] }
 0xe14   : > { %5531 = vmatmul.f32.gmra.mxu0 %v5419_v48  ;;  %v6559_v48 = vunpack.i.l.bf16 %v6558_v13 }
 0xe18   : > { %v6548_v15 = vpop.permute.xlu0 %6547 }
 0xe19   : > { %v6549_v59 = vunpack.i.l.bf16 %v6548_v15  ;;  %v6550_v50 = vunpack.i.h.bf16 %v6548_v15 }
 0xe1b   : > { %v5421_v21 = vsel %vm5396_vm3, %v5388_v23, %v6549_v59  ;;  %v5422_v6 = vsel %vm5396_vm3, %v5389_v10, %v6550_v50 }
 0xe1c   : > { %5534 = vmatmul.f32.gmra.mxu0 %v5420_v18 }
 0xe24   : > { %5537 = vmatmul.f32.gmra.mxu0 %v5421_v21 }
 0xe2c   : > { %5540 = vmatmul.f32.gmra.mxu0 %v5422_v6  ;;  %v12170_v6 = vld [vmem:[#allocation133_spill] sm:$0xff] }
 0xe36   : > { %v5520_v63 = vpop.f32.mrf.mxu0 }
 0xe37   : > { %v5521_v36 = vadd.f32 %v11211_v0, %v5520_v63 }
 0xe39   : > { %5580 = vst [vmem:[%s10861_s29 + $0x90] sm:$0xff] %v5521_v36 }
 0xe3b   : > { %v4520_v44 = vpop.xlane.xlu1 %4519 }
 0xe3c   : > { %7059 = vrcp.f32 %v4520_v44 }
 0xe3d   : > { %7061 = vrcp.f32 %v10796_v25 }
 0xe3e   : > { %v5523_v53 = vpop.f32.mrf.mxu0 }
 0xe3f   : > { %v5524_v33 = vadd.f32 %v11211_v0, %v5523_v53  ;;  %v12171_v53 = vld [vmem:[#allocation53_spill] sm:$0xff] }
 0xe41   : > { %5581 = vst [vmem:[%s10861_s29 + $0x98] sm:$0xff] %v5524_v33  ;;  %v12172_v33 = vld [vmem:[#allocation160_spill] sm:$0xff] }
 0xe42   : > { %v7060_v22 = vpop.eup %7059 }
 0xe43   : > { %v4526_v46 = vpop.xlane.xlu0 %4525  ;;  %v4944_v4 = vmul.f32 %v7060_v22, %v11275_v49  ;;  %v7062_v14 = vpop.eup %7061  ;;  %v12164_v49 = vld [vmem:[#allocation12_spill] sm:$0xff] }
 0xe44   : > { %7063 = vrcp.f32 %v4526_v46  ;;  %v3817_v3 = vmul.f32 %v7062_v14, %v10730_v35  ;;  %v5290_v55 = vpop.permute.xlu2 %5289 }
 0xe45   : > { %5293 = vrot.lane.b32.xlu1 %v4944_v4, %s7088_s22  ;;  %7065 = vrcp.f32 %v12162_v19 }
 0xe46   : > { %7067 = vrcp.f32 %v12163_v7  ;;  %v12174_v7 = vld [vmem:[#allocation70_spill] sm:$0xff] }
 0xe47   : > { %7069 = vrcp.f32 %v12164_v49 }
 0xe48   : > { %7071 = vrcp.f32 %v12168_v57 }
 0xe49   : > { %7073 = vrcp.f32 %v12170_v6 }
 0xe4a   : > { %v7064_v29 = vpop.eup %7063  ;;  %7075 = vrcp.f32 %v12171_v53 }
 0xe4b   : > { %v4946_v47 = vmul.f32 %v7064_v29, %v4880_v24  ;;  %v7066_v30 = vpop.eup %7065  ;;  %v12173_v24 = vld [vmem:[#allocation148_spill] sm:$0xff] }
 0xe4c   : > { %v7068_v37 = vpop.eup %7067  ;;  %v2690_v31 = vmul.f32 %v7066_v30, %v12165_v38  ;;  %v6563_v18 = vpop.permute.xlu2 %6562  ;;  %7077 = vrcp.f32 %v12173_v24 }
 0xe4d   : > { %5167 = vrot.lane.b32.xlu1 %v3817_v3, %s7093_s28  ;;  %5297 = vrot.lane.b32.xlu2 %v4946_v47, %s7088_s22  ;;  %v1525_v35 = vmul.f32 %v7068_v37, %v12166_v17  ;;  %v7070_v56 = vpop.eup %7069  ;;  %v6564_v15 = vunpack.i.l.bf16 %v6563_v18  ;;  %v6565_v44 = vunpack.i.h.bf16 %v6563_v18  ;;  %v12175_v37 = vld [vmem:[#allocation161_spill] sm:$0xff] }
 0xe4e   : > { %v5526_v25 = vpop.f32.mrf.mxu0  ;;  %v1526_v27 = vmul.f32 %v7070_v56, %v12167_v2  ;;  %v7072_v16 = vpop.eup %7071 }
 0xe4f   : > { %v5527_v58 = vadd.f32 %v11211_v0, %v5526_v25  ;;  %v1527_v54 = vmul.f32 %v7072_v16, %v12169_v40  ;;  %v7074_v36 = vpop.eup %7073 }
 0xe50   : > { %v1528_v22 = vmul.f32 %v7074_v36, %v12172_v33  ;;  %v7076_v19 = vpop.eup %7075 }
 0xe51   : > { %5582 = vst [vmem:[%s10861_s29 + $0xa0] sm:$0xff] %v5527_v58  ;;  %v5360_v11 = vsel %vm5331_vm2, %v1527_v54, %v6564_v15 }
 0xe52   : > { %v5361_v13 = vsel %vm5331_vm2, %v1528_v22, %v6565_v44  ;;  %v7078_v30 = vpop.eup %7077 }
 0xe53   : > { %v6553_v39 = vpop.permute.xlu1 %6552 }
 0xe54   : > { %v6554_v26 = vunpack.i.l.bf16 %v6553_v39  ;;  %v6555_v41 = vunpack.i.h.bf16 %v6553_v39  ;;  %v5166_v63 = vpop.permute.xlu2 %5165 }
 0xe55   : > { %5041 = vrot.lane.b32.xlu1 %v2690_v31, %s7096_s7  ;;  %v5393_v4 = vsel %vm918_vm1, %v5361_v13, %v5166_v63 }
 0xe56   : > { %v5529_v42 = vpop.f32.mrf.mxu0  ;;  %v5358_v28 = vsel %vm5331_vm2, %v1525_v35, %v6554_v26  ;;  %v5359_v12 = vsel %vm5331_vm2, %v1526_v27, %v6555_v41  ;;  %v5292_v61 = vpop.permute.xlu0 %5291 }
 0xe57   : > { %v5530_v32 = vadd.f32 %v11211_v0, %v5529_v42  ;;  %v5390_v45 = vsel %vm918_vm1, %v5358_v28, %v6559_v48  ;;  %v5391_v51 = vsel %vm918_vm1, %v5359_v12, %v6560_v9 }
 0xe58   : > { %v5423_v60 = vsel %vm5396_vm3, %v5390_v45, %v5288_v1  ;;  %v5424_v52 = vsel %vm5396_vm3, %v5391_v51, %v5290_v55  ;;  %v1529_v1 = vmul.f32 %v7076_v19, %v12174_v7  ;;  %v1530_v55 = vmul.f32 %v7078_v30, %v12175_v37 }
 0xe59   : > { %5583 = vst [vmem:[%s10861_s29 + $0xa8] sm:$0xff] %v5530_v32  ;;  %5543 = vmatmul.f32.gmra.mxu0 %v5423_v60 }
 0xe5b   : > { %v5164_v59 = vpop.permute.xlu1 %5163 }
 0xe5c   : > { %v5392_v20 = vsel %vm918_vm1, %v5360_v11, %v5164_v59  ;;  %v5040_v46 = vpop.permute.xlu2 %5039 }
 0xe5d   : > { %v5425_v23 = vsel %vm5396_vm3, %v5392_v20, %v5292_v61  ;;  %v5362_v3 = vsel %vm5331_vm2, %v1529_v1, %v5040_v46 }
 0xe5e   : > { %v5170_v38 = vpop.permute.xlu0 %5169 }
 0xe61   : > { %5546 = vmatmul.f32.gmra.mxu0 %v5424_v52 }
 0xe64   : > { %v5296_v25 = vpop.permute.xlu2 %5295 }
 0xe69   : > { %5549 = vmatmul.f32.gmra.mxu0 %v5425_v23 }
 0xe91   : > { %v5532_v8 = vpop.f32.mrf.mxu0 }
 0xe92   : > { %v5533_v21 = vadd.f32 %v11211_v0, %v5532_v8 }
 0xe94   : > { %5584 = vst [vmem:[%s10861_s29 + $0xb0] sm:$0xff] %v5533_v21 }
 0xe99   : > { %v5535_v34 = vpop.f32.mrf.mxu0 }
 0xe9a   : > { %v5536_v43 = vadd.f32 %v11211_v0, %v5535_v34 }
 0xe9c   : > { %5585 = vst [vmem:[%s10861_s29 + $0xb8] sm:$0xff] %v5536_v43 }
 0xea1   : > { %v5538_v50 = vpop.f32.mrf.mxu0 }
 0xea2   : > { %v5539_v62 = vadd.f32 %v11211_v0, %v5538_v50 }
 0xea4   : > { %5586 = vst [vmem:[%s10861_s29 + $0xc0] sm:$0xff] %v5539_v62 }
 0xea7   : > { %v5298_v17 = vpop.permute.xlu2 %5297 }
 0xea9   : > { %v5541_v5 = vpop.f32.mrf.mxu0 }
 0xeaa   : > { %v5542_v10 = vadd.f32 %v11211_v0, %v5541_v5 }
 0xeac   : > { %5587 = vst [vmem:[%s10861_s29 + $0xc8] sm:$0xff] %v5542_v10 }
 0xeb7   : > { %v5294_v14 = vpop.permute.xlu1 %5293 }
 0xeb8   : > { %v5426_v29 = vsel %vm5396_vm3, %v5393_v4, %v5294_v14 }
 0xeb9   : > { %5552 = vmatmul.f32.gmra.mxu0 %v5426_v29 }
 0xebf   : > { %v5168_v47 = vpop.permute.xlu1 %5167 }
 0xec0   : > { %v5394_v49 = vsel %vm918_vm1, %v5362_v3, %v5168_v47 }
 0xec1   : > { %v5427_v58 = vsel %vm5396_vm3, %v5394_v49, %v5296_v25 }
 0xec2   : > { %5555 = vmatmul.f32.gmra.mxu0 %v5427_v58 }
 0xec7   : > { %v5042_v39 = vpop.permute.xlu1 %5041 }
 0xec8   : > { %v5363_v31 = vsel %vm5331_vm2, %v1530_v55, %v5042_v39 }
 0xec9   : > { %v5395_v35 = vsel %vm918_vm1, %v5363_v31, %v5170_v38 }
 0xeca   : > { %v5428_v26 = vsel %vm5396_vm3, %v5395_v35, %v5298_v17 }
 0xecb   : > { %5558 = vmatmul.f32.gmra.mxu0 %v5428_v26 }
 0xed6   : > { %v5544_v56 = vpop.f32.mrf.mxu0 }
 0xed7   : > { %v5545_v48 = vadd.f32 %v11211_v0, %v5544_v56 }
 0xed9   : > { %5588 = vst [vmem:[%s10861_s29 + $0xd0] sm:$0xff] %v5545_v48 }
 0xede   : > { %v5547_v41 = vpop.f32.mrf.mxu0 }
 0xedf   : > { %v5548_v42 = vadd.f32 %v11211_v0, %v5547_v41 }
 0xee1   : > { %5589 = vst [vmem:[%s10861_s29 + $0xd8] sm:$0xff] %v5548_v42 }
 0xee6   : > { %v5550_v28 = vpop.f32.mrf.mxu0 }
 0xee7   : > { %v5551_v32 = vadd.f32 %v11211_v0, %v5550_v28 }
 0xee9   : > { %5590 = vst [vmem:[%s10861_s29 + $0xe0] sm:$0xff] %v5551_v32 }
 0xf36   : > { %v5553_v45 = vpop.f32.mrf.mxu0 }
 0xf37   : > { %v5554_v2 = vadd.f32 %v11211_v0, %v5553_v45 }
 0xf39   : > { %5591 = vst [vmem:[%s10861_s29 + $0xe8] sm:$0xff] %v5554_v2 }
 0xf3f   : > { %v5556_v27 = vpop.f32.mrf.mxu0 }
 0xf40   : > { %v5557_v60 = vadd.f32 %v11211_v0, %v5556_v27 }
 0xf42   : > { %5592 = vst [vmem:[%s10861_s29 + $0xf0] sm:$0xff] %v5557_v60 }
 0xf48   : > { %v5559_v57 = vpop.f32.mrf.mxu0 }
 0xf49   : > { %v5560_v12 = vadd.f32 %v11211_v0, %v5559_v57 }
 0xf4b   : > { %5593 = vst [vmem:[%s10861_s29 + $0xf8] sm:$0xff] %v5560_v12 }
 0xf4c PF: > { %s15_s18 = sadd.s32 1, %s7086_s18  }
 0xf4d   : > { %p12_p4 = scmp.ge.s32.totalorder %s15_s18, 4  }
 0xf4f   :  { %14 = sbr.rel (!%p12_p4) target bundleno = 1 (0x1), region = 70 }

</bundles_post_ra>
